<compile_context>
chip_gen: v7x
topology: tpu7x:2x2x1
jax: 0.10.0
libtpu: 0.0.40
codegen_flags: <defaults>
</compile_context>

<pallas_src>
import functools

import jax
import jax.numpy as jnp
import numpy as np
from jax import lax
from jax.experimental import pallas as pl
from jax.experimental.pallas import tpu as pltpu


CIN_PAD = 8    # real input channels (1) zero-padded to 8 (zero weights -> exact)
COUT_PAD = 8   # final conv's 2 output channels zero-padded to 8 sublanes (4x, not 64x)
HALO = 8       # zero rows in front of every sample (conv halo + batch separator)

# Set to jnp.bfloat16 for ~3x MXU throughput on v6e/v7x if exactness can be relaxed.
MXU_DTYPE = jnp.float32


def _mm(a, b):
    return jnp.dot(a.astype(MXU_DTYPE), b.astype(MXU_DTYPE),
                   preferred_element_type=jnp.float32)


# -----------------------------------------------------------------------------
# Fused forward kernel (BATCH_TILE samples per grid step, flattened into a slab)
# -----------------------------------------------------------------------------

def _unet_fused_kernel(x_ref, pe_ref, po_ref, mf_ref, mh_ref,
                       w1_ref, w2_ref, w3_ref, w4_ref, wt_ref, w5_ref,
                       b1_ref, b2_ref, b3_ref, b4_ref, bt_ref, b5_ref,
                       o_ref):
    mask_f = mf_ref[...]          # (Mf, 1): 1 on data rows, 0 on separator rows
    mask_h = mh_ref[...]          # (Mh, 1)

    def shift_down(a):            # a[r-1] (cyclic; wrap rows are zero / masked later)
        return pltpu.roll(a, 1, axis=0)

    def shift_up(a):              # a[r+1] (cyclic, expressed as a non-negative roll)
        return pltpu.roll(a, a.shape[0] - 1, axis=0)

    def conv3(slab, w_ref, b_ref, relu, mask=None):
        # Conv1d(k=3, padding=1) over every sample in the slab: the zero separator
        # rows provide the halo; pltpu.roll provides the +/-1 shifted operands.
        acc = (_mm(shift_down(slab), w_ref[0])
               + _mm(slab, w_ref[1])
               + _mm(shift_up(slab), w_ref[2]))
        acc = acc + b_ref[...]
        if relu:
            acc = jnp.maximum(acc, 0.0)
        if mask is not None:
            acc = acc * mask      # re-zero separators feeding a downstream halo
        return acc

    # ---- encoder ----
    h = conv3(x_ref[...], w1_ref, b1_ref, relu=True, mask=mask_f)     # (Mf, 64)
    h = conv3(h, w2_ref, b2_ref, relu=True)                           # (Mf, 128)

    # MaxPool1d(2): constant one-hot row selectors (hoisted to the host).  Separator
    # rows of the half-resolution slab come out exactly 0.
    h = jnp.maximum(_mm(pe_ref[...], h), _mm(po_ref[...], h))         # (Mh, 128)

    # ---- middle ----
    h = conv3(h, w3_ref, b3_ref, relu=True, mask=mask_h)              # (Mh, 256)

    # ---- decoder ----
    h = conv3(h, w4_ref, b4_ref, relu=True)                           # (Mh, 128)

    # ConvTranspose1d(k=2, s=2) + ReLU, kept as half-resolution even/odd streams.
    # Masking their separators makes them valid zero padding for the fused conv5.
    y_even = jnp.maximum(_mm(h, wt_ref[0]) + bt_ref[...], 0.0) * mask_h   # (Mh, 64)
    y_odd = jnp.maximum(_mm(h, wt_ref[1]) + bt_ref[...], 0.0) * mask_h    # (Mh, 64)

    # conv5 fused with the stride-2 upsample (up[2m]=y_even[m], up[2m+1]=y_odd[m]).
    out_even = (_mm(shift_down(y_odd), w5_ref[0]) + _mm(y_even, w5_ref[1])
                + _mm(y_odd, w5_ref[2]) + b5_ref[...])                # (Mh, 8)
    out_odd = (_mm(y_even, w5_ref[0]) + _mm(y_odd, w5_ref[1])
               + _mm(shift_up(y_even), w5_ref[2]) + b5_ref[...])      # (Mh, 8)

    # Store transposed so the (long) length axis is lane-dense: sublanes 0..7 hold the
    # even-position channels (2 real + 6 pad), sublanes 8..15 the odd-position ones.
    o_ref[0] = jnp.transpose(jnp.concatenate([out_even, out_odd], axis=1), (1, 0))


# -----------------------------------------------------------------------------
# Host-side constants: maxpool selectors + separator masks (hoisted out of kernel)
# -----------------------------------------------------------------------------

def _pool_selectors_and_masks(bt, l):
    lh = l // 2
    sf, sh = l + HALO, lh + HALO
    mf, mh = bt * sf, bt * sh
    pe = np.zeros((mh, mf), np.float32)
    po = np.zeros((mh, mf), np.float32)
    for i in range(bt):
        for m in range(lh):
            r = i * sh + HALO + m
            pe[r, i * sf + HALO + 2 * m] = 1.0
            po[r, i * sf + HALO + 2 * m + 1] = 1.0
    mask_f = np.zeros((mf, 1), np.float32)
    mask_h = np.zeros((mh, 1), np.float32)
    for i in range(bt):
        mask_f[i * sf + HALO:(i + 1) * sf] = 1.0
        mask_h[i * sh + HALO:(i + 1) * sh] = 1.0
    return (jnp.asarray(pe), jnp.asarray(po),
            jnp.asarray(mask_f), jnp.asarray(mask_h))


# -----------------------------------------------------------------------------
# Public wrapper (PyTorch NCL layout in / out)
# -----------------------------------------------------------------------------

def unet_audio_forward(x_ncl, params, batch_tile=8):
    """x_ncl: (N, 1, L) -> (N, 2, L), matching UNetAudio.forward."""
    n, cin, l = x_ncl.shape
    assert l % 16 == 0, "length must be a multiple of 16 (MaxPool(2) + 8-row halo)"
    assert n % batch_tile == 0, "batch must be a multiple of batch_tile"
    g = n // batch_tile                       # grid size; keep even (>=2) for v7x
    lh = l // 2
    sf, sh = l + HALO, lh + HALO
    mf, mh = batch_tile * sf, batch_tile * sh

    # NCL -> NLC, pad channels 1 -> 8, prepend 8 zero rows per sample and flatten all
    # samples into one slab; the zero rows are both the conv halo and the separator.
    x = jnp.transpose(x_ncl, (0, 2, 1)).astype(jnp.float32)
    x = jnp.pad(x, ((0, 0), (HALO, 0), (0, CIN_PAD - cin)))
    x_slab = x.reshape(n * sf, CIN_PAD)

    pe, po, mask_f, mask_h = _pool_selectors_and_masks(batch_tile, l)

    w_names = ('w1', 'w2', 'w3', 'w4', 'wt', 'w5')
    b_names = ('b1', 'b2', 'b3', 'b4', 'bt', 'b5')

    def _resident(shape):
        # full-extent block + constant index_map -> fetched once, kept resident
        return pl.BlockSpec(shape, lambda i, _s=shape: (0,) * len(_s))

    in_specs = [pl.BlockSpec((mf, CIN_PAD), lambda i: (i, 0))]
    in_specs += [_resident(a.shape) for a in (pe, po, mask_f, mask_h)]
    in_specs += [_resident(params[k].shape) for k in w_names]
    in_specs += [_resident(params[k].shape) for k in b_names]

    out = pl.pallas_call(
        _unet_fused_kernel,
        out_shape=jax.ShapeDtypeStruct((g, 2 * COUT_PAD, mh), jnp.float32),
        grid=(g,),
        in_specs=in_specs,
        out_specs=pl.BlockSpec((1, 2 * COUT_PAD, mh), lambda i: (i, 0, 0)),
        compiler_params=pltpu.CompilerParams(dimension_semantics=("parallel",)),
    )(x_slab, pe, po, mask_f, mask_h,
      *(params[k] for k in w_names), *(params[k] for k in b_names))

    # (g, 16, Mh) -> (N, 2, L): drop channel padding + separator rows, interleave the
    # half-resolution even/odd streams back to full length (tiny tensors, once in XLA).
    oe = out[:, 0:2, :].reshape(g, 2, batch_tile, sh)[..., HALO:]          # (g,2,Bt,Lh)
    oo = out[:, COUT_PAD:COUT_PAD + 2, :].reshape(g, 2, batch_tile, sh)[..., HALO:]
    y = jnp.stack([oe, oo], axis=-1).reshape(g, 2, batch_tile, l)
    return jnp.transpose(y, (0, 2, 1, 3)).reshape(n, 2, l)


# -----------------------------------------------------------------------------
# Deterministic parameter init (PyTorch layouts, transformed once to kernel layout)
# -----------------------------------------------------------------------------

def init_params(key):
    ks = jax.random.split(key, 12)

    def w(k, shape, scale=0.05):
        return (scale * jax.random.normal(k, shape)).astype(jnp.float32)

    # PyTorch-layout parameters (used by the pure-JAX reference).
    w1_pt, b1 = w(ks[0], (64, 1, 3)), w(ks[1], (64,))
    w2_pt, b2 = w(ks[2], (128, 64, 3)), w(ks[3], (128,))
    w3_pt, b3 = w(ks[4], (256, 128, 3)), w(ks[5], (256,))
    w4_pt, b4 = w(ks[6], (128, 256, 3)), w(ks[7], (128,))
    wt_pt, bt = w(ks[8], (128, 64, 2)), w(ks[9], (64,))    # ConvTranspose1d: (Cin,Cout,K)
    w5_pt, b5 = w(ks[10], (2, 64, 3)), w(ks[11], (2,))

    conv_kio = lambda wpt: jnp.transpose(wpt, (2, 1, 0))   # (Cout,Cin,K) -> (K,Cin,Cout)

    w1_k = jnp.pad(conv_kio(w1_pt), ((0, 0), (0, CIN_PAD - 1), (0, 0)))   # Cin 1 -> 8
    w5_k = jnp.pad(conv_kio(w5_pt), ((0, 0), (0, 0), (0, COUT_PAD - 2)))  # Cout 2 -> 8
    b5_k = jnp.pad(b5, (0, COUT_PAD - 2))

    params = dict(
        w1=w1_k,                              b1=b1.reshape(1, -1),
        w2=conv_kio(w2_pt),                   b2=b2.reshape(1, -1),
        w3=conv_kio(w3_pt),                   b3=b3.reshape(1, -1),
        w4=conv_kio(w4_pt),                   b4=b4.reshape(1, -1),
        wt=jnp.transpose(wt_pt, (2, 0, 1)),   bt=bt.reshape(1, -1),       # (K,Cin,Cout)
        w5=w5_k,                              b5=b5_k.reshape(1, -1),
    )
    pt = dict(w1=w1_pt, b1=b1, w2=w2_pt, b2=b2, w3=w3_pt, b3=b3,
              w4=w4_pt, b4=b4, wt=wt_pt, bt=bt, w5=w5_pt, b5=b5)
    return params, pt


# -----------------------------------------------------------------------------
# Pure-JAX reference (PyTorch NCL semantics) for the correctness check
# -----------------------------------------------------------------------------

def _conv1d_ref(x, w, b, relu):
    y = lax.conv_general_dilated(x, w, (1,), [(1, 1)],
                                 dimension_numbers=('NCH', 'OIH', 'NCH'))
    y = y + b[None, :, None]
    return jnp.maximum(y, 0.0) if relu else y


def unet_ref(x, pt):
    h = _conv1d_ref(x, pt['w1'], pt['b1'], True)
    h = _conv1d_ref(h, pt['w2'], pt['b2'], True)
    n, c, l = h.shape
    h = h.reshape(n, c, l // 2, 2).max(axis=-1)             # MaxPool1d(2)
    h = _conv1d_ref(h, pt['w3'], pt['b3'], True)
    h = _conv1d_ref(h, pt['w4'], pt['b4'], True)
    ye = jnp.einsum('ncl,cd->ndl', h, pt['wt'][:, :, 0]) + pt['bt'][None, :, None]
    yo = jnp.einsum('ncl,cd->ndl', h, pt['wt'][:, :, 1]) + pt['bt'][None, :, None]
    h = jnp.stack([ye, yo], axis=-1).reshape(ye.shape[0], ye.shape[1], -1)
    h = jnp.maximum(h, 0.0)
    h = _conv1d_ref(h, pt['w5'], pt['b5'], False)
    return h


# -----------------------------------------------------------------------------

if __name__ == "__main__":
    key = jax.random.PRNGKey(0)
    pkey, xkey = jax.random.split(key)
    params, params_pt = init_params(pkey)

    # small input: 16 mono clips of length 32 -> grid=(2,), 8 samples per grid step
    N, L = 16, 32
    x = jax.random.normal(xkey, (N, 1, L), dtype=jnp.float32)

    fwd = jax.jit(functools.partial(unet_audio_forward, batch_tile=8))
    out = jax.block_until_ready(fwd(x, params))

    ref = unet_ref(x, params_pt)
    assert out.shape == (N, 2, L), out.shape
    np.testing.assert_allclose(np.asarray(out), np.asarray(ref), rtol=1e-4, atol=1e-4)

    print("KERNEL_OK")
</pallas_src>

<mosaic_0001>
module attributes {stable_mosaic.version = 11 : i64} {
  func.func @_unet_fused_kernel(%arg0: i32, %arg1: memref<320x8xf32, #tpu.memory_space<vmem>>, %arg2: memref<192x320xf32, #tpu.memory_space<vmem>>, %arg3: memref<192x320xf32, #tpu.memory_space<vmem>>, %arg4: memref<320x1xf32, #tpu.memory_space<vmem>>, %arg5: memref<192x1xf32, #tpu.memory_space<vmem>>, %arg6: memref<3x8x64xf32, #tpu.memory_space<vmem>>, %arg7: memref<3x64x128xf32, #tpu.memory_space<vmem>>, %arg8: memref<3x128x256xf32, #tpu.memory_space<vmem>>, %arg9: memref<3x256x128xf32, #tpu.memory_space<vmem>>, %arg10: memref<2x128x64xf32, #tpu.memory_space<vmem>>, %arg11: memref<3x64x8xf32, #tpu.memory_space<vmem>>, %arg12: memref<1x64xf32, #tpu.memory_space<vmem>>, %arg13: memref<1x128xf32, #tpu.memory_space<vmem>>, %arg14: memref<1x256xf32, #tpu.memory_space<vmem>>, %arg15: memref<1x128xf32, #tpu.memory_space<vmem>>, %arg16: memref<1x64xf32, #tpu.memory_space<vmem>>, %arg17: memref<1x8xf32, #tpu.memory_space<vmem>>, %arg18: memref<1x16x192xf32, #tpu.memory_space<vmem>>) attributes {dimension_semantics = [#tpu.dimension_semantics<parallel>], iteration_bounds = array<i64: 2>, scalar_prefetch = 0 : i64, scratch_operands = 0 : i64, tpu.core_type = #tpu.core_type<tc>, window_params = [{transform_indices = @transform_0, window_bounds = array<i64: 320, 8>}, {pipeline_mode = #tpu.pipeline_mode<synchronous>, transform_indices = @transform_1, window_bounds = array<i64: 192, 320>}, {pipeline_mode = #tpu.pipeline_mode<synchronous>, transform_indices = @transform_2, window_bounds = array<i64: 192, 320>}, {pipeline_mode = #tpu.pipeline_mode<synchronous>, transform_indices = @transform_3, window_bounds = array<i64: 320, 1>}, {pipeline_mode = #tpu.pipeline_mode<synchronous>, transform_indices = @transform_4, window_bounds = array<i64: 192, 1>}, {pipeline_mode = #tpu.pipeline_mode<synchronous>, transform_indices = @transform_5, window_bounds = array<i64: 3, 8, 64>}, {pipeline_mode = #tpu.pipeline_mode<synchronous>, transform_indices = @transform_6, window_bounds = array<i64: 3, 64, 128>}, {pipeline_mode = #tpu.pipeline_mode<synchronous>, transform_indices = @transform_7, window_bounds = array<i64: 3, 128, 256>}, {pipeline_mode = #tpu.pipeline_mode<synchronous>, transform_indices = @transform_8, window_bounds = array<i64: 3, 256, 128>}, {pipeline_mode = #tpu.pipeline_mode<synchronous>, transform_indices = @transform_9, window_bounds = array<i64: 2, 128, 64>}, {pipeline_mode = #tpu.pipeline_mode<synchronous>, transform_indices = @transform_10, window_bounds = array<i64: 3, 64, 8>}, {pipeline_mode = #tpu.pipeline_mode<synchronous>, transform_indices = @transform_11, window_bounds = array<i64: 1, 64>}, {pipeline_mode = #tpu.pipeline_mode<synchronous>, transform_indices = @transform_12, window_bounds = array<i64: 1, 128>}, {pipeline_mode = #tpu.pipeline_mode<synchronous>, transform_indices = @transform_13, window_bounds = array<i64: 1, 256>}, {pipeline_mode = #tpu.pipeline_mode<synchronous>, transform_indices = @transform_14, window_bounds = array<i64: 1, 128>}, {pipeline_mode = #tpu.pipeline_mode<synchronous>, transform_indices = @transform_15, window_bounds = array<i64: 1, 64>}, {pipeline_mode = #tpu.pipeline_mode<synchronous>, transform_indices = @transform_16, window_bounds = array<i64: 1, 8>}, {transform_indices = @transform_17, window_bounds = array<i64: 1, 16, 192>}]} {
    %c0 = arith.constant 0 : index
    %c0_0 = arith.constant 0 : index
    %0 = vector.load %arg4[%c0, %c0_0] : memref<320x1xf32, #tpu.memory_space<vmem>>, vector<320x1xf32>
    %c0_1 = arith.constant 0 : index
    %c0_2 = arith.constant 0 : index
    %1 = vector.load %arg5[%c0_1, %c0_2] : memref<192x1xf32, #tpu.memory_space<vmem>>, vector<192x1xf32>
    %c0_3 = arith.constant 0 : index
    %c0_4 = arith.constant 0 : index
    %2 = vector.load %arg1[%c0_3, %c0_4] : memref<320x8xf32, #tpu.memory_space<vmem>>, vector<320x8xf32>
    %c1_i32 = arith.constant 1 : i32
    %3 = tpu.dynamic_rotate %2 by %c1_i32 dim 0 : vector<320x8xf32>, i32 -> vector<320x8xf32>
    %c0_5 = arith.constant 0 : index
    %c0_6 = arith.constant 0 : index
    %c0_7 = arith.constant 0 : index
    %4 = vector.load %arg6[%c0_5, %c0_6, %c0_7] : memref<3x8x64xf32, #tpu.memory_space<vmem>>, vector<1x8x64xf32>
    %5 = vector.shape_cast %4 : vector<1x8x64xf32> to vector<8x64xf32>
    %cst = arith.constant dense<0.000000e+00> : vector<320x64xf32>
    %6 = tpu.matmul %3, %5, %cst {dimension_numbers = #tpu.dot_dimension_numbers<[1], [0], [0], [1], [0, 0, 1, 1], [], []>} : vector<320x8xf32>, vector<8x64xf32>, vector<320x64xf32> -> vector<320x64xf32>
    %c1 = arith.constant 1 : index
    %c0_8 = arith.constant 0 : index
    %c0_9 = arith.constant 0 : index
    %7 = vector.load %arg6[%c1, %c0_8, %c0_9] : memref<3x8x64xf32, #tpu.memory_space<vmem>>, vector<1x8x64xf32>
    %8 = vector.shape_cast %7 : vector<1x8x64xf32> to vector<8x64xf32>
    %cst_10 = arith.constant dense<0.000000e+00> : vector<320x64xf32>
    %9 = tpu.matmul %2, %8, %cst_10 {dimension_numbers = #tpu.dot_dimension_numbers<[1], [0], [0], [1], [0, 0, 1, 1], [], []>} : vector<320x8xf32>, vector<8x64xf32>, vector<320x64xf32> -> vector<320x64xf32>
    %10 = arith.addf %6, %9 : vector<320x64xf32>
    %c319_i32 = arith.constant 319 : i32
    %11 = tpu.dynamic_rotate %2 by %c319_i32 dim 0 : vector<320x8xf32>, i32 -> vector<320x8xf32>
    %c2 = arith.constant 2 : index
    %c0_11 = arith.constant 0 : index
    %c0_12 = arith.constant 0 : index
    %12 = vector.load %arg6[%c2, %c0_11, %c0_12] : memref<3x8x64xf32, #tpu.memory_space<vmem>>, vector<1x8x64xf32>
    %13 = vector.shape_cast %12 : vector<1x8x64xf32> to vector<8x64xf32>
    %cst_13 = arith.constant dense<0.000000e+00> : vector<320x64xf32>
    %14 = tpu.matmul %11, %13, %cst_13 {dimension_numbers = #tpu.dot_dimension_numbers<[1], [0], [0], [1], [0, 0, 1, 1], [], []>} : vector<320x8xf32>, vector<8x64xf32>, vector<320x64xf32> -> vector<320x64xf32>
    %15 = arith.addf %10, %14 : vector<320x64xf32>
    %c0_14 = arith.constant 0 : index
    %c0_15 = arith.constant 0 : index
    %16 = vector.load %arg12[%c0_14, %c0_15] : memref<1x64xf32, #tpu.memory_space<vmem>>, vector<1x64xf32>
    %17 = vector.broadcast %16 : vector<1x64xf32> to vector<320x64xf32>
    %18 = arith.addf %15, %17 : vector<320x64xf32>
    %cst_16 = arith.constant 0.000000e+00 : f32
    %19 = vector.broadcast %cst_16 : f32 to vector<320x64xf32>
    %20 = arith.maximumf %18, %19 : vector<320x64xf32>
    %21 = vector.broadcast %0 : vector<320x1xf32> to vector<320x64xf32>
    %22 = arith.mulf %20, %21 : vector<320x64xf32>
    %c1_i32_17 = arith.constant 1 : i32
    %23 = tpu.dynamic_rotate %22 by %c1_i32_17 dim 0 : vector<320x64xf32>, i32 -> vector<320x64xf32>
    %c0_18 = arith.constant 0 : index
    %c0_19 = arith.constant 0 : index
    %c0_20 = arith.constant 0 : index
    %24 = vector.load %arg7[%c0_18, %c0_19, %c0_20] : memref<3x64x128xf32, #tpu.memory_space<vmem>>, vector<1x64x128xf32>
    %25 = vector.shape_cast %24 : vector<1x64x128xf32> to vector<64x128xf32>
    %cst_21 = arith.constant dense<0.000000e+00> : vector<320x128xf32>
    %26 = tpu.matmul %23, %25, %cst_21 {dimension_numbers = #tpu.dot_dimension_numbers<[1], [0], [0], [1], [0, 0, 1, 1], [], []>} : vector<320x64xf32>, vector<64x128xf32>, vector<320x128xf32> -> vector<320x128xf32>
    %c1_22 = arith.constant 1 : index
    %c0_23 = arith.constant 0 : index
    %c0_24 = arith.constant 0 : index
    %27 = vector.load %arg7[%c1_22, %c0_23, %c0_24] : memref<3x64x128xf32, #tpu.memory_space<vmem>>, vector<1x64x128xf32>
    %28 = vector.shape_cast %27 : vector<1x64x128xf32> to vector<64x128xf32>
    %cst_25 = arith.constant dense<0.000000e+00> : vector<320x128xf32>
    %29 = tpu.matmul %22, %28, %cst_25 {dimension_numbers = #tpu.dot_dimension_numbers<[1], [0], [0], [1], [0, 0, 1, 1], [], []>} : vector<320x64xf32>, vector<64x128xf32>, vector<320x128xf32> -> vector<320x128xf32>
    %30 = arith.addf %26, %29 : vector<320x128xf32>
    %c319_i32_26 = arith.constant 319 : i32
    %31 = tpu.dynamic_rotate %22 by %c319_i32_26 dim 0 : vector<320x64xf32>, i32 -> vector<320x64xf32>
    %c2_27 = arith.constant 2 : index
    %c0_28 = arith.constant 0 : index
    %c0_29 = arith.constant 0 : index
    %32 = vector.load %arg7[%c2_27, %c0_28, %c0_29] : memref<3x64x128xf32, #tpu.memory_space<vmem>>, vector<1x64x128xf32>
    %33 = vector.shape_cast %32 : vector<1x64x128xf32> to vector<64x128xf32>
    %cst_30 = arith.constant dense<0.000000e+00> : vector<320x128xf32>
    %34 = tpu.matmul %31, %33, %cst_30 {dimension_numbers = #tpu.dot_dimension_numbers<[1], [0], [0], [1], [0, 0, 1, 1], [], []>} : vector<320x64xf32>, vector<64x128xf32>, vector<320x128xf32> -> vector<320x128xf32>
    %35 = arith.addf %30, %34 : vector<320x128xf32>
    %c0_31 = arith.constant 0 : index
    %c0_32 = arith.constant 0 : index
    %36 = vector.load %arg13[%c0_31, %c0_32] : memref<1x128xf32, #tpu.memory_space<vmem>>, vector<1x128xf32>
    %37 = vector.broadcast %36 : vector<1x128xf32> to vector<320x128xf32>
    %38 = arith.addf %35, %37 : vector<320x128xf32>
    %cst_33 = arith.constant 0.000000e+00 : f32
    %39 = vector.broadcast %cst_33 : f32 to vector<320x128xf32>
    %40 = arith.maximumf %38, %39 : vector<320x128xf32>
    %c0_34 = arith.constant 0 : index
    %c0_35 = arith.constant 0 : index
    %41 = vector.load %arg2[%c0_34, %c0_35] : memref<192x320xf32, #tpu.memory_space<vmem>>, vector<192x320xf32>
    %cst_36 = arith.constant dense<0.000000e+00> : vector<192x128xf32>
    %42 = tpu.matmul %41, %40, %cst_36 {dimension_numbers = #tpu.dot_dimension_numbers<[1], [0], [0], [1], [0, 0, 1, 1], [], []>} : vector<192x320xf32>, vector<320x128xf32>, vector<192x128xf32> -> vector<192x128xf32>
    %c0_37 = arith.constant 0 : index
    %c0_38 = arith.constant 0 : index
    %43 = vector.load %arg3[%c0_37, %c0_38] : memref<192x320xf32, #tpu.memory_space<vmem>>, vector<192x320xf32>
    %cst_39 = arith.constant dense<0.000000e+00> : vector<192x128xf32>
    %44 = tpu.matmul %43, %40, %cst_39 {dimension_numbers = #tpu.dot_dimension_numbers<[1], [0], [0], [1], [0, 0, 1, 1], [], []>} : vector<192x320xf32>, vector<320x128xf32>, vector<192x128xf32> -> vector<192x128xf32>
    %45 = arith.maximumf %42, %44 : vector<192x128xf32>
    %c1_i32_40 = arith.constant 1 : i32
    %46 = tpu.dynamic_rotate %45 by %c1_i32_40 dim 0 : vector<192x128xf32>, i32 -> vector<192x128xf32>
    %c0_41 = arith.constant 0 : index
    %c0_42 = arith.constant 0 : index
    %c0_43 = arith.constant 0 : index
    %47 = vector.load %arg8[%c0_41, %c0_42, %c0_43] : memref<3x128x256xf32, #tpu.memory_space<vmem>>, vector<1x128x256xf32>
    %48 = vector.shape_cast %47 : vector<1x128x256xf32> to vector<128x256xf32>
    %cst_44 = arith.constant dense<0.000000e+00> : vector<192x256xf32>
    %49 = tpu.matmul %46, %48, %cst_44 {dimension_numbers = #tpu.dot_dimension_numbers<[1], [0], [0], [1], [0, 0, 1, 1], [], []>} : vector<192x128xf32>, vector<128x256xf32>, vector<192x256xf32> -> vector<192x256xf32>
    %c1_45 = arith.constant 1 : index
    %c0_46 = arith.constant 0 : index
    %c0_47 = arith.constant 0 : index
    %50 = vector.load %arg8[%c1_45, %c0_46, %c0_47] : memref<3x128x256xf32, #tpu.memory_space<vmem>>, vector<1x128x256xf32>
    %51 = vector.shape_cast %50 : vector<1x128x256xf32> to vector<128x256xf32>
    %cst_48 = arith.constant dense<0.000000e+00> : vector<192x256xf32>
    %52 = tpu.matmul %45, %51, %cst_48 {dimension_numbers = #tpu.dot_dimension_numbers<[1], [0], [0], [1], [0, 0, 1, 1], [], []>} : vector<192x128xf32>, vector<128x256xf32>, vector<192x256xf32> -> vector<192x256xf32>
    %53 = arith.addf %49, %52 : vector<192x256xf32>
    %c191_i32 = arith.constant 191 : i32
    %54 = tpu.dynamic_rotate %45 by %c191_i32 dim 0 : vector<192x128xf32>, i32 -> vector<192x128xf32>
    %c2_49 = arith.constant 2 : index
    %c0_50 = arith.constant 0 : index
    %c0_51 = arith.constant 0 : index
    %55 = vector.load %arg8[%c2_49, %c0_50, %c0_51] : memref<3x128x256xf32, #tpu.memory_space<vmem>>, vector<1x128x256xf32>
    %56 = vector.shape_cast %55 : vector<1x128x256xf32> to vector<128x256xf32>
    %cst_52 = arith.constant dense<0.000000e+00> : vector<192x256xf32>
    %57 = tpu.matmul %54, %56, %cst_52 {dimension_numbers = #tpu.dot_dimension_numbers<[1], [0], [0], [1], [0, 0, 1, 1], [], []>} : vector<192x128xf32>, vector<128x256xf32>, vector<192x256xf32> -> vector<192x256xf32>
    %58 = arith.addf %53, %57 : vector<192x256xf32>
    %c0_53 = arith.constant 0 : index
    %c0_54 = arith.constant 0 : index
    %59 = vector.load %arg14[%c0_53, %c0_54] : memref<1x256xf32, #tpu.memory_space<vmem>>, vector<1x256xf32>
    %60 = vector.broadcast %59 : vector<1x256xf32> to vector<192x256xf32>
    %61 = arith.addf %58, %60 : vector<192x256xf32>
    %cst_55 = arith.constant 0.000000e+00 : f32
    %62 = vector.broadcast %cst_55 : f32 to vector<192x256xf32>
    %63 = arith.maximumf %61, %62 : vector<192x256xf32>
    %64 = vector.broadcast %1 : vector<192x1xf32> to vector<192x256xf32>
    %65 = arith.mulf %63, %64 : vector<192x256xf32>
    %c1_i32_56 = arith.constant 1 : i32
    %66 = tpu.dynamic_rotate %65 by %c1_i32_56 dim 0 : vector<192x256xf32>, i32 -> vector<192x256xf32>
    %c0_57 = arith.constant 0 : index
    %c0_58 = arith.constant 0 : index
    %c0_59 = arith.constant 0 : index
    %67 = vector.load %arg9[%c0_57, %c0_58, %c0_59] : memref<3x256x128xf32, #tpu.memory_space<vmem>>, vector<1x256x128xf32>
    %68 = vector.shape_cast %67 : vector<1x256x128xf32> to vector<256x128xf32>
    %cst_60 = arith.constant dense<0.000000e+00> : vector<192x128xf32>
    %69 = tpu.matmul %66, %68, %cst_60 {dimension_numbers = #tpu.dot_dimension_numbers<[1], [0], [0], [1], [0, 0, 1, 1], [], []>} : vector<192x256xf32>, vector<256x128xf32>, vector<192x128xf32> -> vector<192x128xf32>
    %c1_61 = arith.constant 1 : index
    %c0_62 = arith.constant 0 : index
    %c0_63 = arith.constant 0 : index
    %70 = vector.load %arg9[%c1_61, %c0_62, %c0_63] : memref<3x256x128xf32, #tpu.memory_space<vmem>>, vector<1x256x128xf32>
    %71 = vector.shape_cast %70 : vector<1x256x128xf32> to vector<256x128xf32>
    %cst_64 = arith.constant dense<0.000000e+00> : vector<192x128xf32>
    %72 = tpu.matmul %65, %71, %cst_64 {dimension_numbers = #tpu.dot_dimension_numbers<[1], [0], [0], [1], [0, 0, 1, 1], [], []>} : vector<192x256xf32>, vector<256x128xf32>, vector<192x128xf32> -> vector<192x128xf32>
    %73 = arith.addf %69, %72 : vector<192x128xf32>
    %c191_i32_65 = arith.constant 191 : i32
    %74 = tpu.dynamic_rotate %65 by %c191_i32_65 dim 0 : vector<192x256xf32>, i32 -> vector<192x256xf32>
    %c2_66 = arith.constant 2 : index
    %c0_67 = arith.constant 0 : index
    %c0_68 = arith.constant 0 : index
    %75 = vector.load %arg9[%c2_66, %c0_67, %c0_68] : memref<3x256x128xf32, #tpu.memory_space<vmem>>, vector<1x256x128xf32>
    %76 = vector.shape_cast %75 : vector<1x256x128xf32> to vector<256x128xf32>
    %cst_69 = arith.constant dense<0.000000e+00> : vector<192x128xf32>
    %77 = tpu.matmul %74, %76, %cst_69 {dimension_numbers = #tpu.dot_dimension_numbers<[1], [0], [0], [1], [0, 0, 1, 1], [], []>} : vector<192x256xf32>, vector<256x128xf32>, vector<192x128xf32> -> vector<192x128xf32>
    %78 = arith.addf %73, %77 : vector<192x128xf32>
    %c0_70 = arith.constant 0 : index
    %c0_71 = arith.constant 0 : index
    %79 = vector.load %arg15[%c0_70, %c0_71] : memref<1x128xf32, #tpu.memory_space<vmem>>, vector<1x128xf32>
    %80 = vector.broadcast %79 : vector<1x128xf32> to vector<192x128xf32>
    %81 = arith.addf %78, %80 : vector<192x128xf32>
    %cst_72 = arith.constant 0.000000e+00 : f32
    %82 = vector.broadcast %cst_72 : f32 to vector<192x128xf32>
    %83 = arith.maximumf %81, %82 : vector<192x128xf32>
    %c0_73 = arith.constant 0 : index
    %c0_74 = arith.constant 0 : index
    %c0_75 = arith.constant 0 : index
    %84 = vector.load %arg10[%c0_73, %c0_74, %c0_75] : memref<2x128x64xf32, #tpu.memory_space<vmem>>, vector<1x128x64xf32>
    %85 = vector.shape_cast %84 : vector<1x128x64xf32> to vector<128x64xf32>
    %cst_76 = arith.constant dense<0.000000e+00> : vector<192x64xf32>
    %86 = tpu.matmul %83, %85, %cst_76 {dimension_numbers = #tpu.dot_dimension_numbers<[1], [0], [0], [1], [0, 0, 1, 1], [], []>} : vector<192x128xf32>, vector<128x64xf32>, vector<192x64xf32> -> vector<192x64xf32>
    %c0_77 = arith.constant 0 : index
    %c0_78 = arith.constant 0 : index
    %87 = vector.load %arg16[%c0_77, %c0_78] : memref<1x64xf32, #tpu.memory_space<vmem>>, vector<1x64xf32>
    %88 = vector.broadcast %87 : vector<1x64xf32> to vector<192x64xf32>
    %89 = arith.addf %86, %88 : vector<192x64xf32>
    %cst_79 = arith.constant 0.000000e+00 : f32
    %90 = vector.broadcast %cst_79 : f32 to vector<192x64xf32>
    %91 = arith.maximumf %89, %90 : vector<192x64xf32>
    %92 = vector.broadcast %1 : vector<192x1xf32> to vector<192x64xf32>
    %93 = arith.mulf %91, %92 : vector<192x64xf32>
    %c1_80 = arith.constant 1 : index
    %c0_81 = arith.constant 0 : index
    %c0_82 = arith.constant 0 : index
    %94 = vector.load %arg10[%c1_80, %c0_81, %c0_82] : memref<2x128x64xf32, #tpu.memory_space<vmem>>, vector<1x128x64xf32>
    %95 = vector.shape_cast %94 : vector<1x128x64xf32> to vector<128x64xf32>
    %cst_83 = arith.constant dense<0.000000e+00> : vector<192x64xf32>
    %96 = tpu.matmul %83, %95, %cst_83 {dimension_numbers = #tpu.dot_dimension_numbers<[1], [0], [0], [1], [0, 0, 1, 1], [], []>} : vector<192x128xf32>, vector<128x64xf32>, vector<192x64xf32> -> vector<192x64xf32>
    %c0_84 = arith.constant 0 : index
    %c0_85 = arith.constant 0 : index
    %97 = vector.load %arg16[%c0_84, %c0_85] : memref<1x64xf32, #tpu.memory_space<vmem>>, vector<1x64xf32>
    %98 = vector.broadcast %97 : vector<1x64xf32> to vector<192x64xf32>
    %99 = arith.addf %96, %98 : vector<192x64xf32>
    %cst_86 = arith.constant 0.000000e+00 : f32
    %100 = vector.broadcast %cst_86 : f32 to vector<192x64xf32>
    %101 = arith.maximumf %99, %100 : vector<192x64xf32>
    %102 = vector.broadcast %1 : vector<192x1xf32> to vector<192x64xf32>
    %103 = arith.mulf %101, %102 : vector<192x64xf32>
    %c1_i32_87 = arith.constant 1 : i32
    %104 = tpu.dynamic_rotate %103 by %c1_i32_87 dim 0 : vector<192x64xf32>, i32 -> vector<192x64xf32>
    %c0_88 = arith.constant 0 : index
    %c0_89 = arith.constant 0 : index
    %c0_90 = arith.constant 0 : index
    %105 = vector.load %arg11[%c0_88, %c0_89, %c0_90] : memref<3x64x8xf32, #tpu.memory_space<vmem>>, vector<1x64x8xf32>
    %106 = vector.shape_cast %105 : vector<1x64x8xf32> to vector<64x8xf32>
    %cst_91 = arith.constant dense<0.000000e+00> : vector<192x8xf32>
    %107 = tpu.matmul %104, %106, %cst_91 {dimension_numbers = #tpu.dot_dimension_numbers<[1], [0], [0], [1], [0, 0, 1, 1], [], []>} : vector<192x64xf32>, vector<64x8xf32>, vector<192x8xf32> -> vector<192x8xf32>
    %c1_92 = arith.constant 1 : index
    %c0_93 = arith.constant 0 : index
    %c0_94 = arith.constant 0 : index
    %108 = vector.load %arg11[%c1_92, %c0_93, %c0_94] : memref<3x64x8xf32, #tpu.memory_space<vmem>>, vector<1x64x8xf32>
    %109 = vector.shape_cast %108 : vector<1x64x8xf32> to vector<64x8xf32>
    %cst_95 = arith.constant dense<0.000000e+00> : vector<192x8xf32>
    %110 = tpu.matmul %93, %109, %cst_95 {dimension_numbers = #tpu.dot_dimension_numbers<[1], [0], [0], [1], [0, 0, 1, 1], [], []>} : vector<192x64xf32>, vector<64x8xf32>, vector<192x8xf32> -> vector<192x8xf32>
    %111 = arith.addf %107, %110 : vector<192x8xf32>
    %c2_96 = arith.constant 2 : index
    %c0_97 = arith.constant 0 : index
    %c0_98 = arith.constant 0 : index
    %112 = vector.load %arg11[%c2_96, %c0_97, %c0_98] : memref<3x64x8xf32, #tpu.memory_space<vmem>>, vector<1x64x8xf32>
    %113 = vector.shape_cast %112 : vector<1x64x8xf32> to vector<64x8xf32>
    %cst_99 = arith.constant dense<0.000000e+00> : vector<192x8xf32>
    %114 = tpu.matmul %103, %113, %cst_99 {dimension_numbers = #tpu.dot_dimension_numbers<[1], [0], [0], [1], [0, 0, 1, 1], [], []>} : vector<192x64xf32>, vector<64x8xf32>, vector<192x8xf32> -> vector<192x8xf32>
    %115 = arith.addf %111, %114 : vector<192x8xf32>
    %c0_100 = arith.constant 0 : index
    %c0_101 = arith.constant 0 : index
    %116 = vector.load %arg17[%c0_100, %c0_101] : memref<1x8xf32, #tpu.memory_space<vmem>>, vector<1x8xf32>
    %117 = vector.broadcast %116 : vector<1x8xf32> to vector<192x8xf32>
    %118 = arith.addf %115, %117 : vector<192x8xf32>
    %c0_102 = arith.constant 0 : index
    %c0_103 = arith.constant 0 : index
    %c0_104 = arith.constant 0 : index
    %119 = vector.load %arg11[%c0_102, %c0_103, %c0_104] : memref<3x64x8xf32, #tpu.memory_space<vmem>>, vector<1x64x8xf32>
    %120 = vector.shape_cast %119 : vector<1x64x8xf32> to vector<64x8xf32>
    %cst_105 = arith.constant dense<0.000000e+00> : vector<192x8xf32>
    %121 = tpu.matmul %93, %120, %cst_105 {dimension_numbers = #tpu.dot_dimension_numbers<[1], [0], [0], [1], [0, 0, 1, 1], [], []>} : vector<192x64xf32>, vector<64x8xf32>, vector<192x8xf32> -> vector<192x8xf32>
    %c1_106 = arith.constant 1 : index
    %c0_107 = arith.constant 0 : index
    %c0_108 = arith.constant 0 : index
    %122 = vector.load %arg11[%c1_106, %c0_107, %c0_108] : memref<3x64x8xf32, #tpu.memory_space<vmem>>, vector<1x64x8xf32>
    %123 = vector.shape_cast %122 : vector<1x64x8xf32> to vector<64x8xf32>
    %cst_109 = arith.constant dense<0.000000e+00> : vector<192x8xf32>
    %124 = tpu.matmul %103, %123, %cst_109 {dimension_numbers = #tpu.dot_dimension_numbers<[1], [0], [0], [1], [0, 0, 1, 1], [], []>} : vector<192x64xf32>, vector<64x8xf32>, vector<192x8xf32> -> vector<192x8xf32>
    %125 = arith.addf %121, %124 : vector<192x8xf32>
    %c191_i32_110 = arith.constant 191 : i32
    %126 = tpu.dynamic_rotate %93 by %c191_i32_110 dim 0 : vector<192x64xf32>, i32 -> vector<192x64xf32>
    %c2_111 = arith.constant 2 : index
    %c0_112 = arith.constant 0 : index
    %c0_113 = arith.constant 0 : index
    %127 = vector.load %arg11[%c2_111, %c0_112, %c0_113] : memref<3x64x8xf32, #tpu.memory_space<vmem>>, vector<1x64x8xf32>
    %128 = vector.shape_cast %127 : vector<1x64x8xf32> to vector<64x8xf32>
    %cst_114 = arith.constant dense<0.000000e+00> : vector<192x8xf32>
    %129 = tpu.matmul %126, %128, %cst_114 {dimension_numbers = #tpu.dot_dimension_numbers<[1], [0], [0], [1], [0, 0, 1, 1], [], []>} : vector<192x64xf32>, vector<64x8xf32>, vector<192x8xf32> -> vector<192x8xf32>
    %130 = arith.addf %125, %129 : vector<192x8xf32>
    %c0_115 = arith.constant 0 : index
    %c0_116 = arith.constant 0 : index
    %131 = vector.load %arg17[%c0_115, %c0_116] : memref<1x8xf32, #tpu.memory_space<vmem>>, vector<1x8xf32>
    %132 = vector.broadcast %131 : vector<1x8xf32> to vector<192x8xf32>
    %133 = arith.addf %130, %132 : vector<192x8xf32>
    %134 = tpu.concatenate %118, %133 in 1 : vector<192x8xf32>, vector<192x8xf32> -> vector<192x16xf32>
    %135 = tpu.transpose %134, [1, 0] : vector<192x16xf32> -> vector<16x192xf32>
    %c0_117 = arith.constant 0 : index
    %c0_118 = arith.constant 0 : index
    %c0_119 = arith.constant 0 : index
    %136 = vector.load %arg18[%c0_117, %c0_118, %c0_119] : memref<1x16x192xf32, #tpu.memory_space<vmem>>, vector<1x16x192xf32>
    %137 = vector.shape_cast %136 : vector<1x16x192xf32> to vector<16x192xf32>
    %138 = vector.shape_cast %135 : vector<16x192xf32> to vector<1x16x192xf32>
    tpu.vector_store %arg18[%c0_117, %c0_118, %c0_119], %138 {strides = array<i32>} : memref<1x16x192xf32, #tpu.memory_space<vmem>>, vector<1x16x192xf32>,
    return
  }
  func.func @transform_0(%arg0: i32) -> (i32, i32) {
    %c0_i32 = arith.constant 0 : i32
    %c0_i32_0 = arith.constant 0 : i32
    return %arg0, %c0_i32 : i32, i32
  }
  func.func @transform_1(%arg0: i32) -> (i32, i32) {
    %c0_i32 = arith.constant 0 : i32
    %c0_i32_0 = arith.constant 0 : i32
    %c0_i32_1 = arith.constant 0 : i32
    return %c0_i32, %c0_i32_0 : i32, i32
  }
  func.func @transform_2(%arg0: i32) -> (i32, i32) {
    %c0_i32 = arith.constant 0 : i32
    %c0_i32_0 = arith.constant 0 : i32
    %c0_i32_1 = arith.constant 0 : i32
    return %c0_i32, %c0_i32_0 : i32, i32
  }
  func.func @transform_3(%arg0: i32) -> (i32, i32) {
    %c0_i32 = arith.constant 0 : i32
    %c0_i32_0 = arith.constant 0 : i32
    %c0_i32_1 = arith.constant 0 : i32
    return %c0_i32, %c0_i32_0 : i32, i32
  }
  func.func @transform_4(%arg0: i32) -> (i32, i32) {
    %c0_i32 = arith.constant 0 : i32
    %c0_i32_0 = arith.constant 0 : i32
    %c0_i32_1 = arith.constant 0 : i32
    return %c0_i32, %c0_i32_0 : i32, i32
  }
  func.func @transform_5(%arg0: i32) -> (i32, i32, i32) {
    %c0_i32 = arith.constant 0 : i32
    %c0_i32_0 = arith.constant 0 : i32
    %c0_i32_1 = arith.constant 0 : i32
    %c0_i32_2 = arith.constant 0 : i32
    return %c0_i32, %c0_i32_0, %c0_i32_1 : i32, i32, i32
  }
  func.func @transform_6(%arg0: i32) -> (i32, i32, i32) {
    %c0_i32 = arith.constant 0 : i32
    %c0_i32_0 = arith.constant 0 : i32
    %c0_i32_1 = arith.constant 0 : i32
    %c0_i32_2 = arith.constant 0 : i32
    return %c0_i32, %c0_i32_0, %c0_i32_1 : i32, i32, i32
  }
  func.func @transform_7(%arg0: i32) -> (i32, i32, i32) {
    %c0_i32 = arith.constant 0 : i32
    %c0_i32_0 = arith.constant 0 : i32
    %c0_i32_1 = arith.constant 0 : i32
    %c0_i32_2 = arith.constant 0 : i32
    return %c0_i32, %c0_i32_0, %c0_i32_1 : i32, i32, i32
  }
  func.func @transform_8(%arg0: i32) -> (i32, i32, i32) {
    %c0_i32 = arith.constant 0 : i32
    %c0_i32_0 = arith.constant 0 : i32
    %c0_i32_1 = arith.constant 0 : i32
    %c0_i32_2 = arith.constant 0 : i32
    return %c0_i32, %c0_i32_0, %c0_i32_1 : i32, i32, i32
  }
  func.func @transform_9(%arg0: i32) -> (i32, i32, i32) {
    %c0_i32 = arith.constant 0 : i32
    %c0_i32_0 = arith.constant 0 : i32
    %c0_i32_1 = arith.constant 0 : i32
    %c0_i32_2 = arith.constant 0 : i32
    return %c0_i32, %c0_i32_0, %c0_i32_1 : i32, i32, i32
  }
  func.func @transform_10(%arg0: i32) -> (i32, i32, i32) {
    %c0_i32 = arith.constant 0 : i32
    %c0_i32_0 = arith.constant 0 : i32
    %c0_i32_1 = arith.constant 0 : i32
    %c0_i32_2 = arith.constant 0 : i32
    return %c0_i32, %c0_i32_0, %c0_i32_1 : i32, i32, i32
  }
  func.func @transform_11(%arg0: i32) -> (i32, i32) {
    %c0_i32 = arith.constant 0 : i32
    %c0_i32_0 = arith.constant 0 : i32
    %c0_i32_1 = arith.constant 0 : i32
    return %c0_i32, %c0_i32_0 : i32, i32
  }
  func.func @transform_12(%arg0: i32) -> (i32, i32) {
    %c0_i32 = arith.constant 0 : i32
    %c0_i32_0 = arith.constant 0 : i32
    %c0_i32_1 = arith.constant 0 : i32
    return %c0_i32, %c0_i32_0 : i32, i32
  }
  func.func @transform_13(%arg0: i32) -> (i32, i32) {
    %c0_i32 = arith.constant 0 : i32
    %c0_i32_0 = arith.constant 0 : i32
    %c0_i32_1 = arith.constant 0 : i32
    return %c0_i32, %c0_i32_0 : i32, i32
  }
  func.func @transform_14(%arg0: i32) -> (i32, i32) {
    %c0_i32 = arith.constant 0 : i32
    %c0_i32_0 = arith.constant 0 : i32
    %c0_i32_1 = arith.constant 0 : i32
    return %c0_i32, %c0_i32_0 : i32, i32
  }
  func.func @transform_15(%arg0: i32) -> (i32, i32) {
    %c0_i32 = arith.constant 0 : i32
    %c0_i32_0 = arith.constant 0 : i32
    %c0_i32_1 = arith.constant 0 : i32
    return %c0_i32, %c0_i32_0 : i32, i32
  }
  func.func @transform_16(%arg0: i32) -> (i32, i32) {
    %c0_i32 = arith.constant 0 : i32
    %c0_i32_0 = arith.constant 0 : i32
    %c0_i32_1 = arith.constant 0 : i32
    return %c0_i32, %c0_i32_0 : i32, i32
  }
  func.func @transform_17(%arg0: i32) -> (i32, i32, i32) {
    %c0_i32 = arith.constant 0 : i32
    %c0_i32_0 = arith.constant 0 : i32
    %c0_i32_1 = arith.constant 0 : i32
    return %arg0, %c0_i32, %c0_i32_0 : i32, i32, i32
  }
}

</mosaic_0001>

<bundles_post_ra>
// kernel: unet_audio_forward.1
= control target key start
LH: loop header
LB: loop body
LE: loop exit
PB: predicated region body
PF: predicated region fallthrough
CT: control target
= control target key end

     0   :  { %s18465_s0 = inlined_call_operand.vmem [shape: f32[640,8], index: 0, kind: input, shape index: {}]   ;;  %s18466_s1 = inlined_call_operand.vmem [shape: f32[192,320], index: 1, kind: input, shape index: {}]   ;;  %s18467_s2 = inlined_call_operand.hbm [shape: f32[192,320], index: 2, kind: input, shape index: {}]   ;;  %s18468_s3 = inlined_call_operand.hbm [shape: f32[320,1], index: 3, kind: input, shape index: {}]   ;;  %s18469_s4 = inlined_call_operand.vmem [shape: f32[192,1], index: 4, kind: input, shape index: {}]   ;;  %s18470_s5 = inlined_call_operand.hbm [shape: f32[3,8,64], index: 5, kind: input, shape index: {}]   ;;  %s18471_s6 = inlined_call_operand.hbm [shape: f32[3,64,128], index: 6, kind: input, shape index: {}]   ;;  %s18472_s7 = inlined_call_operand.vmem [shape: f32[3,128,256], index: 7, kind: input, shape index: {}]   ;;  %s18473_s8 = inlined_call_operand.vmem [shape: f32[3,256,128], index: 8, kind: input, shape index: {}]   ;;  %s18474_s9 = inlined_call_operand.vmem [shape: f32[2,128,64], index: 9, kind: input, shape index: {}]   ;;  %s18475_s10 = inlined_call_operand.vmem [shape: f32[3,64,8], index: 10, kind: input, shape index: {}]   ;;  %s18476_s11 = inlined_call_operand.hbm [shape: f32[1,64], index: 11, kind: input, shape index: {}]   ;;  %s18477_s12 = inlined_call_operand.hbm [shape: f32[1,128], index: 12, kind: input, shape index: {}]   ;;  %s18478_s13 = inlined_call_operand.vmem [shape: f32[1,256], index: 13, kind: input, shape index: {}]   ;;  %s18479_s14 = inlined_call_operand.hbm [shape: f32[1,128], index: 14, kind: input, shape index: {}]   ;;  %s18480_s15 = inlined_call_operand.hbm [shape: f32[1,64], index: 15, kind: input, shape index: {}]   ;;  %s18481_s16 = inlined_call_operand.hbm [shape: f32[1,8], index: 16, kind: input, shape index: {}]   ;;  %s18482_s17 = inlined_call_operand.vmem [shape: f32[2,16,192], index: 17, kind: output, shape index: {}]  }
   0x1   :  { %18566 = sst [smem:[#allocation93_spill]] %s18465_s0 }
   0x2   :  { %18567 = sst [smem:[#allocation94_spill]] %s18466_s1 }
   0x3   :  { %18568 = sst [smem:[#allocation95_spill]] %s18474_s9 }
   0x4   :  { %18569 = sst [smem:[#allocation96_spill]] %s18475_s10 }
   0x5   :  { %18570 = sst [smem:[#allocation97_spill]] %s18478_s13 }
   0x6   :  { %18571 = sst [smem:[#allocation98_spill]] %s18482_s17 }
   0x7   :  { %22 = vsyncpa [#allocation3], 0 }
   0x8   :  { %23 = vsyncpa [#allocation5], 0 }
   0x9   :  { %24 = vsyncpa [#allocation8], 0 }
   0xa   :  { %25 = vsyncpa [#allocation11], 0 }
   0xb   :  { %26 = vsyncpa [#allocation14], 0  ;;  %s13145_s24 = smov 0  }
   0xc LB: > { %18572 = sst [smem:[#allocation21_spill]] %s13036_s24  ;;  %s13038_s25 = smov [#allocation4]   ;;  %s13036_s24 = sphi %s13145_s24, %s32_s24  }
   0xd   : > { %s453_s26 = sshll.u32 %s13038_s25, 4  ;;  %s13151_s27 = sadd.s32 4294967295, %s13036_s24   ;;  %s13156_s26 = int_to_ptr.vmem [resolvable:$true] %s453_s26 }
   0xe   : > { %p9520_p0 = scmp.ge.s32.totalorder %s13036_s24, 1  ;;  %p425_p1 = scmp.lt.s32.totalorder %s13036_s24, 3 }
   0xf   : > { %p18487_p2 = scmp.eq.s32.totalorder %s13151_s27, 0  ;;  %s13039_s29 = smov [#allocation7]  }
  0x10   : > { %p13158_p3 = pnand %p9520_p0, %p425_p1  ;;  %s482_s0 = sshll.u32 %s13039_s29, 4  ;;  %s13164_s0 = int_to_ptr.vmem [resolvable:$true] %s482_s0 }
  0x11   : > { %s13040_s18 = smov [#allocation10]   ;;  %s13041_s1 = smov [#allocation13]  }
  0x12   : > { %s18573_s28 = scalar_select %p13158_p3, 1, 0 }
  0x13   : > { %p12685_p4 = pneg %p13158_p3  ;;  %s519_s19 = sshll.u32 %s13040_s18, 4  ;;  %s13172_s19 = int_to_ptr.vmem [resolvable:$true] %s519_s19 }
  0x14   : > { %s13174_s20 = sshll.u32 %s13041_s1, 4  ;;  %s12758_s23 = scalar_lea.hbm %s18468_s3, 5120  ;;  %s545_s20 = int_to_ptr.vmem [resolvable:$true] %s13174_s20 }
  0x15   : > { %p13168_p5 = pnand %p18487_p2, %p12685_p4  ;;  %p12759_p6 = scmp.ne.s32.totalorder %s18468_s3, %s12758_s23 }
  0x16   : > { %p12765_p10 = scmp.lt.u32.totalorder %s12758_s23, %s18468_s3 }
  0x17   : > { %p13184_p7 = pneg %p13168_p5 }
  0x19   : > { %p12761_p8 = pnand %p13184_p7, %p12759_p6 }
  0x1b   : > { %p12762_p9 = pneg %p12761_p8 }
  0x1d   : > { %p12767_p11 = pnand %p12765_p10, %p12762_p9 }
  0x1f   : > { %12770 = shalt.err (!%p12767_p11)
}
  0x20   : > { %s12771_s21 = scalar_lea.vmem %s13156_s26, 5120  ;;  %p12779_p1 = scmp.lt.s32.totalorder %s13156_s26, %s13156_s26 }
  0x21   : > { %p12772_p12 = scmp.ne.s32.totalorder %s13156_s26, %s12771_s21  ;;  %p12780_p4 = scmp.lt.s32.totalorder %s12771_s21, %s12771_s21 }
  0x23   : > { %p12774_p13 = pnand %p12772_p12, %p13184_p7  ;;  %p12781_p6 = por %p12780_p4, %p12779_p1 }
  0x25   : > { %p12775_p0 = pneg %p12774_p13 }
  0x27   : > { %p12782_p8 = pnand %p12781_p6, %p12775_p0 }
  0x29   : > { %12785 = shalt.err (!%p12782_p8)
}
  0x2a   : > { %s18489_s22 = smov 128   ;;  %s13043_s23 = smov 8  }
  0x2b   : > { %12691 = dma.hbm_to_vmem [thread:$0]  (!%p13168_p5), %s18468_s3, 5120, %s13156_s26, [#allocation5], %s18489_s22, %s18489_s22, %s13043_s23  }
  0x2c   : > { %s12786_s21 = scalar_lea.hbm %s18471_s6, 3072 }
  0x2d   : > { %p12787_p9 = scmp.ne.s32.totalorder %s18471_s6, %s12786_s21  ;;  %p12793_p12 = scmp.lt.u32.totalorder %s12786_s21, %s18471_s6 }
  0x2f   : > { %p12789_p10 = pnand %p12787_p9, %p13184_p7 }
  0x31   : > { %p12790_p11 = pneg %p12789_p10 }
  0x33   : > { %p12795_p13 = pnand %p12793_p12, %p12790_p11 }
  0x35   : > { %12798 = shalt.err (!%p12795_p13)
}
  0x36   : > { %s12799_s26 = scalar_lea.vmem %s13164_s0, 3072  ;;  %p12807_p6 = scmp.lt.s32.totalorder %s13164_s0, %s13164_s0 }
  0x37   : > { %p12800_p0 = scmp.ne.s32.totalorder %s13164_s0, %s12799_s26  ;;  %p12808_p8 = scmp.lt.s32.totalorder %s12799_s26, %s12799_s26 }
  0x39   : > { %p12802_p1 = pnand %p12800_p0, %p13184_p7  ;;  %p12809_p9 = por %p12808_p8, %p12807_p6 }
  0x3b   : > { %p12803_p4 = pneg %p12802_p1 }
  0x3d   : > { %p12810_p10 = pnand %p12809_p9, %p12803_p4 }
  0x3f   : > { %12813 = shalt.err (!%p12810_p10)
}
  0x40   : > { %12697 = dma.hbm_to_vmem [thread:$0]  (!%p13168_p5), %s18471_s6, 3072, %s13164_s0, [#allocation8], %s18489_s22, %s18489_s22, %s13043_s23  }
  0x41   : > { %s12814_s25 = scalar_lea.hbm %s18477_s12, 16 }
  0x42   : > { %p12815_p11 = scmp.ne.s32.totalorder %s18477_s12, %s12814_s25  ;;  %p12821_p0 = scmp.lt.u32.totalorder %s12814_s25, %s18477_s12 }
  0x44   : > { %p12817_p12 = pnand %p12815_p11, %p13184_p7 }
  0x46   : > { %p12818_p13 = pneg %p12817_p12 }
  0x48   : > { %p12823_p1 = pnand %p12821_p0, %p12818_p13 }
  0x4a   : > { %12826 = shalt.err (!%p12823_p1)
}
  0x4b   : > { %s12827_s0 = scalar_lea.vmem %s13172_s19, 16  ;;  %s12834_s26 = scalar_lea.vmem %s13172_s19, 32 }
  0x4c   : > { %p12828_p4 = scmp.ne.s32.totalorder %s13172_s19, %s12827_s0  ;;  %p12835_p9 = scmp.lt.s32.totalorder %s13172_s19, %s13172_s19 }
  0x4d   : > { %p12836_p10 = scmp.lt.s32.totalorder %s12834_s26, %s12827_s0 }
  0x4e   : > { %p12830_p6 = pnand %p12828_p4, %p13184_p7 }
  0x4f   : > { %p12837_p11 = por %p12836_p10, %p12835_p9 }
  0x50   : > { %p12831_p8 = pneg %p12830_p6 }
  0x52   : > { %p12838_p12 = pnand %p12837_p11, %p12831_p8 }
  0x54   : > { %12841 = shalt.err (!%p12838_p12)
}
  0x55   : > { %12703 = dma.hbm_to_vmem [thread:$0]  (!%p13168_p5), %s18477_s12, 16, %s13172_s19, [#allocation11]  }
  0x56   : > { %s12842_s25 = scalar_lea.hbm %s18480_s15, 16 }
  0x57   : > { %p12843_p13 = scmp.ne.s32.totalorder %s18480_s15, %s12842_s25  ;;  %p12849_p4 = scmp.lt.u32.totalorder %s12842_s25, %s18480_s15 }
  0x59   : > { %p12845_p0 = pnand %p12843_p13, %p13184_p7 }
  0x5b   : > { %p12846_p1 = pneg %p12845_p0 }
  0x5d   : > { %p12851_p6 = pnand %p12849_p4, %p12846_p1 }
  0x5f   : > { %12854 = shalt.err (!%p12851_p6)
}
  0x60   : > { %s12855_s0 = scalar_lea.vmem %s545_s20, 16  ;;  %s12862_s19 = scalar_lea.vmem %s545_s20, 32 }
  0x61   : > { %p12856_p8 = scmp.ne.s32.totalorder %s545_s20, %s12855_s0  ;;  %p12863_p11 = scmp.lt.s32.totalorder %s545_s20, %s545_s20 }
  0x62   : > { %p12864_p12 = scmp.lt.s32.totalorder %s12862_s19, %s12855_s0 }
  0x63   : > { %p12858_p9 = pnand %p12856_p8, %p13184_p7 }
  0x64   : > { %p12865_p2 = por %p12864_p12, %p12863_p11 }
  0x65   : > { %p12859_p10 = pneg %p12858_p9 }
  0x67   : > { %p12866_p3 = pnand %p12865_p2, %p12859_p10 }
  0x69   : > { %12869 = shalt.err (!%p12866_p3)
}
  0x6a   : > { %12709 = dma.hbm_to_vmem [thread:$0]  (!%p13168_p5), %s18480_s15, 16, %s545_s20, [#allocation14]  }
  0x6b   : > { %s13044_s10 = smov [#allocation2]   ;;  %s12870_s29 = scalar_lea.hbm %s18467_s2, 9216 }
  0x6c   : > { %s440_s13 = sshll.u32 %s13044_s10, 4  ;;  %p12871_p13 = scmp.ne.s32.totalorder %s18467_s2, %s12870_s29  ;;  %s441_s13 = int_to_ptr.vmem [resolvable:$true] %s440_s13 }
  0x6d   : > { %p12877_p0 = scmp.lt.u32.totalorder %s12870_s29, %s18467_s2 }
  0x6e   : > { %p12873_p2 = pnand %p12871_p13, %p13184_p7 }
  0x70   : > { %p12874_p3 = pneg %p12873_p2 }
  0x72   : > { %p12879_p1 = pnand %p12877_p0, %p12874_p3 }
  0x74   : > { %12882 = shalt.err (!%p12879_p1)
}
  0x75   : > { %s12883_s20 = scalar_lea.vmem %s441_s13, 9216  ;;  %p12891_p9 = scmp.lt.s32.totalorder %s441_s13, %s441_s13 }
  0x76   : > { %p12884_p4 = scmp.ne.s32.totalorder %s441_s13, %s12883_s20  ;;  %p12892_p10 = scmp.lt.s32.totalorder %s12883_s20, %s12883_s20 }
  0x78   : > { %p12886_p6 = pnand %p12884_p4, %p13184_p7  ;;  %p12893_p11 = por %p12892_p10, %p12891_p9 }
  0x7a   : > { %p12887_p8 = pneg %p12886_p6 }
  0x7c   : > { %p12894_p12 = pnand %p12893_p11, %p12887_p8 }
  0x7e   : > { %12897 = shalt.err (!%p12894_p12)
}
  0x7f   : > { %s13045_s19 = smov 384   ;;  %s13046_s26 = smov 24  }
  0x80   : > { %12688 = dma.hbm_to_vmem [thread:$0]  (!%p13168_p5), %s18467_s2, 9216, %s441_s13, [#allocation3], %s13045_s19, %s13045_s19, %s13046_s26  }
  0x81   : > { %s13047_s17 = smov [#allocation6]   ;;  %s13048_s29 = smov [#allocation9]  }
  0x82   : > { %s469_s25 = sshll.u32 %s13047_s17, 4  ;;  %s508_s18 = sshll.u32 %s13048_s29, 4  ;;  %s470_s25 = int_to_ptr.vmem [resolvable:$true] %s469_s25  ;;  %s13295_s18 = int_to_ptr.vmem [resolvable:$true] %s508_s18 }
  0x83   : > { %s12898_s0 = scalar_lea.hbm %s18470_s5, 384 }
  0x84   : > { %p12899_p13 = scmp.ne.s32.totalorder %s18470_s5, %s12898_s0  ;;  %p12905_p0 = scmp.lt.u32.totalorder %s12898_s0, %s18470_s5 }
  0x86   : > { %p12901_p2 = pnand %p12899_p13, %p13184_p7 }
  0x88   : > { %p12902_p3 = pneg %p12901_p2 }
  0x8a   : > { %p12907_p1 = pnand %p12905_p0, %p12902_p3 }
  0x8c   : > { %12910 = shalt.err (!%p12907_p1)
}
  0x8d   : > { %s12911_s19 = scalar_lea.vmem %s470_s25, 384  ;;  %p12919_p9 = scmp.lt.s32.totalorder %s470_s25, %s470_s25 }
  0x8e   : > { %p12912_p4 = scmp.ne.s32.totalorder %s470_s25, %s12911_s19  ;;  %p12920_p10 = scmp.lt.s32.totalorder %s12911_s19, %s12911_s19 }
  0x90   : > { %p12914_p6 = pnand %p12912_p4, %p13184_p7  ;;  %p12921_p11 = por %p12920_p10, %p12919_p9 }
  0x92   : > { %p12915_p8 = pneg %p12914_p6 }
  0x94   : > { %p12922_p12 = pnand %p12921_p11, %p12915_p8 }
  0x96   : > { %12925 = shalt.err (!%p12922_p12)
}
  0x97   : > { %s18576_s22 = smov 128   ;;  %s12926_s1 = scalar_lea.hbm %s18476_s11, 16 }
  0x98   : > { %12694 = dma.hbm_to_vmem [thread:$0]  (!%p13168_p5), %s18470_s5, 384, %s470_s25, [#allocation5], %s18576_s22, %s18576_s22, %s13043_s23  }
  0x99   : > { %p12927_p13 = scmp.ne.s32.totalorder %s18476_s11, %s12926_s1  ;;  %p12933_p0 = scmp.lt.u32.totalorder %s12926_s1, %s18476_s11 }
  0x9b   : > { %p12929_p2 = pnand %p12927_p13, %p13184_p7 }
  0x9d   : > { %p12930_p3 = pneg %p12929_p2 }
  0x9f   : > { %p12935_p1 = pnand %p12933_p0, %p12930_p3 }
  0xa1   : > { %12938 = shalt.err (!%p12935_p1)
}
  0xa2   : > { %s12939_s23 = scalar_lea.vmem %s13295_s18, 16  ;;  %s12946_s25 = scalar_lea.vmem %s13295_s18, 32 }
  0xa3   : > { %p12940_p4 = scmp.ne.s32.totalorder %s13295_s18, %s12939_s23  ;;  %p12947_p9 = scmp.lt.s32.totalorder %s13295_s18, %s13295_s18 }
  0xa4   : > { %p12948_p10 = scmp.lt.s32.totalorder %s12946_s25, %s12939_s23 }
  0xa5   : > { %p12942_p6 = pnand %p12940_p4, %p13184_p7 }
  0xa6   : > { %p12949_p11 = por %p12948_p10, %p12947_p9 }
  0xa7   : > { %p12943_p8 = pneg %p12942_p6 }
  0xa9   : > { %p12950_p12 = pnand %p12949_p11, %p12943_p8 }
  0xab   : > { %12953 = shalt.err (!%p12950_p12)
}
  0xac   : > { %12700 = dma.hbm_to_vmem [thread:$0]  (!%p13168_p5), %s18476_s11, 16, %s13295_s18, [#allocation8]  }
  0xad   : > { %s13049_s22 = smov [#allocation12]   ;;  %s13050_s10 = smov [#allocation15]  }
  0xae   : > { %s533_s26 = sshll.u32 %s13049_s22, 4  ;;  %s555_s17 = sshll.u32 %s13050_s10, 4  ;;  %s534_s26 = int_to_ptr.vmem [resolvable:$true] %s533_s26  ;;  %s13342_s17 = int_to_ptr.vmem [resolvable:$true] %s555_s17 }
  0xaf   : > { %s12954_s21 = scalar_lea.hbm %s18479_s14, 16 }
  0xb0   : > { %p12955_p13 = scmp.ne.s32.totalorder %s18479_s14, %s12954_s21  ;;  %p12961_p0 = scmp.lt.u32.totalorder %s12954_s21, %s18479_s14 }
  0xb2   : > { %p12957_p2 = pnand %p12955_p13, %p13184_p7 }
  0xb4   : > { %p12958_p3 = pneg %p12957_p2 }
  0xb6   : > { %p12963_p1 = pnand %p12961_p0, %p12958_p3 }
  0xb8   : > { %12966 = shalt.err (!%p12963_p1)
}
  0xb9   : > { %s12967_s23 = scalar_lea.vmem %s534_s26, 16  ;;  %s12974_s25 = scalar_lea.vmem %s534_s26, 32 }
  0xba   : > { %p12968_p4 = scmp.ne.s32.totalorder %s534_s26, %s12967_s23  ;;  %p12975_p9 = scmp.lt.s32.totalorder %s534_s26, %s534_s26 }
  0xbb   : > { %p12976_p10 = scmp.lt.s32.totalorder %s12974_s25, %s12967_s23 }
  0xbc   : > { %p12970_p6 = pnand %p12968_p4, %p13184_p7 }
  0xbd   : > { %p12977_p11 = por %p12976_p10, %p12975_p9 }
  0xbe   : > { %p12971_p8 = pneg %p12970_p6 }
  0xc0   : > { %p12978_p12 = pnand %p12977_p11, %p12971_p8 }
  0xc2   : > { %12981 = shalt.err (!%p12978_p12)
}
  0xc3   : > { %12706 = dma.hbm_to_vmem [thread:$0]  (!%p13168_p5), %s18479_s14, 16, %s534_s26, [#allocation11]  }
  0xc4   : > { %s12982_s29 = scalar_lea.hbm %s18481_s16, 16 }
  0xc5   : > { %p12983_p13 = scmp.ne.s32.totalorder %s18481_s16, %s12982_s29  ;;  %p12989_p0 = scmp.lt.u32.totalorder %s12982_s29, %s18481_s16 }
  0xc7   : > { %p12985_p2 = pnand %p12983_p13, %p13184_p7 }
  0xc9   : > { %p12986_p3 = pneg %p12985_p2 }
  0xcb   : > { %p12991_p1 = pnand %p12989_p0, %p12986_p3 }
  0xcd   : > { %12994 = shalt.err (!%p12991_p1)
}
  0xce   : > { %s12995_s26 = scalar_lea.vmem %s13342_s17, 16  ;;  %s13002_s9 = scalar_lea.vmem %s13342_s17, 32 }
  0xcf   : > { %p12996_p4 = scmp.ne.s32.totalorder %s13342_s17, %s12995_s26  ;;  %p13003_p9 = scmp.lt.s32.totalorder %s13342_s17, %s13342_s17 }
  0xd0   : > { %p13004_p10 = scmp.lt.s32.totalorder %s13002_s9, %s12995_s26 }
  0xd1   : > { %p12998_p6 = pnand %p12996_p4, %p13184_p7 }
  0xd2   : > { %p13005_p11 = por %p13004_p10, %p13003_p9 }
  0xd3   : > { %p12999_p8 = pneg %p12998_p6 }
  0xd5   : > { %p13006_p12 = pnand %p13005_p11, %p12999_p8 }
  0xd7   : > { %13009 = shalt.err (!%p13006_p12)
}
  0xd8   : > { %12712 = dma.hbm_to_vmem [thread:$0]  (!%p13168_p5), %s18481_s16, 16, %s13342_s17, [#allocation14]  }
  0xd9   : > { %p18577_p13 = scmp.ne.s32.totalorder %s18573_s28, 0 }
  0xdb   : > { %577 = sbr.rel (%p18577_p13) target bundleno = 3089 (0xc11), region = 88 }
  0xe2   : > { %p18578_p7 = scmp.eq.s32.totalorder %s13151_s27, 0 }
  0xe4   : > { %13015 = dma.done.wait (%p18578_p7), [#allocation3], 9216   ;;  %p18579_p2 = pmov %p18578_p7 }
  0xe6   : > { %13017 = vsyncadd (%p18579_p2), [#allocation3], 4294958080  ;;  %p18580_p3 = pmov %p18579_p2 }
  0xe7   : > { %p18581_p0 = pmov %p18579_p2 }
  0xe8   : > { %13019 = dma.done.wait (%p18580_p3), [#allocation5], 5504  }
  0xe9   : > { %13021 = vsyncadd (%p18581_p0), [#allocation5], 4294961792  ;;  %p18582_p1 = pmov %p18581_p0 }
  0xea   : > { %p18583_p5 = pmov %p18581_p0 }
  0xeb   : > { %13023 = dma.done.wait (%p18582_p1), [#allocation8], 3088  }
  0xec   : > { %13025 = vsyncadd (%p18583_p5), [#allocation8], 4294964208  ;;  %p18584_p4 = pmov %p18581_p0 }
  0xed   : > { %p18585_p6 = pmov %p18581_p0 }
  0xee   : > { %13027 = dma.done.wait (%p18584_p4), [#allocation11], 32  }
  0xef   : > { %13029 = vsyncadd (%p18585_p6), [#allocation11], 4294967264  ;;  %p18586_p8 = pmov %p18581_p0 }
  0xf0   : > { %p18587_p9 = pmov %p18581_p0 }
  0xf1   : > { %13031 = dma.done.wait (%p18586_p8), [#allocation14], 32  }
  0xf2   : > { %13033 = vsyncadd (%p18587_p9), [#allocation14], 4294967264  ;;  %s661_s24 = smul.u32 40, %s13151_s27  ;;  %v13051_v0 = vmov 0   ;;  %vm862_vm0 = vcmask 64512   ;;  %v861_v1 = vld [vmem:[#allocation6 + $0x8] sm:$0xff]  ;;  %v816_v7 = vlaneseq }
  0xf3   : > { %12756 = vset.pattern.permute.xlu0 %v13051_v0  ;;  %12757 = vset.pattern.permute.xlu1 %v13051_v0  ;;  %s18588_s25 = sld [smem:[#allocation93_spill]]  ;;  %v859_v2 = vld [vmem:[#allocation6] sm:$0xff]  ;;  %v673_v39 = vld [vmem:[#allocation4 + $0x8] sm:$0xff]  ;;  %v13633_v38 = vld [vmem:[#allocation6 + $0x10] sm:$0xff]  ;;  %vm2565_vm3 = vcmask 523264   ;;  %s18758_s30 = sld [smem:[#allocation94_spill]] }
  0xf4   : > { %p662_p10 = scmp.lt.s32.totalorder %s661_s24, 79  ;;  %v672_v3 = vld [vmem:[#allocation4] sm:$0xff]  ;;  %10747 = vmatprep.subr.mxu0 %v861_v1  ;;  %v13437_v10 = vshrl.u32 %v816_v7, 7  ;;  %s18762_s0 = sld [smem:[#allocation97_spill]] }
  0xf5   : > { %2230 = vperm.xlu0 %12756, %v672_v3   ;;  %10748 = vmatpush3.msra.mxu0 %v861_v1  ;;  %v674_v3 = vld [vmem:[#allocation4 + $0x10] sm:$0xff]  ;;  %s18875_s22 = sld [smem:[#allocation95_spill]]  ;;  %s18888_s10 = sld [smem:[#allocation96_spill]] }
  0xf6   : > { %s18943_s24 = smov (!%p662_p10, %s661_s24), 79  ;;  %10809 = vmatprep.subr.mxu0 %v859_v2  ;;  %vm818_vm1 = vcmp.lt.s32.totalorder %v13437_v10, 1  ;;  %2240 = vperm.xlu1 %12757, %v674_v3   ;;  %vm1673_vm2 = vcmp.lt.s32.totalorder %v13437_v10, 7  ;;  %s13054_s1 = smov 8  }
  0xf7   : > { %s9541_s28 = sshll.u32 %s18943_s24, 3  ;;  %p667_p11 = scmp.lt.s32.totalorder %s13151_s27, 1 }
  0xf8   : > { %s18940_s26 = sld [smem:[#allocation98_spill]] }
  0xf9   : > { %s13412_s13 = scalar_lea.vmem %s18588_s25, %s9541_s28  ;;  %2235 = vperm.xlu0 %12756, %v673_v39   ;;  %v675_v39 = vld [vmem:[#allocation4 + $0x18] sm:$0xff]  ;;  %s18945_s27 = smov (!%p667_p11, %s13151_s27), 1 }
  0xfa   : > { %v13415_v4 = vld [vmem:[%s13412_s13] sm:$0xff]  ;;  %v13418_v5 = vld [vmem:[%s13412_s13 + $0x8] sm:$0xff]  ;;  %v13421_v6 = vld [vmem:[%s13412_s13 + $0x10] sm:$0xff]  ;;  %2245 = vperm.xlu1 %12757, %v675_v39   ;;  %s10143_s21 = sshll.u32 %s18945_s27, 5 }
  0xfb   : > { %18589 = vst [vmem:[#allocation22_spill] sm:$0xff] %v13415_v4  ;;  %10749 = vmatprep.mubr.msk.f32.mxu0 %vm862_vm0, %v13415_v4  ;;  %v13430_v8 = vld [vmem:[%s13412_s13 + $0x18] sm:$0xff]  ;;  %v13433_v9 = vld [vmem:[%s13412_s13 + $0x20] sm:$0xff]  ;;  %v776_v11 = vrot.slane %v13415_v4, 7  ;;  %v13443_v12 = vld [vmem:[%s13412_s13 + $0x28] sm:$0xff]  ;;  %v777_v13 = vrot.slane %v13418_v5, 7 }
  0xfc   : > { %10750 = vmatmul.mubr.msk.f32.vlgmr.msra.gmra.mrb[0].mxu0 %vm862_vm0, %v13418_v5  ;;  %v778_v15 = vrot.slane %v13421_v6, 7  ;;  %v13450_v17 = vld [vmem:[%s13412_s13 + $0x30] sm:$0xff]  ;;  %v13453_v18 = vld [vmem:[%s13412_s13 + $0x38] sm:$0xff]  ;;  %v779_v19 = vrot.slane %v13430_v8, 7  ;;  %v780_v20 = vrot.slane %v13433_v9, 7  ;;  %v781_v21 = vrot.slane %v13443_v12, 7 }
  0xfd   : > { %10752 = vmatprep.mubr.msk.f32.mxu0 %vm862_vm0, %v13421_v6  ;;  %10810 = vmatpush3.msra.mxu0 %v859_v2  ;;  %v13459_v22 = vld [vmem:[%s13412_s13 + $0x40] sm:$0xff]  ;;  %v13462_v23 = vld [vmem:[%s13412_s13 + $0x48] sm:$0xff]  ;;  %v13465_v24 = vld [vmem:[%s13412_s13 + $0x50] sm:$0xff]  ;;  %v782_v25 = vrot.slane %v13450_v17, 7  ;;  %v783_v26 = vrot.slane %v13453_v18, 7  ;;  %v13607_v50 = vsel %vm818_vm1, %v776_v11, %v777_v13 }
  0xfe   : > { %v784_v27 = vrot.slane %v13459_v22, 7  ;;  %v13473_v28 = vld [vmem:[%s13412_s13 + $0x58] sm:$0xff]  ;;  %v13476_v29 = vld [vmem:[%s13412_s13 + $0x60] sm:$0xff]  ;;  %v13479_v30 = vld [vmem:[%s13412_s13 + $0x68] sm:$0xff]  ;;  %v785_v31 = vrot.slane %v13462_v23, 7  ;;  %v786_v32 = vrot.slane %v13465_v24, 7  ;;  %v13615_v51 = vsel %vm818_vm1, %v777_v13, %v778_v15  ;;  %10871 = vmatprep.subr.mxu0 %v13633_v38  ;;  %s671_s9 = scalar_lea.vmem %s18940_s26, %s10143_s21 }
  0xff   : > { %v787_v33 = vrot.slane %v13473_v28, 7  ;;  %v13488_v34 = vld [vmem:[%s13412_s13 + $0x70] sm:$0xff]  ;;  %v13491_v35 = vld [vmem:[%s13412_s13 + $0x78] sm:$0xff]  ;;  %v13494_v36 = vld [vmem:[%s13412_s13 + $0x80] sm:$0xff]  ;;  %v788_v37 = vrot.slane %v13476_v29, 7  ;;  %v13623_v3 = vsel %vm818_vm1, %v778_v15, %v779_v19  ;;  %v13631_v44 = vsel %vm818_vm1, %v779_v19, %v780_v20 }
 0x100   : > { %10753 = vmatmul.mubr.msk.f32.gmra.mrb[2].mxu0 %vm862_vm0, %v13430_v8  ;;  %v13500_v40 = vld [vmem:[%s13412_s13 + $0x88] sm:$0xff]  ;;  %v13503_v41 = vld [vmem:[%s13412_s13 + $0x90] sm:$0xff]  ;;  %v13506_v42 = vld [vmem:[%s13412_s13 + $0x98] sm:$0xff]  ;;  %v13651_v15 = vsel %vm818_vm1, %v780_v20, %v781_v21  ;;  %v13659_v19 = vsel %vm818_vm1, %v781_v21, %v782_v25  ;;  %v13677_v20 = vsel %vm818_vm1, %v783_v26, %v784_v27  ;;  %v13685_v21 = vsel %vm818_vm1, %v784_v27, %v785_v31 }
 0x101   : > { %10755 = vmatprep.mubr.msk.f32.mxu0 %vm862_vm0, %v13433_v9  ;;  %v13512_v46 = vld [vmem:[%s13412_s13 + $0xa0] sm:$0xff]  ;;  %v13515_v47 = vld [vmem:[%s13412_s13 + $0xa8] sm:$0xff]  ;;  %v13518_v48 = vld [vmem:[%s13412_s13 + $0xb0] sm:$0xff]  ;;  %18590 = vst [vmem:[#allocation23_spill] sm:$0xff] %v13677_v20  ;;  %v13709_v27 = vsel %vm818_vm1, %v787_v33, %v788_v37  ;;  %v18597_v4 = vrot.slane %v13488_v34, 7  ;;  %v18612_v20 = vrot.slane %v13506_v42, 7 }
 0x102   : > { %v13526_v52 = vld [vmem:[%s13412_s13 + $0xb8] sm:$0xff]  ;;  %v13529_v53 = vld [vmem:[%s13412_s13 + $0xc0] sm:$0xff]  ;;  %v13532_v54 = vld [vmem:[%s13412_s13 + $0xc8] sm:$0xff]  ;;  %18591 = vst [vmem:[#allocation24_spill] sm:$0xff] %v13685_v21  ;;  %v18621_v39 = vrot.slane %v13518_v48, 7 }
 0x103   : > { %v13540_v58 = vld [vmem:[%s13412_s13 + $0xd0] sm:$0xff]  ;;  %v13543_v59 = vld [vmem:[%s13412_s13 + $0xd8] sm:$0xff]  ;;  %v13546_v60 = vld [vmem:[%s13412_s13 + $0xe0] sm:$0xff]  ;;  %18594 = vst [vmem:[#allocation27_spill] sm:$0xff] %v13709_v27 }
 0x104   : > { %10756 = vmatmul.mubr.msk.f32.gmra.mrb[4].mxu0 %vm862_vm0, %v13443_v12  ;;  %v13552_v0 = vld [vmem:[%s13412_s13 + $0xe8] sm:$0xff]  ;;  %v13555_v1 = vld [vmem:[%s13412_s13 + $0xf0] sm:$0xff]  ;;  %v13558_v2 = vld [vmem:[%s13412_s13 + $0xf8] sm:$0xff] }
 0x105   : > { %10758 = vmatprep.mubr.msk.f32.mxu0 %vm862_vm0, %v13450_v17  ;;  %v13564_v16 = vld [vmem:[%s13412_s13 + $0x100] sm:$0xff]  ;;  %v13567_v62 = vld [vmem:[%s13412_s13 + $0x108] sm:$0xff]  ;;  %v13570_v63 = vld [vmem:[%s13412_s13 + $0x110] sm:$0xff] }
 0x106   : > { %v13578_v7 = vld [vmem:[%s13412_s13 + $0x118] sm:$0xff]  ;;  %v13581_v56 = vld [vmem:[%s13412_s13 + $0x120] sm:$0xff]  ;;  %v13584_v14 = vld [vmem:[%s13412_s13 + $0x128] sm:$0xff]  ;;  %v809_v55 = vrot.slane %v13567_v62, 7 }
 0x107   : > { %v13592_v61 = vld [vmem:[%s13412_s13 + $0x130] sm:$0xff]  ;;  %v13595_v57 = vld [vmem:[%s13412_s13 + $0x138] sm:$0xff]  ;;  %v812_v49 = vrot.slane %v13581_v56, 7  ;;  %v813_v45 = vrot.slane %v13584_v14, 7 }
 0x108   : > { %10759 = vmatmul.mubr.msk.f32.gmra.mrb[6].mxu0 %vm862_vm0, %v13453_v18  ;;  %v18490_v43 = vrot.slane %v13595_v57, 7 }
 0x109   : > { %10761 = vmatprep.mubr.msk.f32.mxu0 %vm862_vm0, %v13459_v22 }
 0x10a   : > { %v13643_v13 = vsel %vm818_vm1, %v18490_v43, %v776_v11  ;;  %v13667_v11 = vsel %vm818_vm1, %v782_v25, %v783_v26  ;;  %v13693_v25 = vsel %vm818_vm1, %v785_v31, %v786_v32  ;;  %v13701_v26 = vsel %vm818_vm1, %v786_v32, %v787_v33 }
 0x10b   : > { %18592 = vst [vmem:[#allocation25_spill] sm:$0xff] %v13693_v25  ;;  %18593 = vst [vmem:[#allocation26_spill] sm:$0xff] %v13701_v26  ;;  %v18595_v43 = vrot.slane %v13479_v30, 7  ;;  %v18600_v25 = vrot.slane %v13491_v35, 7  ;;  %v18601_v33 = vmov %v18597_v4 }
 0x10c   : > { %10762 = vmatmul.mubr.msk.f32.gmra.mrb[8].mxu0 %vm862_vm0, %v13462_v23 }
 0x10d   : > { %10764 = vmatprep.mubr.msk.f32.mxu0 %vm862_vm0, %v13465_v24  ;;  %v13717_v31 = vsel %vm818_vm1, %v788_v37, %v18595_v43  ;;  %v18598_v32 = vmov %v18595_v43  ;;  %v13733_v27 = vsel %vm818_vm1, %v18601_v33, %v18600_v25  ;;  %v676_v37 = vld [vmem:[#allocation4 + $0x20] sm:$0xff]  ;;  %v18603_v43 = vrot.slane %v13494_v36, 7 }
 0x10e   : > { %18596 = vst [vmem:[#allocation28_spill] sm:$0xff] %v13717_v31  ;;  %v13725_v26 = vsel %vm818_vm1, %v18598_v32, %v18597_v4  ;;  %18602 = vst [vmem:[#allocation30_spill] sm:$0xff] %v13733_v27  ;;  %v18604_v31 = vmov %v18600_v25  ;;  %v18606_v4 = vrot.slane %v13500_v40, 7  ;;  %v18609_v25 = vrot.slane %v13503_v41, 7  ;;  %2250 = vperm.xlu0 %12756, %v676_v37  }
 0x10f   : > { %18599 = vst [vmem:[#allocation29_spill] sm:$0xff] %v13725_v26  ;;  %v13742_v21 = vsel %vm818_vm1, %v18604_v31, %v18603_v43  ;;  %v18607_v32 = vmov %v18603_v43 }
 0x110   : > { %10765 = vmatmul.mubr.msk.f32.gmra.mrb[10].mxu0 %vm862_vm0, %v13473_v28  ;;  %18605 = vst [vmem:[#allocation31_spill] sm:$0xff] %v13742_v21  ;;  %v13750_v26 = vsel %vm818_vm1, %v18607_v32, %v18606_v4  ;;  %v18610_v33 = vmov %v18606_v4  ;;  %v18613_v31 = vmov %v18609_v25  ;;  %v18615_v4 = vrot.slane %v13512_v46, 7  ;;  %v678_v21 = vld [vmem:[#allocation4 + $0x30] sm:$0xff] }
 0x111   : > { %10767 = vmatprep.mubr.msk.f32.mxu0 %vm862_vm0, %v13476_v29  ;;  %18608 = vst [vmem:[#allocation32_spill] sm:$0xff] %v13750_v26  ;;  %v13758_v27 = vsel %vm818_vm1, %v18610_v33, %v18609_v25  ;;  %v13766_v43 = vsel %vm818_vm1, %v18613_v31, %v18612_v20  ;;  %v18616_v32 = vmov %v18612_v20  ;;  %v18618_v33 = vrot.slane %v13515_v47, 7 }
 0x112   : > { %18611 = vst [vmem:[#allocation33_spill] sm:$0xff] %v13758_v27  ;;  %18614 = vst [vmem:[#allocation34_spill] sm:$0xff] %v13766_v43  ;;  %v13776_v25 = vsel %vm818_vm1, %v18616_v32, %v18615_v4  ;;  %v18619_v27 = vmov %v18615_v4  ;;  %v18624_v26 = vrot.slane %v13526_v52, 7  ;;  %v18625_v4 = vmov %v18621_v39  ;;  %2260 = vperm.xlu0 %12756, %v678_v21  }
 0x113   : > { %18617 = vst [vmem:[#allocation35_spill] sm:$0xff] %v13776_v25  ;;  %v13784_v20 = vsel %vm818_vm1, %v18619_v27, %v18618_v33  ;;  %v18622_v31 = vmov %v18618_v33  ;;  %v677_v25 = vld [vmem:[#allocation4 + $0x28] sm:$0xff]  ;;  %v1636_v27 = vrot.slane %v13430_v8, 1  ;;  %v18627_v33 = vrot.slane %v13529_v53, 7 }
 0x114   : > { %10768 = vmatmul.mubr.msk.f32.gmra.mrb[12].mxu0 %vm862_vm0, %v13479_v30  ;;  %18620 = vst [vmem:[#allocation36_spill] sm:$0xff] %v13784_v20  ;;  %v13792_v43 = vsel %vm818_vm1, %v18622_v31, %v18621_v39  ;;  %v13800_v32 = vsel %vm818_vm1, %v18625_v4, %v18624_v26  ;;  %v18628_v20 = vmov %v18624_v26  ;;  %v18630_v31 = vrot.slane %v13532_v54, 7  ;;  %2255 = vperm.xlu1 %12757, %v677_v25  }
 0x115   : > { %18623 = vst [vmem:[#allocation37_spill] sm:$0xff] %v13792_v43  ;;  %18626 = vst [vmem:[#allocation38_spill] sm:$0xff] %v13800_v32  ;;  %10770 = vmatprep.mubr.msk.f32.mxu0 %vm862_vm0, %v13488_v34  ;;  %v13811_v39 = vsel %vm818_vm1, %v18628_v20, %v18627_v33  ;;  %v18631_v43 = vmov %v18627_v33  ;;  %v18632_v8 = vrot.slane %v13540_v58, 7  ;;  %v18635_v20 = vrot.slane %v13543_v59, 7 }
 0x116   : > { %18629 = vst [vmem:[#allocation39_spill] sm:$0xff] %v13811_v39  ;;  %v13819_v26 = vsel %vm818_vm1, %v18631_v43, %v18630_v31  ;;  %v18633_v4 = vmov %v18630_v31  ;;  %v18638_v43 = vrot.slane %v13546_v60, 7  ;;  %v1638_v21 = vrot.slane %v13443_v12, 1  ;;  %v682_v12 = vld [vmem:[#allocation4 + $0x50] sm:$0xff] }
 0x117   : > { %v13827_v32 = vsel %vm818_vm1, %v18633_v4, %v18632_v8  ;;  %v18636_v33 = vmov %v18632_v8  ;;  %v18639_v37 = vmov %v18635_v20  ;;  %v18641_v8 = vrot.slane %v13552_v0, 7 }
 0x118   : > { %18634 = vst [vmem:[#allocation40_spill] sm:$0xff] %v13827_v32  ;;  %v13835_v39 = vsel %vm818_vm1, %v18636_v33, %v18635_v20  ;;  %v13843_v31 = vsel %vm818_vm1, %v18639_v37, %v18638_v43  ;;  %v18642_v4 = vmov %v18638_v43  ;;  %v18644_v20 = vrot.slane %v13555_v1, 7  ;;  %10771 = vmatmul.mubr.msk.f32.gmra.mrb[14].mxu0 %vm862_vm0, %v13491_v35 }
 0x119   : > { %18637 = vst [vmem:[#allocation41_spill] sm:$0xff] %v13835_v39  ;;  %18640 = vst [vmem:[#allocation42_spill] sm:$0xff] %v13843_v31  ;;  %v13851_v32 = vsel %vm818_vm1, %v18642_v4, %v18641_v8  ;;  %v18645_v33 = vmov %v18641_v8  ;;  %v18646_v43 = vrot.slane %v13558_v2, 7  ;;  %v18649_v8 = vrot.slane %v13564_v16, 7  ;;  %10773 = vmatprep.mubr.msk.f32.mxu0 %vm862_vm0, %v13494_v36 }
 0x11a   : > { %18643 = vst [vmem:[#allocation43_spill] sm:$0xff] %v13851_v32  ;;  %v13859_v39 = vsel %vm818_vm1, %v18645_v33, %v18644_v20  ;;  %v18647_v37 = vmov %v18644_v20  ;;  %v18654_v33 = vrot.slane %v13570_v63, 7 }
 0x11b   : > { %v13867_v31 = vsel %vm818_vm1, %v18647_v37, %v18646_v43  ;;  %v18650_v4 = vmov %v18646_v43  ;;  %v18652_v20 = vmov %v18649_v8  ;;  %v679_v37 = vld [vmem:[#allocation4 + $0x38] sm:$0xff] }
 0x11c   : > { %18648 = vst [vmem:[#allocation44_spill] sm:$0xff] %v13867_v31  ;;  %v13875_v32 = vsel %vm818_vm1, %v18650_v4, %v18649_v8  ;;  %v13881_v25 = vsel %vm818_vm1, %v18652_v20, %v809_v55  ;;  %v13887_v43 = vsel %vm818_vm1, %v809_v55, %v18654_v33  ;;  %v18656_v31 = vrot.slane %v13578_v7, 7  ;;  %2265 = vperm.xlu1 %12757, %v679_v37  }
 0x11d   : > { %18651 = vst [vmem:[#allocation45_spill] sm:$0xff] %v13875_v32  ;;  %18653 = vst [vmem:[#allocation46_spill] sm:$0xff] %v13881_v25  ;;  %v18657_v8 = vmov %v18654_v33  ;;  %v13907_v55 = vsel %vm818_vm1, %v812_v49, %v813_v45  ;;  %v18659_v33 = vrot.slane %v13592_v61, 7  ;;  %v1637_v32 = vrot.slane %v13433_v9, 1  ;;  %10774 = vmatmul.mubr.msk.f32.gmra.mrb[16].mxu0 %vm862_vm0, %v13500_v40 }
 0x11e   : > { %18655 = vst [vmem:[#allocation47_spill] sm:$0xff] %v13887_v43  ;;  %v13897_v4 = vsel %vm818_vm1, %v18657_v8, %v18656_v31  ;;  %v18658_v20 = vmov %v18656_v31  ;;  %v18661_v31 = vrot.slane %v13595_v57, 7  ;;  %10776 = vmatprep.mubr.msk.f32.mxu0 %vm862_vm0, %v13503_v41 }
 0x11f   : > { %v13903_v25 = vsel %vm818_vm1, %v18658_v20, %v812_v49  ;;  %v13913_v43 = vsel %vm818_vm1, %v813_v45, %v18659_v33  ;;  %v18662_v8 = vmov %v18659_v33  ;;  %v680_v20 = vld [vmem:[#allocation4 + $0x40] sm:$0xff]  ;;  %v18664_v45 = vrot.slane %v13421_v6, 1  ;;  %v683_v6 = vld [vmem:[#allocation4 + $0x58] sm:$0xff] }
 0x120   : > { %18660 = vst [vmem:[#allocation48_spill] sm:$0xff] %v13913_v43  ;;  %v13924_v49 = vsel %vm818_vm1, %v18662_v8, %v18661_v31  ;;  %v18665_v33 = vrot.slane %v13418_v5, 1  ;;  %v681_v43 = vld [vmem:[#allocation4 + $0x48] sm:$0xff]  ;;  %2270 = vperm.xlu0 %12756, %v680_v20   ;;  %v13949_v37 = vsel %vm1673_vm2, %v1636_v27, %v1637_v32 }
 0x121   : > { %18663 = vst [vmem:[#allocation49_spill] sm:$0xff] %v13924_v49  ;;  %v18666_v31 = vmov %v18664_v45  ;;  %v1639_v49 = vrot.slane %v13450_v17, 1  ;;  %2275 = vperm.xlu1 %12757, %v681_v43   ;;  %10777 = vmatmul.mubr.msk.f32.gmra.mrb[18].mxu0 %vm862_vm0, %v13506_v42  ;;  %v1641_v17 = vrot.slane %v13459_v22, 1  ;;  %v684_v43 = vld [vmem:[#allocation4 + $0x60] sm:$0xff]  ;;  %v685_v20 = vld [vmem:[#allocation4 + $0x68] sm:$0xff]  ;;  %v1643_v22 = vrot.slane %v13465_v24, 1 }
 0x122   : > { %v13933_v9 = vsel %vm1673_vm2, %v18665_v33, %v18664_v45  ;;  %v13942_v8 = vsel %vm1673_vm2, %v18666_v31, %v1636_v27  ;;  %v1640_v45 = vrot.slane %v13453_v18, 1  ;;  %v13956_v33 = vsel %vm1673_vm2, %v1637_v32, %v1638_v21  ;;  %10779 = vmatprep.mubr.msk.f32.mxu0 %vm862_vm0, %v13512_v46  ;;  %v686_v31 = vld [vmem:[#allocation4 + $0x70] sm:$0xff] }
 0x123   : > { %v13963_v27 = vsel %vm1673_vm2, %v1638_v21, %v1639_v49  ;;  %v1642_v18 = vrot.slane %v13462_v23, 1  ;;  %v1644_v23 = vrot.slane %v13473_v28, 1  ;;  %v1645_v24 = vrot.slane %v13476_v29, 1 }
 0x124   : > { %2280 = vperm.xlu0 %12756, %v682_v12   ;;  %v13970_v32 = vsel %vm1673_vm2, %v1639_v49, %v1640_v45  ;;  %v13977_v21 = vsel %vm1673_vm2, %v1640_v45, %v1641_v17  ;;  %v687_v12 = vld [vmem:[#allocation4 + $0x78] sm:$0xff]  ;;  %v1646_v28 = vrot.slane %v13479_v30, 1  ;;  %v1647_v29 = vrot.slane %v13488_v34, 1 }
 0x125   : > { %2285 = vperm.xlu1 %12757, %v683_v6   ;;  %10780 = vmatmul.mubr.msk.f32.gmra.mrb[20].mxu0 %vm862_vm0, %v13515_v47  ;;  %v13984_v49 = vsel %vm1673_vm2, %v1641_v17, %v1642_v18  ;;  %v13991_v45 = vsel %vm1673_vm2, %v1642_v18, %v1643_v22  ;;  %v688_v6 = vld [vmem:[#allocation4 + $0x80] sm:$0xff]  ;;  %v13998_v17 = vsel %vm1673_vm2, %v1643_v22, %v1644_v23  ;;  %v1648_v30 = vrot.slane %v13491_v35, 1 }
 0x126   : > { %10782 = vmatprep.mubr.msk.f32.mxu0 %vm862_vm0, %v13518_v48  ;;  %v14005_v18 = vsel %vm1673_vm2, %v1644_v23, %v1645_v24  ;;  %v14012_v22 = vsel %vm1673_vm2, %v1645_v24, %v1646_v28  ;;  %v1649_v34 = vrot.slane %v13494_v36, 1  ;;  %v14019_v23 = vsel %vm1673_vm2, %v1646_v28, %v1647_v29 }
 0x127   : > { %v1650_v35 = vrot.slane %v13500_v40, 1  ;;  %v14026_v24 = vsel %vm1673_vm2, %v1647_v29, %v1648_v30  ;;  %v1651_v36 = vrot.slane %v13503_v41, 1  ;;  %v1652_v40 = vrot.slane %v13506_v42, 1 }
 0x128   : > { %2290 = vperm.xlu0 %12756, %v684_v43   ;;  %v689_v43 = vld [vmem:[#allocation4 + $0x88] sm:$0xff]  ;;  %v14033_v28 = vsel %vm1673_vm2, %v1648_v30, %v1649_v34  ;;  %v1653_v41 = vrot.slane %v13512_v46, 1  ;;  %v1654_v42 = vrot.slane %v13515_v47, 1  ;;  %v1655_v46 = vrot.slane %v13518_v48, 1 }
 0x129   : > { %2295 = vperm.xlu1 %12757, %v685_v20   ;;  %10783 = vmatmul.mubr.msk.f32.gmra.mrb[22].mxu0 %vm862_vm0, %v13526_v52  ;;  %v690_v20 = vld [vmem:[#allocation4 + $0x90] sm:$0xff]  ;;  %v14040_v29 = vsel %vm1673_vm2, %v1649_v34, %v1650_v35  ;;  %v14047_v30 = vsel %vm1673_vm2, %v1650_v35, %v1651_v36  ;;  %v14054_v34 = vsel %vm1673_vm2, %v1651_v36, %v1652_v40  ;;  %v1656_v47 = vrot.slane %v13526_v52, 1 }
 0x12a   : > { %10785 = vmatprep.mubr.msk.f32.mxu0 %vm862_vm0, %v13529_v53  ;;  %v14061_v35 = vsel %vm1673_vm2, %v1652_v40, %v1653_v41  ;;  %v14068_v36 = vsel %vm1673_vm2, %v1653_v41, %v1654_v42  ;;  %v1657_v48 = vrot.slane %v13529_v53, 1  ;;  %v14075_v40 = vsel %vm1673_vm2, %v1654_v42, %v1655_v46 }
 0x12b   : > { %v1658_v52 = vrot.slane %v13532_v54, 1  ;;  %v14082_v41 = vsel %vm1673_vm2, %v1655_v46, %v1656_v47  ;;  %v1659_v53 = vrot.slane %v13540_v58, 1 }
 0x12c   : > { %2300 = vperm.xlu0 %12756, %v686_v31   ;;  %v691_v31 = vld [vmem:[#allocation4 + $0x98] sm:$0xff]  ;;  %v14089_v42 = vsel %vm1673_vm2, %v1656_v47, %v1657_v48 }
 0x12d   : > { %2305 = vperm.xlu1 %12757, %v687_v12   ;;  %10786 = vmatmul.mubr.msk.f32.gmra.mrb[24].mxu0 %vm862_vm0, %v13532_v54  ;;  %v692_v12 = vld [vmem:[#allocation4 + $0xa0] sm:$0xff]  ;;  %v1660_v54 = vrot.slane %v13543_v59, 1  ;;  %v14096_v46 = vsel %vm1673_vm2, %v1657_v48, %v1658_v52  ;;  %v14103_v47 = vsel %vm1673_vm2, %v1658_v52, %v1659_v53  ;;  %v707_v52 = vld [vmem:[#allocation4 + $0x118] sm:$0xff] }
 0x12e   : > { %10788 = vmatprep.mubr.msk.f32.mxu0 %vm862_vm0, %v13540_v58  ;;  %v1661_v58 = vrot.slane %v13546_v60, 1 }
 0x12f   : > { %v14110_v48 = vsel %vm1673_vm2, %v1659_v53, %v1660_v54 }
 0x130   : > { %2310 = vperm.xlu0 %12756, %v688_v6   ;;  %v693_v6 = vld [vmem:[#allocation4 + $0xa8] sm:$0xff] }
 0x131   : > { %2315 = vperm.xlu1 %12757, %v689_v43   ;;  %10789 = vmatmul.mubr.msk.f32.gmra.mrb[26].mxu0 %vm862_vm0, %v13543_v59  ;;  %v694_v43 = vld [vmem:[#allocation4 + $0xb0] sm:$0xff]  ;;  %v704_v59 = vld [vmem:[#allocation4 + $0x100] sm:$0xff] }
 0x132   : > { %10791 = vmatprep.mubr.msk.f32.mxu0 %vm862_vm0, %v13546_v60  ;;  %v1663_v60 = vrot.slane %v13555_v1, 1 }
 0x134   : > { %2320 = vperm.xlu0 %12756, %v690_v20   ;;  %v695_v20 = vld [vmem:[#allocation4 + $0xb8] sm:$0xff] }
 0x135   : > { %2325 = vperm.xlu1 %12757, %v691_v31   ;;  %10792 = vmatmul.mubr.msk.f32.gmra.mrb[28].mxu0 %vm862_vm0, %v13552_v0  ;;  %v696_v31 = vld [vmem:[#allocation4 + $0xc0] sm:$0xff] }
 0x136   : > { %10794 = vmatprep.mubr.msk.f32.mxu0 %vm862_vm0, %v13555_v1 }
 0x138   : > { %2330 = vperm.xlu0 %12756, %v692_v12   ;;  %v697_v12 = vld [vmem:[#allocation4 + $0xc8] sm:$0xff] }
 0x139   : > { %2335 = vperm.xlu1 %12757, %v693_v6   ;;  %10795 = vmatmul.mubr.msk.f32.gmra.mrb[30].mxu0 %vm862_vm0, %v13558_v2  ;;  %v698_v6 = vld [vmem:[#allocation4 + $0xd0] sm:$0xff] }
 0x13a   : > { %10797 = vmatprep.mubr.msk.f32.mxu0 %vm862_vm0, %v13564_v16 }
 0x13c   : > { %2340 = vperm.xlu0 %12756, %v694_v43   ;;  %v699_v43 = vld [vmem:[#allocation4 + $0xd8] sm:$0xff] }
 0x13d   : > { %2345 = vperm.xlu1 %12757, %v695_v20   ;;  %10798 = vmatmul.mubr.msk.f32.gmra.mrb[32].mxu0 %vm862_vm0, %v13567_v62  ;;  %v700_v20 = vld [vmem:[#allocation4 + $0xe0] sm:$0xff] }
 0x13e   : > { %10800 = vmatprep.mubr.msk.f32.mxu0 %vm862_vm0, %v13570_v63 }
 0x140   : > { %2350 = vperm.xlu0 %12756, %v696_v31   ;;  %v701_v31 = vld [vmem:[#allocation4 + $0xe8] sm:$0xff] }
 0x141   : > { %2355 = vperm.xlu1 %12757, %v697_v12   ;;  %10801 = vmatmul.mubr.msk.f32.gmra.mrb[34].mxu0 %vm862_vm0, %v13578_v7  ;;  %v702_v12 = vld [vmem:[#allocation4 + $0xf0] sm:$0xff] }
 0x142   : > { %10803 = vmatprep.mubr.msk.f32.mxu0 %vm862_vm0, %v13581_v56 }
 0x144   : > { %2360 = vperm.xlu0 %12756, %v698_v6   ;;  %v703_v6 = vld [vmem:[#allocation4 + $0xf8] sm:$0xff] }
 0x145   : > { %2365 = vperm.xlu1 %12757, %v699_v43   ;;  %10804 = vmatmul.mubr.msk.f32.gmra.mrb[36].mxu0 %vm862_vm0, %v13584_v14  ;;  %v1662_v43 = vrot.slane %v13552_v0, 1  ;;  %v706_v0 = vld [vmem:[#allocation4 + $0x110] sm:$0xff] }
 0x146   : > { %10806 = vmatprep.mubr.msk.f32.mxu0 %vm862_vm0, %v13592_v61 }
 0x147   : > { %v14125_v1 = vsel %vm1673_vm2, %v1661_v58, %v1662_v43 }
 0x148   : > { %2370 = vperm.xlu0 %12756, %v700_v20   ;;  %v705_v20 = vld [vmem:[#allocation4 + $0x108] sm:$0xff] }
 0x149   : > { %2375 = vperm.xlu1 %12757, %v701_v31   ;;  %10807 = vmatmul.mubr.msk.f32.gmra.mrb[38].mxu0 %vm862_vm0, %v13595_v57  ;;  %v1666_v31 = vrot.slane %v13567_v62, 1  ;;  %v710_v62 = vld [vmem:[#allocation4 + $0x130] sm:$0xff] }
 0x14a   : > { %10811 = vmatprep.mubr.msk.f32.mxu0 %vm862_vm0, %v13643_v13  ;;  %v14118_v13 = vsel %vm1673_vm2, %v1660_v54, %v1661_v58  ;;  %v18668_v58 = vld [vmem:[#allocation24_spill] sm:$0xff] }
 0x14c   : > { %2380 = vperm.xlu0 %12756, %v702_v12   ;;  %v1668_v12 = vrot.slane %v13578_v7, 1  ;;  %v712_v7 = vld [vmem:[%s18469_s4] sm:$0xff] }
 0x14d   : > { %2385 = vperm.xlu1 %12757, %v703_v6   ;;  %10812 = vmatmul.mubr.msk.f32.vlgmr.msra.gmra.mrb[0].mxu0 %vm862_vm0, %v13607_v50  ;;  %v1664_v50 = vrot.slane %v13558_v2, 1  ;;  %v708_v2 = vld [vmem:[#allocation4 + $0x120] sm:$0xff] }
 0x14e   : > { %10814 = vmatprep.mubr.msk.f32.mxu0 %vm862_vm0, %v13615_v51  ;;  %10872 = vmatpush3.msra.mxu0 %v13633_v38  ;;  %v1665_v51 = vrot.slane %v13564_v16, 1  ;;  %v14132_v38 = vsel %vm1673_vm2, %v1662_v43, %v1663_v60  ;;  %v1667_v16 = vrot.slane %v13570_v63, 1  ;;  %v1669_v63 = vrot.slane %v13581_v56, 1  ;;  %v713_v56 = vld [vmem:[%s18469_s4 + $0x8] sm:$0xff] }
 0x14f   : > { %v14139_v53 = vsel %vm1673_vm2, %v1663_v60, %v1664_v50  ;;  %v1671_v43 = vrot.slane %v13592_v61, 1  ;;  %v715_v61 = vld [vmem:[%s18469_s4 + $0x18] sm:$0xff] }
 0x150   : > { %2390 = vperm.xlu0 %12756, %v704_v59   ;;  %v14153_v54 = vsel %vm1673_vm2, %v1665_v51, %v1666_v31  ;;  %v14160_v6 = vsel %vm1673_vm2, %v1666_v31, %v1667_v16  ;;  %v14173_v59 = vsel %vm1673_vm2, %v1667_v16, %v1668_v12  ;;  %v14180_v60 = vsel %vm1673_vm2, %v1668_v12, %v1669_v63  ;;  %v716_v31 = vld [vmem:[%s18469_s4 + $0x20] sm:$0xff]  ;;  %v717_v16 = vld [vmem:[%s18469_s4 + $0x28] sm:$0xff] }
 0x151   : > { %2395 = vperm.xlu1 %12757, %v705_v20   ;;  %10815 = vmatmul.mubr.msk.f32.gmra.mrb[2].mxu0 %vm862_vm0, %v13623_v3  ;;  %v709_v3 = vld [vmem:[#allocation4 + $0x128] sm:$0xff]  ;;  %v18669_v20 = vld [vmem:[#allocation25_spill] sm:$0xff] }
 0x152   : > { %10817 = vmatprep.mubr.msk.f32.mxu0 %vm862_vm0, %v13631_v44  ;;  %v14146_v44 = vsel %vm1673_vm2, %v1664_v50, %v1665_v51  ;;  %v18670_v50 = vld [vmem:[#allocation26_spill] sm:$0xff]  ;;  %v18671_v51 = vld [vmem:[#allocation27_spill] sm:$0xff]  ;;  %v18673_v12 = vld [vmem:[#allocation29_spill] sm:$0xff] }
 0x154   : > { %2400 = vperm.xlu0 %12756, %v706_v0   ;;  %v1672_v0 = vrot.slane %v13595_v57, 1 }
 0x155   : > { %2405 = vperm.xlu1 %12757, %v707_v52   ;;  %10818 = vmatmul.mubr.msk.f32.gmra.mrb[4].mxu0 %vm862_vm0, %v13651_v15  ;;  %v711_v15 = vld [vmem:[#allocation4 + $0x138] sm:$0xff] }
 0x156   : > { %10820 = vmatprep.mubr.msk.f32.mxu0 %vm862_vm0, %v13659_v19  ;;  %v18667_v19 = vld [vmem:[#allocation23_spill] sm:$0xff] }
 0x158   : > { %2410 = vperm.xlu0 %12756, %v708_v2  }
 0x159   : > { %2415 = vperm.xlu1 %12757, %v709_v3   ;;  %10821 = vmatmul.mubr.msk.f32.gmra.mrb[6].mxu0 %vm862_vm0, %v13667_v11  ;;  %v1670_v11 = vrot.slane %v13584_v14, 1  ;;  %v714_v14 = vld [vmem:[%s18469_s4 + $0x10] sm:$0xff] }
 0x15a   : > { %10823 = vmatprep.mubr.msk.f32.mxu0 %vm862_vm0, %v18667_v19  ;;  %v18672_v3 = vld [vmem:[#allocation28_spill] sm:$0xff] }
 0x15b   : > { %v14193_v52 = vsel %vm1673_vm2, %v1669_v63, %v1670_v11  ;;  %v14199_v2 = vsel %vm1673_vm2, %v1670_v11, %v1671_v43  ;;  %v18674_v63 = vld [vmem:[#allocation30_spill] sm:$0xff]  ;;  %v719_v19 = vld [vmem:[%s18469_s4 + $0x38] sm:$0xff] }
 0x15c   : > { %2420 = vperm.xlu0 %12756, %v710_v62   ;;  %v14213_v62 = vsel %vm1673_vm2, %v1671_v43, %v1672_v0  ;;  %v720_v11 = vld [vmem:[%s18469_s4 + $0x40] sm:$0xff] }
 0x15d   : > { %2425 = vperm.xlu1 %12757, %v711_v15   ;;  %10824 = vmatmul.mubr.msk.f32.gmra.mrb[8].mxu0 %vm862_vm0, %v18668_v58  ;;  %v718_v15 = vld [vmem:[%s18469_s4 + $0x30] sm:$0xff]  ;;  %v18677_v43 = vld [vmem:[#allocation33_spill] sm:$0xff] }
 0x15e   : > { %10826 = vmatprep.mubr.msk.f32.mxu0 %vm862_vm0, %v18669_v20  ;;  %v18676_v58 = vld [vmem:[#allocation32_spill] sm:$0xff] }
 0x15f   : > { %v722_v20 = vld [vmem:[%s18469_s4 + $0x50] sm:$0xff] }
 0x160   : > { %5968 = vperm.xlu0 %12756, %v712_v7   ;;  %v18675_v7 = vld [vmem:[#allocation31_spill] sm:$0xff] }
 0x161   : > { %5973 = vperm.xlu1 %12757, %v713_v56   ;;  %10827 = vmatmul.mubr.msk.f32.gmra.mrb[10].mxu0 %vm862_vm0, %v18670_v50  ;;  %v721_v56 = vld [vmem:[%s18469_s4 + $0x48] sm:$0xff]  ;;  %v723_v50 = vld [vmem:[%s18469_s4 + $0x58] sm:$0xff] }
 0x162   : > { %10829 = vmatprep.mubr.msk.f32.mxu0 %vm862_vm0, %v18671_v51  ;;  %v724_v51 = vld [vmem:[%s18469_s4 + $0x60] sm:$0xff] }
 0x164   : > { %5978 = vperm.xlu0 %12756, %v714_v14   ;;  %v18678_v14 = vld [vmem:[#allocation34_spill] sm:$0xff] }
 0x165   : > { %5983 = vperm.xlu1 %12757, %v715_v61   ;;  %10830 = vmatmul.mubr.msk.f32.gmra.mrb[12].mxu0 %vm862_vm0, %v18672_v3  ;;  %v18679_v61 = vld [vmem:[#allocation35_spill] sm:$0xff] }
 0x166   : > { %10832 = vmatprep.mubr.msk.f32.mxu0 %vm862_vm0, %v18673_v12  ;;  %v725_v3 = vld [vmem:[%s18469_s4 + $0x68] sm:$0xff]  ;;  %v726_v12 = vld [vmem:[%s18469_s4 + $0x70] sm:$0xff] }
 0x168   : > { %5988 = vperm.xlu0 %12756, %v716_v31   ;;  %v18680_v31 = vld [vmem:[#allocation36_spill] sm:$0xff] }
 0x169   : > { %5993 = vperm.xlu1 %12757, %v717_v16   ;;  %10833 = vmatmul.mubr.msk.f32.gmra.mrb[14].mxu0 %vm862_vm0, %v18674_v63  ;;  %v18681_v16 = vld [vmem:[#allocation37_spill] sm:$0xff] }
 0x16a   : > { %10835 = vmatprep.mubr.msk.f32.mxu0 %vm862_vm0, %v18675_v7  ;;  %v727_v63 = vld [vmem:[%s18469_s4 + $0x78] sm:$0xff]  ;;  %v728_v7 = vld [vmem:[%s18469_s4 + $0x80] sm:$0xff] }
 0x16c   : > { %5998 = vperm.xlu0 %12756, %v718_v15   ;;  %v18682_v15 = vld [vmem:[#allocation38_spill] sm:$0xff] }
 0x16d   : > { %6003 = vperm.xlu1 %12757, %v719_v19   ;;  %10836 = vmatmul.mubr.msk.f32.gmra.mrb[16].mxu0 %vm862_vm0, %v18676_v58  ;;  %v18683_v19 = vld [vmem:[#allocation39_spill] sm:$0xff]  ;;  %v18684_v58 = vld [vmem:[#allocation40_spill] sm:$0xff] }
 0x16e   : > { %10838 = vmatprep.mubr.msk.f32.mxu0 %vm862_vm0, %v18677_v43  ;;  %v2558_v43 = vld [vmem:[#allocation7 + $0x48] sm:$0xff] }
 0x170   : > { %6008 = vperm.xlu0 %12756, %v720_v11   ;;  %v729_v11 = vld [vmem:[%s18469_s4 + $0x88] sm:$0xff] }
 0x171   : > { %6013 = vperm.xlu1 %12757, %v721_v56   ;;  %10839 = vmatmul.mubr.msk.f32.gmra.mrb[18].mxu0 %vm862_vm0, %v18678_v14  ;;  %v2557_v56 = vld [vmem:[#allocation7 + $0x40] sm:$0xff]  ;;  %v730_v14 = vld [vmem:[%s18469_s4 + $0x90] sm:$0xff] }
 0x172   : > { %10841 = vmatprep.mubr.msk.f32.mxu0 %vm862_vm0, %v18679_v61  ;;  %v18686_v61 = vld [vmem:[#allocation42_spill] sm:$0xff] }
 0x174   : > { %6018 = vperm.xlu0 %12756, %v722_v20   ;;  %v11713_v20 = vpack.c.bf16 %v2558_v43, %v2557_v56  ;;  %v18692_v56 = vld [vmem:[#allocation22_spill] sm:$0xff] }
 0x175   : > { %6023 = vperm.xlu1 %12757, %v723_v50   ;;  %10842 = vmatmul.mubr.msk.f32.gmra.mrb[20].mxu0 %vm862_vm0, %v18680_v31  ;;  %v18685_v50 = vld [vmem:[#allocation41_spill] sm:$0xff]  ;;  %v2560_v31 = vld [vmem:[#allocation7 + $0x58] sm:$0xff]  ;;  %v1633_v43 = vrot.slane %v18692_v56, 1  ;;  %v2241_v57 = vpop.permute.xlu1 %2240 }
 0x176   : > { %10844 = vmatprep.mubr.msk.f32.mxu0 %vm862_vm0, %v18681_v16  ;;  %11714 = vmatprep.subr.bf16.mxu1 %v11713_v20  ;;  %v732_v16 = vld [vmem:[%s18469_s4 + $0xa0] sm:$0xff] }
 0x177   : > { %11716 = vmatpush3.bf16.msra.mxu1 %v11713_v20  ;;  %v18693_v20 = vld [vmem:[#allocation48_spill] sm:$0xff] }
 0x178   : > { %6028 = vperm.xlu0 %12756, %v724_v51   ;;  %v2559_v51 = vld [vmem:[#allocation7 + $0x50] sm:$0xff] }
 0x179   : > { %6033 = vperm.xlu1 %12757, %v725_v3   ;;  %10845 = vmatmul.mubr.msk.f32.gmra.mrb[22].mxu0 %vm862_vm0, %v18682_v15  ;;  %v11717_v3 = vpack.c.bf16 %v2560_v31, %v2559_v51  ;;  %v733_v15 = vld [vmem:[%s18469_s4 + $0xa8] sm:$0xff]  ;;  %v2552_v31 = vld [vmem:[#allocation7 + $0x20] sm:$0xff] }
 0x17a   : > { %10847 = vmatprep.mubr.msk.f32.mxu0 %vm862_vm0, %v18683_v19  ;;  %v18688_v19 = vld [vmem:[#allocation44_spill] sm:$0xff] }
 0x17b   : > { %11718 = vmatprep.subr.bf16.mxu1 %v11717_v3 }
 0x17c   : > { %6038 = vperm.xlu0 %12756, %v726_v12   ;;  %v18687_v12 = vld [vmem:[#allocation43_spill] sm:$0xff]  ;;  %11720 = vmatpush3.bf16.msra.mxu1 %v11717_v3  ;;  %v2553_v3 = vld [vmem:[#allocation7 + $0x28] sm:$0xff] }
 0x17d   : > { %6043 = vperm.xlu1 %12757, %v727_v63   ;;  %10848 = vmatmul.mubr.msk.f32.gmra.mrb[24].mxu0 %vm862_vm0, %v13819_v26  ;;  %v731_v26 = vld [vmem:[%s18469_s4 + $0x98] sm:$0xff]  ;;  %v734_v63 = vld [vmem:[%s18469_s4 + $0xb0] sm:$0xff] }
 0x17e   : > { %10850 = vmatprep.mubr.msk.f32.mxu0 %vm862_vm0, %v18684_v58  ;;  %v18691_v58 = vld [vmem:[#allocation47_spill] sm:$0xff] }
 0x180   : > { %6048 = vperm.xlu0 %12756, %v728_v7   ;;  %v735_v7 = vld [vmem:[%s18469_s4 + $0xb8] sm:$0xff] }
 0x181   : > { %6053 = vperm.xlu1 %12757, %v729_v11   ;;  %10851 = vmatmul.mubr.msk.f32.gmra.mrb[26].mxu0 %vm862_vm0, %v18685_v50  ;;  %v18689_v11 = vld [vmem:[#allocation45_spill] sm:$0xff] }
 0x182   : > { %10853 = vmatprep.mubr.msk.f32.mxu0 %vm862_vm0, %v18686_v61 }
 0x184   : > { %6058 = vperm.xlu0 %12756, %v730_v14   ;;  %v18694_v14 = vrot.slane %v13418_v5, 1  ;;  %v1713_v5 = vsel %vm1673_vm2, %v1672_v0, %v1633_v43 }
 0x185   : > { %6063 = vperm.xlu1 %12757, %v731_v26   ;;  %10854 = vmatmul.mubr.msk.f32.gmra.mrb[28].mxu0 %vm862_vm0, %v18687_v12  ;;  %v18695_v26 = vld [vmem:[#allocation49_spill] sm:$0xff] }
 0x186   : > { %10856 = vmatprep.mubr.msk.f32.mxu0 %vm862_vm0, %v13859_v39  ;;  %v18690_v39 = vld [vmem:[#allocation46_spill] sm:$0xff]  ;;  %v1712_v50 = vsel %vm1673_vm2, %v1633_v43, %v18694_v14 }
 0x188   : > { %6068 = vperm.xlu0 %12756, %v732_v16  }
 0x189   : > { %6073 = vperm.xlu1 %12757, %v733_v15   ;;  %10857 = vmatmul.mubr.msk.f32.gmra.mrb[30].mxu0 %vm862_vm0, %v18688_v19 }
 0x18a   : > { %10859 = vmatprep.mubr.msk.f32.mxu0 %vm862_vm0, %v18689_v11  ;;  %v2554_v11 = vld [vmem:[#allocation7 + $0x30] sm:$0xff] }
 0x18c   : > { %6078 = vperm.xlu0 %12756, %v734_v63  }
 0x18d   : > { %6083 = vperm.xlu1 %12757, %v735_v7   ;;  %10860 = vmatmul.mubr.msk.f32.gmra.mrb[32].mxu0 %vm862_vm0, %v18690_v39  ;;  %v2555_v39 = vld [vmem:[#allocation7 + $0x38] sm:$0xff] }
 0x18e   : > { %10862 = vmatprep.mubr.msk.f32.mxu0 %vm862_vm0, %v18691_v58 }
 0x191   : > { %10863 = vmatmul.mubr.msk.f32.gmra.mrb[34].mxu0 %vm862_vm0, %v13897_v4  ;;  %v2562_v4 = vld [vmem:[#allocation7 + $0x68] sm:$0xff] }
 0x192   : > { %10865 = vmatprep.mubr.msk.f32.mxu0 %vm862_vm0, %v13903_v25  ;;  %v2561_v25 = vld [vmem:[#allocation7 + $0x60] sm:$0xff] }
 0x195   : > { %10866 = vmatmul.mubr.msk.f32.gmra.mrb[36].mxu0 %vm862_vm0, %v13907_v55  ;;  %v11721_v55 = vpack.c.bf16 %v2562_v4, %v2561_v25 }
 0x196   : > { %10868 = vmatprep.mubr.msk.f32.mxu0 %vm862_vm0, %v18693_v20  ;;  %v11737_v20 = vpack.c.bf16 %v2553_v3, %v2552_v31 }
 0x197   : > { %11722 = vmatprep.subr.bf16.mxu1 %v11721_v55 }
 0x198   : > { %11724 = vmatpush3.bf16.msra.mxu1 %v11721_v55 }
 0x199   : > { %10869 = vmatmul.mubr.msk.f32.gmra.mrb[38].mxu0 %vm862_vm0, %v18695_v26 }
 0x19a   : > { %10873 = vmatprep.mubr.msk.f32.mxu0 %vm862_vm0, %v1712_v50 }
 0x19d   : > { %10874 = vmatmul.mubr.msk.f32.vlgmr.msra.gmra.mrb[0].mxu0 %vm862_vm0, %v13933_v9  ;;  %v2563_v9 = vld [vmem:[#allocation7 + $0x70] sm:$0xff] }
 0x19e   : > { %10876 = vmatprep.mubr.msk.f32.mxu0 %vm862_vm0, %v13942_v8  ;;  %v2564_v8 = vld [vmem:[#allocation7 + $0x78] sm:$0xff] }
 0x1a1   : > { %10877 = vmatmul.mubr.msk.f32.gmra.mrb[2].mxu0 %vm862_vm0, %v13949_v37  ;;  %v11725_v37 = vpack.c.bf16 %v2564_v8, %v2563_v9 }
 0x1a2   : > { %10879 = vmatprep.mubr.msk.f32.mxu0 %vm862_vm0, %v13956_v33  ;;  %v2548_v33 = vld [vmem:[#allocation7] sm:$0xff] }
 0x1a3   : > { %11726 = vmatprep.subr.bf16.mxu1 %v11725_v37 }
 0x1a4   : > { %11728 = vmatpush3.bf16.msra.mxu1 %v11725_v37  ;;  %v11741_v37 = vpack.c.bf16 %v2555_v39, %v2554_v11 }
 0x1a5   : > { %10880 = vmatmul.mubr.msk.f32.gmra.mrb[4].mxu0 %vm862_vm0, %v13963_v27  ;;  %v2549_v27 = vld [vmem:[#allocation7 + $0x8] sm:$0xff] }
 0x1a6   : > { %10882 = vmatprep.mubr.msk.f32.mxu0 %vm862_vm0, %v13970_v32  ;;  %v11729_v32 = vpack.c.bf16 %v2549_v27, %v2548_v33 }
 0x1a8   : > { %11730 = vmatprep.subr.bf16.mxu1 %v11729_v32 }
 0x1a9   : > { %10883 = vmatmul.mubr.msk.f32.gmra.mrb[6].mxu0 %vm862_vm0, %v13977_v21  ;;  %v2231_v21 = vpop.permute.xlu0 %2230 }
 0x1aa   : > { %10885 = vmatprep.mubr.msk.f32.mxu0 %vm862_vm0, %v13984_v49  ;;  %v2246_v49 = vpop.permute.xlu1 %2245 }
 0x1ad   : > { %10886 = vmatmul.mubr.msk.f32.gmra.mrb[8].mxu0 %vm862_vm0, %v13991_v45  ;;  %v2236_v45 = vpop.permute.xlu0 %2235 }
 0x1ae   : > { %10888 = vmatprep.mubr.msk.f32.mxu0 %vm862_vm0, %v13998_v17  ;;  %v2256_v17 = vpop.permute.xlu1 %2255 }
 0x1b1   : > { %10889 = vmatmul.mubr.msk.f32.gmra.mrb[10].mxu0 %vm862_vm0, %v14005_v18  ;;  %v14408_v18 = vpop.permute.xlu0 %2250 }
 0x1b2   : > { %10891 = vmatprep.mubr.msk.f32.mxu0 %vm862_vm0, %v14012_v22  ;;  %v14410_v22 = vpop.permute.xlu1 %2265 }
 0x1b5   : > { %10892 = vmatmul.mubr.msk.f32.gmra.mrb[12].mxu0 %vm862_vm0, %v14019_v23  ;;  %v14412_v23 = vpop.permute.xlu0 %2260 }
 0x1b6   : > { %10894 = vmatprep.mubr.msk.f32.mxu0 %vm862_vm0, %v14026_v24  ;;  %v14414_v24 = vpop.permute.xlu1 %2275 }
 0x1b9   : > { %10895 = vmatmul.mubr.msk.f32.gmra.mrb[14].mxu0 %vm862_vm0, %v14033_v28  ;;  %v14416_v28 = vpop.permute.xlu0 %2270 }
 0x1ba   : > { %10897 = vmatprep.mubr.msk.f32.mxu0 %vm862_vm0, %v14040_v29  ;;  %v14418_v29 = vpop.permute.xlu1 %2285 }
 0x1bd   : > { %10898 = vmatmul.mubr.msk.f32.gmra.mrb[16].mxu0 %vm862_vm0, %v14047_v30  ;;  %v14420_v30 = vpop.permute.xlu0 %2280 }
 0x1be   : > { %10900 = vmatprep.mubr.msk.f32.mxu0 %vm862_vm0, %v14054_v34  ;;  %v14422_v34 = vld [vmem:[#allocation9] ss:$0 sm:$0xff] }
 0x1c1   : > { %10901 = vmatmul.mubr.msk.f32.gmra.mrb[18].mxu0 %vm862_vm0, %v14061_v35 }
 0x1c2   : > { %10903 = vmatprep.mubr.msk.f32.mxu0 %vm862_vm0, %v14068_v36 }
 0x1c5   : > { %10904 = vmatmul.mubr.msk.f32.gmra.mrb[20].mxu0 %vm862_vm0, %v14075_v40 }
 0x1c6   : > { %10906 = vmatprep.mubr.msk.f32.mxu0 %vm862_vm0, %v14082_v41  ;;  %v14425_v41 = vpop.permute.xlu1 %2295 }
 0x1c9   : > { %10907 = vmatmul.mubr.msk.f32.gmra.mrb[22].mxu0 %vm862_vm0, %v14089_v42 }
 0x1ca   : > { %10909 = vmatprep.mubr.msk.f32.mxu0 %vm862_vm0, %v14096_v46  ;;  %v14428_v46 = vpop.permute.xlu0 %2290 }
 0x1cd   : > { %10910 = vmatmul.mubr.msk.f32.gmra.mrb[24].mxu0 %vm862_vm0, %v14103_v47 }
 0x1ce   : > { %10912 = vmatprep.mubr.msk.f32.mxu0 %vm862_vm0, %v14110_v48  ;;  %v14442_v16 = vpop.permute.xlu0 %2300 }
 0x1d1   : > { %10913 = vmatmul.mubr.msk.f32.gmra.mrb[26].mxu0 %vm862_vm0, %v14118_v13 }
 0x1d2   : > { %10915 = vmatprep.mubr.msk.f32.mxu0 %vm862_vm0, %v14125_v1  ;;  %v2550_v1 = vld [vmem:[#allocation7 + $0x10] sm:$0xff] }
 0x1d5   : > { %10916 = vmatmul.mubr.msk.f32.gmra.mrb[28].mxu0 %vm862_vm0, %v14132_v38  ;;  %v2551_v38 = vld [vmem:[#allocation7 + $0x18] sm:$0xff] }
 0x1d6   : > { %10918 = vmatprep.mubr.msk.f32.mxu0 %vm862_vm0, %v14139_v53 }
 0x1d9   : > { %10919 = vmatmul.mubr.msk.f32.gmra.mrb[30].mxu0 %vm862_vm0, %v14146_v44 }
 0x1da   : > { %10921 = vmatprep.mubr.msk.f32.mxu0 %vm862_vm0, %v14153_v54 }
 0x1dd   : > { %10922 = vmatmul.mubr.msk.f32.gmra.mrb[32].mxu0 %vm862_vm0, %v14160_v6 }
 0x1de   : > { %10924 = vmatprep.mubr.msk.f32.mxu0 %vm862_vm0, %v14173_v59 }
 0x1e1   : > { %10925 = vmatmul.mubr.msk.f32.gmra.mrb[34].mxu0 %vm862_vm0, %v14180_v60 }
 0x1e2   : > { %10927 = vmatprep.mubr.msk.f32.mxu0 %vm862_vm0, %v14193_v52  ;;  %v11733_v52 = vpack.c.bf16 %v2551_v38, %v2550_v1 }
 0x1e5   : > { %10928 = vmatmul.mubr.msk.f32.gmra.mrb[36].mxu0 %vm862_vm0, %v14199_v2  ;;  %v14437_v2 = vpop.permute.xlu1 %2305 }
 0x1e6   : > { %10930 = vmatprep.mubr.msk.f32.mxu0 %vm862_vm0, %v14213_v62 }
 0x1e9   : > { %10931 = vmatmul.mubr.msk.f32.gmra.mrb[38].mxu0 %vm862_vm0, %v1713_v5  ;;  %v14458_v33 = vpop.permute.xlu1 %2315 }
 0x270   : > { %v10875_v35 = vpop.f32.mrb[0].mxu0 }
 0x271   : > { %v2149_v36 = vadd.f32 %v10875_v35, %v14422_v34  ;;  %v1902_v40 = vpop.f32.mrb[1].mxu0 }
 0x272   : > { %v2148_v42 = vadd.f32 %v14422_v34, %v1902_v40 }
 0x273   : > { %v2189_v47 = vmax.f32 %v2149_v36, 0.0 }
 0x274   : > { %v2188_v48 = vmax.f32 %v2148_v42, 0.0  ;;  %v10878_v13 = vpop.f32.mrb[2].mxu0 }
 0x275   : > { %v14430_v53 = vmul.f32 %v2236_v45, %v2189_v47  ;;  %v2151_v44 = vadd.f32 %v10878_v13, %v14422_v34  ;;  %v1912_v54 = vpop.f32.mrb[3].mxu0  ;;  %v3418_v45 = vld [vmem:[#allocation7 + $0x88] sm:$0xff] }
 0x276   : > { %v14433_v6 = vmul.f32 %v2231_v21, %v2188_v48  ;;  %v2150_v59 = vadd.f32 %v14422_v34, %v1912_v54 }
 0x277   : > { %v2469_v60 = vrot.slane %v14430_v53, 7  ;;  %v2191_v0 = vmax.f32 %v2151_v44, 0.0  ;;  %v18492_v4 = vrot.slane %v14430_v53, 1 }
 0x278   : > { %v18493_v62 = vrot.slane %v14433_v6, 7  ;;  %v2190_v61 = vmax.f32 %v2150_v59, 0.0  ;;  %v10881_v51 = vpop.f32.mrb[4].mxu0  ;;  %10949 = vmatprep.mubr.msk.f32.mxu1 %vm2565_vm3, %v14433_v6 }
 0x279   : > { %v2431_v12 = vmul.f32 %v2246_v49, %v2191_v0  ;;  %v2153_v15 = vadd.f32 %v10881_v51, %v14422_v34  ;;  %v1922_v63 = vpop.f32.mrb[5].mxu0  ;;  %10950 = vmatmul.mubr.msk.f32.vlgmr.msra.gmra.mrb[0].mxu1 %vm2565_vm3, %v14430_v53  ;;  %v3417_v49 = vld [vmem:[#allocation7 + $0x80] sm:$0xff] }
 0x27a   : > { %v2430_v19 = vmul.f32 %v2241_v57, %v2190_v61  ;;  %v2152_v7 = vadd.f32 %v14422_v34, %v1922_v63  ;;  %11732 = vmatpush3.bf16.msra.mxu1 %v11729_v32  ;;  %v14452_v58 = vsel %vm818_vm1, %v18493_v62, %v2469_v60  ;;  %v14486_v59 = vpack.c.bf16 %v3418_v45, %v3417_v49 }
 0x27b   : > { %v2471_v56 = vrot.slane %v2431_v12, 7  ;;  %v2193_v43 = vmax.f32 %v2153_v15, 0.0  ;;  %11734 = vmatprep.subr.bf16.mxu1 %v11733_v52  ;;  %v3339_v14 = vrot.slane %v2431_v12, 1 }
 0x27c   : > { %v2470_v50 = vrot.slane %v2430_v19, 7  ;;  %v3338_v26 = vrot.slane %v2430_v19, 1  ;;  %v2192_v5 = vmax.f32 %v2152_v7, 0.0  ;;  %v10884_v25 = vpop.f32.mrb[6].mxu0  ;;  %10952 = vmatprep.mubr.msk.f32.mxu1 %vm2565_vm3, %v2430_v19 }
 0x27d   : > { %v2433_v55 = vmul.f32 %v2256_v17, %v2193_v43  ;;  %v2155_v9 = vadd.f32 %v10884_v25, %v14422_v34  ;;  %v1932_v8 = vpop.f32.mrb[7].mxu0  ;;  %10953 = vmatmul.mubr.msk.f32.gmra.mrb[2].mxu1 %vm2565_vm3, %v2431_v12  ;;  %v14470_v17 = vpop.permute.xlu0 %2310 }
 0x27e   : > { %v2432_v27 = vmul.f32 %v14408_v18, %v2192_v5  ;;  %v2154_v32 = vadd.f32 %v14422_v34, %v1932_v8  ;;  %11736 = vmatpush3.bf16.msra.mxu1 %v11733_v52  ;;  %v14464_v57 = vsel %vm818_vm1, %v2469_v60, %v2470_v50  ;;  %v14468_v21 = vsel %vm818_vm1, %v2470_v50, %v2471_v56 }
 0x27f   : > { %v2473_v35 = vrot.slane %v2433_v55, 7  ;;  %v3341_v36 = vrot.slane %v2433_v55, 1  ;;  %v2195_v40 = vmax.f32 %v2155_v9, 0.0  ;;  %11738 = vmatprep.subr.bf16.mxu1 %v11737_v20  ;;  %v14476_v18 = vsel %vm1673_vm2, %v18492_v4, %v3338_v26 }
 0x280   : > { %v2472_v42 = vrot.slane %v2432_v27, 7  ;;  %v3340_v47 = vrot.slane %v2432_v27, 1  ;;  %v2194_v48 = vmax.f32 %v2154_v32, 0.0  ;;  %v10887_v13 = vpop.f32.mrb[8].mxu0  ;;  %10955 = vmatprep.mubr.msk.f32.mxu1 %vm2565_vm3, %v2432_v27  ;;  %v14481_v1 = vsel %vm1673_vm2, %v3338_v26, %v3339_v14 }
 0x281   : > { %v2435_v38 = vmul.f32 %v14410_v22, %v2195_v40  ;;  %v2157_v44 = vadd.f32 %v10887_v13, %v14422_v34  ;;  %v1942_v54 = vpop.f32.mrb[9].mxu0  ;;  %10956 = vmatmul.mubr.msk.f32.gmra.mrb[4].mxu1 %vm2565_vm3, %v2433_v55  ;;  %v14509_v11 = vpop.permute.xlu0 %2320 }
 0x282   : > { %v2434_v60 = vmul.f32 %v14412_v23, %v2194_v48  ;;  %v2156_v0 = vadd.f32 %v14422_v34, %v1942_v54  ;;  %11740 = vmatpush3.bf16.msra.mxu1 %v11737_v20  ;;  %v14492_v52 = vsel %vm818_vm1, %v2471_v56, %v2472_v42  ;;  %v14496_v61 = vsel %vm818_vm1, %v2472_v42, %v2473_v35  ;;  %v14502_v23 = vpop.permute.xlu1 %2325 }
 0x283   : > { %v2475_v22 = vrot.slane %v2435_v38, 7  ;;  %v3343_v51 = vrot.slane %v2435_v38, 1  ;;  %v2197_v31 = vmax.f32 %v2157_v44, 0.0  ;;  %11742 = vmatprep.subr.bf16.mxu1 %v11741_v37  ;;  %v14500_v3 = vsel %vm1673_vm2, %v3339_v14, %v3340_v47 }
 0x284   : > { %v2474_v12 = vrot.slane %v2434_v60, 7  ;;  %v3342_v15 = vrot.slane %v2434_v60, 1  ;;  %v2196_v63 = vmax.f32 %v2156_v0, 0.0  ;;  %v10890_v19 = vpop.f32.mrb[10].mxu0  ;;  %10958 = vmatprep.mubr.msk.f32.mxu1 %vm2565_vm3, %v2434_v60  ;;  %v14507_v7 = vsel %vm1673_vm2, %v3340_v47, %v3341_v36 }
 0x285   : > { %v2437_v39 = vmul.f32 %v14414_v24, %v2197_v31  ;;  %v2159_v56 = vadd.f32 %v10890_v19, %v14422_v34  ;;  %v1952_v43 = vpop.f32.mrb[11].mxu0  ;;  %10959 = vmatmul.mubr.msk.f32.gmra.mrb[6].mxu1 %vm2565_vm3, %v2435_v38 }
 0x286   : > { %v2436_v20 = vmul.f32 %v14416_v28, %v2196_v63  ;;  %v2158_v14 = vadd.f32 %v14422_v34, %v1952_v43  ;;  %11744 = vmatpush3.bf16.msra.mxu1 %v11741_v37  ;;  %v14518_v50 = vsel %vm818_vm1, %v2473_v35, %v2474_v12  ;;  %v14522_v26 = vsel %vm818_vm1, %v2474_v12, %v2475_v22  ;;  %v14537_v35 = vpop.permute.xlu1 %2335 }
 0x287   : > { %v2477_v5 = vrot.slane %v2437_v39, 7  ;;  %v2199_v24 = vmax.f32 %v2159_v56, 0.0  ;;  %11746 = vmatprep.subr.bf16.mxu1 %v14486_v59  ;;  %v14527_v25 = vsel %vm1673_vm2, %v3341_v36, %v3342_v15  ;;  %v14532_v37 = vsel %vm1673_vm2, %v3342_v15, %v3343_v51 }
 0x288   : > { %18696 = vst [vmem:[#allocation23_spill] sm:$0xff] %v14527_v25  ;;  %v2476_v28 = vrot.slane %v2436_v20, 7  ;;  %v3344_v55 = vrot.slane %v2436_v20, 1  ;;  %v2198_v9 = vmax.f32 %v2158_v14, 0.0  ;;  %v10893_v8 = vpop.f32.mrb[12].mxu0  ;;  %10961 = vmatprep.mubr.msk.f32.mxu1 %vm2565_vm3, %v2436_v20  ;;  %18697 = vst [vmem:[#allocation24_spill] sm:$0xff] %v14532_v37 }
 0x289   : > { %v3345_v27 = vrot.slane %v2437_v39, 1  ;;  %v2439_v32 = vmul.f32 %v14418_v29, %v2199_v24  ;;  %v2161_v49 = vadd.f32 %v10893_v8, %v14422_v34  ;;  %v1962_v45 = vpop.f32.mrb[13].mxu0  ;;  %10962 = vmatmul.mubr.msk.f32.gmra.mrb[8].mxu1 %vm2565_vm3, %v2437_v39  ;;  %v14549_v29 = vpop.permute.xlu0 %2330 }
 0x28a   : > { %v2438_v36 = vmul.f32 %v14420_v30, %v2198_v9  ;;  %v2160_v40 = vadd.f32 %v14422_v34, %v1962_v45  ;;  %v14543_v42 = vsel %vm818_vm1, %v2475_v22, %v2476_v28  ;;  %v14547_v47 = vsel %vm818_vm1, %v2476_v28, %v2477_v5  ;;  %v14573_v43 = vpop.permute.xlu1 %2345 }
 0x28b   : > { %v2479_v48 = vrot.slane %v2439_v32, 7  ;;  %v2201_v13 = vmax.f32 %v2161_v49, 0.0  ;;  %v14554_v30 = vsel %vm1673_vm2, %v3343_v51, %v3344_v55  ;;  %v3347_v0 = vrot.slane %v2439_v32, 1 }
 0x28c   : > { %v2478_v38 = vrot.slane %v2438_v36, 7  ;;  %v3346_v44 = vrot.slane %v2438_v36, 1  ;;  %v2200_v54 = vmax.f32 %v2160_v40, 0.0  ;;  %v10896_v60 = vpop.f32.mrb[14].mxu0  ;;  %10964 = vmatprep.mubr.msk.f32.mxu1 %vm2565_vm3, %v2438_v36  ;;  %18698 = vst [vmem:[#allocation25_spill] sm:$0xff] %v14554_v30  ;;  %v14561_v15 = vsel %vm1673_vm2, %v3344_v55, %v3345_v27 }
 0x28d   : > { %v2441_v22 = vmul.f32 %v14425_v41, %v2201_v13  ;;  %v2163_v31 = vadd.f32 %v10896_v60, %v14422_v34  ;;  %v1972_v12 = vpop.f32.mrb[15].mxu0  ;;  %10965 = vmatmul.mubr.msk.f32.gmra.mrb[10].mxu1 %vm2565_vm3, %v2439_v32  ;;  %18699 = vst [vmem:[#allocation26_spill] sm:$0xff] %v14561_v15 }
 0x28e   : > { %v2440_v63 = vmul.f32 %v14428_v46, %v2200_v54  ;;  %v2162_v19 = vadd.f32 %v14422_v34, %v1972_v12  ;;  %v14567_v51 = vsel %vm818_vm1, %v2477_v5, %v2478_v38  ;;  %v14571_v41 = vsel %vm818_vm1, %v2478_v38, %v2479_v48  ;;  %v14580_v5 = vpop.permute.xlu0 %2340 }
 0x28f   : > { %v2481_v39 = vrot.slane %v2441_v22, 7  ;;  %v2203_v56 = vmax.f32 %v2163_v31, 0.0  ;;  %v14578_v46 = vsel %vm1673_vm2, %v3345_v27, %v3346_v44  ;;  %v3349_v55 = vrot.slane %v2441_v22, 1 }
 0x290   : > { %v2480_v20 = vrot.slane %v2440_v63, 7  ;;  %v3348_v14 = vrot.slane %v2440_v63, 1  ;;  %v2202_v24 = vmax.f32 %v2162_v19, 0.0  ;;  %v10899_v28 = vpop.f32.mrb[16].mxu0  ;;  %10967 = vmatprep.mubr.msk.f32.mxu1 %vm2565_vm3, %v2440_v63  ;;  %18700 = vst [vmem:[#allocation27_spill] sm:$0xff] %v14578_v46  ;;  %v14587_v49 = vsel %vm1673_vm2, %v3346_v44, %v3347_v0  ;;  %v14611_v19 = vpop.permute.xlu1 %2355 }
 0x291   : > { %v2443_v9 = vmul.f32 %v14437_v2, %v2203_v56  ;;  %v2165_v8 = vadd.f32 %v10899_v28, %v14422_v34  ;;  %v1982_v32 = vpop.f32.mrb[17].mxu0  ;;  %10968 = vmatmul.mubr.msk.f32.gmra.mrb[12].mxu1 %vm2565_vm3, %v2441_v22  ;;  %18701 = vst [vmem:[#allocation28_spill] sm:$0xff] %v14587_v49 }
 0x292   : > { %v2442_v45 = vmul.f32 %v14442_v16, %v2202_v24  ;;  %v2164_v36 = vadd.f32 %v14422_v34, %v1982_v32  ;;  %v14593_v27 = vsel %vm818_vm1, %v2479_v48, %v2480_v20  ;;  %v14597_v2 = vsel %vm818_vm1, %v2480_v20, %v2481_v39  ;;  %v14623_v24 = vpop.permute.xlu0 %2350 }
 0x293   : > { %v2483_v40 = vrot.slane %v2443_v9, 7  ;;  %v3351_v13 = vrot.slane %v2443_v9, 1  ;;  %v2205_v38 = vmax.f32 %v2165_v8, 0.0  ;;  %v14602_v16 = vsel %vm1673_vm2, %v3347_v0, %v3348_v14 }
 0x294   : > { %v2482_v54 = vrot.slane %v2442_v45, 7  ;;  %v3350_v60 = vrot.slane %v2442_v45, 1  ;;  %v2204_v22 = vmax.f32 %v2164_v36, 0.0  ;;  %v10902_v44 = vpop.f32.mrb[18].mxu0  ;;  %10970 = vmatprep.mubr.msk.f32.mxu1 %vm2565_vm3, %v2442_v45  ;;  %18702 = vst [vmem:[#allocation29_spill] sm:$0xff] %v14602_v16  ;;  %v14609_v63 = vsel %vm1673_vm2, %v3348_v14, %v3349_v55 }
 0x295   : > { %v2445_v48 = vmul.f32 %v14458_v33, %v2205_v38  ;;  %v2167_v31 = vadd.f32 %v10902_v44, %v14422_v34  ;;  %v1992_v12 = vpop.f32.mrb[19].mxu0  ;;  %10971 = vmatmul.mubr.msk.f32.gmra.mrb[14].mxu1 %vm2565_vm3, %v2443_v9  ;;  %18703 = vst [vmem:[#allocation30_spill] sm:$0xff] %v14609_v63 }
 0x296   : > { %v2444_v56 = vmul.f32 %v14470_v17, %v2204_v22  ;;  %v2166_v20 = vadd.f32 %v14422_v34, %v1992_v12  ;;  %v14617_v0 = vsel %vm818_vm1, %v2481_v39, %v2482_v54  ;;  %v14621_v33 = vsel %vm818_vm1, %v2482_v54, %v2483_v40 }
 0x297   : > { %v2485_v28 = vrot.slane %v2445_v48, 7  ;;  %v3353_v9 = vrot.slane %v2445_v48, 1  ;;  %v2207_v14 = vmax.f32 %v2167_v31, 0.0  ;;  %v14627_v8 = vsel %vm1673_vm2, %v3349_v55, %v3350_v60 }
 0x298   : > { %18704 = vst [vmem:[#allocation31_spill] sm:$0xff] %v14627_v8  ;;  %v2484_v17 = vrot.slane %v2444_v56, 7  ;;  %v3352_v32 = vrot.slane %v2444_v56, 1  ;;  %v2206_v45 = vmax.f32 %v2166_v20, 0.0  ;;  %v10905_v36 = vpop.f32.mrb[20].mxu0  ;;  %10973 = vmatprep.mubr.msk.f32.mxu1 %vm2565_vm3, %v2444_v56  ;;  %v14632_v39 = vsel %vm1673_vm2, %v3350_v60, %v3351_v13 }
 0x299   : > { %18705 = vst [vmem:[#allocation32_spill] sm:$0xff] %v14632_v39  ;;  %v2447_v38 = vmul.f32 %v14502_v23, %v2207_v14  ;;  %v2169_v54 = vadd.f32 %v10905_v36, %v14422_v34  ;;  %v2002_v22 = vpop.f32.mrb[21].mxu0  ;;  %10974 = vmatmul.mubr.msk.f32.gmra.mrb[16].mxu1 %vm2565_vm3, %v2445_v48  ;;  %v14651_v48 = vpop.permute.xlu1 %2365 }
 0x29a   : > { %v2446_v55 = vmul.f32 %v14509_v11, %v2206_v45  ;;  %v2168_v44 = vadd.f32 %v14422_v34, %v2002_v22  ;;  %v14641_v31 = vsel %vm818_vm1, %v2483_v40, %v2484_v17  ;;  %v14645_v12 = vsel %vm818_vm1, %v2484_v17, %v2485_v28  ;;  %v14658_v17 = vpop.permute.xlu0 %2360 }
 0x29b   : > { %v2487_v60 = vrot.slane %v2447_v38, 7  ;;  %v3355_v56 = vrot.slane %v2447_v38, 1  ;;  %v2209_v23 = vmax.f32 %v2169_v54, 0.0  ;;  %v14649_v20 = vsel %vm1673_vm2, %v3351_v13, %v3352_v32 }
 0x29c   : > { %18706 = vst [vmem:[#allocation33_spill] sm:$0xff] %v14649_v20  ;;  %v2486_v11 = vrot.slane %v2446_v55, 7  ;;  %v3354_v14 = vrot.slane %v2446_v55, 1  ;;  %v2208_v45 = vmax.f32 %v2168_v44, 0.0  ;;  %v10908_v36 = vpop.f32.mrb[22].mxu0  ;;  %10976 = vmatprep.mubr.msk.f32.mxu1 %vm2565_vm3, %v2446_v55  ;;  %v14656_v40 = vsel %vm1673_vm2, %v3352_v32, %v3353_v9 }
 0x29d   : > { %18707 = vst [vmem:[#allocation34_spill] sm:$0xff] %v14656_v40  ;;  %v2449_v54 = vmul.f32 %v14537_v35, %v2209_v23  ;;  %v2171_v22 = vadd.f32 %v10908_v36, %v14422_v34  ;;  %v2012_v13 = vpop.f32.mrb[23].mxu0  ;;  %10977 = vmatmul.mubr.msk.f32.gmra.mrb[18].mxu1 %vm2565_vm3, %v2447_v38 }
 0x29e   : > { %v2448_v4 = vmul.f32 %v14549_v29, %v2208_v45  ;;  %v2170_v44 = vadd.f32 %v14422_v34, %v2012_v13  ;;  %v14667_v55 = vsel %vm818_vm1, %v2485_v28, %v2486_v11  ;;  %v14671_v32 = vsel %vm818_vm1, %v2486_v11, %v2487_v60 }
 0x29f   : > { %v2489_v62 = vrot.slane %v2449_v54, 7  ;;  %v3357_v40 = vrot.slane %v2449_v54, 1  ;;  %v2211_v35 = vmax.f32 %v2171_v22, 0.0  ;;  %v14675_v23 = vsel %vm1673_vm2, %v3353_v9, %v3354_v14  ;;  %v2376_v22 = vpop.permute.xlu1 %2375 }
 0x2a0   : > { %18708 = vst [vmem:[#allocation35_spill] sm:$0xff] %v14675_v23  ;;  %v2488_v38 = vrot.slane %v2448_v4, 7  ;;  %v3356_v36 = vrot.slane %v2448_v4, 1  ;;  %v2210_v29 = vmax.f32 %v2170_v44, 0.0  ;;  %v10911_v45 = vpop.f32.mrb[24].mxu0  ;;  %10979 = vmatprep.mubr.msk.f32.mxu1 %vm2565_vm3, %v2448_v4  ;;  %v14680_v28 = vsel %vm1673_vm2, %v3354_v14, %v3355_v56  ;;  %v2371_v14 = vpop.permute.xlu0 %2370 }
 0x2a1   : > { %18709 = vst [vmem:[#allocation36_spill] sm:$0xff] %v14680_v28  ;;  %v2451_v11 = vmul.f32 %v14573_v43, %v2211_v35  ;;  %v2173_v13 = vadd.f32 %v10911_v45, %v14422_v34  ;;  %v2022_v20 = vpop.f32.mrb[25].mxu0  ;;  %10980 = vmatmul.mubr.msk.f32.gmra.mrb[20].mxu1 %vm2565_vm3, %v2449_v54 }
 0x2a2   : > { %v2450_v9 = vmul.f32 %v14580_v5, %v2210_v29  ;;  %v2172_v23 = vadd.f32 %v14422_v34, %v2022_v20  ;;  %v14689_v44 = vsel %vm818_vm1, %v2487_v60, %v2488_v38  ;;  %v14693_v4 = vsel %vm818_vm1, %v2488_v38, %v2489_v62 }
 0x2a3   : > { %v2491_v43 = vrot.slane %v2451_v11, 7  ;;  %v3359_v35 = vrot.slane %v2451_v11, 1  ;;  %v2213_v45 = vmax.f32 %v2173_v13, 0.0  ;;  %v14697_v54 = vsel %vm1673_vm2, %v3355_v56, %v3356_v36 }
 0x2a4   : > { %18710 = vst [vmem:[#allocation37_spill] sm:$0xff] %v14697_v54  ;;  %v2490_v28 = vrot.slane %v2450_v9, 7  ;;  %v3358_v5 = vrot.slane %v2450_v9, 1  ;;  %v2212_v29 = vmax.f32 %v2172_v23, 0.0  ;;  %v10914_v20 = vpop.f32.mrb[26].mxu0  ;;  %10982 = vmatprep.mubr.msk.f32.mxu1 %vm2565_vm3, %v2450_v9  ;;  %v14702_v60 = vsel %vm1673_vm2, %v3356_v36, %v3357_v40 }
 0x2a5   : > { %18711 = vst [vmem:[#allocation38_spill] sm:$0xff] %v14702_v60  ;;  %v2453_v38 = vmul.f32 %v14611_v19, %v2213_v45  ;;  %v2175_v39 = vadd.f32 %v10914_v20, %v14422_v34  ;;  %v2032_v8 = vpop.f32.mrb[27].mxu0  ;;  %10983 = vmatmul.mubr.msk.f32.gmra.mrb[22].mxu1 %vm2565_vm3, %v2451_v11  ;;  %v2386_v11 = vpop.permute.xlu1 %2385 }
 0x2a6   : > { %v2452_v56 = vmul.f32 %v14623_v24, %v2212_v29  ;;  %v2174_v13 = vadd.f32 %v14422_v34, %v2032_v8  ;;  %v14711_v23 = vsel %vm818_vm1, %v2489_v62, %v2490_v28  ;;  %v14715_v9 = vsel %vm818_vm1, %v2490_v28, %v2491_v43  ;;  %v2381_v28 = vpop.permute.xlu0 %2380 }
 0x2a7   : > { %v2493_v36 = vrot.slane %v2453_v38, 7  ;;  %v3361_v60 = vrot.slane %v2453_v38, 1  ;;  %v2215_v19 = vmax.f32 %v2175_v39, 0.0  ;;  %v14719_v45 = vsel %vm1673_vm2, %v3357_v40, %v3358_v5 }
 0x2a8   : > { %18712 = vst [vmem:[#allocation39_spill] sm:$0xff] %v14719_v45  ;;  %v2492_v20 = vrot.slane %v2452_v56, 7  ;;  %v3360_v24 = vrot.slane %v2452_v56, 1  ;;  %v2214_v29 = vmax.f32 %v2174_v13, 0.0  ;;  %v10917_v8 = vpop.f32.mrb[28].mxu0  ;;  %10985 = vmatprep.mubr.msk.f32.mxu1 %vm2565_vm3, %v2452_v56  ;;  %v14724_v62 = vsel %vm1673_vm2, %v3358_v5, %v3359_v35 }
 0x2a9   : > { %18713 = vst [vmem:[#allocation40_spill] sm:$0xff] %v14724_v62  ;;  %v2455_v54 = vmul.f32 %v14651_v48, %v2215_v19  ;;  %v2177_v39 = vadd.f32 %v10917_v8, %v14422_v34  ;;  %v2042_v63 = vpop.f32.mrb[29].mxu0  ;;  %10986 = vmatmul.mubr.msk.f32.gmra.mrb[24].mxu1 %vm2565_vm3, %v2453_v38 }
 0x2aa   : > { %v2454_v40 = vmul.f32 %v14658_v17, %v2214_v29  ;;  %v2176_v45 = vadd.f32 %v14422_v34, %v2042_v63  ;;  %v14733_v13 = vsel %vm818_vm1, %v2491_v43, %v2492_v20  ;;  %v14737_v5 = vsel %vm818_vm1, %v2492_v20, %v2493_v36 }
 0x2ab   : > { %v2495_v56 = vrot.slane %v2455_v54, 7  ;;  %v3363_v62 = vrot.slane %v2455_v54, 1  ;;  %v2217_v48 = vmax.f32 %v2177_v39, 0.0  ;;  %v14741_v19 = vsel %vm1673_vm2, %v3359_v35, %v3360_v24  ;;  %v2396_v39 = vpop.permute.xlu1 %2395 }
 0x2ac   : > { %18714 = vst [vmem:[#allocation41_spill] sm:$0xff] %v14741_v19  ;;  %v2494_v38 = vrot.slane %v2454_v40, 7  ;;  %v3362_v8 = vrot.slane %v2454_v40, 1  ;;  %v2216_v17 = vmax.f32 %v2176_v45, 0.0  ;;  %v10920_v29 = vpop.f32.mrb[30].mxu0  ;;  %10988 = vmatprep.mubr.msk.f32.mxu1 %vm2565_vm3, %v2454_v40  ;;  %v14746_v63 = vsel %vm1673_vm2, %v3360_v24, %v3361_v60  ;;  %v2391_v24 = vpop.permute.xlu0 %2390 }
 0x2ad   : > { %18715 = vst [vmem:[#allocation42_spill] sm:$0xff] %v14746_v63  ;;  %v2457_v43 = vmul.f32 %v2376_v22, %v2217_v48  ;;  %v2179_v20 = vadd.f32 %v10920_v29, %v14422_v34  ;;  %v2052_v16 = vpop.f32.mrb[31].mxu0  ;;  %10989 = vmatmul.mubr.msk.f32.gmra.mrb[26].mxu1 %vm2565_vm3, %v2455_v54 }
 0x2ae   : > { %v2456_v49 = vmul.f32 %v2371_v14, %v2216_v17  ;;  %v2178_v35 = vadd.f32 %v14422_v34, %v2052_v16  ;;  %v14753_v45 = vsel %vm818_vm1, %v2493_v36, %v2494_v38  ;;  %v14757_v40 = vsel %vm818_vm1, %v2494_v38, %v2495_v56 }
 0x2af   : > { %v2497_v63 = vrot.slane %v2457_v43, 7  ;;  %v3365_v22 = vrot.slane %v2457_v43, 1  ;;  %v2219_v48 = vmax.f32 %v2179_v20, 0.0  ;;  %v14761_v29 = vsel %vm1673_vm2, %v3361_v60, %v3362_v8 }
 0x2b0   : > { %18716 = vst [vmem:[#allocation43_spill] sm:$0xff] %v14761_v29  ;;  %v2496_v54 = vrot.slane %v2456_v49, 7  ;;  %v3364_v14 = vrot.slane %v2456_v49, 1  ;;  %v2218_v17 = vmax.f32 %v2178_v35, 0.0  ;;  %v10923_v16 = vpop.f32.mrb[32].mxu0  ;;  %10991 = vmatprep.mubr.msk.f32.mxu1 %vm2565_vm3, %v2456_v49  ;;  %v14766_v36 = vsel %vm1673_vm2, %v3362_v8, %v3363_v62 }
 0x2b1   : > { %18717 = vst [vmem:[#allocation44_spill] sm:$0xff] %v14766_v36  ;;  %v2459_v38 = vmul.f32 %v2386_v11, %v2219_v48  ;;  %v2181_v19 = vadd.f32 %v10923_v16, %v14422_v34  ;;  %v2062_v46 = vpop.f32.mrb[33].mxu0  ;;  %10992 = vmatmul.mubr.msk.f32.gmra.mrb[28].mxu1 %vm2565_vm3, %v2457_v43  ;;  %v2406_v48 = vpop.permute.xlu1 %2405 }
 0x2b2   : > { %v2458_v20 = vmul.f32 %v2381_v28, %v2218_v17  ;;  %v2180_v60 = vadd.f32 %v14422_v34, %v2062_v46  ;;  %v14773_v29 = vsel %vm818_vm1, %v2495_v56, %v2496_v54  ;;  %v14777_v49 = vsel %vm818_vm1, %v2496_v54, %v2497_v63  ;;  %v2401_v54 = vpop.permute.xlu0 %2400 }
 0x2b3   : > { %v2499_v35 = vrot.slane %v2459_v38, 7  ;;  %v3367_v8 = vrot.slane %v2459_v38, 1  ;;  %v2221_v36 = vmax.f32 %v2181_v19, 0.0  ;;  %v14781_v11 = vsel %vm1673_vm2, %v3363_v62, %v3364_v14 }
 0x2b4   : > { %18718 = vst [vmem:[#allocation45_spill] sm:$0xff] %v14781_v11  ;;  %v2498_v43 = vrot.slane %v2458_v20, 7  ;;  %v3366_v28 = vrot.slane %v2458_v20, 1  ;;  %v2220_v17 = vmax.f32 %v2180_v60, 0.0  ;;  %v10926_v46 = vpop.f32.mrb[34].mxu0  ;;  %10994 = vmatprep.mubr.msk.f32.mxu1 %vm2565_vm3, %v2458_v20  ;;  %v14786_v56 = vsel %vm1673_vm2, %v3364_v14, %v3365_v22 }
 0x2b5   : > { %18719 = vst [vmem:[#allocation46_spill] sm:$0xff] %v14786_v56  ;;  %v2461_v16 = vmul.f32 %v2396_v39, %v2221_v36  ;;  %v2183_v15 = vadd.f32 %v10926_v46, %v14422_v34  ;;  %v2072_v19 = vpop.f32.mrb[35].mxu0  ;;  %10995 = vmatmul.mubr.msk.f32.gmra.mrb[30].mxu1 %vm2565_vm3, %v2459_v38 }
 0x2b6   : > { %v2460_v62 = vmul.f32 %v2391_v24, %v2220_v17  ;;  %v2182_v11 = vadd.f32 %v14422_v34, %v2072_v19  ;;  %v14793_v60 = vsel %vm818_vm1, %v2497_v63, %v2498_v43  ;;  %v14797_v20 = vsel %vm818_vm1, %v2498_v43, %v2499_v35 }
 0x2b7   : > { %v2501_v14 = vrot.slane %v2461_v16, 7  ;;  %v3369_v56 = vrot.slane %v2461_v16, 1  ;;  %v2223_v30 = vmax.f32 %v2183_v15, 0.0  ;;  %v14801_v39 = vsel %vm1673_vm2, %v3365_v22, %v3366_v28  ;;  %v2416_v15 = vpop.permute.xlu1 %2415 }
 0x2b8   : > { %18720 = vst [vmem:[#allocation47_spill] sm:$0xff] %v14801_v39  ;;  %v2500_v36 = vrot.slane %v2460_v62, 7  ;;  %v3368_v38 = vrot.slane %v2460_v62, 1  ;;  %v2222_v24 = vmax.f32 %v2182_v11, 0.0  ;;  %v10929_v17 = vpop.f32.mrb[36].mxu0  ;;  %10997 = vmatprep.mubr.msk.f32.mxu1 %vm2565_vm3, %v2460_v62  ;;  %v14806_v63 = vsel %vm1673_vm2, %v3366_v28, %v3367_v8  ;;  %v2411_v28 = vpop.permute.xlu0 %2410 }
 0x2b9   : > { %18721 = vst [vmem:[#allocation22_spill] sm:$0xff] %v14806_v63  ;;  %v2463_v46 = vmul.f32 %v2406_v48, %v2223_v30  ;;  %v2185_v43 = vadd.f32 %v10929_v17, %v14422_v34  ;;  %v2082_v19 = vpop.f32.mrb[37].mxu0  ;;  %10998 = vmatmul.mubr.msk.f32.gmra.mrb[32].mxu1 %vm2565_vm3, %v2461_v16 }
 0x2ba   : > { %v2462_v37 = vmul.f32 %v2401_v54, %v2222_v24  ;;  %v2184_v22 = vadd.f32 %v14422_v34, %v2082_v19  ;;  %v14813_v11 = vsel %vm818_vm1, %v2499_v35, %v2500_v36  ;;  %v14817_v62 = vsel %vm818_vm1, %v2500_v36, %v2501_v14 }
 0x2bb   : > { %v2503_v63 = vrot.slane %v2463_v46, 7  ;;  %v3371_v30 = vrot.slane %v2463_v46, 1  ;;  %v2225_v48 = vmax.f32 %v2185_v43, 0.0  ;;  %v14821_v17 = vsel %vm1673_vm2, %v3367_v8, %v3368_v38 }
 0x2bc   : > { %18722 = vst [vmem:[#allocation48_spill] sm:$0xff] %v14821_v17  ;;  %v2502_v16 = vrot.slane %v2462_v37, 7  ;;  %v3370_v54 = vrot.slane %v2462_v37, 1  ;;  %v2224_v24 = vmax.f32 %v2184_v22, 0.0  ;;  %v10932_v19 = vpop.f32.mrb[38].mxu0  ;;  %11000 = vmatprep.mubr.msk.f32.mxu1 %vm2565_vm3, %v2462_v37  ;;  %v14826_v35 = vsel %vm1673_vm2, %v3368_v38, %v3369_v56 }
 0x2bd   : > { %18723 = vst [vmem:[#allocation49_spill] sm:$0xff] %v14826_v35  ;;  %v2465_v36 = vmul.f32 %v2416_v15, %v2225_v48  ;;  %v2187_v39 = vadd.f32 %v10932_v19, %v14422_v34  ;;  %v2092_v25 = vpop.f32.mrb[39].mxu0  ;;  %11001 = vmatmul.mubr.msk.f32.gmra.mrb[34].mxu1 %vm2565_vm3, %v2463_v46  ;;  %v2426_v48 = vpop.permute.xlu1 %2425 }
 0x2be   : > { %v2464_v43 = vmul.f32 %v2411_v28, %v2224_v24  ;;  %v2186_v8 = vadd.f32 %v14422_v34, %v2092_v25  ;;  %v14833_v17 = vsel %vm818_vm1, %v2501_v14, %v2502_v16  ;;  %v14837_v37 = vsel %vm818_vm1, %v2502_v16, %v2503_v63  ;;  %v2421_v25 = vpop.permute.xlu0 %2420 }
 0x2bf   : > { %v2505_v22 = vrot.slane %v2465_v36, 7  ;;  %v3373_v38 = vrot.slane %v2465_v36, 1  ;;  %v2227_v35 = vmax.f32 %v2187_v39, 0.0  ;;  %v14841_v15 = vsel %vm1673_vm2, %v3369_v56, %v3370_v54 }
 0x2c0   : > { %v2504_v46 = vrot.slane %v2464_v43, 7  ;;  %v3372_v28 = vrot.slane %v2464_v43, 1  ;;  %v2226_v24 = vmax.f32 %v2186_v8, 0.0  ;;  %11003 = vmatprep.mubr.msk.f32.mxu1 %vm2565_vm3, %v2464_v43  ;;  %v14846_v34 = vsel %vm1673_vm2, %v3370_v54, %v3371_v30 }
 0x2c1   : > { %v14848_v14 = vmul.f32 %v2426_v48, %v2227_v35  ;;  %11004 = vmatmul.mubr.msk.f32.gmra.mrb[36].mxu1 %vm2565_vm3, %v2465_v36  ;;  %v3420_v48 = vld [vmem:[#allocation7 + $0x98] sm:$0xff] }
 0x2c2   : > { %v2466_v39 = vmul.f32 %v2421_v25, %v2226_v24  ;;  %v14853_v56 = vsel %vm818_vm1, %v2503_v63, %v2504_v46  ;;  %v14857_v16 = vsel %vm818_vm1, %v2504_v46, %v2505_v22  ;;  %v14861_v19 = vsel %vm1673_vm2, %v3371_v30, %v3372_v28  ;;  %v3419_v63 = vld [vmem:[#allocation7 + $0x90] sm:$0xff] }
 0x2c3   : > { %18724 = vst [vmem:[#allocation50_spill] sm:$0xff] %v14861_v19  ;;  %v2507_v54 = vrot.slane %v14848_v14, 7  ;;  %v3375_v35 = vrot.slane %v14848_v14, 1  ;;  %v14867_v36 = vsel %vm1673_vm2, %v3372_v28, %v3373_v38  ;;  %v18726_v30 = vrot.slane %v14433_v6, 7  ;;  %v3422_v19 = vld [vmem:[#allocation7 + $0xa8] sm:$0xff] }
 0x2c4   : > { %18725 = vst [vmem:[#allocation51_spill] sm:$0xff] %v14867_v36  ;;  %v2506_v43 = vrot.slane %v2466_v39, 7  ;;  %v3374_v8 = vrot.slane %v2466_v39, 1  ;;  %11006 = vmatprep.mubr.msk.f32.mxu1 %vm2565_vm3, %v2466_v39  ;;  %v11749_v36 = vpack.c.bf16 %v3420_v48, %v3419_v63 }
 0x2c5   : > { %11007 = vmatmul.mubr.msk.f32.gmra.mrb[38].mxu1 %vm2565_vm3, %v14848_v14  ;;  %v2547_v46 = vsel %vm818_vm1, %v2507_v54, %v18726_v30  ;;  %v3421_v30 = vld [vmem:[#allocation7 + $0xa0] sm:$0xff] }
 0x2c6   : > { %11025 = vmatprep.mubr.msk.f32.mxu1 %vm2565_vm3, %v2547_v46  ;;  %v2509_v28 = vsel %vm818_vm1, %v2505_v22, %v2506_v43  ;;  %v2508_v24 = vsel %vm818_vm1, %v2506_v43, %v2507_v54  ;;  %v14883_v25 = vsel %vm1673_vm2, %v3373_v38, %v3374_v8  ;;  %v14889_v39 = vsel %vm1673_vm2, %v3374_v8, %v3375_v35  ;;  %v3423_v38 = vld [vmem:[#allocation7 + $0xb0] sm:$0xff]  ;;  %v3424_v54 = vld [vmem:[#allocation7 + $0xb8] sm:$0xff] }
 0x2c7   : > { %v11753_v22 = vpack.c.bf16 %v3422_v19, %v3421_v30  ;;  %v11757_v43 = vpack.c.bf16 %v3424_v54, %v3423_v38 }
 0x2c9   : > { %11026 = vmatmul.mubr.msk.f32.vlgmr.msra.gmra.mrb[0].mxu1 %vm2565_vm3, %v14452_v58  ;;  %v3336_v58 = vrot.slane %v14433_v6, 1  ;;  %v18728_v6 = vld [vmem:[#allocation23_spill] sm:$0xff] }
 0x2ca   : > { %11028 = vmatprep.mubr.msk.f32.mxu1 %vm2565_vm3, %v14464_v57  ;;  %11748 = vmatpush3.bf16.msra.mxu1 %v14486_v59  ;;  %v18727_v57 = vrot.slane %v14430_v53, 1  ;;  %v18729_v53 = vld [vmem:[#allocation24_spill] sm:$0xff]  ;;  %v18730_v59 = vld [vmem:[#allocation25_spill] sm:$0xff] }
 0x2cb   : > { %11750 = vmatprep.subr.bf16.mxu1 %v11749_v36 }
 0x2cd   : > { %11029 = vmatmul.mubr.msk.f32.gmra.mrb[2].mxu1 %vm2565_vm3, %v14468_v21  ;;  %v3414_v21 = vsel %vm1673_vm2, %v3336_v58, %v18727_v57 }
 0x2ce   : > { %11031 = vmatprep.mubr.msk.f32.mxu1 %vm2565_vm3, %v14492_v52  ;;  %11752 = vmatpush3.bf16.msra.mxu1 %v11749_v36  ;;  %v18731_v52 = vld [vmem:[#allocation26_spill] sm:$0xff] }
 0x2cf   : > { %11754 = vmatprep.subr.bf16.mxu1 %v11753_v22 }
 0x2d1   : > { %11032 = vmatmul.mubr.msk.f32.gmra.mrb[4].mxu1 %vm2565_vm3, %v14496_v61  ;;  %v18734_v61 = vld [vmem:[#allocation29_spill] sm:$0xff] }
 0x2d2   : > { %11034 = vmatprep.mubr.msk.f32.mxu1 %vm2565_vm3, %v14518_v50  ;;  %11756 = vmatpush3.bf16.msra.mxu1 %v11753_v22  ;;  %v18737_v50 = vld [vmem:[#allocation32_spill] sm:$0xff] }
 0x2d3   : > { %11758 = vmatprep.subr.bf16.mxu1 %v11757_v43 }
 0x2d5   : > { %11035 = vmatmul.mubr.msk.f32.gmra.mrb[6].mxu1 %vm2565_vm3, %v14522_v26  ;;  %v18738_v26 = vld [vmem:[#allocation33_spill] sm:$0xff] }
 0x2d6   : > { %11037 = vmatprep.mubr.msk.f32.mxu1 %vm2565_vm3, %v14543_v42  ;;  %11760 = vmatpush3.bf16.msra.mxu1 %v11757_v43  ;;  %v18739_v42 = vld [vmem:[#allocation34_spill] sm:$0xff] }
 0x2d9   : > { %11038 = vmatmul.mubr.msk.f32.gmra.mrb[8].mxu1 %vm2565_vm3, %v14547_v47  ;;  %v18740_v47 = vld [vmem:[#allocation35_spill] sm:$0xff] }
 0x2da   : > { %11040 = vmatprep.mubr.msk.f32.mxu1 %vm2565_vm3, %v14567_v51  ;;  %v18741_v51 = vld [vmem:[#allocation36_spill] sm:$0xff] }
 0x2dd   : > { %11041 = vmatmul.mubr.msk.f32.gmra.mrb[10].mxu1 %vm2565_vm3, %v14571_v41  ;;  %v18742_v41 = vld [vmem:[#allocation37_spill] sm:$0xff] }
 0x2de   : > { %11043 = vmatprep.mubr.msk.f32.mxu1 %vm2565_vm3, %v14593_v27  ;;  %v18743_v27 = vld [vmem:[#allocation38_spill] sm:$0xff] }
 0x2e1   : > { %11044 = vmatmul.mubr.msk.f32.gmra.mrb[12].mxu1 %vm2565_vm3, %v14597_v2  ;;  %v18744_v2 = vld [vmem:[#allocation39_spill] sm:$0xff] }
 0x2e2   : > { %11046 = vmatprep.mubr.msk.f32.mxu1 %vm2565_vm3, %v14617_v0  ;;  %v18745_v0 = vld [vmem:[#allocation40_spill] sm:$0xff] }
 0x2e5   : > { %11047 = vmatmul.mubr.msk.f32.gmra.mrb[14].mxu1 %vm2565_vm3, %v14621_v33  ;;  %v18746_v33 = vld [vmem:[#allocation41_spill] sm:$0xff] }
 0x2e6   : > { %11049 = vmatprep.mubr.msk.f32.mxu1 %vm2565_vm3, %v14641_v31  ;;  %v18747_v31 = vld [vmem:[#allocation42_spill] sm:$0xff] }
 0x2e9   : > { %11050 = vmatmul.mubr.msk.f32.gmra.mrb[16].mxu1 %vm2565_vm3, %v14645_v12  ;;  %v18748_v12 = vld [vmem:[#allocation43_spill] sm:$0xff] }
 0x2ea   : > { %11052 = vmatprep.mubr.msk.f32.mxu1 %vm2565_vm3, %v14667_v55  ;;  %v18749_v55 = vld [vmem:[#allocation44_spill] sm:$0xff] }
 0x2ed   : > { %11053 = vmatmul.mubr.msk.f32.gmra.mrb[18].mxu1 %vm2565_vm3, %v14671_v32  ;;  %v18750_v32 = vld [vmem:[#allocation45_spill] sm:$0xff] }
 0x2ee   : > { %11055 = vmatprep.mubr.msk.f32.mxu1 %vm2565_vm3, %v14689_v44  ;;  %v18751_v44 = vld [vmem:[#allocation46_spill] sm:$0xff] }
 0x2f1   : > { %11056 = vmatmul.mubr.msk.f32.gmra.mrb[20].mxu1 %vm2565_vm3, %v14693_v4  ;;  %v18752_v4 = vld [vmem:[#allocation47_spill] sm:$0xff] }
 0x2f2   : > { %11058 = vmatprep.mubr.msk.f32.mxu1 %vm2565_vm3, %v14711_v23  ;;  %v18753_v23 = vld [vmem:[#allocation22_spill] sm:$0xff] }
 0x2f5   : > { %11059 = vmatmul.mubr.msk.f32.gmra.mrb[22].mxu1 %vm2565_vm3, %v14715_v9  ;;  %v18754_v9 = vld [vmem:[#allocation48_spill] sm:$0xff] }
 0x2f6   : > { %11061 = vmatprep.mubr.msk.f32.mxu1 %vm2565_vm3, %v14733_v13  ;;  %v18755_v13 = vld [vmem:[#allocation49_spill] sm:$0xff] }
 0x2f9   : > { %11062 = vmatmul.mubr.msk.f32.gmra.mrb[24].mxu1 %vm2565_vm3, %v14737_v5  ;;  %v18756_v5 = vld [vmem:[#allocation50_spill] sm:$0xff] }
 0x2fa   : > { %11064 = vmatprep.mubr.msk.f32.mxu1 %vm2565_vm3, %v14753_v45  ;;  %v18757_v45 = vld [vmem:[#allocation51_spill] sm:$0xff] }
 0x2fd   : > { %11065 = vmatmul.mubr.msk.f32.gmra.mrb[26].mxu1 %vm2565_vm3, %v14757_v40  ;;  %v3415_v40 = vsel %vm1673_vm2, %v3375_v35, %v3336_v58 }
 0x2fe   : > { %11067 = vmatprep.mubr.msk.f32.mxu1 %vm2565_vm3, %v14773_v29  ;;  %v18495_v29 = vmov 0.0|0.0  }
 0x2ff   : > { %11761 = vmatprep.subr.bf16.mxu0 %v18495_v29 }
 0x301   : > { %11068 = vmatmul.mubr.msk.f32.gmra.mrb[28].mxu1 %vm2565_vm3, %v14777_v49  ;;  %v3938_v49 = vld [vmem:[%s18758_s30 + $0x8] sm:$0xff] }
 0x302   : > { %11070 = vmatprep.mubr.msk.f32.mxu1 %vm2565_vm3, %v14793_v60  ;;  %4145 = vmatprep.mubr.f32.mxu0 %v3938_v49  ;;  %v3939_v60 = vld [vmem:[%s18758_s30 + $0x10] sm:$0xff] }
 0x305   : > { %11071 = vmatmul.mubr.msk.f32.gmra.mrb[30].mxu1 %vm2565_vm3, %v14797_v20  ;;  %v15063_v20 = vld [vmem:[#allocation10] ss:$0 sm:$0xff] }
 0x306   : > { %11073 = vmatprep.mubr.msk.f32.mxu1 %vm2565_vm3, %v14813_v11 }
 0x309   : > { %11074 = vmatmul.mubr.msk.f32.gmra.mrb[32].mxu1 %vm2565_vm3, %v14817_v62 }
 0x30a   : > { %11076 = vmatprep.mubr.msk.f32.mxu1 %vm2565_vm3, %v14833_v17 }
 0x30d   : > { %11077 = vmatmul.mubr.msk.f32.gmra.mrb[34].mxu1 %vm2565_vm3, %v14837_v37 }
 0x30e   : > { %11079 = vmatprep.mubr.msk.f32.mxu1 %vm2565_vm3, %v14853_v56 }
 0x311   : > { %11080 = vmatmul.mubr.msk.f32.gmra.mrb[36].mxu1 %vm2565_vm3, %v14857_v16 }
 0x312   : > { %11082 = vmatprep.mubr.msk.f32.mxu1 %vm2565_vm3, %v2509_v28 }
 0x315   : > { %11083 = vmatmul.mubr.msk.f32.gmra.mrb[38].mxu1 %vm2565_vm3, %v2508_v24 }
 0x316   : > { %11101 = vmatprep.mubr.msk.f32.mxu1 %vm2565_vm3, %v3414_v21 }
 0x319   : > { %11102 = vmatmul.mubr.msk.f32.vlgmr.msra.gmra.mrb[0].mxu1 %vm2565_vm3, %v14476_v18  ;;  %v18732_v18 = vld [vmem:[#allocation27_spill] sm:$0xff] }
 0x31a   : > { %11104 = vmatprep.mubr.msk.f32.mxu1 %vm2565_vm3, %v14481_v1  ;;  %v18733_v1 = vld [vmem:[#allocation28_spill] sm:$0xff] }
 0x31d   : > { %11105 = vmatmul.mubr.msk.f32.gmra.mrb[2].mxu1 %vm2565_vm3, %v14500_v3  ;;  %v18735_v3 = vld [vmem:[#allocation30_spill] sm:$0xff] }
 0x31e   : > { %11107 = vmatprep.mubr.msk.f32.mxu1 %vm2565_vm3, %v14507_v7  ;;  %v18736_v7 = vld [vmem:[#allocation31_spill] sm:$0xff] }
 0x321   : > { %11108 = vmatmul.mubr.msk.f32.gmra.mrb[4].mxu1 %vm2565_vm3, %v18728_v6 }
 0x322   : > { %11110 = vmatprep.mubr.msk.f32.mxu1 %vm2565_vm3, %v18729_v53 }
 0x325   : > { %11111 = vmatmul.mubr.msk.f32.gmra.mrb[6].mxu1 %vm2565_vm3, %v18730_v59 }
 0x326   : > { %11113 = vmatprep.mubr.msk.f32.mxu1 %vm2565_vm3, %v18731_v52 }
 0x329   : > { %11114 = vmatmul.mubr.msk.f32.gmra.mrb[8].mxu1 %vm2565_vm3, %v18732_v18 }
 0x32a   : > { %11116 = vmatprep.mubr.msk.f32.mxu1 %vm2565_vm3, %v18733_v1 }
 0x32d   : > { %11117 = vmatmul.mubr.msk.f32.gmra.mrb[10].mxu1 %vm2565_vm3, %v18734_v61 }
 0x32e   : > { %11119 = vmatprep.mubr.msk.f32.mxu1 %vm2565_vm3, %v18735_v3 }
 0x331   : > { %11120 = vmatmul.mubr.msk.f32.gmra.mrb[12].mxu1 %vm2565_vm3, %v18736_v7 }
 0x332   : > { %11122 = vmatprep.mubr.msk.f32.mxu1 %vm2565_vm3, %v18737_v50 }
 0x335   : > { %11123 = vmatmul.mubr.msk.f32.gmra.mrb[14].mxu1 %vm2565_vm3, %v18738_v26 }
 0x336   : > { %11125 = vmatprep.mubr.msk.f32.mxu1 %vm2565_vm3, %v18739_v42 }
 0x339   : > { %11126 = vmatmul.mubr.msk.f32.gmra.mrb[16].mxu1 %vm2565_vm3, %v18740_v47 }
 0x33a   : > { %11128 = vmatprep.mubr.msk.f32.mxu1 %vm2565_vm3, %v18741_v51 }
 0x33d   : > { %11129 = vmatmul.mubr.msk.f32.gmra.mrb[18].mxu1 %vm2565_vm3, %v18742_v41 }
 0x33e   : > { %11131 = vmatprep.mubr.msk.f32.mxu1 %vm2565_vm3, %v18743_v27 }
 0x341   : > { %11132 = vmatmul.mubr.msk.f32.gmra.mrb[20].mxu1 %vm2565_vm3, %v18744_v2 }
 0x342   : > { %11134 = vmatprep.mubr.msk.f32.mxu1 %vm2565_vm3, %v18745_v0 }
 0x345   : > { %11135 = vmatmul.mubr.msk.f32.gmra.mrb[22].mxu1 %vm2565_vm3, %v18746_v33 }
 0x346   : > { %11137 = vmatprep.mubr.msk.f32.mxu1 %vm2565_vm3, %v18747_v31 }
 0x349   : > { %11138 = vmatmul.mubr.msk.f32.gmra.mrb[24].mxu1 %vm2565_vm3, %v18748_v12 }
 0x34a   : > { %11140 = vmatprep.mubr.msk.f32.mxu1 %vm2565_vm3, %v18749_v55 }
 0x34d   : > { %11141 = vmatmul.mubr.msk.f32.gmra.mrb[26].mxu1 %vm2565_vm3, %v18750_v32 }
 0x34e   : > { %11143 = vmatprep.mubr.msk.f32.mxu1 %vm2565_vm3, %v18751_v44 }
 0x351   : > { %11144 = vmatmul.mubr.msk.f32.gmra.mrb[28].mxu1 %vm2565_vm3, %v18752_v4 }
 0x352   : > { %11146 = vmatprep.mubr.msk.f32.mxu1 %vm2565_vm3, %v18753_v23 }
 0x355   : > { %11147 = vmatmul.mubr.msk.f32.gmra.mrb[30].mxu1 %vm2565_vm3, %v18754_v9 }
 0x356   : > { %11149 = vmatprep.mubr.msk.f32.mxu1 %vm2565_vm3, %v18755_v13 }
 0x359   : > { %11150 = vmatmul.mubr.msk.f32.gmra.mrb[32].mxu1 %vm2565_vm3, %v14841_v15 }
 0x35a   : > { %11152 = vmatprep.mubr.msk.f32.mxu1 %vm2565_vm3, %v14846_v34 }
 0x35d   : > { %11153 = vmatmul.mubr.msk.f32.gmra.mrb[34].mxu1 %vm2565_vm3, %v18756_v5 }
 0x35e   : > { %11155 = vmatprep.mubr.msk.f32.mxu1 %vm2565_vm3, %v18757_v45 }
 0x361   : > { %11156 = vmatmul.mubr.msk.f32.gmra.mrb[36].mxu1 %vm2565_vm3, %v14883_v25 }
 0x362   : > { %11158 = vmatprep.mubr.msk.f32.mxu1 %vm2565_vm3, %v14889_v39 }
 0x365   : > { %11159 = vmatmul.mubr.msk.f32.gmra.mrb[38].mxu1 %vm2565_vm3, %v3415_v40 }
 0x366   : > { %11177 = vmatprep.mubr.msk.f32.mxu1 %vm2565_vm3, %v3939_v60 }
 0x3ec   : > { %v11103_v11 = vpop.f32.mrb[0].mxu1 }
 0x3ed   : > { %v3858_v62 = vadd.f32 %v11103_v11, %v15063_v20  ;;  %v3611_v17 = vpop.f32.mrb[1].mxu1 }
 0x3ee   : > { %v3857_v37 = vadd.f32 %v15063_v20, %v3611_v17 }
 0x3ef   : > { %v3898_v15 = vmax.f32 %v3858_v62, 0.0 }
 0x3f0   : > { %v3897_v34 = vmax.f32 %v3857_v37, 0.0  ;;  %v11106_v14 = vpop.f32.mrb[2].mxu1 }
 0x3f1   : > { %v3860_v56 = vadd.f32 %v11106_v14, %v15063_v20  ;;  %v3621_v16 = vpop.f32.mrb[3].mxu1 }
 0x3f2   : > { %v15068_v19 = vpack.c.bf16 %v3898_v15, %v3897_v34  ;;  %v3859_v35 = vadd.f32 %v15063_v20, %v3621_v16 }
 0x3f3   : > { %v3900_v36 = vmax.f32 %v3860_v56, 0.0 }
 0x3f4   : > { %v3899_v8 = vmax.f32 %v3859_v35, 0.0  ;;  %v11109_v63 = vpop.f32.mrb[4].mxu1  ;;  %11763 = vmatpush1.bf16.msra.mxu0 %v15068_v19 }
 0x3f5   : > { %v3862_v48 = vadd.f32 %v11109_v63, %v15063_v20  ;;  %v3631_v46 = vpop.f32.mrb[5].mxu1  ;;  %11764 = vmatprep.subr.bf16.mxu0 %v18495_v29 }
 0x3f6   : > { %v15074_v28 = vpack.c.bf16 %v3900_v36, %v3899_v8  ;;  %v3861_v24 = vadd.f32 %v15063_v20, %v3631_v46 }
 0x3f7   : > { %v3902_v25 = vmax.f32 %v3862_v48, 0.0 }
 0x3f8   : > { %v3901_v39 = vmax.f32 %v3861_v24, 0.0  ;;  %v11112_v30 = vpop.f32.mrb[6].mxu1  ;;  %11766 = vmatpush1.bf16.msra.mxu0 %v15074_v28 }
 0x3f9   : > { %v3864_v22 = vadd.f32 %v11112_v30, %v15063_v20  ;;  %v3641_v38 = vpop.f32.mrb[7].mxu1  ;;  %11767 = vmatprep.subr.bf16.mxu0 %v18495_v29 }
 0x3fa   : > { %v15080_v54 = vpack.c.bf16 %v3902_v25, %v3901_v39  ;;  %v3863_v43 = vadd.f32 %v15063_v20, %v3641_v38 }
 0x3fb   : > { %v3904_v58 = vmax.f32 %v3864_v22, 0.0 }
 0x3fc   : > { %v3903_v57 = vmax.f32 %v3863_v43, 0.0  ;;  %v11115_v21 = vpop.f32.mrb[8].mxu1  ;;  %11769 = vmatpush1.bf16.msra.mxu0 %v15080_v54 }
 0x3fd   : > { %v3866_v6 = vadd.f32 %v11115_v21, %v15063_v20  ;;  %v3651_v53 = vpop.f32.mrb[9].mxu1  ;;  %11770 = vmatprep.subr.bf16.mxu0 %v18495_v29 }
 0x3fe   : > { %v15086_v59 = vpack.c.bf16 %v3904_v58, %v3903_v57  ;;  %v3865_v52 = vadd.f32 %v15063_v20, %v3651_v53 }
 0x3ff   : > { %v3906_v18 = vmax.f32 %v3866_v6, 0.0 }
 0x400   : > { %v3905_v1 = vmax.f32 %v3865_v52, 0.0  ;;  %v11118_v61 = vpop.f32.mrb[10].mxu1  ;;  %11772 = vmatpush1.bf16.msra.mxu0 %v15086_v59 }
 0x401   : > { %v3868_v3 = vadd.f32 %v11118_v61, %v15063_v20  ;;  %v3661_v7 = vpop.f32.mrb[11].mxu1  ;;  %11773 = vmatprep.subr.bf16.mxu0 %v18495_v29 }
 0x402   : > { %v15092_v50 = vpack.c.bf16 %v3906_v18, %v3905_v1  ;;  %v3867_v26 = vadd.f32 %v15063_v20, %v3661_v7 }
 0x403   : > { %v3908_v42 = vmax.f32 %v3868_v3, 0.0 }
 0x404   : > { %v3907_v47 = vmax.f32 %v3867_v26, 0.0  ;;  %v11121_v51 = vpop.f32.mrb[12].mxu1  ;;  %11775 = vmatpush1.bf16.msra.mxu0 %v15092_v50 }
 0x405   : > { %v3870_v41 = vadd.f32 %v11121_v51, %v15063_v20  ;;  %v3671_v27 = vpop.f32.mrb[13].mxu1  ;;  %11776 = vmatprep.subr.bf16.mxu0 %v18495_v29 }
 0x406   : > { %v15098_v2 = vpack.c.bf16 %v3908_v42, %v3907_v47  ;;  %v3869_v0 = vadd.f32 %v15063_v20, %v3671_v27 }
 0x407   : > { %v3910_v33 = vmax.f32 %v3870_v41, 0.0 }
 0x408   : > { %v3909_v31 = vmax.f32 %v3869_v0, 0.0  ;;  %v11124_v12 = vpop.f32.mrb[14].mxu1  ;;  %11778 = vmatpush1.bf16.msra.mxu0 %v15098_v2 }
 0x409   : > { %v3872_v55 = vadd.f32 %v11124_v12, %v15063_v20  ;;  %v3681_v32 = vpop.f32.mrb[15].mxu1  ;;  %11779 = vmatprep.subr.bf16.mxu0 %v18495_v29 }
 0x40a   : > { %v15104_v44 = vpack.c.bf16 %v3910_v33, %v3909_v31  ;;  %v3871_v4 = vadd.f32 %v15063_v20, %v3681_v32 }
 0x40b   : > { %v3912_v23 = vmax.f32 %v3872_v55, 0.0 }
 0x40c   : > { %v3911_v9 = vmax.f32 %v3871_v4, 0.0  ;;  %v11127_v13 = vpop.f32.mrb[16].mxu1  ;;  %11781 = vmatpush1.bf16.msra.mxu0 %v15104_v44 }
 0x40d   : > { %v3874_v5 = vadd.f32 %v11127_v13, %v15063_v20  ;;  %v3691_v45 = vpop.f32.mrb[17].mxu1  ;;  %11782 = vmatprep.subr.bf16.mxu0 %v18495_v29 }
 0x40e   : > { %v15110_v40 = vpack.c.bf16 %v3912_v23, %v3911_v9  ;;  %v3873_v49 = vadd.f32 %v15063_v20, %v3691_v45 }
 0x40f   : > { %v3914_v60 = vmax.f32 %v3874_v5, 0.0 }
 0x410   : > { %v3913_v11 = vmax.f32 %v3873_v49, 0.0  ;;  %v11130_v62 = vpop.f32.mrb[18].mxu1  ;;  %11784 = vmatpush1.bf16.msra.mxu0 %v15110_v40 }
 0x411   : > { %v3876_v17 = vadd.f32 %v11130_v62, %v15063_v20  ;;  %v3701_v37 = vpop.f32.mrb[19].mxu1  ;;  %11785 = vmatprep.subr.bf16.mxu0 %v18495_v29 }
 0x412   : > { %v15116_v15 = vpack.c.bf16 %v3914_v60, %v3913_v11  ;;  %v3875_v34 = vadd.f32 %v15063_v20, %v3701_v37 }
 0x413   : > { %v3916_v14 = vmax.f32 %v3876_v17, 0.0 }
 0x414   : > { %v3915_v56 = vmax.f32 %v3875_v34, 0.0  ;;  %v11133_v16 = vpop.f32.mrb[20].mxu1  ;;  %11787 = vmatpush1.bf16.msra.mxu0 %v15116_v15 }
 0x415   : > { %v3878_v35 = vadd.f32 %v11133_v16, %v15063_v20  ;;  %v3711_v36 = vpop.f32.mrb[21].mxu1  ;;  %11788 = vmatprep.subr.bf16.mxu0 %v18495_v29 }
 0x416   : > { %v15122_v8 = vpack.c.bf16 %v3916_v14, %v3915_v56  ;;  %v3877_v63 = vadd.f32 %v15063_v20, %v3711_v36  ;;  %v3937_v14 = vld [vmem:[%s18758_s30] sm:$0xff] }
 0x417   : > { %v3918_v48 = vmax.f32 %v3878_v35, 0.0 }
 0x418   : > { %v3917_v46 = vmax.f32 %v3877_v63, 0.0  ;;  %v11136_v24 = vpop.f32.mrb[22].mxu1  ;;  %11790 = vmatpush1.bf16.msra.mxu0 %v15122_v8 }
 0x419   : > { %v3880_v25 = vadd.f32 %v11136_v24, %v15063_v20  ;;  %v3721_v39 = vpop.f32.mrb[23].mxu1  ;;  %11791 = vmatprep.subr.bf16.mxu0 %v18495_v29 }
 0x41a   : > { %v15128_v30 = vpack.c.bf16 %v3918_v48, %v3917_v46  ;;  %v3879_v22 = vadd.f32 %v15063_v20, %v3721_v39  ;;  %v3941_v48 = vld [vmem:[%s18758_s30 + $0x20] sm:$0xff] }
 0x41b   : > { %v3920_v38 = vmax.f32 %v3880_v25, 0.0  ;;  %v3940_v25 = vld [vmem:[%s18758_s30 + $0x18] sm:$0xff] }
 0x41c   : > { %v3919_v43 = vmax.f32 %v3879_v22, 0.0  ;;  %v11139_v58 = vpop.f32.mrb[24].mxu1  ;;  %11793 = vmatpush1.bf16.msra.mxu0 %v15128_v30 }
 0x41d   : > { %v3882_v57 = vadd.f32 %v11139_v58, %v15063_v20  ;;  %v3731_v21 = vpop.f32.mrb[25].mxu1  ;;  %11794 = vmatprep.subr.bf16.mxu0 %v18495_v29 }
 0x41e   : > { %v15134_v6 = vpack.c.bf16 %v3920_v38, %v3919_v43  ;;  %v3881_v53 = vadd.f32 %v15063_v20, %v3731_v21 }
 0x41f   : > { %v3922_v52 = vmax.f32 %v3882_v57, 0.0  ;;  %v3944_v57 = vld [vmem:[%s18758_s30 + $0x38] sm:$0xff] }
 0x420   : > { %v3921_v18 = vmax.f32 %v3881_v53, 0.0  ;;  %v11142_v1 = vpop.f32.mrb[26].mxu1  ;;  %11796 = vmatpush1.bf16.msra.mxu0 %v15134_v6 }
 0x421   : > { %v3884_v61 = vadd.f32 %v11142_v1, %v15063_v20  ;;  %v3741_v3 = vpop.f32.mrb[27].mxu1  ;;  %11797 = vmatprep.subr.bf16.mxu0 %v18495_v29 }
 0x422   : > { %v3883_v7 = vadd.f32 %v15063_v20, %v3741_v3  ;;  %v15141_v26 = vpack.c.bf16 %v3922_v52, %v3921_v18  ;;  %v3943_v52 = vld [vmem:[%s18758_s30 + $0x30] sm:$0xff] }
 0x423   : > { %v3924_v42 = vmax.f32 %v3884_v61, 0.0 }
 0x424   : > { %v3923_v47 = vmax.f32 %v3883_v7, 0.0  ;;  %v11145_v51 = vpop.f32.mrb[28].mxu1  ;;  %11799 = vmatpush1.bf16.msra.mxu0 %v15141_v26 }
 0x425   : > { %v3886_v41 = vadd.f32 %v11145_v51, %v15063_v20  ;;  %v3751_v27 = vpop.f32.mrb[29].mxu1  ;;  %11800 = vmatprep.subr.bf16.mxu0 %v18495_v29  ;;  %v3946_v51 = vld [vmem:[%s18758_s30 + $0x48] sm:$0xff] }
 0x426   : > { %v3885_v0 = vadd.f32 %v15063_v20, %v3751_v27  ;;  %v15147_v33 = vpack.c.bf16 %v3924_v42, %v3923_v47  ;;  %v3947_v42 = vld [vmem:[%s18758_s30 + $0x50] sm:$0xff]  ;;  %v3949_v27 = vld [vmem:[%s18758_s30 + $0x60] sm:$0xff] }
 0x427   : > { %v3926_v31 = vmax.f32 %v3886_v41, 0.0 }
 0x428   : > { %v3925_v12 = vmax.f32 %v3885_v0, 0.0  ;;  %v11148_v55 = vpop.f32.mrb[30].mxu1  ;;  %11802 = vmatpush1.bf16.msra.mxu0 %v15147_v33  ;;  %v3942_v0 = vld [vmem:[%s18758_s30 + $0x28] sm:$0xff] }
 0x429   : > { %v3888_v32 = vadd.f32 %v11148_v55, %v15063_v20  ;;  %v3761_v4 = vpop.f32.mrb[31].mxu1  ;;  %11803 = vmatprep.subr.bf16.mxu0 %v18495_v29  ;;  %v3952_v55 = vld [vmem:[%s18758_s30 + $0x78] sm:$0xff] }
 0x42a   : > { %v3887_v23 = vadd.f32 %v15063_v20, %v3761_v4  ;;  %v15153_v9 = vpack.c.bf16 %v3926_v31, %v3925_v12  ;;  %v3953_v31 = vld [vmem:[%s18758_s30 + $0x80] sm:$0xff]  ;;  %v3948_v4 = vld [vmem:[%s18758_s30 + $0x58] sm:$0xff] }
 0x42b   : > { %v3928_v13 = vmax.f32 %v3888_v32, 0.0  ;;  %v3945_v12 = vld [vmem:[%s18758_s30 + $0x40] sm:$0xff]  ;;  %v3956_v32 = vld [vmem:[%s18758_s30 + $0x98] sm:$0xff] }
 0x42c   : > { %v3927_v5 = vmax.f32 %v3887_v23, 0.0  ;;  %v11151_v45 = vpop.f32.mrb[32].mxu1  ;;  %11805 = vmatpush1.bf16.msra.mxu0 %v15153_v9  ;;  %v3951_v23 = vld [vmem:[%s18758_s30 + $0x70] sm:$0xff] }
 0x42d   : > { %v3890_v49 = vadd.f32 %v11151_v45, %v15063_v20  ;;  %v3771_v60 = vpop.f32.mrb[33].mxu1  ;;  %11806 = vmatprep.subr.bf16.mxu0 %v18495_v29  ;;  %v3957_v45 = vld [vmem:[%s18758_s30 + $0xa0] sm:$0xff] }
 0x42e   : > { %v3889_v11 = vadd.f32 %v15063_v20, %v3771_v60  ;;  %v15159_v62 = vpack.c.bf16 %v3928_v13, %v3927_v5  ;;  %v3959_v13 = vld [vmem:[%s18758_s30 + $0xb0] sm:$0xff]  ;;  %v3954_v5 = vld [vmem:[%s18758_s30 + $0x88] sm:$0xff]  ;;  %v3960_v60 = vld [vmem:[%s18758_s30 + $0xb8] sm:$0xff] }
 0x42f   : > { %v3930_v17 = vmax.f32 %v3890_v49, 0.0  ;;  %v3962_v49 = vld [vmem:[%s18758_s30 + $0xc8] sm:$0xff] }
 0x430   : > { %v3929_v37 = vmax.f32 %v3889_v11, 0.0  ;;  %v11154_v34 = vpop.f32.mrb[34].mxu1  ;;  %11808 = vmatpush1.bf16.msra.mxu0 %v15159_v62  ;;  %v3963_v11 = vld [vmem:[%s18758_s30 + $0xd0] sm:$0xff] }
 0x431   : > { %v3892_v56 = vadd.f32 %v11154_v34, %v15063_v20  ;;  %v3781_v16 = vpop.f32.mrb[35].mxu1  ;;  %v3969_v34 = vld [vmem:[%s18758_s30 + $0x100] sm:$0xff] }
 0x432   : > { %v3891_v35 = vadd.f32 %v15063_v20, %v3781_v16  ;;  %v11809_v36 = vpack.c.bf16 %v3930_v17, %v3929_v37  ;;  %v3965_v17 = vld [vmem:[%s18758_s30 + $0xe0] sm:$0xff]  ;;  %v3966_v37 = vld [vmem:[%s18758_s30 + $0xe8] sm:$0xff]  ;;  %v3975_v16 = vld [vmem:[%s18758_s30 + $0x130] sm:$0xff] }
 0x433   : > { %v3932_v63 = vmax.f32 %v3892_v56, 0.0  ;;  %4146 = vmatmul.mubr.f32.vlgmr.msra.gmra.mrb[40].mxu0 %v3937_v14  ;;  %v3968_v14 = vld [vmem:[%s18758_s30 + $0xf8] sm:$0xff] }
 0x434   : > { %v3931_v46 = vmax.f32 %v3891_v35, 0.0  ;;  %v11157_v24 = vpop.f32.mrb[36].mxu1  ;;  %11810 = vmatprep.subr.bf16.mxu1 %v11809_v36  ;;  %11874 = vmatprep.subr.bf16.mxu0 %v11809_v36  ;;  %v3972_v56 = vld [vmem:[%s18758_s30 + $0x118] sm:$0xff]  ;;  %v3971_v35 = vld [vmem:[%s18758_s30 + $0x110] sm:$0xff] }
 0x435   : > { %v3894_v39 = vadd.f32 %v11157_v24, %v15063_v20  ;;  %v3791_v22 = vpop.f32.mrb[37].mxu1  ;;  %11812 = vmatpush3.bf16.msra.mxu1 %v11809_v36  ;;  %11876 = vmatpush3.bf16.msra.mxu0 %v11809_v36  ;;  %v3978_v36 = vld [vmem:[%s18758_s30 + $0x148] sm:$0xff]  ;;  %v3987_v24 = vld [vmem:[%s18758_s30 + $0x190] sm:$0xff] }
 0x436   : > { %v3893_v38 = vadd.f32 %v15063_v20, %v3791_v22  ;;  %4150 = vmatprep.mubr.f32.mxu0 %v3941_v48  ;;  %v11813_v43 = vpack.c.bf16 %v3932_v63, %v3931_v46  ;;  %v3981_v63 = vld [vmem:[%s18758_s30 + $0x160] sm:$0xff]  ;;  %v3974_v48 = vld [vmem:[%s18758_s30 + $0x128] sm:$0xff]  ;;  %v3984_v46 = vld [vmem:[%s18758_s30 + $0x178] sm:$0xff] }
 0x437   : > { %v3934_v58 = vmax.f32 %v3894_v39, 0.0  ;;  %4151 = vmatmul.mubr.f32.gmra.mrb[42].mxu0 %v3940_v25  ;;  %v3977_v25 = vld [vmem:[%s18758_s30 + $0x140] sm:$0xff]  ;;  %v3990_v39 = vld [vmem:[%s18758_s30 + $0x1a8] sm:$0xff] }
 0x438   : > { %v3933_v21 = vmax.f32 %v3893_v38, 0.0  ;;  %v11160_v53 = vpop.f32.mrb[38].mxu1  ;;  %11814 = vmatprep.subr.bf16.mxu1 %v11813_v43  ;;  %11878 = vmatprep.subr.bf16.mxu0 %v11813_v43  ;;  %v3993_v22 = vld [vmem:[%s18758_s30 + $0x1c0] sm:$0xff]  ;;  %v3980_v38 = vld [vmem:[%s18758_s30 + $0x158] sm:$0xff] }
 0x439   : > { %v3896_v18 = vadd.f32 %v11160_v53, %v15063_v20  ;;  %v3801_v1 = vpop.f32.mrb[39].mxu1  ;;  %11816 = vmatpush3.bf16.msra.mxu1 %v11813_v43  ;;  %11880 = vmatpush3.bf16.msra.mxu0 %v11813_v43  ;;  %v3996_v43 = vld [vmem:[%s18758_s30 + $0x1d8] sm:$0xff]  ;;  %v4005_v53 = vld [vmem:[%s18758_s30 + $0x220] sm:$0xff] }
 0x43a   : > { %v3895_v61 = vadd.f32 %v15063_v20, %v3801_v1  ;;  %4155 = vmatprep.mubr.f32.mxu0 %v3944_v57  ;;  %v11817_v3 = vpack.c.bf16 %v3934_v58, %v3933_v21  ;;  %v3950_v20 = vld [vmem:[%s18758_s30 + $0x68] sm:$0xff]  ;;  %v3999_v58 = vld [vmem:[%s18758_s30 + $0x1f0] sm:$0xff] }
 0x43b   : > { %v3936_v7 = vmax.f32 %v3896_v18, 0.0  ;;  %4156 = vmatmul.mubr.f32.gmra.mrb[44].mxu0 %v3943_v52  ;;  %v3983_v57 = vld [vmem:[%s18758_s30 + $0x170] sm:$0xff]  ;;  %v4002_v21 = vld [vmem:[%s18758_s30 + $0x208] sm:$0xff]  ;;  %v4008_v18 = vld [vmem:[%s18758_s30 + $0x238] sm:$0xff] }
 0x43c   : > { %v3935_v47 = vmax.f32 %v3895_v61, 0.0  ;;  %11818 = vmatprep.subr.bf16.mxu1 %v11817_v3  ;;  %11882 = vmatprep.subr.bf16.mxu0 %v11817_v3  ;;  %v3986_v52 = vld [vmem:[%s18758_s30 + $0x188] sm:$0xff]  ;;  %v3985_v61 = vld [vmem:[%s18758_s30 + $0x180] sm:$0xff] }
 0x43d   : > { %11820 = vmatpush3.bf16.msra.mxu1 %v11817_v3  ;;  %11884 = vmatpush3.bf16.msra.mxu0 %v11817_v3  ;;  %v4452_v1 = vld [vmem:[#allocation2 + $0x8] sm:$0xff]  ;;  %v3988_v3 = vld [vmem:[%s18758_s30 + $0x198] sm:$0xff] }
 0x43e   : > { %4160 = vmatprep.mubr.f32.mxu0 %v3947_v42  ;;  %v11821_v41 = vpack.c.bf16 %v3936_v7, %v3935_v47  ;;  %v3992_v7 = vld [vmem:[%s18758_s30 + $0x1b8] sm:$0xff]  ;;  %v3995_v42 = vld [vmem:[%s18758_s30 + $0x1d0] sm:$0xff]  ;;  %v3998_v47 = vld [vmem:[%s18758_s30 + $0x1e8] sm:$0xff] }
 0x43f   : > { %4161 = vmatmul.mubr.f32.gmra.mrb[46].mxu0 %v3946_v51  ;;  %v4451_v51 = vld [vmem:[#allocation2] sm:$0xff] }
 0x440   : > { %11822 = vmatprep.subr.bf16.mxu1 %v11821_v41  ;;  %11886 = vmatprep.subr.bf16.mxu0 %v11821_v41 }
 0x441   : > { %11824 = vmatpush3.bf16.msra.mxu1 %v11821_v41  ;;  %11888 = vmatpush3.bf16.msra.mxu0 %v11821_v41  ;;  %v4001_v41 = vld [vmem:[%s18758_s30 + $0x200] sm:$0xff] }
 0x442   : > { %4165 = vmatprep.mubr.f32.mxu0 %v3950_v20  ;;  %11825 = vmatprep.subr.bf16.mxu1 %v18495_v29  ;;  %v4000_v20 = vld [vmem:[%s18758_s30 + $0x1f8] sm:$0xff] }
 0x443   : > { %4166 = vmatmul.mubr.f32.gmra.mrb[48].mxu0 %v3949_v27  ;;  %v4454_v27 = vld [vmem:[#allocation2 + $0x18] sm:$0xff] }
 0x444   : > { %11178 = vmatmul.mubr.msk.f32.vlgmr.msra.gmra.mrb[40].mxu1 %vm2565_vm3, %v3942_v0  ;;  %4170 = vmatprep.mubr.f32.mxu0 %v3953_v31  ;;  %v4458_v0 = vld [vmem:[#allocation2 + $0x38] sm:$0xff]  ;;  %v4003_v31 = vld [vmem:[%s18758_s30 + $0x210] sm:$0xff] }
 0x445   : > { %11827 = vmatpush1.bf16.msra.mxu1 %v15068_v19  ;;  %11180 = vmatprep.mubr.msk.f32.mxu1 %vm2565_vm3, %v3945_v12  ;;  %v3955_v19 = vld [vmem:[%s18758_s30 + $0x90] sm:$0xff] }
 0x446   : > { %11828 = vmatprep.subr.bf16.mxu1 %v18495_v29  ;;  %v4457_v12 = vld [vmem:[#allocation2 + $0x30] sm:$0xff] }
 0x447   : > { %4171 = vmatmul.mubr.f32.gmra.mrb[50].mxu0 %v3952_v55  ;;  %v4007_v55 = vld [vmem:[%s18758_s30 + $0x230] sm:$0xff] }
 0x448   : > { %4175 = vmatprep.mubr.f32.mxu0 %v3956_v32  ;;  %11181 = vmatmul.mubr.msk.f32.gmra.mrb[42].mxu1 %vm2565_vm3, %v3948_v4  ;;  %v4461_v32 = vld [vmem:[#allocation2 + $0x50] sm:$0xff]  ;;  %v4006_v4 = vld [vmem:[%s18758_s30 + $0x228] sm:$0xff] }
 0x449   : > { %11830 = vmatpush1.bf16.msra.mxu1 %v15074_v28  ;;  %11183 = vmatprep.mubr.msk.f32.mxu1 %vm2565_vm3, %v3951_v23  ;;  %v3958_v28 = vld [vmem:[%s18758_s30 + $0xa8] sm:$0xff] }
 0x44a   : > { %11831 = vmatprep.subr.bf16.mxu1 %v18495_v29  ;;  %v4460_v23 = vld [vmem:[#allocation2 + $0x48] sm:$0xff] }
 0x44b   : > { %4176 = vmatmul.mubr.f32.gmra.mrb[52].mxu0 %v3955_v19  ;;  %v4453_v19 = vld [vmem:[#allocation2 + $0x10] sm:$0xff] }
 0x44c   : > { %4180 = vmatprep.mubr.f32.mxu0 %v3959_v13  ;;  %11184 = vmatmul.mubr.msk.f32.gmra.mrb[44].mxu1 %vm2565_vm3, %v3954_v5  ;;  %v4464_v13 = vld [vmem:[#allocation2 + $0x68] sm:$0xff] }
 0x44d   : > { %11833 = vmatpush1.bf16.msra.mxu1 %v15080_v54  ;;  %11186 = vmatprep.mubr.msk.f32.mxu1 %vm2565_vm3, %v3957_v45  ;;  %v3961_v54 = vld [vmem:[%s18758_s30 + $0xc0] sm:$0xff]  ;;  %v4456_v5 = vld [vmem:[#allocation2 + $0x28] sm:$0xff] }
 0x44e   : > { %11834 = vmatprep.subr.bf16.mxu1 %v18495_v29  ;;  %v4463_v45 = vld [vmem:[#allocation2 + $0x60] sm:$0xff] }
 0x44f   : > { %4181 = vmatmul.mubr.f32.gmra.mrb[54].mxu0 %v3958_v28  ;;  %v4459_v28 = vld [vmem:[#allocation2 + $0x40] sm:$0xff] }
 0x450   : > { %4185 = vmatprep.mubr.f32.mxu0 %v3962_v49  ;;  %11187 = vmatmul.mubr.msk.f32.gmra.mrb[46].mxu1 %vm2565_vm3, %v3960_v60  ;;  %v4467_v49 = vld [vmem:[#allocation2 + $0x80] sm:$0xff]  ;;  %v4462_v60 = vld [vmem:[#allocation2 + $0x58] sm:$0xff] }
 0x451   : > { %11836 = vmatpush1.bf16.msra.mxu1 %v15086_v59  ;;  %11189 = vmatprep.mubr.msk.f32.mxu1 %vm2565_vm3, %v3963_v11  ;;  %v3964_v59 = vld [vmem:[%s18758_s30 + $0xd8] sm:$0xff] }
 0x452   : > { %11837 = vmatprep.subr.bf16.mxu1 %v18495_v29  ;;  %v4466_v11 = vld [vmem:[#allocation2 + $0x78] sm:$0xff] }
 0x453   : > { %4186 = vmatmul.mubr.f32.gmra.mrb[56].mxu0 %v3961_v54  ;;  %v4465_v54 = vld [vmem:[#allocation2 + $0x70] sm:$0xff] }
 0x454   : > { %4190 = vmatprep.mubr.f32.mxu0 %v3965_v17  ;;  %11190 = vmatmul.mubr.msk.f32.gmra.mrb[48].mxu1 %vm2565_vm3, %v3966_v37  ;;  %v4470_v17 = vld [vmem:[#allocation2 + $0x98] sm:$0xff]  ;;  %v4468_v37 = vld [vmem:[#allocation2 + $0x88] sm:$0xff] }
 0x455   : > { %11839 = vmatpush1.bf16.msra.mxu1 %v15092_v50  ;;  %11192 = vmatprep.mubr.msk.f32.mxu1 %vm2565_vm3, %v3969_v34  ;;  %v3967_v50 = vld [vmem:[%s18758_s30 + $0xf0] sm:$0xff] }
 0x456   : > { %11840 = vmatprep.subr.bf16.mxu1 %v18495_v29  ;;  %v4469_v34 = vld [vmem:[#allocation2 + $0x90] sm:$0xff] }
 0x457   : > { %4191 = vmatmul.mubr.f32.gmra.mrb[58].mxu0 %v3964_v59  ;;  %v4471_v59 = vld [vmem:[#allocation2 + $0xa0] sm:$0xff] }
 0x458   : > { %4195 = vmatprep.mubr.f32.mxu0 %v3968_v14  ;;  %11193 = vmatmul.mubr.msk.f32.gmra.mrb[50].mxu1 %vm2565_vm3, %v3972_v56  ;;  %v4473_v14 = vld [vmem:[#allocation2 + $0xb0] sm:$0xff]  ;;  %v4474_v56 = vld [vmem:[#allocation2 + $0xb8] sm:$0xff] }
 0x459   : > { %11842 = vmatpush1.bf16.msra.mxu1 %v15098_v2  ;;  %11195 = vmatprep.mubr.msk.f32.mxu1 %vm2565_vm3, %v3975_v16  ;;  %v3970_v2 = vld [vmem:[%s18758_s30 + $0x108] sm:$0xff] }
 0x45a   : > { %11843 = vmatprep.subr.bf16.mxu1 %v18495_v29  ;;  %v4472_v16 = vld [vmem:[#allocation2 + $0xa8] sm:$0xff] }
 0x45b   : > { %4196 = vmatmul.mubr.f32.gmra.mrb[60].mxu0 %v3967_v50  ;;  %v4477_v50 = vld [vmem:[#allocation2 + $0xd0] sm:$0xff] }
 0x45c   : > { %4200 = vmatprep.mubr.f32.mxu0 %v3971_v35  ;;  %11196 = vmatmul.mubr.msk.f32.gmra.mrb[52].mxu1 %vm2565_vm3, %v3978_v36  ;;  %v4476_v35 = vld [vmem:[#allocation2 + $0xc8] sm:$0xff] }
 0x45d   : > { %11845 = vmatpush1.bf16.msra.mxu1 %v15104_v44  ;;  %11198 = vmatprep.mubr.msk.f32.mxu1 %vm2565_vm3, %v3981_v63  ;;  %v3973_v44 = vld [vmem:[%s18758_s30 + $0x120] sm:$0xff]  ;;  %v4480_v36 = vld [vmem:[#allocation2 + $0xe8] sm:$0xff] }
 0x45e   : > { %11846 = vmatprep.subr.bf16.mxu1 %v18495_v29  ;;  %v4475_v63 = vld [vmem:[#allocation2 + $0xc0] sm:$0xff] }
 0x45f   : > { %4201 = vmatmul.mubr.f32.gmra.mrb[62].mxu0 %v3970_v2  ;;  %v4483_v2 = vld [vmem:[#allocation2 + $0x100] sm:$0xff] }
 0x460   : > { %4205 = vmatprep.mubr.f32.mxu0 %v3974_v48  ;;  %11199 = vmatmul.mubr.msk.f32.gmra.mrb[54].mxu1 %vm2565_vm3, %v3984_v46  ;;  %v4479_v48 = vld [vmem:[#allocation2 + $0xe0] sm:$0xff]  ;;  %v4486_v46 = vld [vmem:[#allocation2 + $0x118] sm:$0xff] }
 0x461   : > { %11848 = vmatpush1.bf16.msra.mxu1 %v15110_v40  ;;  %11201 = vmatprep.mubr.msk.f32.mxu1 %vm2565_vm3, %v3987_v24  ;;  %v3976_v40 = vld [vmem:[%s18758_s30 + $0x138] sm:$0xff] }
 0x462   : > { %11849 = vmatprep.subr.bf16.mxu1 %v18495_v29  ;;  %v4478_v24 = vld [vmem:[#allocation2 + $0xd8] sm:$0xff] }
 0x463   : > { %4206 = vmatmul.mubr.f32.gmra.mrb[64].mxu0 %v3973_v44  ;;  %v4489_v44 = vld [vmem:[#allocation2 + $0x130] sm:$0xff] }
 0x464   : > { %4210 = vmatprep.mubr.f32.mxu0 %v3977_v25  ;;  %11202 = vmatmul.mubr.msk.f32.gmra.mrb[56].mxu1 %vm2565_vm3, %v3990_v39  ;;  %v4482_v25 = vld [vmem:[#allocation2 + $0xf8] sm:$0xff]  ;;  %v4492_v39 = vld [vmem:[#allocation2 + $0x148] sm:$0xff] }
 0x465   : > { %11851 = vmatpush1.bf16.msra.mxu1 %v15116_v15  ;;  %11204 = vmatprep.mubr.msk.f32.mxu1 %vm2565_vm3, %v3993_v22  ;;  %v3979_v15 = vld [vmem:[%s18758_s30 + $0x150] sm:$0xff] }
 0x466   : > { %11852 = vmatprep.subr.bf16.mxu1 %v18495_v29  ;;  %v4481_v22 = vld [vmem:[#allocation2 + $0xf0] sm:$0xff] }
 0x467   : > { %4211 = vmatmul.mubr.f32.gmra.mrb[66].mxu0 %v3976_v40  ;;  %v4495_v40 = vld [vmem:[#allocation2 + $0x160] sm:$0xff] }
 0x468   : > { %4215 = vmatprep.mubr.f32.mxu0 %v3980_v38  ;;  %11205 = vmatmul.mubr.msk.f32.gmra.mrb[58].mxu1 %vm2565_vm3, %v3996_v43  ;;  %v4485_v38 = vld [vmem:[#allocation2 + $0x110] sm:$0xff]  ;;  %v4498_v43 = vld [vmem:[#allocation2 + $0x178] sm:$0xff] }
 0x469   : > { %11854 = vmatpush1.bf16.msra.mxu1 %v15122_v8  ;;  %11207 = vmatprep.mubr.msk.f32.mxu1 %vm2565_vm3, %v3999_v58  ;;  %v3982_v8 = vld [vmem:[%s18758_s30 + $0x168] sm:$0xff] }
 0x46a   : > { %11855 = vmatprep.subr.bf16.mxu1 %v18495_v29  ;;  %v4484_v58 = vld [vmem:[#allocation2 + $0x108] sm:$0xff] }
 0x46b   : > { %4216 = vmatmul.mubr.f32.gmra.mrb[68].mxu0 %v3979_v15  ;;  %v4501_v15 = vld [vmem:[#allocation2 + $0x190] sm:$0xff] }
 0x46c   : > { %4220 = vmatprep.mubr.f32.mxu0 %v3983_v57  ;;  %11208 = vmatmul.mubr.msk.f32.gmra.mrb[60].mxu1 %vm2565_vm3, %v4002_v21  ;;  %v4488_v57 = vld [vmem:[#allocation2 + $0x128] sm:$0xff] }
 0x46d   : > { %11857 = vmatpush1.bf16.msra.mxu1 %v15128_v30  ;;  %11210 = vmatprep.mubr.msk.f32.mxu1 %vm2565_vm3, %v4005_v53  ;;  %v3989_v30 = vld [vmem:[%s18758_s30 + $0x1a0] sm:$0xff]  ;;  %v4504_v21 = vld [vmem:[#allocation2 + $0x1a8] sm:$0xff] }
 0x46e   : > { %11858 = vmatprep.subr.bf16.mxu1 %v18495_v29  ;;  %v4487_v53 = vld [vmem:[#allocation2 + $0x120] sm:$0xff] }
 0x46f   : > { %4221 = vmatmul.mubr.f32.gmra.mrb[70].mxu0 %v3982_v8  ;;  %v4507_v8 = vld [vmem:[#allocation2 + $0x1c0] sm:$0xff] }
 0x470   : > { %4225 = vmatprep.mubr.f32.mxu0 %v3986_v52  ;;  %11211 = vmatmul.mubr.msk.f32.gmra.mrb[62].mxu1 %vm2565_vm3, %v4008_v18  ;;  %v4491_v52 = vld [vmem:[#allocation2 + $0x140] sm:$0xff]  ;;  %v9835_v18 = vld [vmem:[%s18472_s7 + $0x108] sm:$0xff] }
 0x471   : > { %11860 = vmatpush1.bf16.msra.mxu1 %v15134_v6  ;;  %4659 = vmatprep.mubr.f32.mxu1 %v4452_v1  ;;  %v3991_v6 = vld [vmem:[%s18758_s30 + $0x1b0] sm:$0xff]  ;;  %v9837_v1 = vld [vmem:[%s18472_s7 + $0x118] sm:$0xff] }
 0x472   : > { %11861 = vmatprep.subr.bf16.mxu1 %v18495_v29 }
 0x473   : > { %4226 = vmatmul.mubr.f32.gmra.mrb[72].mxu0 %v3985_v61  ;;  %v11889_v61 = vpack.c.bf16 %v9837_v1, %v9835_v18  ;;  %v9859_v18 = vld [vmem:[%s18472_s7 + $0x1c8] sm:$0xff]  ;;  %v9861_v1 = vld [vmem:[%s18472_s7 + $0x1d8] sm:$0xff] }
 0x474   : > { %4230 = vmatprep.mubr.f32.mxu0 %v3989_v30  ;;  %v9834_v30 = vld [vmem:[%s18472_s7 + $0x100] sm:$0xff] }
 0x475   : > { %11863 = vmatpush1.bf16.msra.mxu1 %v15141_v26  ;;  %v3994_v26 = vld [vmem:[%s18758_s30 + $0x1c8] sm:$0xff]  ;;  %11890 = vmatprep.subr.bf16.mxu0 %v11889_v61  ;;  %v9858_v61 = vld [vmem:[%s18472_s7 + $0x1c0] sm:$0xff] }
 0x476   : > { %11864 = vmatprep.subr.bf16.mxu1 %v18495_v29 }
 0x477   : > { %4231 = vmatmul.mubr.f32.gmra.mrb[74].mxu0 %v3988_v3  ;;  %v9836_v3 = vld [vmem:[%s18472_s7 + $0x110] sm:$0xff] }
 0x478   : > { %4235 = vmatprep.mubr.f32.mxu0 %v3992_v7  ;;  %v4510_v7 = vld [vmem:[#allocation2 + $0x1d8] sm:$0xff] }
 0x479   : > { %11866 = vmatpush1.bf16.msra.mxu1 %v15147_v33  ;;  %v3997_v33 = vld [vmem:[%s18758_s30 + $0x1e0] sm:$0xff] }
 0x47a   : > { %11867 = vmatprep.subr.bf16.mxu1 %v18495_v29 }
 0x47b   : > { %4236 = vmatmul.mubr.f32.gmra.mrb[76].mxu0 %v3991_v6  ;;  %v11891_v6 = vpack.c.bf16 %v9836_v3, %v9834_v30  ;;  %v11913_v30 = vpack.c.bf16 %v9861_v1, %v9859_v18  ;;  %v9860_v3 = vld [vmem:[%s18472_s7 + $0x1d0] sm:$0xff] }
 0x47c   : > { %4240 = vmatprep.mubr.f32.mxu0 %v3995_v42  ;;  %v4490_v42 = vld [vmem:[#allocation2 + $0x138] sm:$0xff] }
 0x47d   : > { %11869 = vmatpush1.bf16.msra.mxu1 %v15153_v9  ;;  %v4455_v9 = vld [vmem:[#allocation2 + $0x20] sm:$0xff] }
 0x47e   : > { %11870 = vmatprep.subr.bf16.mxu1 %v18495_v29 }
 0x47f   : > { %4241 = vmatmul.mubr.f32.gmra.mrb[78].mxu0 %v3994_v26  ;;  %v4513_v26 = vld [vmem:[#allocation2 + $0x1f0] sm:$0xff] }
 0x480   : > { %4245 = vmatprep.mubr.f32.mxu0 %v3998_v47  ;;  %v4494_v47 = vld [vmem:[#allocation2 + $0x158] sm:$0xff] }
 0x481   : > { %11872 = vmatpush1.bf16.msra.mxu1 %v15159_v62  ;;  %v4004_v62 = vld [vmem:[%s18758_s30 + $0x218] sm:$0xff] }
 0x482   : > { %11985 = vmatprep.subr.bf16.mxu1 %v18495_v29 }
 0x483   : > { %4246 = vmatmul.mubr.f32.gmra.mrb[80].mxu0 %v3997_v33  ;;  %v4516_v33 = vld [vmem:[#allocation2 + $0x208] sm:$0xff] }
 0x484   : > { %4660 = vmatmul.mubr.f32.vlgmr.msra.gmra.mrb[64].mxu1 %v4451_v51  ;;  %4250 = vmatprep.mubr.f32.mxu0 %v4001_v41  ;;  %v4493_v51 = vld [vmem:[#allocation2 + $0x150] sm:$0xff]  ;;  %v4519_v41 = vld [vmem:[#allocation2 + $0x220] sm:$0xff] }
 0x485   : > { %4664 = vmatprep.mubr.f32.mxu1 %v4455_v9  ;;  %v4497_v9 = vld [vmem:[#allocation2 + $0x170] sm:$0xff] }
 0x487   : > { %4251 = vmatmul.mubr.f32.gmra.mrb[82].mxu0 %v4000_v20  ;;  %v9839_v20 = vld [vmem:[%s18472_s7 + $0x128] sm:$0xff] }
 0x488   : > { %4665 = vmatmul.mubr.f32.gmra.mrb[66].mxu1 %v4454_v27  ;;  %4255 = vmatprep.mubr.f32.mxu0 %v4004_v62  ;;  %v9841_v27 = vld [vmem:[%s18472_s7 + $0x138] sm:$0xff] }
 0x489   : > { %4669 = vmatprep.mubr.f32.mxu1 %v4458_v0  ;;  %v11893_v62 = vpack.c.bf16 %v9841_v27, %v9839_v20  ;;  %v9838_v0 = vld [vmem:[%s18472_s7 + $0x120] sm:$0xff] }
 0x48b   : > { %4256 = vmatmul.mubr.f32.gmra.mrb[84].mxu0 %v4003_v31  ;;  %v9840_v31 = vld [vmem:[%s18472_s7 + $0x130] sm:$0xff] }
 0x48c   : > { %4670 = vmatmul.mubr.f32.gmra.mrb[68].mxu1 %v4457_v12  ;;  %4260 = vmatprep.mubr.f32.mxu0 %v4007_v55  ;;  %v4522_v12 = vld [vmem:[#allocation2 + $0x238] sm:$0xff]  ;;  %v11895_v55 = vpack.c.bf16 %v9840_v31, %v9838_v0 }
 0x48d   : > { %4674 = vmatprep.mubr.f32.mxu1 %v4461_v32  ;;  %v4496_v32 = vld [vmem:[#allocation2 + $0x168] sm:$0xff] }
 0x48f   : > { %4261 = vmatmul.mubr.f32.gmra.mrb[86].mxu0 %v4006_v4  ;;  %v4500_v4 = vld [vmem:[#allocation2 + $0x188] sm:$0xff] }
 0x490   : > { %4675 = vmatmul.mubr.f32.gmra.mrb[70].mxu1 %v4460_v23  ;;  %11229 = vmatprep.mubr.msk.f32.mxu0 %vm2565_vm3, %v4453_v19  ;;  %v4499_v23 = vld [vmem:[#allocation2 + $0x180] sm:$0xff] }
 0x491   : > { %4679 = vmatprep.mubr.f32.mxu1 %v4464_v13  ;;  %v4503_v19 = vld [vmem:[#allocation2 + $0x1a0] sm:$0xff]  ;;  %v9843_v13 = vld [vmem:[%s18472_s7 + $0x148] sm:$0xff] }
 0x493   : > { %11230 = vmatmul.mubr.msk.f32.vlgmr.msra.gmra.mrb[88].mxu0 %vm2565_vm3, %v4456_v5  ;;  %v9845_v5 = vld [vmem:[%s18472_s7 + $0x158] sm:$0xff] }
 0x494   : > { %4680 = vmatmul.mubr.f32.gmra.mrb[72].mxu1 %v4463_v45  ;;  %11232 = vmatprep.mubr.msk.f32.mxu0 %vm2565_vm3, %v4459_v28  ;;  %v11897_v45 = vpack.c.bf16 %v9845_v5, %v9843_v13  ;;  %v9842_v28 = vld [vmem:[%s18472_s7 + $0x140] sm:$0xff] }
 0x495   : > { %4684 = vmatprep.mubr.f32.mxu1 %v4467_v49  ;;  %11892 = vmatpush1.bf16.msra.mxu0 %v11891_v6  ;;  %v9844_v49 = vld [vmem:[%s18472_s7 + $0x150] sm:$0xff]  ;;  %v9863_v6 = vld [vmem:[%s18472_s7 + $0x1e8] sm:$0xff] }
 0x496   : > { %11894 = vmatprep.subr.bf16.mxu0 %v11893_v62 }
 0x497   : > { %11233 = vmatmul.mubr.msk.f32.gmra.mrb[90].mxu0 %vm2565_vm3, %v4462_v60  ;;  %v11899_v60 = vpack.c.bf16 %v9844_v49, %v9842_v28 }
 0x498   : > { %4685 = vmatmul.mubr.f32.gmra.mrb[74].mxu1 %v4466_v11  ;;  %11235 = vmatprep.mubr.msk.f32.mxu0 %vm2565_vm3, %v4465_v54  ;;  %v4502_v11 = vld [vmem:[#allocation2 + $0x198] sm:$0xff] }
 0x499   : > { %4689 = vmatprep.mubr.f32.mxu1 %v4470_v17  ;;  %11896 = vmatpush1.bf16.msra.mxu0 %v11895_v55  ;;  %v4506_v54 = vld [vmem:[#allocation2 + $0x1b8] sm:$0xff]  ;;  %v4505_v17 = vld [vmem:[#allocation2 + $0x1b0] sm:$0xff] }
 0x49a   : > { %11898 = vmatprep.subr.bf16.mxu0 %v11897_v45 }
 0x49b   : > { %11236 = vmatmul.mubr.msk.f32.gmra.mrb[92].mxu0 %vm2565_vm3, %v4468_v37  ;;  %v4509_v37 = vld [vmem:[#allocation2 + $0x1d0] sm:$0xff] }
 0x49c   : > { %4690 = vmatmul.mubr.f32.gmra.mrb[76].mxu1 %v4469_v34  ;;  %11238 = vmatprep.mubr.msk.f32.mxu0 %vm2565_vm3, %v4471_v59  ;;  %v9847_v34 = vld [vmem:[%s18472_s7 + $0x168] sm:$0xff]  ;;  %v9849_v59 = vld [vmem:[%s18472_s7 + $0x178] sm:$0xff] }
 0x49d   : > { %4694 = vmatprep.mubr.f32.mxu1 %v4473_v14  ;;  %11900 = vmatpush1.bf16.msra.mxu0 %v11899_v60  ;;  %v11901_v14 = vpack.c.bf16 %v9849_v59, %v9847_v34  ;;  %v5040_v34 = vld [vmem:[%s18472_s7 + $0x18] sm:$0xff] }
 0x49f   : > { %11239 = vmatmul.mubr.msk.f32.gmra.mrb[94].mxu0 %vm2565_vm3, %v4474_v56  ;;  %v9846_v56 = vld [vmem:[%s18472_s7 + $0x160] sm:$0xff]  ;;  %11902 = vmatprep.subr.bf16.mxu0 %v11901_v14 }
 0x4a0   : > { %4695 = vmatmul.mubr.f32.gmra.mrb[78].mxu1 %v4472_v16  ;;  %11241 = vmatprep.mubr.msk.f32.mxu0 %vm2565_vm3, %v4477_v50  ;;  %v9848_v16 = vld [vmem:[%s18472_s7 + $0x170] sm:$0xff] }
 0x4a1   : > { %4699 = vmatprep.mubr.f32.mxu1 %v4476_v35  ;;  %v11903_v50 = vpack.c.bf16 %v9848_v16, %v9846_v56  ;;  %v4508_v35 = vld [vmem:[#allocation2 + $0x1c8] sm:$0xff] }
 0x4a3   : > { %11242 = vmatmul.mubr.msk.f32.gmra.mrb[96].mxu0 %vm2565_vm3, %v4480_v36  ;;  %v4512_v36 = vld [vmem:[#allocation2 + $0x1e8] sm:$0xff] }
 0x4a4   : > { %4700 = vmatmul.mubr.f32.gmra.mrb[80].mxu1 %v4475_v63  ;;  %11244 = vmatprep.mubr.msk.f32.mxu0 %vm2565_vm3, %v4483_v2  ;;  %v4511_v63 = vld [vmem:[#allocation2 + $0x1e0] sm:$0xff] }
 0x4a5   : > { %4704 = vmatprep.mubr.f32.mxu1 %v4479_v48  ;;  %11904 = vmatpush1.bf16.msra.mxu0 %v11903_v50  ;;  %v4515_v2 = vld [vmem:[#allocation2 + $0x200] sm:$0xff]  ;;  %v9851_v48 = vld [vmem:[%s18472_s7 + $0x188] sm:$0xff] }
 0x4a7   : > { %11245 = vmatmul.mubr.msk.f32.gmra.mrb[98].mxu0 %vm2565_vm3, %v4486_v46  ;;  %v9853_v46 = vld [vmem:[%s18472_s7 + $0x198] sm:$0xff] }
 0x4a8   : > { %4705 = vmatmul.mubr.f32.gmra.mrb[82].mxu1 %v4478_v24  ;;  %11247 = vmatprep.mubr.msk.f32.mxu0 %vm2565_vm3, %v4489_v44  ;;  %v11905_v24 = vpack.c.bf16 %v9853_v46, %v9851_v48  ;;  %v9850_v44 = vld [vmem:[%s18472_s7 + $0x180] sm:$0xff] }
 0x4a9   : > { %4709 = vmatprep.mubr.f32.mxu1 %v4482_v25  ;;  %v9852_v25 = vld [vmem:[%s18472_s7 + $0x190] sm:$0xff] }
 0x4aa   : > { %11906 = vmatprep.subr.bf16.mxu0 %v11905_v24 }
 0x4ab   : > { %11248 = vmatmul.mubr.msk.f32.gmra.mrb[100].mxu0 %vm2565_vm3, %v4492_v39  ;;  %v11907_v39 = vpack.c.bf16 %v9852_v25, %v9850_v44 }
 0x4ac   : > { %4710 = vmatmul.mubr.f32.gmra.mrb[84].mxu1 %v4481_v22  ;;  %11250 = vmatprep.mubr.msk.f32.mxu0 %vm2565_vm3, %v4495_v40  ;;  %v4514_v22 = vld [vmem:[#allocation2 + $0x1f8] sm:$0xff] }
 0x4ad   : > { %4714 = vmatprep.mubr.f32.mxu1 %v4485_v38  ;;  %v4518_v40 = vld [vmem:[#allocation2 + $0x218] sm:$0xff]  ;;  %11908 = vmatpush1.bf16.msra.mxu0 %v11907_v39  ;;  %v4517_v38 = vld [vmem:[#allocation2 + $0x210] sm:$0xff] }
 0x4af   : > { %11251 = vmatmul.mubr.msk.f32.gmra.mrb[102].mxu0 %vm2565_vm3, %v4498_v43  ;;  %v4521_v43 = vld [vmem:[#allocation2 + $0x230] sm:$0xff] }
 0x4b0   : > { %4715 = vmatmul.mubr.f32.gmra.mrb[86].mxu1 %v4484_v58  ;;  %11253 = vmatprep.mubr.msk.f32.mxu0 %vm2565_vm3, %v4501_v15  ;;  %v9855_v58 = vld [vmem:[%s18472_s7 + $0x1a8] sm:$0xff]  ;;  %v9857_v15 = vld [vmem:[%s18472_s7 + $0x1b8] sm:$0xff] }
 0x4b1   : > { %4719 = vmatprep.mubr.f32.mxu1 %v4488_v57  ;;  %v9854_v57 = vld [vmem:[%s18472_s7 + $0x1a0] sm:$0xff] }
 0x4b3   : > { %11254 = vmatmul.mubr.msk.f32.gmra.mrb[104].mxu0 %vm2565_vm3, %v4504_v21  ;;  %v11909_v21 = vpack.c.bf16 %v9857_v15, %v9855_v58 }
 0x4b4   : > { %4720 = vmatmul.mubr.f32.gmra.mrb[88].mxu1 %v4487_v53  ;;  %11256 = vmatprep.mubr.msk.f32.mxu0 %vm2565_vm3, %v4507_v8  ;;  %v9856_v53 = vld [vmem:[%s18472_s7 + $0x1b0] sm:$0xff]  ;;  %v4520_v8 = vld [vmem:[#allocation2 + $0x228] sm:$0xff] }
 0x4b5   : > { %4724 = vmatprep.mubr.f32.mxu1 %v4491_v52  ;;  %v11911_v52 = vpack.c.bf16 %v9856_v53, %v9854_v57  ;;  %11910 = vmatprep.subr.bf16.mxu0 %v11909_v21 }
 0x4b7   : > { %11257 = vmatmul.mubr.msk.f32.gmra.mrb[106].mxu0 %vm2565_vm3, %v4510_v7  ;;  %v11915_v7 = vpack.c.bf16 %v9860_v3, %v9858_v61 }
 0x4b8   : > { %4725 = vmatmul.mubr.f32.gmra.mrb[90].mxu1 %v4490_v42  ;;  %11259 = vmatprep.mubr.msk.f32.mxu0 %vm2565_vm3, %v4513_v26  ;;  %v9865_v42 = vld [vmem:[%s18472_s7 + $0x1f8] sm:$0xff] }
 0x4b9   : > { %4729 = vmatprep.mubr.f32.mxu1 %v4494_v47  ;;  %11912 = vmatpush1.bf16.msra.mxu0 %v11911_v52  ;;  %v11917_v26 = vpack.c.bf16 %v9865_v42, %v9863_v6  ;;  %v9862_v47 = vld [vmem:[%s18472_s7 + $0x1e0] sm:$0xff] }
 0x4ba   : > { %11914 = vmatprep.subr.bf16.mxu0 %v11913_v30 }
 0x4bb   : > { %11260 = vmatmul.mubr.msk.f32.gmra.mrb[108].mxu0 %vm2565_vm3, %v4516_v33  ;;  %v9864_v33 = vld [vmem:[%s18472_s7 + $0x1f0] sm:$0xff] }
 0x4bc   : > { %4730 = vmatmul.mubr.f32.gmra.mrb[92].mxu1 %v4493_v51  ;;  %11262 = vmatprep.mubr.msk.f32.mxu0 %vm2565_vm3, %v4519_v41  ;;  %v11919_v51 = vpack.c.bf16 %v9864_v33, %v9862_v47  ;;  %v13053_v41 = vmov 0.0  }
 0x4bd   : > { %4734 = vmatprep.mubr.f32.mxu1 %v4497_v9  ;;  %11916 = vmatpush1.bf16.msra.mxu0 %v11915_v7 }
 0x4be   : > { %11918 = vmatprep.subr.bf16.mxu0 %v11917_v26 }
 0x4bf   : > { %11263 = vmatmul.mubr.msk.f32.gmra.mrb[110].mxu0 %vm2565_vm3, %v4522_v12 }
 0x4c0   : > { %4735 = vmatmul.mubr.f32.gmra.mrb[94].mxu1 %v4496_v32  ;;  %5166 = vmatprep.mubr.f32.mxu0 %v13053_v41 }
 0x4c1   : > { %4739 = vmatprep.mubr.f32.mxu1 %v4500_v4  ;;  %11920 = vmatpush1.bf16.msra.mxu0 %v11919_v51 }
 0x4c4   : > { %4740 = vmatmul.mubr.f32.gmra.mrb[96].mxu1 %v4499_v23 }
 0x4c5   : > { %4744 = vmatprep.mubr.f32.mxu1 %v4503_v19 }
 0x4c8   : > { %4745 = vmatmul.mubr.f32.gmra.mrb[98].mxu1 %v4502_v11 }
 0x4c9   : > { %4749 = vmatprep.mubr.f32.mxu1 %v4506_v54 }
 0x4cc   : > { %4750 = vmatmul.mubr.f32.gmra.mrb[100].mxu1 %v4505_v17 }
 0x4cd   : > { %4754 = vmatprep.mubr.f32.mxu1 %v4509_v37  ;;  %v5038_v37 = vld [vmem:[%s18472_s7 + $0x8] sm:$0xff] }
 0x4ce   : > { %v11921_v56 = vpack.c.bf16 %v5040_v34, %v5038_v37 }
 0x4d0   : > { %4755 = vmatmul.mubr.f32.gmra.mrb[102].mxu1 %v4508_v35  ;;  %11922 = vmatprep.subr.bf16.mxu0 %v11921_v56 }
 0x4d1   : > { %4759 = vmatprep.mubr.f32.mxu1 %v4512_v36 }
 0x4d4   : > { %4760 = vmatmul.mubr.f32.gmra.mrb[104].mxu1 %v4511_v63 }
 0x4d5   : > { %4764 = vmatprep.mubr.f32.mxu1 %v4515_v2 }
 0x4d8   : > { %4765 = vmatmul.mubr.f32.gmra.mrb[106].mxu1 %v4514_v22 }
 0x4d9   : > { %4769 = vmatprep.mubr.f32.mxu1 %v4518_v40 }
 0x4dc   : > { %4770 = vmatmul.mubr.f32.gmra.mrb[108].mxu1 %v4517_v38 }
 0x4dd   : > { %4774 = vmatprep.mubr.f32.mxu1 %v4521_v43 }
 0x4e0   : > { %4775 = vmatmul.mubr.f32.gmra.mrb[110].mxu1 %v4520_v8 }
 0x506   : > { %v4147_v9 = vpop.f32.mrb[40].mxu0 }
 0x507   : > { %v4149_v20 = vpop.f32.mrb[41].mxu0 }
 0x50a   : > { %v4152_v27 = vpop.f32.mrb[42].mxu0 }
 0x50b   : > { %v4154_v62 = vpop.f32.mrb[43].mxu0 }
 0x50e   : > { %v4157_v0 = vpop.f32.mrb[44].mxu0 }
 0x50f   : > { %v4159_v31 = vpop.f32.mrb[45].mxu0 }
 0x512   : > { %v4162_v12 = vpop.f32.mrb[46].mxu0 }
 0x513   : > { %v4164_v55 = vpop.f32.mrb[47].mxu0 }
 0x516   : > { %v4167_v32 = vpop.f32.mrb[48].mxu0 }
 0x517   : > { %v11179_v4 = vpop.f32.mrb[40].mxu1  ;;  %v4169_v23 = vpop.f32.mrb[49].mxu0 }
 0x518   : > { %v4332_v19 = vpop.f32.mrb[41].mxu1  ;;  %v15555_v13 = vadd.f32 %v11179_v4, %v4152_v27 }
 0x519   : > { %v15557_v5 = vadd.f32 %v4332_v19, %v4147_v9 }
 0x51a   : > { %v4172_v45 = vpop.f32.mrb[50].mxu0 }
 0x51b   : > { %v11182_v28 = vpop.f32.mrb[42].mxu1  ;;  %v4174_v49 = vpop.f32.mrb[51].mxu0 }
 0x51c   : > { %v4342_v60 = vpop.f32.mrb[43].mxu1  ;;  %v15559_v11 = vadd.f32 %v11182_v28, %v4162_v12 }
 0x51d   : > { %v15561_v54 = vadd.f32 %v4342_v60, %v4157_v0 }
 0x51e   : > { %v4177_v17 = vpop.f32.mrb[52].mxu0 }
 0x51f   : > { %v4179_v59 = vpop.f32.mrb[53].mxu0  ;;  %v11185_v14 = vpop.f32.mrb[44].mxu1 }
 0x520   : > { %v4352_v16 = vpop.f32.mrb[45].mxu1  ;;  %v15569_v50 = vadd.f32 %v11185_v14, %v4172_v45 }
 0x521   : > { %v15571_v35 = vadd.f32 %v4352_v16, %v4167_v32 }
 0x522   : > { %v4182_v36 = vpop.f32.mrb[54].mxu0 }
 0x523   : > { %v4184_v63 = vpop.f32.mrb[55].mxu0  ;;  %v11188_v2 = vpop.f32.mrb[46].mxu1 }
 0x524   : > { %v4362_v48 = vpop.f32.mrb[47].mxu1  ;;  %v15573_v46 = vadd.f32 %v11188_v2, %v4182_v36 }
 0x525   : > { %v15575_v24 = vadd.f32 %v4362_v48, %v4177_v17 }
 0x526   : > { %v4187_v44 = vpop.f32.mrb[56].mxu0 }
 0x527   : > { %v4189_v25 = vpop.f32.mrb[57].mxu0  ;;  %v11191_v39 = vpop.f32.mrb[48].mxu1 }
 0x528   : > { %v4372_v22 = vpop.f32.mrb[49].mxu1 }
 0x529   : > { %v15577_v40 = vadd.f32 %v4372_v22, %v4187_v44 }
 0x52a   : > { %v4192_v38 = vpop.f32.mrb[58].mxu0 }
 0x52b   : > { %v4194_v43 = vpop.f32.mrb[59].mxu0  ;;  %v15579_v58 = vadd.f32 %v11191_v39, %v4192_v38  ;;  %v11194_v15 = vpop.f32.mrb[50].mxu1 }
 0x52c   : > { %v4382_v57 = vpop.f32.mrb[51].mxu1 }
 0x52e   : > { %v4197_v21 = vpop.f32.mrb[60].mxu0 }
 0x52f   : > { %v4199_v53 = vpop.f32.mrb[61].mxu0  ;;  %v15581_v8 = vadd.f32 %v4382_v57, %v4197_v21  ;;  %v11197_v52 = vpop.f32.mrb[52].mxu1 }
 0x530   : > { %v4392_v18 = vpop.f32.mrb[53].mxu1 }
 0x532   : > { %v4202_v1 = vpop.f32.mrb[62].mxu0 }
 0x533   : > { %v4204_v61 = vpop.f32.mrb[63].mxu0  ;;  %v15583_v30 = vadd.f32 %v11194_v15, %v4202_v1  ;;  %v11200_v3 = vpop.f32.mrb[54].mxu1 }
 0x534   : > { %v4402_v7 = vpop.f32.mrb[55].mxu1 }
 0x536   : > { %v4207_v6 = vpop.f32.mrb[64].mxu0 }
 0x537   : > { %v4209_v42 = vpop.f32.mrb[65].mxu0  ;;  %v15585_v26 = vadd.f32 %v4392_v18, %v4207_v6  ;;  %v11203_v47 = vpop.f32.mrb[56].mxu1 }
 0x538   : > { %v4412_v33 = vpop.f32.mrb[57].mxu1 }
 0x53a   : > { %v4212_v51 = vpop.f32.mrb[66].mxu0 }
 0x53b   : > { %v4214_v9 = vpop.f32.mrb[67].mxu0  ;;  %v15587_v20 = vadd.f32 %v11197_v52, %v4212_v51  ;;  %v11206_v27 = vpop.f32.mrb[58].mxu1  ;;  %v5037_v51 = vld [vmem:[%s18472_s7] sm:$0xff] }
 0x53c   : > { %v4422_v62 = vpop.f32.mrb[59].mxu1  ;;  %v5039_v9 = vld [vmem:[%s18472_s7 + $0x10] sm:$0xff] }
 0x53e   : > { %v4217_v0 = vpop.f32.mrb[68].mxu0 }
 0x53f   : > { %v4219_v31 = vpop.f32.mrb[69].mxu0  ;;  %v15589_v12 = vadd.f32 %v4402_v7, %v4217_v0  ;;  %v11209_v55 = vpop.f32.mrb[60].mxu1 }
 0x540   : > { %v4432_v32 = vpop.f32.mrb[61].mxu1  ;;  %v5042_v31 = vld [vmem:[%s18472_s7 + $0x28] sm:$0xff] }
 0x542   : > { %v4222_v4 = vpop.f32.mrb[70].mxu0 }
 0x543   : > { %v4224_v23 = vpop.f32.mrb[71].mxu0  ;;  %v15591_v19 = vadd.f32 %v11200_v3, %v4222_v4  ;;  %v11212_v45 = vpop.f32.mrb[62].mxu1 }
 0x544   : > { %v4442_v28 = vpop.f32.mrb[63].mxu1 }
 0x546   : > { %v4227_v49 = vpop.f32.mrb[72].mxu0 }
 0x547   : > { %v4229_v60 = vpop.f32.mrb[73].mxu0  ;;  %v15593_v17 = vadd.f32 %v4412_v33, %v4227_v49 }
 0x54a   : > { %v4232_v37 = vpop.f32.mrb[74].mxu0 }
 0x54b   : > { %v4234_v34 = vpop.f32.mrb[75].mxu0  ;;  %v15595_v59 = vadd.f32 %v11203_v47, %v4232_v37  ;;  %v5041_v37 = vld [vmem:[%s18472_s7 + $0x20] sm:$0xff] }
 0x54c   : > { %v5043_v34 = vld [vmem:[%s18472_s7 + $0x30] sm:$0xff] }
 0x54e   : > { %v4237_v14 = vpop.f32.mrb[76].mxu0 }
 0x54f   : > { %v4239_v56 = vpop.f32.mrb[77].mxu0  ;;  %v15597_v16 = vadd.f32 %v4422_v62, %v4237_v14 }
 0x552   : > { %v4242_v36 = vpop.f32.mrb[78].mxu0 }
 0x553   : > { %v4244_v63 = vpop.f32.mrb[79].mxu0  ;;  %v15599_v2 = vadd.f32 %v11206_v27, %v4242_v36 }
 0x556   : > { %v4247_v48 = vpop.f32.mrb[80].mxu0 }
 0x557   : > { %v4249_v44 = vpop.f32.mrb[81].mxu0  ;;  %v15601_v25 = vadd.f32 %v4432_v32, %v4247_v48  ;;  %v4661_v39 = vpop.f32.mrb[64].mxu1 }
 0x558   : > { %v4663_v22 = vpop.f32.mrb[65].mxu1 }
 0x55a   : > { %v4252_v38 = vpop.f32.mrb[82].mxu0 }
 0x55b   : > { %v15603_v43 = vadd.f32 %v11209_v55, %v4252_v38  ;;  %v4254_v15 = vpop.f32.mrb[83].mxu0  ;;  %v4666_v57 = vpop.f32.mrb[66].mxu1  ;;  %v5044_v55 = vld [vmem:[%s18472_s7 + $0x38] sm:$0xff]  ;;  %v11927_v38 = vpack.c.bf16 %v5043_v34, %v5041_v37 }
 0x55c   : > { %v4668_v21 = vpop.f32.mrb[67].mxu1  ;;  %v11925_v60 = vpack.c.bf16 %v5044_v55, %v5042_v31  ;;  %v5045_v15 = vld [vmem:[%s18472_s7 + $0x40] sm:$0xff] }
 0x55e   : > { %v4257_v53 = vpop.f32.mrb[84].mxu0 }
 0x55f   : > { %v4259_v52 = vpop.f32.mrb[85].mxu0  ;;  %v15605_v18 = vadd.f32 %v4442_v28, %v4257_v53  ;;  %v4671_v1 = vpop.f32.mrb[68].mxu1 }
 0x560   : > { %v4673_v61 = vpop.f32.mrb[69].mxu1  ;;  %v5047_v52 = vld [vmem:[%s18472_s7 + $0x50] sm:$0xff] }
 0x561   : > { %v11931_v55 = vpack.c.bf16 %v5047_v52, %v5045_v15 }
 0x562   : > { %v4262_v3 = vpop.f32.mrb[86].mxu0 }
 0x563   : > { %v15607_v7 = vadd.f32 %v11212_v45, %v4262_v3  ;;  %v4264_v6 = vpop.f32.mrb[87].mxu0  ;;  %v4676_v42 = vpop.f32.mrb[70].mxu1  ;;  %v11923_v45 = vpack.c.bf16 %v5039_v9, %v5037_v51 }
 0x564   : > { %v4678_v47 = vpop.f32.mrb[71].mxu1 }
 0x566   : > { %v11231_v33 = vpop.f32.mrb[88].mxu0 }
 0x567   : > { %v4852_v27 = vadd.f32 %v11231_v33, %v4666_v57  ;;  %v4846_v62 = vpop.f32.mrb[89].mxu0  ;;  %v4681_v0 = vpop.f32.mrb[72].mxu1 }
 0x568   : > { %v4847_v32 = vadd.f32 %v4846_v62, %v4661_v39  ;;  %v4683_v4 = vpop.f32.mrb[73].mxu1 }
 0x569   : > { %v15622_v23 = vmax.f32 %v15555_v13, %v4852_v27  ;;  %v5046_v13 = vld [vmem:[%s18472_s7 + $0x48] sm:$0xff]  ;;  %v5049_v4 = vld [vmem:[%s18472_s7 + $0x60] sm:$0xff] }
 0x56a   : > { %v15625_v28 = vmax.f32 %v15557_v5, %v4847_v32  ;;  %v11234_v49 = vpop.f32.mrb[90].mxu0  ;;  %v5048_v5 = vld [vmem:[%s18472_s7 + $0x58] sm:$0xff] }
 0x56b   : > { %v4862_v14 = vadd.f32 %v11234_v49, %v4676_v42  ;;  %v4856_v56 = vpop.f32.mrb[91].mxu0  ;;  %v4686_v36 = vpop.f32.mrb[74].mxu1  ;;  %v4990_v63 = vrot.slane %v15622_v23, 7  ;;  %v11929_v53 = vpack.c.bf16 %v5048_v5, %v5046_v13  ;;  %v18494_v33 = vrot.slane %v15622_v23, 1  ;;  %v5051_v49 = vld [vmem:[%s18472_s7 + $0x70] sm:$0xff] }
 0x56c   : > { %v18497_v48 = vrot.slane %v15625_v28, 7  ;;  %v4857_v44 = vadd.f32 %v4856_v56, %v4671_v1  ;;  %5167 = vmatmul.mubr.f32.vlgmr.msra.gmra.mrb[112].mxu0 %v15625_v28  ;;  %v4688_v39 = vpop.f32.mrb[75].mxu1  ;;  %v5052_v1 = vld [vmem:[%s18472_s7 + $0x78] sm:$0xff] }
 0x56d   : > { %v15643_v22 = vmax.f32 %v15559_v11, %v4862_v14  ;;  %5172 = vmatprep.mubr.f32.mxu0 %v13053_v41  ;;  %11924 = vmatpush1.bf16.msra.mxu0 %v11923_v45  ;;  %v5050_v11 = vld [vmem:[%s18472_s7 + $0x68] sm:$0xff] }
 0x56e   : > { %v4967_v57 = vmax.f32 %v15561_v54, %v4857_v44  ;;  %v11237_v21 = vpop.f32.mrb[92].mxu0  ;;  %11926 = vmatprep.subr.bf16.mxu0 %v11925_v60  ;;  %v15663_v54 = vsel %vm818_vm1, %v18497_v48, %v4990_v63  ;;  %v11933_v32 = vpack.c.bf16 %v5052_v1, %v5050_v11  ;;  %v5056_v60 = vld [vmem:[%s18472_s7 + $0x98] sm:$0xff] }
 0x56f   : > { %v4872_v61 = vadd.f32 %v11237_v21, %v4686_v36  ;;  %v4866_v3 = vpop.f32.mrb[93].mxu0  ;;  %v4691_v6 = vpop.f32.mrb[76].mxu1  ;;  %v4992_v42 = vrot.slane %v15643_v22, 7  ;;  %v5523_v47 = vrot.slane %v15643_v22, 1  ;;  %v11935_v21 = vpack.c.bf16 %v5051_v49, %v5049_v4 }
 0x570   : > { %v4867_v51 = vadd.f32 %v4866_v3, %v4681_v0  ;;  %5173 = vmatmul.mubr.f32.gmra.mrb[114].mxu0 %v15622_v23  ;;  %v4693_v9 = vpop.f32.mrb[77].mxu1  ;;  %v4991_v27 = vrot.slane %v4967_v57, 7  ;;  %v5522_v62 = vrot.slane %v4967_v57, 1 }
 0x571   : > { %v15670_v31 = vmax.f32 %v15569_v50, %v4872_v61  ;;  %5178 = vmatprep.mubr.f32.mxu0 %v13053_v41  ;;  %11928 = vmatpush1.bf16.msra.mxu0 %v11927_v38  ;;  %v5054_v50 = vld [vmem:[%s18472_s7 + $0x88] sm:$0xff]  ;;  %v5055_v61 = vld [vmem:[%s18472_s7 + $0x90] sm:$0xff]  ;;  %v5060_v9 = vld [vmem:[%s18472_s7 + $0xb8] sm:$0xff] }
 0x572   : > { %v15677_v45 = vmax.f32 %v15571_v35, %v4867_v51  ;;  %v11240_v0 = vpop.f32.mrb[94].mxu0  ;;  %11930 = vmatprep.subr.bf16.mxu0 %v11929_v53  ;;  %v15690_v37 = vsel %vm818_vm1, %v4990_v63, %v4991_v27  ;;  %v15694_v35 = vsel %vm818_vm1, %v4991_v27, %v4992_v42  ;;  %v15700_v34 = vsel %vm1673_vm2, %v18494_v33, %v5522_v62  ;;  %v5058_v51 = vld [vmem:[%s18472_s7 + $0xa8] sm:$0xff] }
 0x573   : > { %v4696_v14 = vpop.f32.mrb[78].mxu1  ;;  %v4876_v56 = vpop.f32.mrb[95].mxu0  ;;  %v4994_v36 = vrot.slane %v15670_v31, 7  ;;  %v15705_v13 = vsel %vm1673_vm2, %v5522_v62, %v5523_v47  ;;  %v5525_v5 = vrot.slane %v15670_v31, 1  ;;  %v11937_v53 = vpack.c.bf16 %v5056_v60, %v5054_v50 }
 0x574   : > { %v4882_v63 = vadd.f32 %v11240_v0, %v4696_v14  ;;  %v4877_v44 = vadd.f32 %v4876_v56, %v4691_v6  ;;  %5179 = vmatmul.mubr.f32.gmra.mrb[116].mxu0 %v4967_v57  ;;  %v4698_v39 = vpop.f32.mrb[79].mxu1  ;;  %v4993_v38 = vrot.slane %v15677_v45, 7  ;;  %v5524_v15 = vrot.slane %v15677_v45, 1  ;;  %v5053_v57 = vld [vmem:[%s18472_s7 + $0x80] sm:$0xff]  ;;  %v5059_v56 = vld [vmem:[%s18472_s7 + $0xb0] sm:$0xff] }
 0x575   : > { %5184 = vmatprep.mubr.f32.mxu0 %v13053_v41  ;;  %11932 = vmatpush1.bf16.msra.mxu0 %v11931_v55  ;;  %v11939_v49 = vpack.c.bf16 %v5055_v61, %v5053_v57  ;;  %v11941_v14 = vpack.c.bf16 %v5060_v9, %v5058_v51 }
 0x576   : > { %v15712_v52 = vmax.f32 %v15573_v46, %v4882_v63  ;;  %v15715_v11 = vmax.f32 %v15575_v24, %v4877_v44  ;;  %v11243_v1 = vpop.f32.mrb[96].mxu0  ;;  %11934 = vmatprep.subr.bf16.mxu0 %v11933_v32  ;;  %v15725_v3 = vsel %vm818_vm1, %v4992_v42, %v4993_v38  ;;  %v15729_v46 = vsel %vm818_vm1, %v4993_v38, %v4994_v36  ;;  %v5062_v38 = vld [vmem:[%s18472_s7 + $0xc8] sm:$0xff] }
 0x577   : > { %v4701_v24 = vpop.f32.mrb[80].mxu1  ;;  %v4886_v6 = vpop.f32.mrb[97].mxu0  ;;  %v15739_v27 = vsel %vm1673_vm2, %v5523_v47, %v5524_v15  ;;  %v15743_v42 = vsel %vm1673_vm2, %v5524_v15, %v5525_v5  ;;  %v5064_v15 = vld [vmem:[%s18472_s7 + $0xd8] sm:$0xff] }
 0x578   : > { %v4887_v62 = vadd.f32 %v4886_v6, %v4701_v24  ;;  %5185 = vmatmul.mubr.f32.gmra.mrb[118].mxu0 %v15643_v22  ;;  %v4703_v55 = vpop.f32.mrb[81].mxu1  ;;  %v4995_v32 = vrot.slane %v15715_v11, 7  ;;  %v4996_v4 = vrot.slane %v15712_v52, 7  ;;  %v5526_v0 = vrot.slane %v15715_v11, 1  ;;  %v5057_v22 = vld [vmem:[%s18472_s7 + $0xa0] sm:$0xff] }
 0x579   : > { %5190 = vmatprep.mubr.f32.mxu0 %v13053_v41  ;;  %11936 = vmatpush1.bf16.msra.mxu0 %v11935_v21  ;;  %v5527_v47 = vrot.slane %v15712_v52, 1  ;;  %v11943_v6 = vpack.c.bf16 %v5059_v56, %v5057_v22  ;;  %v11945_v9 = vpack.c.bf16 %v5064_v15, %v5062_v38 }
 0x57a   : > { %v15752_v50 = vmax.f32 %v15577_v40, %v4887_v62  ;;  %v11246_v60 = vpop.f32.mrb[98].mxu0  ;;  %11938 = vmatprep.subr.bf16.mxu0 %v11937_v53  ;;  %v15762_v63 = vsel %vm818_vm1, %v4994_v36, %v4995_v32  ;;  %v15766_v44 = vsel %vm818_vm1, %v4995_v32, %v4996_v4  ;;  %v15776_v21 = vsel %vm1673_vm2, %v5525_v5, %v5526_v0 }
 0x57b   : > { %v4706_v40 = vpop.f32.mrb[82].mxu1  ;;  %v4896_v39 = vpop.f32.mrb[99].mxu0  ;;  %v15780_v36 = vsel %vm1673_vm2, %v5526_v0, %v5527_v47  ;;  %v5066_v0 = vld [vmem:[%s18472_s7 + $0xe8] sm:$0xff] }
 0x57c   : > { %v4892_v53 = vadd.f32 %v11243_v1, %v4706_v40  ;;  %5191 = vmatmul.mubr.f32.gmra.mrb[120].mxu0 %v15677_v45  ;;  %v4708_v57 = vpop.f32.mrb[83].mxu1  ;;  %v4997_v61 = vrot.slane %v15752_v50, 7  ;;  %v5528_v24 = vrot.slane %v15752_v50, 1  ;;  %v5061_v1 = vld [vmem:[%s18472_s7 + $0xc0] sm:$0xff]  ;;  %v5063_v45 = vld [vmem:[%s18472_s7 + $0xd0] sm:$0xff] }
 0x57d   : > { %5196 = vmatprep.mubr.f32.mxu0 %v13053_v41  ;;  %11940 = vmatpush1.bf16.msra.mxu0 %v11939_v49  ;;  %v5068_v49 = vld [vmem:[%s18472_s7 + $0xf8] sm:$0xff] }
 0x57e   : > { %v15787_v51 = vmax.f32 %v15579_v58, %v4892_v53  ;;  %v11249_v5 = vpop.f32.mrb[100].mxu0  ;;  %11942 = vmatprep.subr.bf16.mxu0 %v11941_v14  ;;  %v15797_v62 = vsel %vm818_vm1, %v4996_v4, %v4997_v61  ;;  %v15801_v55 = vsel %vm1673_vm2, %v5527_v47, %v5528_v24  ;;  %v11947_v47 = vpack.c.bf16 %v5063_v45, %v5061_v1  ;;  %v9869_v1 = vld [vmem:[%s18472_s7 + $0x218] sm:$0xff] }
 0x57f   : > { %v4711_v58 = vpop.f32.mrb[84].mxu1  ;;  %v4906_v32 = vpop.f32.mrb[101].mxu0  ;;  %v11949_v15 = vpack.c.bf16 %v5068_v49, %v5066_v0 }
 0x580   : > { %v4897_v14 = vadd.f32 %v4896_v39, %v4711_v58  ;;  %5197 = vmatmul.mubr.f32.gmra.mrb[122].mxu0 %v15670_v31  ;;  %v4713_v22 = vpop.f32.mrb[85].mxu1  ;;  %v4998_v4 = vrot.slane %v15787_v51, 7  ;;  %v5529_v56 = vrot.slane %v15787_v51, 1  ;;  %v5065_v31 = vld [vmem:[%s18472_s7 + $0xe0] sm:$0xff]  ;;  %v5067_v39 = vld [vmem:[%s18472_s7 + $0xf0] sm:$0xff] }
 0x581   : > { %5202 = vmatprep.mubr.f32.mxu0 %v13053_v41  ;;  %11944 = vmatpush1.bf16.msra.mxu0 %v11943_v6 }
 0x582   : > { %v15814_v40 = vmax.f32 %v15581_v8, %v4897_v14  ;;  %v15816_v38 = vpop.f32.mrb[102].mxu0  ;;  %11946 = vmatprep.subr.bf16.mxu0 %v11945_v9  ;;  %v15826_v53 = vsel %vm818_vm1, %v4997_v61, %v4998_v4  ;;  %v15830_v8 = vsel %vm1673_vm2, %v5528_v24, %v5529_v56  ;;  %v9867_v9 = vld [vmem:[%s18472_s7 + $0x208] sm:$0xff]  ;;  %v11951_v24 = vpack.c.bf16 %v5067_v39, %v5065_v31 }
 0x583   : > { %v4716_v57 = vpop.f32.mrb[86].mxu1  ;;  %v4916_v6 = vpop.f32.mrb[103].mxu0 }
 0x584   : > { %v4902_v45 = vadd.f32 %v11246_v60, %v4716_v57  ;;  %5203 = vmatmul.mubr.f32.gmra.mrb[124].mxu0 %v15715_v11  ;;  %v4718_v58 = vpop.f32.mrb[87].mxu1  ;;  %v4999_v61 = vrot.slane %v15814_v40, 7  ;;  %v5530_v0 = vrot.slane %v15814_v40, 1  ;;  %v11953_v60 = vpack.c.bf16 %v9869_v1, %v9867_v9 }
 0x585   : > { %5208 = vmatprep.mubr.f32.mxu0 %v13053_v41  ;;  %11948 = vmatpush1.bf16.msra.mxu0 %v11947_v47 }
 0x586   : > { %v4976_v49 = vmax.f32 %v15583_v30, %v4902_v45  ;;  %v15843_v14 = vpop.f32.mrb[104].mxu0  ;;  %11950 = vmatprep.subr.bf16.mxu0 %v11949_v15  ;;  %v15847_v22 = vsel %vm818_vm1, %v4998_v4, %v4999_v61  ;;  %v15851_v11 = vsel %vm1673_vm2, %v5529_v56, %v5530_v0 }
 0x587   : > { %v4721_v57 = vpop.f32.mrb[88].mxu1  ;;  %v4926_v58 = vpop.f32.mrb[105].mxu0 }
 0x588   : > { %v4907_v33 = vadd.f32 %v4906_v32, %v4721_v57  ;;  %5209 = vmatmul.mubr.f32.gmra.mrb[126].mxu0 %v15712_v52  ;;  %v4723_v47 = vpop.f32.mrb[89].mxu1  ;;  %v5000_v31 = vrot.slane %v4976_v49, 7  ;;  %v5531_v30 = vrot.slane %v4976_v49, 1 }
 0x589   : > { %5214 = vmatprep.mubr.f32.mxu0 %v13053_v41  ;;  %11952 = vmatpush1.bf16.msra.mxu0 %v11951_v24 }
 0x58a   : > { %v4977_v15 = vmax.f32 %v15585_v26, %v4907_v33  ;;  %v15856_v4 = vpop.f32.mrb[106].mxu0  ;;  %v15860_v39 = vsel %vm818_vm1, %v4999_v61, %v5000_v31  ;;  %11954 = vmatprep.subr.bf16.mxu0 %v11953_v60  ;;  %v15864_v32 = vsel %vm1673_vm2, %v5530_v0, %v5531_v30 }
 0x58b   : > { %v4726_v52 = vpop.f32.mrb[90].mxu1  ;;  %v4936_v56 = vpop.f32.mrb[107].mxu0 }
 0x58c   : > { %v4912_v9 = vadd.f32 %v11249_v5, %v4726_v52  ;;  %5215 = vmatmul.mubr.f32.gmra.mrb[128].mxu0 %v15752_v50  ;;  %v4728_v1 = vpop.f32.mrb[91].mxu1  ;;  %v5001_v45 = vrot.slane %v4977_v15, 7  ;;  %v5532_v24 = vrot.slane %v4977_v15, 1 }
 0x58d   : > { %5220 = vmatprep.mubr.f32.mxu0 %v13053_v41 }
 0x58e   : > { %v4978_v26 = vmax.f32 %v15587_v20, %v4912_v9  ;;  %v15869_v33 = vpop.f32.mrb[108].mxu0  ;;  %v15873_v61 = vsel %vm818_vm1, %v5000_v31, %v5001_v45  ;;  %v15877_v0 = vsel %vm1673_vm2, %v5531_v30, %v5532_v24 }
 0x58f   : > { %v4731_v5 = vpop.f32.mrb[92].mxu1  ;;  %v15879_v60 = vpop.f32.mrb[109].mxu0 }
 0x590   : > { %v4917_v50 = vadd.f32 %v4916_v6, %v4731_v5  ;;  %5221 = vmatmul.mubr.f32.gmra.mrb[130].mxu0 %v15787_v51  ;;  %v4733_v57 = vpop.f32.mrb[93].mxu1  ;;  %v5002_v47 = vrot.slane %v4978_v26, 7  ;;  %v5533_v52 = vrot.slane %v4978_v26, 1 }
 0x591   : > { %5226 = vmatprep.mubr.f32.mxu0 %v13053_v41 }
 0x592   : > { %v4979_v20 = vmax.f32 %v15589_v12, %v4917_v50  ;;  %v15884_v9 = vpop.f32.mrb[110].mxu0  ;;  %v15888_v31 = vsel %vm818_vm1, %v5001_v45, %v5002_v47  ;;  %v15892_v30 = vsel %vm1673_vm2, %v5532_v24, %v5533_v52 }
 0x593   : > { %v4736_v6 = vpop.f32.mrb[94].mxu1  ;;  %v15894_v1 = vpop.f32.mrb[111].mxu0 }
 0x594   : > { %v4922_v51 = vadd.f32 %v15816_v38, %v4736_v6  ;;  %5227 = vmatmul.mubr.f32.gmra.mrb[132].mxu0 %v15814_v40  ;;  %v4738_v5 = vpop.f32.mrb[95].mxu1  ;;  %v5003_v57 = vrot.slane %v4979_v20, 7  ;;  %v5534_v12 = vrot.slane %v4979_v20, 1 }
 0x595   : > { %5232 = vmatprep.mubr.f32.mxu0 %v13053_v41 }
 0x596   : > { %v4980_v50 = vmax.f32 %v15591_v19, %v4922_v51  ;;  %v15902_v45 = vsel %vm818_vm1, %v5002_v47, %v5003_v57  ;;  %v15906_v24 = vsel %vm1673_vm2, %v5533_v52, %v5534_v12 }
 0x597   : > { %v4741_v29 = vpop.f32.mrb[96].mxu1 }
 0x598   : > { %v4927_v48 = vadd.f32 %v4926_v58, %v4741_v29  ;;  %5233 = vmatmul.mubr.f32.gmra.mrb[134].mxu0 %v4976_v49  ;;  %v4743_v38 = vpop.f32.mrb[97].mxu1  ;;  %v5004_v40 = vrot.slane %v4980_v50, 7  ;;  %v5535_v6 = vrot.slane %v4980_v50, 1 }
 0x599   : > { %5238 = vmatprep.mubr.f32.mxu0 %v13053_v41 }
 0x59a   : > { %v4981_v5 = vmax.f32 %v15593_v17, %v4927_v48  ;;  %v15912_v19 = vsel %vm818_vm1, %v5003_v57, %v5004_v40  ;;  %v15916_v47 = vsel %vm1673_vm2, %v5534_v12, %v5535_v6 }
 0x59b   : > { %v4746_v52 = vpop.f32.mrb[98].mxu1 }
 0x59c   : > { %v4932_v51 = vadd.f32 %v15843_v14, %v4746_v52  ;;  %5239 = vmatmul.mubr.f32.gmra.mrb[136].mxu0 %v4977_v15  ;;  %v4748_v29 = vpop.f32.mrb[99].mxu1  ;;  %v5005_v49 = vrot.slane %v4981_v5, 7  ;;  %v5536_v58 = vrot.slane %v4981_v5, 1 }
 0x59d   : > { %5244 = vmatprep.mubr.f32.mxu0 %v13053_v41 }
 0x59e   : > { %v4982_v38 = vmax.f32 %v15595_v59, %v4932_v51  ;;  %v15923_v17 = vsel %vm818_vm1, %v5004_v40, %v5005_v49  ;;  %v15927_v48 = vsel %vm1673_vm2, %v5535_v6, %v5536_v58 }
 0x59f   : > { %v4751_v57 = vpop.f32.mrb[100].mxu1 }
 0x5a0   : > { %v4937_v12 = vadd.f32 %v4936_v56, %v4751_v57  ;;  %5245 = vmatmul.mubr.f32.gmra.mrb[138].mxu0 %v4978_v26  ;;  %v4753_v14 = vpop.f32.mrb[101].mxu1  ;;  %v5006_v15 = vrot.slane %v4982_v38, 7  ;;  %v5537_v52 = vrot.slane %v4982_v38, 1 }
 0x5a1   : > { %5250 = vmatprep.mubr.f32.mxu0 %v13053_v41 }
 0x5a2   : > { %v4983_v29 = vmax.f32 %v15597_v16, %v4937_v12  ;;  %v15933_v59 = vsel %vm818_vm1, %v5005_v49, %v5006_v15  ;;  %v15937_v40 = vsel %vm1673_vm2, %v5536_v58, %v5537_v52 }
 0x5a3   : > { %v4756_v6 = vpop.f32.mrb[102].mxu1 }
 0x5a4   : > { %v4942_v51 = vadd.f32 %v15856_v4, %v4756_v6  ;;  %5251 = vmatmul.mubr.f32.gmra.mrb[140].mxu0 %v4979_v20  ;;  %v4758_v56 = vpop.f32.mrb[103].mxu1  ;;  %v5007_v26 = vrot.slane %v4983_v29, 7  ;;  %v5538_v57 = vrot.slane %v4983_v29, 1 }
 0x5a5   : > { %5256 = vmatprep.mubr.f32.mxu0 %v13053_v41 }
 0x5a6   : > { %v4984_v14 = vmax.f32 %v15599_v2, %v4942_v51  ;;  %v15944_v16 = vsel %vm818_vm1, %v5006_v15, %v5007_v26  ;;  %v15948_v49 = vsel %vm1673_vm2, %v5537_v52, %v5538_v57 }
 0x5a7   : > { %v4761_v58 = vpop.f32.mrb[104].mxu1 }
 0x5a8   : > { %v4947_v12 = vadd.f32 %v15879_v60, %v4761_v58  ;;  %5257 = vmatmul.mubr.f32.gmra.mrb[142].mxu0 %v4980_v50  ;;  %v4763_v4 = vpop.f32.mrb[105].mxu1  ;;  %v5008_v20 = vrot.slane %v4984_v14, 7  ;;  %v5539_v6 = vrot.slane %v4984_v14, 1 }
 0x5a9   : > { %5262 = vmatprep.mubr.f32.mxu0 %v13053_v41 }
 0x5aa   : > { %v4985_v56 = vmax.f32 %v15601_v25, %v4947_v12  ;;  %v15955_v2 = vsel %vm818_vm1, %v5007_v26, %v5008_v20  ;;  %v15959_v15 = vsel %vm1673_vm2, %v5538_v57, %v5539_v6 }
 0x5ab   : > { %v4766_v52 = vpop.f32.mrb[106].mxu1 }
 0x5ac   : > { %v4952_v51 = vadd.f32 %v15869_v33, %v4766_v52  ;;  %5263 = vmatmul.mubr.f32.gmra.mrb[144].mxu0 %v4981_v5  ;;  %v4768_v60 = vpop.f32.mrb[107].mxu1  ;;  %v5009_v50 = vrot.slane %v4985_v56, 7  ;;  %v5540_v58 = vrot.slane %v4985_v56, 1 }
 0x5ad   : > { %5268 = vmatprep.mubr.f32.mxu0 %v13053_v41 }
 0x5ae   : > { %v4986_v4 = vmax.f32 %v15603_v43, %v4952_v51  ;;  %v15966_v25 = vsel %vm818_vm1, %v5008_v20, %v5009_v50  ;;  %v15970_v26 = vsel %vm1673_vm2, %v5539_v6, %v5540_v58 }
 0x5af   : > { %v4771_v57 = vpop.f32.mrb[108].mxu1 }
 0x5b0   : > { %v4957_v12 = vadd.f32 %v15894_v1, %v4771_v57  ;;  %5269 = vmatmul.mubr.f32.gmra.mrb[146].mxu0 %v4982_v38  ;;  %v4773_v33 = vpop.f32.mrb[109].mxu1  ;;  %v5010_v5 = vrot.slane %v4986_v4, 7  ;;  %v5541_v52 = vrot.slane %v4986_v4, 1 }
 0x5b1   : > { %5274 = vmatprep.mubr.f32.mxu0 %v13053_v41 }
 0x5b2   : > { %v4987_v60 = vmax.f32 %v15605_v18, %v4957_v12  ;;  %v15977_v43 = vsel %vm818_vm1, %v5009_v50, %v5010_v5  ;;  %v15981_v20 = vsel %vm1673_vm2, %v5540_v58, %v5541_v52 }
 0x5b3   : > { %v4776_v6 = vpop.f32.mrb[110].mxu1 }
 0x5b4   : > { %v4962_v51 = vadd.f32 %v15884_v9, %v4776_v6  ;;  %5275 = vmatmul.mubr.f32.gmra.mrb[148].mxu0 %v4983_v29  ;;  %v4778_v1 = vpop.f32.mrb[111].mxu1  ;;  %v5011_v38 = vrot.slane %v4987_v60, 7  ;;  %v5542_v57 = vrot.slane %v4987_v60, 1  ;;  %v18759_v29 = vrot.slane %v15625_v28, 7 }
 0x5b5   : > { %5280 = vmatprep.mubr.f32.mxu0 %v13053_v41  ;;  %v9872_v1 = vld [vmem:[%s18472_s7 + $0x230] sm:$0xff] }
 0x5b6   : > { %v15986_v33 = vmax.f32 %v15607_v7, %v4962_v51  ;;  %v15990_v18 = vsel %vm818_vm1, %v5010_v5, %v5011_v38  ;;  %v15994_v50 = vsel %vm1673_vm2, %v5541_v52, %v5542_v57  ;;  %v9868_v52 = vld [vmem:[%s18472_s7 + $0x210] sm:$0xff]  ;;  %v9870_v51 = vld [vmem:[%s18472_s7 + $0x220] sm:$0xff] }
 0x5b8   : > { %v5012_v58 = vrot.slane %v15986_v33, 7  ;;  %5281 = vmatmul.mubr.f32.gmra.mrb[150].mxu0 %v4984_v14  ;;  %v5543_v9 = vrot.slane %v15986_v33, 1  ;;  %v9866_v14 = vld [vmem:[%s18472_s7 + $0x200] sm:$0xff] }
 0x5b9   : > { %5286 = vmatprep.mubr.f32.mxu0 %v13053_v41 }
 0x5ba   : > { %v5036_v7 = vsel %vm818_vm1, %v5012_v58, %v18759_v29  ;;  %v16005_v12 = vsel %vm818_vm1, %v5011_v38, %v5012_v58  ;;  %v16011_v5 = vsel %vm1673_vm2, %v5542_v57, %v5543_v9  ;;  %v9875_v38 = vld [vmem:[%s18472_s7 + $0x248] sm:$0xff]  ;;  %v9877_v57 = vld [vmem:[%s18472_s7 + $0x258] sm:$0xff]  ;;  %v11959_v58 = vpack.c.bf16 %v9872_v1, %v9870_v51  ;;  %v9880_v51 = vld [vmem:[%s18472_s7 + $0x270] sm:$0xff] }
 0x5bb   : > { %v11961_v29 = vpack.c.bf16 %v9877_v57, %v9875_v38  ;;  %v9883_v1 = vld [vmem:[%s18472_s7 + $0x288] sm:$0xff] }
 0x5bc   : > { %5287 = vmatmul.mubr.f32.gmra.mrb[152].mxu0 %v4985_v56  ;;  %v9871_v56 = vld [vmem:[%s18472_s7 + $0x228] sm:$0xff] }
 0x5bd   : > { %5292 = vmatprep.mubr.f32.mxu0 %v13053_v41 }
 0x5c0   : > { %5293 = vmatmul.mubr.f32.gmra.mrb[154].mxu0 %v4986_v4  ;;  %v9873_v4 = vld [vmem:[%s18472_s7 + $0x238] sm:$0xff] }
 0x5c1   : > { %5298 = vmatprep.mubr.f32.mxu0 %v13053_v41  ;;  %v11957_v6 = vpack.c.bf16 %v9873_v4, %v9871_v56  ;;  %v9879_v56 = vld [vmem:[%s18472_s7 + $0x268] sm:$0xff] }
 0x5c4   : > { %5299 = vmatmul.mubr.f32.gmra.mrb[156].mxu0 %v4987_v60  ;;  %v11955_v60 = vpack.c.bf16 %v9868_v52, %v9866_v14  ;;  %v9874_v14 = vld [vmem:[%s18472_s7 + $0x240] sm:$0xff]  ;;  %v9876_v52 = vld [vmem:[%s18472_s7 + $0x250] sm:$0xff] }
 0x5c5   : > { %5304 = vmatprep.mubr.f32.mxu0 %v13053_v41  ;;  %v11963_v4 = vpack.c.bf16 %v9876_v52, %v9874_v14  ;;  %v9887_v14 = vld [vmem:[%s18472_s7 + $0x2a8] sm:$0xff] }
 0x5c8   : > { %5305 = vmatmul.mubr.f32.gmra.mrb[158].mxu0 %v15986_v33 }
 0x5c9   : > { %5375 = vmatprep.mubr.f32.mxu0 %v13053_v41 }
 0x5cc   : > { %5376 = vmatmul.mubr.f32.vlgmr.msra.gmra.mrb[112].mxu0 %v5036_v7  ;;  %v9881_v7 = vld [vmem:[%s18472_s7 + $0x278] sm:$0xff] }
 0x5cd   : > { %5381 = vmatprep.mubr.f32.mxu0 %v13053_v41  ;;  %11956 = vmatpush1.bf16.msra.mxu0 %v11955_v60  ;;  %v11965_v60 = vpack.c.bf16 %v9881_v7, %v9879_v56  ;;  %v9886_v7 = vld [vmem:[%s18472_s7 + $0x2a0] sm:$0xff] }
 0x5ce   : > { %11958 = vmatprep.subr.bf16.mxu0 %v11957_v6  ;;  %v9878_v6 = vld [vmem:[%s18472_s7 + $0x260] sm:$0xff] }
 0x5cf   : > { %v11967_v38 = vpack.c.bf16 %v9880_v51, %v9878_v6 }
 0x5d0   : > { %5382 = vmatmul.mubr.f32.gmra.mrb[114].mxu0 %v15663_v54  ;;  %v9885_v54 = vld [vmem:[%s18472_s7 + $0x298] sm:$0xff] }
 0x5d1   : > { %5387 = vmatprep.mubr.f32.mxu0 %v13053_v41  ;;  %11960 = vmatpush1.bf16.msra.mxu0 %v11959_v58  ;;  %v11969_v57 = vpack.c.bf16 %v9885_v54, %v9883_v1  ;;  %v9882_v58 = vld [vmem:[%s18472_s7 + $0x280] sm:$0xff]  ;;  %v9892_v54 = vld [vmem:[%s18472_s7 + $0x2d0] sm:$0xff] }
 0x5d2   : > { %11962 = vmatprep.subr.bf16.mxu0 %v11961_v29  ;;  %v9884_v29 = vld [vmem:[%s18472_s7 + $0x290] sm:$0xff]  ;;  %v9890_v1 = vld [vmem:[%s18472_s7 + $0x2c0] sm:$0xff] }
 0x5d3   : > { %v11971_v52 = vpack.c.bf16 %v9884_v29, %v9882_v58  ;;  %v9894_v29 = vld [vmem:[%s18472_s7 + $0x2e0] sm:$0xff] }
 0x5d4   : > { %5388 = vmatmul.mubr.f32.gmra.mrb[116].mxu0 %v15690_v37  ;;  %v9889_v37 = vld [vmem:[%s18472_s7 + $0x2b8] sm:$0xff] }
 0x5d5   : > { %5393 = vmatprep.mubr.f32.mxu0 %v13053_v41  ;;  %11964 = vmatpush1.bf16.msra.mxu0 %v11963_v4  ;;  %v11973_v56 = vpack.c.bf16 %v9889_v37, %v9887_v14  ;;  %v9888_v4 = vld [vmem:[%s18472_s7 + $0x2b0] sm:$0xff]  ;;  %v9905_v37 = vld [vmem:[%s18473_s8 + $0x138] sm:$0xff] }
 0x5d6   : > { %11966 = vmatprep.subr.bf16.mxu0 %v11965_v60  ;;  %v9891_v60 = vld [vmem:[%s18472_s7 + $0x2c8] sm:$0xff]  ;;  %v11975_v6 = vpack.c.bf16 %v9888_v4, %v9886_v7  ;;  %v9896_v14 = vld [vmem:[%s18472_s7 + $0x2f0] sm:$0xff]  ;;  %v9909_v4 = vld [vmem:[%s18473_s8 + $0x158] sm:$0xff] }
 0x5d8   : > { %5394 = vmatmul.mubr.f32.gmra.mrb[118].mxu0 %v15694_v35  ;;  %v9893_v35 = vld [vmem:[%s18472_s7 + $0x2d8] sm:$0xff] }
 0x5d9   : > { %5399 = vmatprep.mubr.f32.mxu0 %v13053_v41  ;;  %11968 = vmatpush1.bf16.msra.mxu0 %v11967_v38  ;;  %v11977_v51 = vpack.c.bf16 %v9893_v35, %v9891_v60  ;;  %v9895_v38 = vld [vmem:[%s18472_s7 + $0x2e8] sm:$0xff] }
 0x5da   : > { %11970 = vmatprep.subr.bf16.mxu0 %v11969_v57  ;;  %v11979_v57 = vpack.c.bf16 %v9892_v54, %v9890_v1  ;;  %v9911_v35 = vld [vmem:[%s18473_s8 + $0x168] sm:$0xff] }
 0x5db   : > { %v9915_v54 = vld [vmem:[%s18473_s8 + $0x188] sm:$0xff] }
 0x5dc   : > { %5400 = vmatmul.mubr.f32.gmra.mrb[120].mxu0 %v15725_v3  ;;  %v9897_v3 = vld [vmem:[%s18472_s7 + $0x2f8] sm:$0xff] }
 0x5dd   : > { %5405 = vmatprep.mubr.f32.mxu0 %v13053_v41  ;;  %11972 = vmatpush1.bf16.msra.mxu0 %v11971_v52  ;;  %v11981_v58 = vpack.c.bf16 %v9897_v3, %v9895_v38  ;;  %v5520_v38 = vrot.slane %v15625_v28, 1 }
 0x5de   : > { %11974 = vmatprep.subr.bf16.mxu0 %v11973_v56  ;;  %v9907_v56 = vld [vmem:[%s18473_s8 + $0x148] sm:$0xff] }
 0x5e0   : > { %5406 = vmatmul.mubr.f32.gmra.mrb[122].mxu0 %v15729_v46  ;;  %v11983_v46 = vpack.c.bf16 %v9896_v14, %v9894_v29  ;;  %v9918_v14 = vld [vmem:[%s18473_s8 + $0x1a0] sm:$0xff] }
 0x5e1   : > { %5411 = vmatprep.mubr.f32.mxu0 %v13053_v41  ;;  %11976 = vmatpush1.bf16.msra.mxu0 %v11975_v6 }
 0x5e2   : > { %11978 = vmatprep.subr.bf16.mxu0 %v11977_v51  ;;  %v9913_v51 = vld [vmem:[%s18473_s8 + $0x178] sm:$0xff] }
 0x5e4   : > { %5412 = vmatmul.mubr.f32.gmra.mrb[124].mxu0 %v15762_v63  ;;  %v9898_v63 = vld [vmem:[%s18473_s8 + $0x100] sm:$0xff] }
 0x5e5   : > { %5417 = vmatprep.mubr.f32.mxu0 %v13053_v41  ;;  %11980 = vmatpush1.bf16.msra.mxu0 %v11979_v57  ;;  %v9917_v57 = vld [vmem:[%s18473_s8 + $0x198] sm:$0xff] }
 0x5e6   : > { %11982 = vmatprep.subr.bf16.mxu0 %v11981_v58  ;;  %v18761_v58 = vrot.slane %v15622_v23, 1 }
 0x5e8   : > { %5418 = vmatmul.mubr.f32.gmra.mrb[126].mxu0 %v15766_v44  ;;  %v9899_v44 = vld [vmem:[%s18473_s8 + $0x108] sm:$0xff]  ;;  %v5566_v29 = vsel %vm1673_vm2, %v5520_v38, %v18761_v58 }
 0x5e9   : > { %5423 = vmatprep.mubr.f32.mxu0 %v13053_v41  ;;  %11984 = vmatpush1.bf16.msra.mxu0 %v11983_v46  ;;  %v9919_v46 = vld [vmem:[%s18473_s8 + $0x1a8] sm:$0xff] }
 0x5ea   : > { %v12016_v23 = vpack.c.bf16 %v9919_v46, %v9918_v14 }
 0x5ec   : > { %5424 = vmatmul.mubr.f32.gmra.mrb[128].mxu0 %v15797_v62  ;;  %v9900_v62 = vld [vmem:[%s18473_s8 + $0x110] sm:$0xff] }
 0x5ed   : > { %5429 = vmatprep.mubr.f32.mxu0 %v13053_v41 }
 0x5f0   : > { %5430 = vmatmul.mubr.f32.gmra.mrb[130].mxu0 %v15826_v53  ;;  %v11986_v53 = vpack.c.bf16 %v9899_v44, %v9898_v63  ;;  %v9920_v63 = vld [vmem:[%s18473_s8 + $0x1b0] sm:$0xff]  ;;  %v9921_v44 = vld [vmem:[%s18473_s8 + $0x1b8] sm:$0xff] }
 0x5f1   : > { %5435 = vmatprep.mubr.f32.mxu0 %v13053_v41 }
 0x5f2   : > { %11987 = vmatpush1.bf16.msra.mxu1 %v11986_v53  ;;  %v9923_v53 = vld [vmem:[%s18473_s8 + $0x1c8] sm:$0xff] }
 0x5f4   : > { %5436 = vmatmul.mubr.f32.gmra.mrb[132].mxu0 %v15847_v22  ;;  %v9901_v22 = vld [vmem:[%s18473_s8 + $0x118] sm:$0xff] }
 0x5f5   : > { %5441 = vmatprep.mubr.f32.mxu0 %v13053_v41 }
 0x5f8   : > { %5442 = vmatmul.mubr.f32.gmra.mrb[134].mxu0 %v15860_v39  ;;  %v11989_v39 = vpack.c.bf16 %v9901_v22, %v9900_v62  ;;  %v12019_v62 = vpack.c.bf16 %v9921_v44, %v9920_v63 }
 0x5f9   : > { %5447 = vmatprep.mubr.f32.mxu0 %v13053_v41 }
 0x5fc   : > { %5448 = vmatmul.mubr.f32.gmra.mrb[136].mxu0 %v15873_v61  ;;  %v18760_v61 = vmov 0.0|0.0  }
 0x5fd   : > { %5453 = vmatprep.mubr.f32.mxu0 %v13053_v41  ;;  %11988 = vmatprep.subr.bf16.mxu1 %v18760_v61 }
 0x5fe   : > { %11990 = vmatpush1.bf16.msra.mxu1 %v11989_v39  ;;  %v9925_v39 = vld [vmem:[%s18473_s8 + $0x1d8] sm:$0xff] }
 0x5ff   : > { %11991 = vmatprep.subr.bf16.mxu1 %v18760_v61 }
 0x600   : > { %5454 = vmatmul.mubr.f32.gmra.mrb[138].mxu0 %v15888_v31  ;;  %v9902_v31 = vld [vmem:[%s18473_s8 + $0x120] sm:$0xff] }
 0x601   : > { %5459 = vmatprep.mubr.f32.mxu0 %v13053_v41 }
 0x604   : > { %5460 = vmatmul.mubr.f32.gmra.mrb[140].mxu0 %v15902_v45  ;;  %v9903_v45 = vld [vmem:[%s18473_s8 + $0x128] sm:$0xff] }
 0x605   : > { %5465 = vmatprep.mubr.f32.mxu0 %v13053_v41 }
 0x608   : > { %5466 = vmatmul.mubr.f32.gmra.mrb[142].mxu0 %v15912_v19  ;;  %v11992_v19 = vpack.c.bf16 %v9903_v45, %v9902_v31 }
 0x609   : > { %5471 = vmatprep.mubr.f32.mxu0 %v13053_v41 }
 0x60a   : > { %11993 = vmatpush1.bf16.msra.mxu1 %v11992_v19 }
 0x60b   : > { %11994 = vmatprep.subr.bf16.mxu1 %v18760_v61 }
 0x60c   : > { %5472 = vmatmul.mubr.f32.gmra.mrb[144].mxu0 %v15923_v17  ;;  %v9904_v17 = vld [vmem:[%s18473_s8 + $0x130] sm:$0xff] }
 0x60d   : > { %5477 = vmatprep.mubr.f32.mxu0 %v13053_v41  ;;  %v11995_v52 = vpack.c.bf16 %v9905_v37, %v9904_v17 }
 0x60f   : > { %11996 = vmatpush1.bf16.msra.mxu1 %v11995_v52 }
 0x610   : > { %5478 = vmatmul.mubr.f32.gmra.mrb[146].mxu0 %v15933_v59  ;;  %v9906_v59 = vld [vmem:[%s18473_s8 + $0x140] sm:$0xff]  ;;  %11997 = vmatprep.subr.bf16.mxu1 %v18760_v61 }
 0x611   : > { %5483 = vmatprep.mubr.f32.mxu0 %v13053_v41  ;;  %v11998_v7 = vpack.c.bf16 %v9907_v56, %v9906_v59  ;;  %v6232_v59 = vld [vmem:[%s18473_s8 + $0x10] sm:$0xff]  ;;  %v6233_v56 = vld [vmem:[%s18473_s8 + $0x18] sm:$0xff] }
 0x613   : > { %11999 = vmatpush1.bf16.msra.mxu1 %v11998_v7  ;;  %v16358_v7 = vpop.permute.xlu1 %5973 }
 0x614   : > { %5484 = vmatmul.mubr.f32.gmra.mrb[148].mxu0 %v15944_v16  ;;  %v9908_v16 = vld [vmem:[%s18473_s8 + $0x150] sm:$0xff]  ;;  %12000 = vmatprep.subr.bf16.mxu1 %v18760_v61  ;;  %18764 = vst [vmem:[#allocation24_spill] sm:$0xff] %v16358_v7 }
 0x615   : > { %5489 = vmatprep.mubr.f32.mxu0 %v13053_v41  ;;  %v12001_v60 = vpack.c.bf16 %v9909_v4, %v9908_v16 }
 0x617   : > { %12002 = vmatpush1.bf16.msra.mxu1 %v12001_v60 }
 0x618   : > { %5490 = vmatmul.mubr.f32.gmra.mrb[150].mxu0 %v15955_v2  ;;  %v9910_v2 = vld [vmem:[%s18473_s8 + $0x160] sm:$0xff]  ;;  %12003 = vmatprep.subr.bf16.mxu1 %v18760_v61 }
 0x619   : > { %5495 = vmatprep.mubr.f32.mxu0 %v13053_v41  ;;  %v12004_v6 = vpack.c.bf16 %v9911_v35, %v9910_v2 }
 0x61b   : > { %12005 = vmatpush1.bf16.msra.mxu1 %v12004_v6 }
 0x61c   : > { %5496 = vmatmul.mubr.f32.gmra.mrb[152].mxu0 %v15966_v25  ;;  %v9912_v25 = vld [vmem:[%s18473_s8 + $0x170] sm:$0xff]  ;;  %12006 = vmatprep.subr.bf16.mxu1 %v18760_v61 }
 0x61d   : > { %5501 = vmatprep.mubr.f32.mxu0 %v13053_v41  ;;  %v12007_v1 = vpack.c.bf16 %v9913_v51, %v9912_v25  ;;  %v12037_v51 = vpack.c.bf16 %v6233_v56, %v6232_v59 }
 0x61f   : > { %12008 = vmatpush1.bf16.msra.mxu1 %v12007_v1  ;;  %v6234_v1 = vld [vmem:[%s18473_s8 + $0x20] sm:$0xff] }
 0x620   : > { %5502 = vmatmul.mubr.f32.gmra.mrb[154].mxu0 %v15977_v43  ;;  %v9914_v43 = vld [vmem:[%s18473_s8 + $0x180] sm:$0xff]  ;;  %12009 = vmatprep.subr.bf16.mxu1 %v18760_v61 }
 0x621   : > { %5507 = vmatprep.mubr.f32.mxu0 %v13053_v41  ;;  %v12010_v3 = vpack.c.bf16 %v9915_v54, %v9914_v43  ;;  %v6235_v43 = vld [vmem:[%s18473_s8 + $0x28] sm:$0xff] }
 0x623   : > { %12011 = vmatpush1.bf16.msra.mxu1 %v12010_v3  ;;  %v16381_v3 = vld [vmem:[%s18473_s8 + $0x30] sm:$0xff] }
 0x624   : > { %5508 = vmatmul.mubr.f32.gmra.mrb[156].mxu0 %v15990_v18  ;;  %v9916_v18 = vld [vmem:[%s18473_s8 + $0x190] sm:$0xff]  ;;  %12012 = vmatprep.subr.bf16.mxu1 %v18760_v61 }
 0x625   : > { %5513 = vmatprep.mubr.f32.mxu0 %v13053_v41 }
 0x628   : > { %5514 = vmatmul.mubr.f32.gmra.mrb[158].mxu0 %v16005_v12  ;;  %v12013_v12 = vpack.c.bf16 %v9917_v57, %v9916_v18  ;;  %v16386_v18 = vld [vmem:[%s18473_s8 + $0x38] sm:$0xff] }
 0x629   : > { %5665 = vmatprep.mubr.f32.mxu0 %v13053_v41 }
 0x62a   : > { %12014 = vmatpush1.bf16.msra.mxu1 %v12013_v12 }
 0x62b   : > { %12015 = vmatprep.subr.bf16.mxu1 %v18760_v61 }
 0x62c   : > { %5666 = vmatmul.mubr.f32.vlgmr.msra.gmra.mrb[112].mxu0 %v5566_v29 }
 0x62d   : > { %5671 = vmatprep.mubr.f32.mxu0 %v13053_v41 }
 0x62e   : > { %12017 = vmatpush1.bf16.msra.mxu1 %v12016_v23 }
 0x62f   : > { %12018 = vmatprep.subr.bf16.mxu1 %v18760_v61 }
 0x630   : > { %5672 = vmatmul.mubr.f32.gmra.mrb[114].mxu0 %v15700_v34  ;;  %v9922_v34 = vld [vmem:[%s18473_s8 + $0x1c0] sm:$0xff] }
 0x631   : > { %5677 = vmatprep.mubr.f32.mxu0 %v13053_v41  ;;  %v12022_v22 = vpack.c.bf16 %v9923_v53, %v9922_v34 }
 0x632   : > { %12020 = vmatpush1.bf16.msra.mxu1 %v12019_v62  ;;  %v12040_v62 = vpack.c.bf16 %v6235_v43, %v6234_v1  ;;  %v6240_v1 = vld [vmem:[%s18473_s8 + $0x50] sm:$0xff]  ;;  %v6241_v43 = vld [vmem:[%s18473_s8 + $0x58] sm:$0xff] }
 0x633   : > { %12021 = vmatprep.subr.bf16.mxu1 %v18760_v61 }
 0x634   : > { %5678 = vmatmul.mubr.f32.gmra.mrb[116].mxu0 %v15705_v13  ;;  %v9924_v13 = vld [vmem:[%s18473_s8 + $0x1d0] sm:$0xff] }
 0x635   : > { %5683 = vmatprep.mubr.f32.mxu0 %v13053_v41  ;;  %v12025_v31 = vpack.c.bf16 %v9925_v39, %v9924_v13  ;;  %v12043_v13 = vpack.c.bf16 %v16386_v18, %v16381_v3 }
 0x636   : > { %12023 = vmatpush1.bf16.msra.mxu1 %v12022_v22 }
 0x637   : > { %12024 = vmatprep.subr.bf16.mxu1 %v18760_v61 }
 0x638   : > { %5684 = vmatmul.mubr.f32.gmra.mrb[118].mxu0 %v15739_v27  ;;  %v9926_v27 = vld [vmem:[%s18473_s8 + $0x1e0] sm:$0xff] }
 0x639   : > { %5689 = vmatprep.mubr.f32.mxu0 %v13053_v41 }
 0x63a   : > { %12026 = vmatpush1.bf16.msra.mxu1 %v12025_v31 }
 0x63b   : > { %12027 = vmatprep.subr.bf16.mxu1 %v18760_v61 }
 0x63c   : > { %5690 = vmatmul.mubr.f32.gmra.mrb[120].mxu0 %v15743_v42  ;;  %v9927_v42 = vld [vmem:[%s18473_s8 + $0x1e8] sm:$0xff] }
 0x63d   : > { %5695 = vmatprep.mubr.f32.mxu0 %v13053_v41 }
 0x640   : > { %5696 = vmatmul.mubr.f32.gmra.mrb[122].mxu0 %v15776_v21  ;;  %v12028_v21 = vpack.c.bf16 %v9927_v42, %v9926_v27 }
 0x641   : > { %5701 = vmatprep.mubr.f32.mxu0 %v13053_v41 }
 0x642   : > { %12029 = vmatpush1.bf16.msra.mxu1 %v12028_v21 }
 0x643   : > { %12030 = vmatprep.subr.bf16.mxu1 %v18760_v61 }
 0x644   : > { %5702 = vmatmul.mubr.f32.gmra.mrb[124].mxu0 %v15780_v36  ;;  %v9928_v36 = vld [vmem:[%s18473_s8 + $0x1f0] sm:$0xff] }
 0x645   : > { %5707 = vmatprep.mubr.f32.mxu0 %v13053_v41 }
 0x648   : > { %5708 = vmatmul.mubr.f32.gmra.mrb[126].mxu0 %v15801_v55  ;;  %v9929_v55 = vld [vmem:[%s18473_s8 + $0x1f8] sm:$0xff] }
 0x649   : > { %5713 = vmatprep.mubr.f32.mxu0 %v13053_v41 }
 0x64c   : > { %5714 = vmatmul.mubr.f32.gmra.mrb[128].mxu0 %v15830_v8  ;;  %v12031_v8 = vpack.c.bf16 %v9929_v55, %v9928_v36  ;;  %v16415_v36 = vpop.permute.xlu1 %5983 }
 0x64d   : > { %5719 = vmatprep.mubr.f32.mxu0 %v13053_v41  ;;  %18768 = vst [vmem:[#allocation28_spill] sm:$0xff] %v16415_v36 }
 0x64e   : > { %12032 = vmatpush1.bf16.msra.mxu1 %v12031_v8 }
 0x64f   : > { %12033 = vmatprep.subr.bf16.mxu1 %v18760_v61 }
 0x650   : > { %5720 = vmatmul.mubr.f32.gmra.mrb[130].mxu0 %v15851_v11  ;;  %v5567_v11 = vsel %vm1673_vm2, %v5543_v9, %v5520_v38 }
 0x651   : > { %5725 = vmatprep.mubr.f32.mxu0 %v13053_v41 }
 0x654   : > { %5726 = vmatmul.mubr.f32.gmra.mrb[132].mxu0 %v15864_v32  ;;  %v5858_v32 = vld [vmem:[%s18762_s0] sm:$0x3] }
 0x655   : > { %5731 = vmatprep.mubr.f32.mxu0 %v13053_v41 }
 0x658   : > { %5732 = vmatmul.mubr.f32.gmra.mrb[134].mxu0 %v15877_v0  ;;  %v5866_v0 = vsub.s32 1, %v13437_v10 }
 0x659   : > { %5737 = vmatprep.mubr.f32.mxu0 %v13053_v41 }
 0x65a   : > { %v16332_v28 = vrot.slane %v5858_v32, %v5866_v0 }
 0x65c   : > { %5738 = vmatmul.mubr.f32.gmra.mrb[136].mxu0 %v15892_v30 }
 0x65d   : > { %5743 = vmatprep.mubr.f32.mxu0 %v13053_v41 }
 0x660   : > { %5744 = vmatmul.mubr.f32.gmra.mrb[138].mxu0 %v15906_v24 }
 0x661   : > { %5749 = vmatprep.mubr.f32.mxu0 %v13053_v41 }
 0x664   : > { %5750 = vmatmul.mubr.f32.gmra.mrb[140].mxu0 %v15916_v47 }
 0x665   : > { %5755 = vmatprep.mubr.f32.mxu0 %v13053_v41 }
 0x668   : > { %5756 = vmatmul.mubr.f32.gmra.mrb[142].mxu0 %v15927_v48 }
 0x669   : > { %5761 = vmatprep.mubr.f32.mxu0 %v13053_v41 }
 0x66c   : > { %5762 = vmatmul.mubr.f32.gmra.mrb[144].mxu0 %v15937_v40 }
 0x66d   : > { %5767 = vmatprep.mubr.f32.mxu0 %v13053_v41 }
 0x670   : > { %5768 = vmatmul.mubr.f32.gmra.mrb[146].mxu0 %v15948_v49 }
 0x671   : > { %5773 = vmatprep.mubr.f32.mxu0 %v13053_v41 }
 0x674   : > { %5774 = vmatmul.mubr.f32.gmra.mrb[148].mxu0 %v15959_v15  ;;  %v6230_v15 = vld [vmem:[%s18473_s8] sm:$0xff] }
 0x675   : > { %5779 = vmatprep.mubr.f32.mxu0 %v13053_v41 }
 0x678   : > { %5780 = vmatmul.mubr.f32.gmra.mrb[150].mxu0 %v15970_v26  ;;  %v6231_v26 = vld [vmem:[%s18473_s8 + $0x8] sm:$0xff] }
 0x679   : > { %5785 = vmatprep.mubr.f32.mxu0 %v13053_v41  ;;  %v12034_v17 = vpack.c.bf16 %v6231_v26, %v6230_v15 }
 0x67c   : > { %5786 = vmatmul.mubr.f32.gmra.mrb[152].mxu0 %v15981_v20 }
 0x67d   : > { %5791 = vmatprep.mubr.f32.mxu0 %v13053_v41 }
 0x680   : > { %5792 = vmatmul.mubr.f32.gmra.mrb[154].mxu0 %v15994_v50  ;;  %v16342_v50 = vpop.permute.xlu0 %5968 }
 0x681   : > { %5797 = vmatprep.mubr.f32.mxu0 %v13053_v41  ;;  %18763 = vst [vmem:[#allocation23_spill] sm:$0xff] %v16342_v50 }
 0x684   : > { %5798 = vmatmul.mubr.f32.gmra.mrb[156].mxu0 %v16011_v5  ;;  %v16389_v58 = vpop.permute.xlu0 %5978 }
 0x685   : > { %5803 = vmatprep.mubr.f32.mxu0 %v13053_v41  ;;  %v5862_v41 = vsub.s32 0, %v13437_v10  ;;  %18767 = vst [vmem:[#allocation27_spill] sm:$0xff] %v16389_v58  ;;  %v18264_v10 = vld [vmem:[#allocation15] ss:$0 sm:$0xff] }
 0x687   : > { %v16330_v30 = vrot.slane %v5858_v32, %v5862_v41 }
 0x688   : > { %5804 = vmatmul.mubr.f32.gmra.mrb[158].mxu0 %v5567_v11 }
 0x6ff   : > { %v5667_v24 = vpop.f32.mrb[112].mxu0 }
 0x700   : > { %v5870_v47 = vadd.f32 %v16330_v30, %v5667_v24  ;;  %v5669_v48 = vpop.f32.mrb[113].mxu0 }
 0x701   : > { %v5871_v40 = vadd.f32 %v16332_v28, %v5669_v48  ;;  %v6238_v48 = vld [vmem:[%s18473_s8 + $0x40] sm:$0xff] }
 0x702   : > { %v5918_v49 = vmax.f32 %v5870_v47, 0.0 }
 0x703   : > { %v5919_v20 = vmax.f32 %v5871_v40, 0.0  ;;  %v5673_v33 = vpop.f32.mrb[114].mxu0  ;;  %v6239_v40 = vld [vmem:[%s18473_s8 + $0x48] sm:$0xff] }
 0x704   : > { %v5872_v9 = vadd.f32 %v16330_v30, %v5673_v33  ;;  %v5675_v5 = vpop.f32.mrb[115].mxu0  ;;  %v16350_v37 = vmul.f32 %v16342_v50, %v5918_v49 }
 0x705   : > { %v16346_v45 = vmul.f32 %v16342_v50, %v5919_v20  ;;  %v5873_v19 = vadd.f32 %v16332_v28, %v5675_v5 }
 0x706   : > { %v5920_v52 = vmax.f32 %v5872_v9, 0.0  ;;  %v18501_v54 = vrot.slane %v16350_v37, 7 }
 0x707   : > { %v5921_v16 = vmax.f32 %v5873_v19, 0.0  ;;  %v5679_v4 = vpop.f32.mrb[116].mxu0  ;;  %6359 = vmatprep.mubr.f32.mxu1 %v16346_v45  ;;  %v18500_v14 = vrot.slane %v16346_v45, 7 }
 0x708   : > { %v16362_v60 = vmul.f32 %v16358_v7, %v5920_v52  ;;  %v5874_v2 = vadd.f32 %v16330_v30, %v5679_v4  ;;  %v5681_v35 = vpop.f32.mrb[117].mxu0  ;;  %6360 = vmatmul.mubr.f32.vlgmr.msra.gmra.mrb[112].mxu1 %v16350_v37  ;;  %v16449_v52 = vpop.permute.xlu0 %5988 }
 0x709   : > { %v16367_v6 = vmul.f32 %v16358_v7, %v5921_v16  ;;  %v5875_v25 = vadd.f32 %v16332_v28, %v5681_v35  ;;  %12035 = vmatpush1.bf16.msra.mxu1 %v12034_v17  ;;  %18771 = vst [vmem:[#allocation31_spill] sm:$0xff] %v16449_v52  ;;  %v12046_v16 = vpack.c.bf16 %v6239_v40, %v6238_v48 }
 0x70a   : > { %18765 = vst [vmem:[#allocation25_spill] sm:$0xff] %v16362_v60  ;;  %v5922_v38 = vmax.f32 %v5874_v2, 0.0  ;;  %12036 = vmatprep.subr.bf16.mxu1 %v18760_v61  ;;  %v6136_v57 = vrot.slane %v16362_v60, 7  ;;  %v18498_v31 = vrot.slane %v16362_v60, 1 }
 0x70b   : > { %18766 = vst [vmem:[#allocation26_spill] sm:$0xff] %v16367_v6  ;;  %v5923_v29 = vmax.f32 %v5875_v25, 0.0  ;;  %v5685_v12 = vpop.f32.mrb[118].mxu0  ;;  %6364 = vmatprep.mubr.f32.mxu1 %v16367_v6  ;;  %v6137_v46 = vrot.slane %v16367_v6, 7  ;;  %v18499_v41 = vrot.slane %v16367_v6, 1 }
 0x70c   : > { %v6090_v23 = vmul.f32 %v16389_v58, %v5922_v38  ;;  %v5876_v63 = vadd.f32 %v16330_v30, %v5685_v12  ;;  %v5687_v44 = vpop.f32.mrb[119].mxu0  ;;  %6365 = vmatmul.mubr.f32.gmra.mrb[114].mxu1 %v16362_v60  ;;  %v16401_v34 = vsel %vm818_vm1, %v18501_v54, %v6136_v57 }
 0x70d   : > { %v6091_v53 = vmul.f32 %v16389_v58, %v5923_v29  ;;  %v5877_v22 = vadd.f32 %v16332_v28, %v5687_v44  ;;  %12038 = vmatpush1.bf16.msra.mxu1 %v12037_v51  ;;  %v16411_v39 = vsel %vm818_vm1, %v18500_v14, %v6137_v46  ;;  %v16478_v44 = vpop.permute.xlu1 %5993 }
 0x70e   : > { %v5924_v27 = vmax.f32 %v5876_v63, 0.0  ;;  %12039 = vmatprep.subr.bf16.mxu1 %v18760_v61  ;;  %v6138_v42 = vrot.slane %v6090_v23, 7  ;;  %v6669_v21 = vrot.slane %v6090_v23, 1  ;;  %18774 = vst [vmem:[#allocation34_spill] sm:$0xff] %v16478_v44 }
 0x70f   : > { %v5925_v55 = vmax.f32 %v5877_v22, 0.0  ;;  %v5691_v8 = vpop.f32.mrb[120].mxu0  ;;  %6369 = vmatprep.mubr.f32.mxu1 %v6091_v53  ;;  %v6139_v11 = vrot.slane %v6091_v53, 7  ;;  %v6670_v32 = vrot.slane %v6091_v53, 1  ;;  %v12049_v22 = vpack.c.bf16 %v6241_v43, %v6240_v1  ;;  %v6245_v1 = vld [vmem:[%s18473_s8 + $0x78] sm:$0xff] }
 0x710   : > { %v6092_v0 = vmul.f32 %v16415_v36, %v5924_v27  ;;  %v5878_v24 = vadd.f32 %v16330_v30, %v5691_v8  ;;  %v5693_v47 = vpop.f32.mrb[121].mxu0  ;;  %6370 = vmatmul.mubr.f32.gmra.mrb[116].mxu1 %v6090_v23  ;;  %v16428_v49 = vsel %vm818_vm1, %v6136_v57, %v6138_v42  ;;  %v16434_v15 = vsel %vm1673_vm2, %v18498_v31, %v6669_v21  ;;  %v6242_v8 = vld [vmem:[%s18473_s8 + $0x60] sm:$0xff] }
 0x711   : > { %18769 = vst [vmem:[#allocation29_spill] sm:$0xff] %v16434_v15  ;;  %v6093_v26 = vmul.f32 %v16415_v36, %v5925_v55  ;;  %v5879_v20 = vadd.f32 %v16332_v28, %v5693_v47  ;;  %12041 = vmatpush1.bf16.msra.mxu1 %v12040_v62  ;;  %v16440_v33 = vsel %vm818_vm1, %v6137_v46, %v6139_v11 }
 0x712   : > { %v16446_v9 = vsel %vm1673_vm2, %v18499_v41, %v6670_v32  ;;  %v5926_v5 = vmax.f32 %v5878_v24, 0.0  ;;  %12042 = vmatprep.subr.bf16.mxu1 %v18760_v61  ;;  %v6140_v19 = vrot.slane %v6092_v0, 7  ;;  %v6671_v17 = vrot.slane %v6092_v0, 1 }
 0x713   : > { %18770 = vst [vmem:[#allocation30_spill] sm:$0xff] %v16446_v9  ;;  %v5927_v59 = vmax.f32 %v5879_v20, 0.0  ;;  %v5697_v56 = vpop.f32.mrb[122].mxu0  ;;  %6374 = vmatprep.mubr.f32.mxu1 %v6093_v26  ;;  %v6141_v4 = vrot.slane %v6093_v26, 7  ;;  %v6672_v2 = vrot.slane %v6093_v26, 1 }
 0x714   : > { %v6094_v35 = vmul.f32 %v16449_v52, %v5926_v5  ;;  %v5880_v25 = vadd.f32 %v16330_v30, %v5697_v56  ;;  %v5699_v51 = vpop.f32.mrb[123].mxu0  ;;  %6375 = vmatmul.mubr.f32.gmra.mrb[118].mxu1 %v6092_v0  ;;  %v16461_v38 = vsel %vm818_vm1, %v6138_v42, %v6140_v19  ;;  %v16465_v3 = vsel %vm1673_vm2, %v6669_v21, %v6671_v17 }
 0x715   : > { %18772 = vst [vmem:[#allocation32_spill] sm:$0xff] %v16465_v3  ;;  %v6095_v18 = vmul.f32 %v16449_v52, %v5927_v59  ;;  %v5881_v57 = vadd.f32 %v16332_v28, %v5699_v51  ;;  %12044 = vmatpush1.bf16.msra.mxu1 %v12043_v13  ;;  %v16471_v29 = vsel %vm818_vm1, %v6139_v11, %v6141_v4  ;;  %v6243_v11 = vld [vmem:[%s18473_s8 + $0x68] sm:$0xff] }
 0x716   : > { %v16475_v12 = vsel %vm1673_vm2, %v6670_v32, %v6672_v2  ;;  %v5928_v46 = vmax.f32 %v5880_v25, 0.0  ;;  %12045 = vmatprep.subr.bf16.mxu1 %v18760_v61  ;;  %v6142_v23 = vrot.slane %v6094_v35, 7  ;;  %v6673_v63 = vrot.slane %v6094_v35, 1 }
 0x717   : > { %18773 = vst [vmem:[#allocation33_spill] sm:$0xff] %v16475_v12  ;;  %v5929_v62 = vmax.f32 %v5881_v57, 0.0  ;;  %v5703_v53 = vpop.f32.mrb[124].mxu0  ;;  %6379 = vmatprep.mubr.f32.mxu1 %v6095_v18  ;;  %v6143_v13 = vrot.slane %v6095_v18, 7  ;;  %v6674_v27 = vrot.slane %v6095_v18, 1  ;;  %v12052_v56 = vpack.c.bf16 %v6243_v11, %v6242_v8 }
 0x718   : > { %v6096_v42 = vmul.f32 %v16478_v44, %v5928_v46  ;;  %v5882_v21 = vadd.f32 %v16330_v30, %v5703_v53  ;;  %v5705_v55 = vpop.f32.mrb[125].mxu0  ;;  %6380 = vmatmul.mubr.f32.gmra.mrb[120].mxu1 %v6094_v35  ;;  %v16490_v32 = vsel %vm818_vm1, %v6140_v19, %v6142_v23  ;;  %v16494_v0 = vsel %vm1673_vm2, %v6671_v17, %v6673_v63  ;;  %v16507_v19 = vpop.permute.xlu0 %5998 }
 0x719   : > { %18775 = vst [vmem:[#allocation35_spill] sm:$0xff] %v16494_v0  ;;  %v6097_v24 = vmul.f32 %v16478_v44, %v5929_v62  ;;  %v5883_v47 = vadd.f32 %v16332_v28, %v5705_v55  ;;  %12047 = vmatpush1.bf16.msra.mxu1 %v12046_v16  ;;  %v16500_v48 = vsel %vm818_vm1, %v6141_v4, %v6143_v13  ;;  %18777 = vst [vmem:[#allocation37_spill] sm:$0xff] %v16507_v19 }
 0x71a   : > { %v16504_v40 = vsel %vm1673_vm2, %v6672_v2, %v6674_v27  ;;  %v5930_v26 = vmax.f32 %v5882_v21, 0.0  ;;  %12048 = vmatprep.subr.bf16.mxu1 %v18760_v61  ;;  %v6144_v20 = vrot.slane %v6096_v42, 7  ;;  %v6675_v5 = vrot.slane %v6096_v42, 1  ;;  %v6244_v2 = vld [vmem:[%s18473_s8 + $0x70] sm:$0xff] }
 0x71b   : > { %18776 = vst [vmem:[#allocation36_spill] sm:$0xff] %v16504_v40  ;;  %v5931_v17 = vmax.f32 %v5883_v47, 0.0  ;;  %v5709_v59 = vpop.f32.mrb[126].mxu0  ;;  %6384 = vmatprep.mubr.f32.mxu1 %v6097_v24  ;;  %v6145_v16 = vrot.slane %v6097_v24, 7  ;;  %v6676_v35 = vrot.slane %v6097_v24, 1  ;;  %v12055_v11 = vpack.c.bf16 %v6245_v1, %v6244_v2 }
 0x71c   : > { %v6098_v4 = vmul.f32 %v16507_v19, %v5930_v26  ;;  %v5884_v25 = vadd.f32 %v16330_v30, %v5709_v59  ;;  %v5711_v51 = vpop.f32.mrb[127].mxu0  ;;  %6385 = vmatmul.mubr.f32.gmra.mrb[122].mxu1 %v6096_v42  ;;  %v16519_v43 = vsel %vm818_vm1, %v6142_v23, %v6144_v20  ;;  %v16523_v18 = vsel %vm1673_vm2, %v6673_v63, %v6675_v5  ;;  %v16536_v63 = vpop.permute.xlu1 %6003 }
 0x71d   : > { %18778 = vst [vmem:[#allocation38_spill] sm:$0xff] %v16523_v18  ;;  %v6099_v57 = vmul.f32 %v16507_v19, %v5931_v17  ;;  %v5885_v46 = vadd.f32 %v16332_v28, %v5711_v51  ;;  %12050 = vmatpush1.bf16.msra.mxu1 %v12049_v22  ;;  %v16529_v62 = vsel %vm818_vm1, %v6143_v13, %v6145_v16  ;;  %18780 = vst [vmem:[#allocation40_spill] sm:$0xff] %v16536_v63  ;;  %v6247_v17 = vld [vmem:[%s18473_s8 + $0x88] sm:$0xff] }
 0x71e   : > { %v16533_v53 = vsel %vm1673_vm2, %v6674_v27, %v6676_v35  ;;  %v5932_v42 = vmax.f32 %v5884_v25, 0.0  ;;  %12051 = vmatprep.subr.bf16.mxu1 %v18760_v61  ;;  %v6146_v23 = vrot.slane %v6098_v4, 7  ;;  %v6677_v21 = vrot.slane %v6098_v4, 1  ;;  %v6246_v27 = vld [vmem:[%s18473_s8 + $0x80] sm:$0xff] }
 0x71f   : > { %18779 = vst [vmem:[#allocation39_spill] sm:$0xff] %v16533_v53  ;;  %v5933_v55 = vmax.f32 %v5885_v46, 0.0  ;;  %v5715_v8 = vpop.f32.mrb[128].mxu0  ;;  %6389 = vmatprep.mubr.f32.mxu1 %v6099_v57  ;;  %v6147_v22 = vrot.slane %v6099_v57, 7  ;;  %v6678_v24 = vrot.slane %v6099_v57, 1 }
 0x720   : > { %v6100_v13 = vmul.f32 %v16536_v63, %v5932_v42  ;;  %v5886_v47 = vadd.f32 %v16330_v30, %v5715_v8  ;;  %v5717_v26 = vpop.f32.mrb[129].mxu0  ;;  %6390 = vmatmul.mubr.f32.gmra.mrb[124].mxu1 %v6098_v4  ;;  %v16548_v59 = vsel %vm818_vm1, %v6144_v20, %v6146_v23  ;;  %v16552_v25 = vsel %vm1673_vm2, %v6675_v5, %v6677_v21  ;;  %v16565_v5 = vpop.permute.xlu0 %6008 }
 0x721   : > { %18781 = vst [vmem:[#allocation41_spill] sm:$0xff] %v16552_v25  ;;  %v6101_v51 = vmul.f32 %v16536_v63, %v5933_v55  ;;  %v5887_v4 = vadd.f32 %v16332_v28, %v5717_v26  ;;  %12053 = vmatpush1.bf16.msra.mxu1 %v12052_v56  ;;  %v16558_v2 = vsel %vm818_vm1, %v6145_v16, %v6147_v22  ;;  %18783 = vst [vmem:[#allocation43_spill] sm:$0xff] %v16565_v5 }
 0x722   : > { %v16562_v1 = vsel %vm1673_vm2, %v6676_v35, %v6678_v24  ;;  %v5934_v57 = vmax.f32 %v5886_v47, 0.0  ;;  %12054 = vmatprep.subr.bf16.mxu1 %v18760_v61  ;;  %v6148_v20 = vrot.slane %v6100_v13, 7  ;;  %v6679_v46 = vrot.slane %v6100_v13, 1  ;;  %v6248_v35 = vld [vmem:[%s18473_s8 + $0x90] sm:$0xff]  ;;  %v6249_v47 = vld [vmem:[%s18473_s8 + $0x98] sm:$0xff] }
 0x723   : > { %18782 = vst [vmem:[#allocation42_spill] sm:$0xff] %v16562_v1  ;;  %v5935_v42 = vmax.f32 %v5887_v4, 0.0  ;;  %v5721_v55 = vpop.f32.mrb[130].mxu0  ;;  %6394 = vmatprep.mubr.f32.mxu1 %v6101_v51  ;;  %v12058_v8 = vpack.c.bf16 %v6247_v17, %v6246_v27  ;;  %v6149_v56 = vrot.slane %v6101_v51, 7  ;;  %v6680_v26 = vrot.slane %v6101_v51, 1 }
 0x724   : > { %v6102_v16 = vmul.f32 %v16565_v5, %v5934_v57  ;;  %v5888_v31 = vadd.f32 %v16330_v30, %v5721_v55  ;;  %v5723_v41 = vpop.f32.mrb[131].mxu0  ;;  %6395 = vmatmul.mubr.f32.gmra.mrb[126].mxu1 %v6100_v13  ;;  %v16577_v4 = vsel %vm818_vm1, %v6146_v23, %v6148_v20  ;;  %v16581_v27 = vsel %vm1673_vm2, %v6677_v21, %v6679_v46  ;;  %v16594_v21 = vpop.permute.xlu1 %6013 }
 0x725   : > { %18784 = vst [vmem:[#allocation44_spill] sm:$0xff] %v16581_v27  ;;  %v6103_v17 = vmul.f32 %v16565_v5, %v5935_v42  ;;  %v5889_v13 = vadd.f32 %v16332_v28, %v5723_v41  ;;  %12056 = vmatpush1.bf16.msra.mxu1 %v12055_v11  ;;  %v16587_v51 = vsel %vm818_vm1, %v6147_v22, %v6149_v56  ;;  %18786 = vst [vmem:[#allocation46_spill] sm:$0xff] %v16594_v21 }
 0x726   : > { %v16591_v57 = vsel %vm1673_vm2, %v6678_v24, %v6680_v26  ;;  %v5936_v55 = vmax.f32 %v5888_v31, 0.0  ;;  %12057 = vmatprep.subr.bf16.mxu1 %v18760_v61  ;;  %v6150_v23 = vrot.slane %v6102_v16, 7  ;;  %v6681_v14 = vrot.slane %v6102_v16, 1  ;;  %v6250_v31 = vld [vmem:[%s18473_s8 + $0xa0] sm:$0xff]  ;;  %v6251_v24 = vld [vmem:[%s18473_s8 + $0xa8] sm:$0xff] }
 0x727   : > { %18785 = vst [vmem:[#allocation45_spill] sm:$0xff] %v16591_v57  ;;  %v5937_v54 = vmax.f32 %v5889_v13, 0.0  ;;  %v5727_v42 = vpop.f32.mrb[132].mxu0  ;;  %6399 = vmatprep.mubr.f32.mxu1 %v6103_v17  ;;  %v12061_v41 = vpack.c.bf16 %v6249_v47, %v6248_v35  ;;  %v6151_v11 = vrot.slane %v6103_v17, 7  ;;  %v6682_v5 = vrot.slane %v6103_v17, 1 }
 0x728   : > { %v6104_v22 = vmul.f32 %v16594_v21, %v5936_v55  ;;  %v5890_v63 = vadd.f32 %v16330_v30, %v5727_v42  ;;  %v5729_v19 = vpop.f32.mrb[133].mxu0  ;;  %6400 = vmatmul.mubr.f32.gmra.mrb[128].mxu1 %v6102_v16  ;;  %v16606_v13 = vsel %vm818_vm1, %v6148_v20, %v6150_v23  ;;  %v16610_v35 = vsel %vm1673_vm2, %v6679_v46, %v6681_v14  ;;  %v16623_v46 = vpop.permute.xlu0 %6018 }
 0x729   : > { %18787 = vst [vmem:[#allocation47_spill] sm:$0xff] %v16610_v35  ;;  %v6105_v47 = vmul.f32 %v16594_v21, %v5937_v54  ;;  %v5891_v16 = vadd.f32 %v16332_v28, %v5729_v19  ;;  %12059 = vmatpush1.bf16.msra.mxu1 %v12058_v8  ;;  %v16616_v17 = vsel %vm818_vm1, %v6149_v56, %v6151_v11  ;;  %18789 = vst [vmem:[#allocation48_spill] sm:$0xff] %v16623_v46 }
 0x72a   : > { %v16620_v55 = vsel %vm1673_vm2, %v6680_v26, %v6682_v5  ;;  %v5938_v42 = vmax.f32 %v5890_v63, 0.0  ;;  %12060 = vmatprep.subr.bf16.mxu1 %v18760_v61  ;;  %v6152_v20 = vrot.slane %v6104_v22, 7  ;;  %v6683_v44 = vrot.slane %v6104_v22, 1  ;;  %v6252_v63 = vld [vmem:[%s18473_s8 + $0xb0] sm:$0xff]  ;;  %v6253_v26 = vld [vmem:[%s18473_s8 + $0xb8] sm:$0xff] }
 0x72b   : > { %18788 = vst [vmem:[#allocation22_spill] sm:$0xff] %v16620_v55  ;;  %v5939_v52 = vmax.f32 %v5891_v16, 0.0  ;;  %v5733_v54 = vpop.f32.mrb[134].mxu0  ;;  %6404 = vmatprep.mubr.f32.mxu1 %v6105_v47  ;;  %v12064_v19 = vpack.c.bf16 %v6251_v24, %v6250_v31  ;;  %v6153_v8 = vrot.slane %v6105_v47, 7  ;;  %v6684_v21 = vrot.slane %v6105_v47, 1 }
 0x72c   : > { %v6106_v56 = vmul.f32 %v16623_v46, %v5938_v42  ;;  %v5892_v36 = vadd.f32 %v16330_v30, %v5733_v54  ;;  %v5735_v58 = vpop.f32.mrb[135].mxu0  ;;  %6405 = vmatmul.mubr.f32.gmra.mrb[130].mxu1 %v6104_v22  ;;  %v16635_v16 = vsel %vm818_vm1, %v6150_v23, %v6152_v20  ;;  %v16639_v31 = vsel %vm1673_vm2, %v6681_v14, %v6683_v44  ;;  %v16652_v14 = vpop.permute.xlu1 %6023 }
 0x72d   : > { %18790 = vst [vmem:[#allocation49_spill] sm:$0xff] %v16639_v31  ;;  %v6107_v24 = vmul.f32 %v16623_v46, %v5939_v52  ;;  %v5893_v22 = vadd.f32 %v16332_v28, %v5735_v58  ;;  %12062 = vmatpush1.bf16.msra.mxu1 %v12061_v41  ;;  %v16645_v47 = vsel %vm818_vm1, %v6151_v11, %v6153_v8  ;;  %18792 = vst [vmem:[#allocation51_spill] sm:$0xff] %v16652_v14 }
 0x72e   : > { %v16649_v42 = vsel %vm1673_vm2, %v6682_v5, %v6684_v21  ;;  %v5940_v54 = vmax.f32 %v5892_v36, 0.0  ;;  %12063 = vmatprep.subr.bf16.mxu1 %v18760_v61  ;;  %v6154_v23 = vrot.slane %v6106_v56, 7  ;;  %v6685_v7 = vrot.slane %v6106_v56, 1  ;;  %v6254_v36 = vld [vmem:[%s18473_s8 + $0xc0] sm:$0xff]  ;;  %v6255_v5 = vld [vmem:[%s18473_s8 + $0xc8] sm:$0xff] }
 0x72f   : > { %18791 = vst [vmem:[#allocation50_spill] sm:$0xff] %v16649_v42  ;;  %v5941_v50 = vmax.f32 %v5893_v22, 0.0  ;;  %v5739_v52 = vpop.f32.mrb[136].mxu0  ;;  %6409 = vmatprep.mubr.f32.mxu1 %v6107_v24  ;;  %v12067_v58 = vpack.c.bf16 %v6253_v26, %v6252_v63  ;;  %v6155_v41 = vrot.slane %v6107_v24, 7  ;;  %v6686_v46 = vrot.slane %v6107_v24, 1 }
 0x730   : > { %v6108_v11 = vmul.f32 %v16652_v14, %v5940_v54  ;;  %v5894_v31 = vadd.f32 %v16330_v30, %v5739_v52  ;;  %v5741_v35 = vpop.f32.mrb[137].mxu0  ;;  %6410 = vmatmul.mubr.f32.gmra.mrb[132].mxu1 %v6106_v56  ;;  %v16664_v22 = vsel %vm818_vm1, %v6152_v20, %v6154_v23  ;;  %v16668_v63 = vsel %vm1673_vm2, %v6683_v44, %v6685_v7  ;;  %v16681_v44 = vpop.permute.xlu0 %6028 }
 0x731   : > { %18793 = vst [vmem:[#allocation52_spill] sm:$0xff] %v16668_v63  ;;  %v6109_v26 = vmul.f32 %v16652_v14, %v5941_v50  ;;  %v5895_v56 = vadd.f32 %v16332_v28, %v5741_v35  ;;  %12065 = vmatpush1.bf16.msra.mxu1 %v12064_v19  ;;  %v16674_v24 = vsel %vm818_vm1, %v6153_v8, %v6155_v41  ;;  %18795 = vst [vmem:[#allocation54_spill] sm:$0xff] %v16681_v44 }
 0x732   : > { %v16678_v54 = vsel %vm1673_vm2, %v6684_v21, %v6686_v46  ;;  %v5942_v52 = vmax.f32 %v5894_v31, 0.0  ;;  %12066 = vmatprep.subr.bf16.mxu1 %v18760_v61  ;;  %v6156_v20 = vrot.slane %v6108_v11, 7  ;;  %v6687_v42 = vrot.slane %v6108_v11, 1  ;;  %v6256_v21 = vld [vmem:[%s18473_s8 + $0xd0] sm:$0xff]  ;;  %v6257_v31 = vld [vmem:[%s18473_s8 + $0xd8] sm:$0xff] }
 0x733   : > { %18794 = vst [vmem:[#allocation53_spill] sm:$0xff] %v16678_v54  ;;  %v5943_v63 = vmax.f32 %v5895_v56, 0.0  ;;  %v5745_v50 = vpop.f32.mrb[138].mxu0  ;;  %6414 = vmatprep.mubr.f32.mxu1 %v6109_v26  ;;  %v12070_v35 = vpack.c.bf16 %v6255_v5, %v6254_v36  ;;  %v6157_v19 = vrot.slane %v6109_v26, 7  ;;  %v6688_v14 = vrot.slane %v6109_v26, 1 }
 0x734   : > { %v6110_v8 = vmul.f32 %v16681_v44, %v5942_v52  ;;  %v5896_v55 = vadd.f32 %v16330_v30, %v5745_v50  ;;  %v5747_v27 = vpop.f32.mrb[139].mxu0  ;;  %6415 = vmatmul.mubr.f32.gmra.mrb[134].mxu1 %v6108_v11  ;;  %v16693_v56 = vsel %vm818_vm1, %v6154_v23, %v6156_v20  ;;  %v16697_v36 = vsel %vm1673_vm2, %v6685_v7, %v6687_v42  ;;  %v16710_v7 = vpop.permute.xlu1 %6033 }
 0x735   : > { %18796 = vst [vmem:[#allocation55_spill] sm:$0xff] %v16697_v36  ;;  %v6111_v5 = vmul.f32 %v16681_v44, %v5943_v63  ;;  %v5897_v11 = vadd.f32 %v16332_v28, %v5747_v27  ;;  %12068 = vmatpush1.bf16.msra.mxu1 %v12067_v58  ;;  %v16703_v26 = vsel %vm818_vm1, %v6155_v41, %v6157_v19  ;;  %18798 = vst [vmem:[#allocation57_spill] sm:$0xff] %v16710_v7 }
 0x736   : > { %v16707_v52 = vsel %vm1673_vm2, %v6686_v46, %v6688_v14  ;;  %v5944_v50 = vmax.f32 %v5896_v55, 0.0  ;;  %12069 = vmatprep.subr.bf16.mxu1 %v18760_v61  ;;  %v6158_v23 = vrot.slane %v6110_v8, 7  ;;  %v6689_v54 = vrot.slane %v6110_v8, 1  ;;  %v6258_v55 = vld [vmem:[%s18473_s8 + $0xe0] sm:$0xff]  ;;  %v6259_v46 = vld [vmem:[%s18473_s8 + $0xe8] sm:$0xff] }
 0x737   : > { %18797 = vst [vmem:[#allocation56_spill] sm:$0xff] %v16707_v52  ;;  %v5945_v36 = vmax.f32 %v5897_v11, 0.0  ;;  %v5751_v63 = vpop.f32.mrb[140].mxu0  ;;  %6419 = vmatprep.mubr.f32.mxu1 %v6111_v5  ;;  %v12073_v27 = vpack.c.bf16 %v6257_v31, %v6256_v21  ;;  %v6159_v58 = vrot.slane %v6111_v5, 7  ;;  %v6690_v44 = vrot.slane %v6111_v5, 1 }
 0x738   : > { %v6112_v41 = vmul.f32 %v16710_v7, %v5944_v50  ;;  %v5898_v57 = vadd.f32 %v16330_v30, %v5751_v63  ;;  %v5753_v25 = vpop.f32.mrb[141].mxu0  ;;  %6420 = vmatmul.mubr.f32.gmra.mrb[136].mxu1 %v6110_v8  ;;  %v16722_v11 = vsel %vm818_vm1, %v6156_v20, %v6158_v23  ;;  %v16726_v21 = vsel %vm1673_vm2, %v6687_v42, %v6689_v54  ;;  %v16739_v42 = vpop.permute.xlu0 %6038 }
 0x739   : > { %18799 = vst [vmem:[#allocation58_spill] sm:$0xff] %v16726_v21  ;;  %v6113_v31 = vmul.f32 %v16710_v7, %v5945_v36  ;;  %v5899_v8 = vadd.f32 %v16332_v28, %v5753_v25  ;;  %12071 = vmatpush1.bf16.msra.mxu1 %v12070_v35  ;;  %v16732_v5 = vsel %vm818_vm1, %v6157_v19, %v6159_v58  ;;  %18801 = vst [vmem:[#allocation60_spill] sm:$0xff] %v16739_v42 }
 0x73a   : > { %v16736_v50 = vsel %vm1673_vm2, %v6688_v14, %v6690_v44  ;;  %v5946_v63 = vmax.f32 %v5898_v57, 0.0  ;;  %12072 = vmatprep.subr.bf16.mxu1 %v18760_v61  ;;  %v6160_v20 = vrot.slane %v6112_v41, 7  ;;  %v6691_v52 = vrot.slane %v6112_v41, 1  ;;  %v6260_v57 = vld [vmem:[%s18473_s8 + $0xf0] sm:$0xff]  ;;  %v6261_v14 = vld [vmem:[%s18473_s8 + $0xf8] sm:$0xff] }
 0x73b   : > { %18800 = vst [vmem:[#allocation59_spill] sm:$0xff] %v16736_v50  ;;  %v5947_v21 = vmax.f32 %v5899_v8, 0.0  ;;  %v5757_v36 = vpop.f32.mrb[142].mxu0  ;;  %6424 = vmatprep.mubr.f32.mxu1 %v6113_v31  ;;  %v12076_v25 = vpack.c.bf16 %v6259_v46, %v6258_v55  ;;  %v6161_v35 = vrot.slane %v6113_v31, 7  ;;  %v6692_v7 = vrot.slane %v6113_v31, 1 }
 0x73c   : > { %v6114_v19 = vmul.f32 %v16739_v42, %v5946_v63  ;;  %v5900_v1 = vadd.f32 %v16330_v30, %v5757_v36  ;;  %v5759_v18 = vpop.f32.mrb[143].mxu0  ;;  %6425 = vmatmul.mubr.f32.gmra.mrb[138].mxu1 %v6112_v41  ;;  %v16751_v8 = vsel %vm818_vm1, %v6158_v23, %v6160_v20  ;;  %v16755_v55 = vsel %vm1673_vm2, %v6689_v54, %v6691_v52  ;;  %v16768_v54 = vpop.permute.xlu1 %6043 }
 0x73d   : > { %18802 = vst [vmem:[#allocation61_spill] sm:$0xff] %v16755_v55  ;;  %v6115_v46 = vmul.f32 %v16739_v42, %v5947_v21  ;;  %v5901_v41 = vadd.f32 %v16332_v28, %v5759_v18  ;;  %12074 = vmatpush1.bf16.msra.mxu1 %v12073_v27  ;;  %v16761_v31 = vsel %vm818_vm1, %v6159_v58, %v6161_v35  ;;  %18804 = vst [vmem:[#allocation63_spill] sm:$0xff] %v16768_v54 }
 0x73e   : > { %v16765_v63 = vsel %vm1673_vm2, %v6690_v44, %v6692_v7  ;;  %v5948_v36 = vmax.f32 %v5900_v1, 0.0  ;;  %12075 = vmatprep.subr.bf16.mxu1 %v18760_v61  ;;  %v6162_v23 = vrot.slane %v6114_v19, 7  ;;  %v6693_v50 = vrot.slane %v6114_v19, 1 }
 0x73f   : > { %18803 = vst [vmem:[#allocation62_spill] sm:$0xff] %v16765_v63  ;;  %v5949_v55 = vmax.f32 %v5901_v41, 0.0  ;;  %v5763_v21 = vpop.f32.mrb[144].mxu0  ;;  %6429 = vmatprep.mubr.f32.mxu1 %v6115_v46  ;;  %v12079_v18 = vpack.c.bf16 %v6261_v14, %v6260_v57  ;;  %v6163_v27 = vrot.slane %v6115_v46, 7  ;;  %v6694_v42 = vrot.slane %v6115_v46, 1 }
 0x740   : > { %v6116_v58 = vmul.f32 %v16768_v54, %v5948_v36  ;;  %v5902_v53 = vadd.f32 %v16330_v30, %v5763_v21  ;;  %v5765_v0 = vpop.f32.mrb[145].mxu0  ;;  %6430 = vmatmul.mubr.f32.gmra.mrb[140].mxu1 %v6114_v19  ;;  %v16774_v1 = vsel %vm818_vm1, %v6160_v20, %v6162_v23  ;;  %v16778_v44 = vsel %vm1673_vm2, %v6691_v52, %v6693_v50  ;;  %v16791_v52 = vpop.permute.xlu0 %6048 }
 0x741   : > { %18805 = vst [vmem:[#allocation64_spill] sm:$0xff] %v16778_v44  ;;  %v6117_v41 = vmul.f32 %v16768_v54, %v5949_v55  ;;  %v5903_v57 = vadd.f32 %v16332_v28, %v5765_v0  ;;  %12077 = vmatpush1.bf16.msra.mxu1 %v12076_v25  ;;  %v16784_v14 = vsel %vm818_vm1, %v6161_v35, %v6163_v27  ;;  %18807 = vst [vmem:[#allocation66_spill] sm:$0xff] %v16791_v52 }
 0x742   : > { %v16788_v19 = vsel %vm1673_vm2, %v6692_v7, %v6694_v42  ;;  %v5950_v46 = vmax.f32 %v5902_v53, 0.0  ;;  %12078 = vmatprep.subr.bf16.mxu1 %v18760_v61  ;;  %v6164_v20 = vrot.slane %v6116_v58, 7  ;;  %v6695_v36 = vrot.slane %v6116_v58, 1 }
 0x743   : > { %18806 = vst [vmem:[#allocation65_spill] sm:$0xff] %v16788_v19  ;;  %v5951_v21 = vmax.f32 %v5903_v57, 0.0  ;;  %v5769_v55 = vpop.f32.mrb[146].mxu0  ;;  %6434 = vmatprep.mubr.f32.mxu1 %v6117_v41  ;;  %v6165_v0 = vrot.slane %v6117_v41, 7  ;;  %v6696_v25 = vrot.slane %v6117_v41, 1 }
 0x744   : > { %v6118_v54 = vmul.f32 %v16791_v52, %v5950_v46  ;;  %v5904_v35 = vadd.f32 %v16330_v30, %v5769_v55  ;;  %v5771_v44 = vpop.f32.mrb[147].mxu0  ;;  %6435 = vmatmul.mubr.f32.gmra.mrb[142].mxu1 %v6116_v58  ;;  %v16797_v53 = vsel %vm818_vm1, %v6162_v23, %v6164_v20  ;;  %v16801_v7 = vsel %vm1673_vm2, %v6693_v50, %v6695_v36  ;;  %v16814_v50 = vpop.permute.xlu1 %6053 }
 0x745   : > { %18808 = vst [vmem:[#allocation67_spill] sm:$0xff] %v16801_v7  ;;  %v6119_v57 = vmul.f32 %v16791_v52, %v5951_v21  ;;  %v5905_v19 = vadd.f32 %v16332_v28, %v5771_v44  ;;  %12080 = vmatpush1.bf16.msra.mxu1 %v12079_v18  ;;  %v16807_v41 = vsel %vm818_vm1, %v6163_v27, %v6165_v0  ;;  %18810 = vst [vmem:[#allocation69_spill] sm:$0xff] %v16814_v50  ;;  %v16836_v40 = vpop.permute.xlu0 %6058 }
 0x746   : > { %v5952_v46 = vmax.f32 %v5904_v35, 0.0  ;;  %12081 = vmatprep.subr.bf16.mxu1 %v18760_v61  ;;  %v6166_v58 = vrot.slane %v6118_v54, 7  ;;  %v16812_v23 = vsel %vm1673_vm2, %v6694_v42, %v6696_v25  ;;  %v6697_v55 = vrot.slane %v6118_v54, 1  ;;  %18813 = vst [vmem:[#allocation72_spill] sm:$0xff] %v16836_v40 }
 0x747   : > { %18809 = vst [vmem:[#allocation68_spill] sm:$0xff] %v16812_v23  ;;  %v5953_v7 = vmax.f32 %v5905_v19, 0.0  ;;  %v5775_v21 = vpop.f32.mrb[148].mxu0  ;;  %6439 = vmatprep.mubr.f32.mxu1 %v6119_v57  ;;  %v6167_v44 = vrot.slane %v6119_v57, 7  ;;  %v6698_v18 = vrot.slane %v6119_v57, 1 }
 0x748   : > { %v6120_v52 = vmul.f32 %v16814_v50, %v5952_v46  ;;  %v5906_v27 = vadd.f32 %v16330_v30, %v5775_v21  ;;  %v5777_v35 = vpop.f32.mrb[149].mxu0  ;;  %6440 = vmatmul.mubr.f32.gmra.mrb[144].mxu1 %v6118_v54  ;;  %v16820_v63 = vsel %vm818_vm1, %v6164_v20, %v6166_v58  ;;  %v16824_v42 = vsel %vm1673_vm2, %v6695_v36, %v6697_v55  ;;  %v16858_v12 = vpop.permute.xlu1 %6063 }
 0x749   : > { %18811 = vst [vmem:[#allocation70_spill] sm:$0xff] %v16824_v42  ;;  %v6121_v19 = vmul.f32 %v16814_v50, %v5953_v7  ;;  %v5907_v23 = vadd.f32 %v16332_v28, %v5777_v35  ;;  %v16830_v57 = vsel %vm818_vm1, %v6165_v0, %v6167_v44  ;;  %v16834_v46 = vsel %vm1673_vm2, %v6696_v25, %v6698_v18  ;;  %v16880_v9 = vpop.permute.xlu0 %6068 }
 0x74a   : > { %18812 = vst [vmem:[#allocation71_spill] sm:$0xff] %v16834_v46  ;;  %v5954_v54 = vmax.f32 %v5906_v27, 0.0  ;;  %v6168_v21 = vrot.slane %v6120_v52, 7  ;;  %v6699_v20 = vrot.slane %v6120_v52, 1  ;;  %18816 = vst [vmem:[#allocation75_spill] sm:$0xff] %v16858_v12 }
 0x74b   : > { %v5955_v3 = vmax.f32 %v5907_v23, 0.0  ;;  %v5781_v36 = vpop.f32.mrb[150].mxu0  ;;  %6444 = vmatprep.mubr.f32.mxu1 %v6121_v19  ;;  %v6169_v42 = vrot.slane %v6121_v19, 7  ;;  %v6700_v7 = vrot.slane %v6121_v19, 1  ;;  %18819 = vst [vmem:[#allocation78_spill] sm:$0xff] %v16880_v9 }
 0x74c   : > { %v6122_v35 = vmul.f32 %v16836_v40, %v5954_v54  ;;  %v5908_v50 = vadd.f32 %v16330_v30, %v5781_v36  ;;  %v5783_v0 = vpop.f32.mrb[151].mxu0  ;;  %6445 = vmatmul.mubr.f32.gmra.mrb[146].mxu1 %v6120_v52  ;;  %v16842_v25 = vsel %vm818_vm1, %v6166_v58, %v6168_v21  ;;  %v16846_v27 = vsel %vm1673_vm2, %v6697_v55, %v6699_v20  ;;  %v16902_v6 = vpop.permute.xlu1 %6073 }
 0x74d   : > { %18814 = vst [vmem:[#allocation73_spill] sm:$0xff] %v16846_v27  ;;  %v6123_v23 = vmul.f32 %v16836_v40, %v5955_v3  ;;  %v5909_v46 = vadd.f32 %v16332_v28, %v5783_v0  ;;  %v16852_v19 = vsel %vm818_vm1, %v6167_v44, %v6169_v42  ;;  %v16856_v54 = vsel %vm1673_vm2, %v6698_v18, %v6700_v7 }
 0x74e   : > { %18815 = vst [vmem:[#allocation74_spill] sm:$0xff] %v16856_v54  ;;  %v5956_v52 = vmax.f32 %v5908_v50, 0.0  ;;  %v6170_v36 = vrot.slane %v6122_v35, 7  ;;  %v6701_v58 = vrot.slane %v6122_v35, 1  ;;  %18824 = vst [vmem:[#allocation83_spill] sm:$0xff] %v16902_v6 }
 0x74f   : > { %v5957_v15 = vmax.f32 %v5909_v46, 0.0  ;;  %v5787_v55 = vpop.f32.mrb[152].mxu0  ;;  %6449 = vmatprep.mubr.f32.mxu1 %v6123_v23  ;;  %v6171_v27 = vrot.slane %v6123_v23, 7  ;;  %v6702_v3 = vrot.slane %v6123_v23, 1 }
 0x750   : > { %v6124_v0 = vmul.f32 %v16858_v12, %v5956_v52  ;;  %v5910_v40 = vadd.f32 %v16330_v30, %v5787_v55  ;;  %v5789_v44 = vpop.f32.mrb[153].mxu0  ;;  %6450 = vmatmul.mubr.f32.gmra.mrb[148].mxu1 %v6122_v35  ;;  %v16864_v18 = vsel %vm818_vm1, %v6168_v21, %v6170_v36  ;;  %v16868_v50 = vsel %vm1673_vm2, %v6699_v20, %v6701_v58 }
 0x751   : > { %18817 = vst [vmem:[#allocation76_spill] sm:$0xff] %v16868_v50  ;;  %v6125_v46 = vmul.f32 %v16858_v12, %v5957_v15  ;;  %v5911_v54 = vadd.f32 %v16332_v28, %v5789_v44  ;;  %v16874_v23 = vsel %vm818_vm1, %v6169_v42, %v6171_v27  ;;  %v16878_v52 = vsel %vm1673_vm2, %v6700_v7, %v6702_v3 }
 0x752   : > { %18818 = vst [vmem:[#allocation77_spill] sm:$0xff] %v16878_v52  ;;  %v5958_v35 = vmax.f32 %v5910_v40, 0.0  ;;  %v6172_v55 = vrot.slane %v6124_v0, 7  ;;  %v6703_v21 = vrot.slane %v6124_v0, 1 }
 0x753   : > { %v5959_v60 = vmax.f32 %v5911_v54, 0.0  ;;  %v5793_v20 = vpop.f32.mrb[154].mxu0  ;;  %6454 = vmatprep.mubr.f32.mxu1 %v6125_v46  ;;  %v6173_v50 = vrot.slane %v6125_v46, 7  ;;  %v6704_v15 = vrot.slane %v6125_v46, 1 }
 0x754   : > { %v6126_v44 = vmul.f32 %v16880_v9, %v5958_v35  ;;  %v5912_v12 = vadd.f32 %v16330_v30, %v5793_v20  ;;  %v5795_v42 = vpop.f32.mrb[155].mxu0  ;;  %6455 = vmatmul.mubr.f32.gmra.mrb[150].mxu1 %v6124_v0  ;;  %v16886_v7 = vsel %vm818_vm1, %v6170_v36, %v6172_v55  ;;  %v16890_v40 = vsel %vm1673_vm2, %v6701_v58, %v6703_v21 }
 0x755   : > { %18820 = vst [vmem:[#allocation79_spill] sm:$0xff] %v16886_v7  ;;  %18821 = vst [vmem:[#allocation80_spill] sm:$0xff] %v16890_v40  ;;  %v6127_v54 = vmul.f32 %v16880_v9, %v5959_v60  ;;  %v5913_v52 = vadd.f32 %v16332_v28, %v5795_v42  ;;  %v16896_v46 = vsel %vm818_vm1, %v6171_v27, %v6173_v50 }
 0x756   : > { %18822 = vst [vmem:[#allocation81_spill] sm:$0xff] %v16896_v46  ;;  %v16900_v35 = vsel %vm1673_vm2, %v6702_v3, %v6704_v15  ;;  %v5960_v0 = vmax.f32 %v5912_v12, 0.0  ;;  %v6174_v20 = vrot.slane %v6126_v44, 7  ;;  %v6705_v36 = vrot.slane %v6126_v44, 1 }
 0x757   : > { %18823 = vst [vmem:[#allocation82_spill] sm:$0xff] %v16900_v35  ;;  %v5961_v7 = vmax.f32 %v5913_v52, 0.0  ;;  %v5799_v58 = vpop.f32.mrb[156].mxu0  ;;  %6459 = vmatprep.mubr.f32.mxu1 %v6127_v54  ;;  %v6175_v40 = vrot.slane %v6127_v54, 7  ;;  %v6706_v60 = vrot.slane %v6127_v54, 1 }
 0x758   : > { %v6128_v42 = vmul.f32 %v16902_v6, %v5960_v0  ;;  %v5914_v9 = vadd.f32 %v16330_v30, %v5799_v58  ;;  %v5801_v27 = vpop.f32.mrb[157].mxu0  ;;  %6460 = vmatmul.mubr.f32.gmra.mrb[152].mxu1 %v6126_v44  ;;  %v16908_v3 = vsel %vm818_vm1, %v6172_v55, %v6174_v20  ;;  %v16912_v12 = vsel %vm1673_vm2, %v6703_v21, %v6705_v36 }
 0x759   : > { %18825 = vst [vmem:[#allocation84_spill] sm:$0xff] %v16908_v3  ;;  %18826 = vst [vmem:[#allocation85_spill] sm:$0xff] %v16912_v12  ;;  %v6129_v52 = vmul.f32 %v16902_v6, %v5961_v7  ;;  %v5915_v35 = vadd.f32 %v16332_v28, %v5801_v27  ;;  %v16918_v54 = vsel %vm818_vm1, %v6173_v50, %v6175_v40  ;;  %v16924_v3 = vpop.permute.xlu0 %6078 }
 0x75a   : > { %v16922_v0 = vsel %vm1673_vm2, %v6704_v15, %v6706_v60  ;;  %v5962_v44 = vmax.f32 %v5914_v9, 0.0  ;;  %v6176_v58 = vrot.slane %v6128_v42, 7  ;;  %v6707_v55 = vrot.slane %v6128_v42, 1  ;;  %18828 = vst [vmem:[#allocation87_spill] sm:$0xff] %v16924_v3 }
 0x75b   : > { %18827 = vst [vmem:[#allocation86_spill] sm:$0xff] %v16922_v0  ;;  %v5963_v46 = vmax.f32 %v5915_v35, 0.0  ;;  %v5805_v21 = vpop.f32.mrb[158].mxu0  ;;  %6464 = vmatprep.mubr.f32.mxu1 %v6129_v52  ;;  %v6177_v12 = vrot.slane %v6129_v52, 7  ;;  %v6708_v7 = vrot.slane %v6129_v52, 1 }
 0x75c   : > { %v6130_v27 = vmul.f32 %v16924_v3, %v5962_v44  ;;  %v5916_v6 = vadd.f32 %v16330_v30, %v5805_v21  ;;  %v5807_v50 = vpop.f32.mrb[159].mxu0  ;;  %6465 = vmatmul.mubr.f32.gmra.mrb[154].mxu1 %v6128_v42  ;;  %v16930_v15 = vsel %vm818_vm1, %v6174_v20, %v6176_v58  ;;  %v16934_v9 = vsel %vm1673_vm2, %v6705_v36, %v6707_v55  ;;  %v16946_v21 = vpop.permute.xlu1 %6083 }
 0x75d   : > { %18829 = vst [vmem:[#allocation88_spill] sm:$0xff] %v16930_v15  ;;  %18830 = vst [vmem:[#allocation89_spill] sm:$0xff] %v16934_v9  ;;  %v6131_v35 = vmul.f32 %v16924_v3, %v5963_v46  ;;  %v5917_v0 = vadd.f32 %v16332_v28, %v5807_v50  ;;  %v16940_v52 = vsel %vm818_vm1, %v6175_v40, %v6177_v12 }
 0x75e   : > { %v16944_v30 = vsel %vm1673_vm2, %v6706_v60, %v6708_v7  ;;  %v5964_v42 = vmax.f32 %v5916_v6, 0.0  ;;  %v6178_v44 = vrot.slane %v6130_v27, 7  ;;  %v6709_v20 = vrot.slane %v6130_v27, 1  ;;  %18831 = vst [vmem:[#allocation90_spill] sm:$0xff] %v16946_v21 }
 0x75f   : > { %v5965_v15 = vmax.f32 %v5917_v0, 0.0  ;;  %6469 = vmatprep.mubr.f32.mxu1 %v6131_v35  ;;  %v6179_v36 = vrot.slane %v6131_v35, 7  ;;  %v6710_v9 = vrot.slane %v6131_v35, 1 }
 0x760   : > { %v16949_v46 = vmul.f32 %v16946_v21, %v5964_v42  ;;  %6470 = vmatmul.mubr.f32.gmra.mrb[156].mxu1 %v6130_v27  ;;  %v16953_v28 = vsel %vm818_vm1, %v6176_v58, %v6178_v44  ;;  %v16957_v40 = vsel %vm1673_vm2, %v6707_v55, %v6709_v20  ;;  %v9930_v58 = vld [vmem:[%s18473_s8 + $0x200] sm:$0xff]  ;;  %v9931_v55 = vld [vmem:[%s18473_s8 + $0x208] sm:$0xff] }
 0x761   : > { %18832 = vst [vmem:[#allocation91_spill] sm:$0xff] %v16957_v40  ;;  %v16960_v6 = vmul.f32 %v16946_v21, %v5965_v15  ;;  %v16964_v60 = vsel %vm818_vm1, %v6177_v12, %v6179_v36  ;;  %v16968_v0 = vsel %vm1673_vm2, %v6708_v7, %v6710_v9  ;;  %v18834_v7 = vrot.slane %v16350_v37, 7 }
 0x762   : > { %18833 = vst [vmem:[#allocation92_spill] sm:$0xff] %v16968_v0  ;;  %v6180_v27 = vrot.slane %v16949_v46, 7  ;;  %v6711_v50 = vrot.slane %v16949_v46, 1  ;;  %v18835_v21 = vrot.slane %v16346_v45, 7  ;;  %v12082_v40 = vpack.c.bf16 %v9931_v55, %v9930_v58  ;;  %v9939_v55 = vld [vmem:[%s18473_s8 + $0x248] sm:$0xff] }
 0x763   : > { %6474 = vmatprep.mubr.f32.mxu1 %v16960_v6  ;;  %v6181_v12 = vrot.slane %v16960_v6, 7 }
 0x764   : > { %6475 = vmatmul.mubr.f32.gmra.mrb[158].mxu1 %v16949_v46  ;;  %v6228_v35 = vsel %vm818_vm1, %v6180_v27, %v18834_v7  ;;  %v16988_v42 = vsel %vm818_vm1, %v6178_v44, %v6180_v27  ;;  %v16994_v3 = vsel %vm1673_vm2, %v6709_v20, %v6711_v50  ;;  %v18836_v7 = vrot.slane %v16960_v6, 1  ;;  %v9932_v20 = vld [vmem:[%s18473_s8 + $0x210] sm:$0xff]  ;;  %v9935_v27 = vld [vmem:[%s18473_s8 + $0x228] sm:$0xff] }
 0x765   : > { %v6229_v15 = vsel %vm818_vm1, %v6181_v12, %v18835_v21  ;;  %v17002_v0 = vsel %vm818_vm1, %v6179_v36, %v6181_v12  ;;  %v9933_v21 = vld [vmem:[%s18473_s8 + $0x218] sm:$0xff] }
 0x766   : > { %v17008_v44 = vsel %vm1673_vm2, %v6710_v9, %v18836_v7  ;;  %6544 = vmatprep.mubr.f32.mxu1 %v6229_v15  ;;  %v12085_v36 = vpack.c.bf16 %v9933_v21, %v9932_v20  ;;  %v9934_v9 = vld [vmem:[%s18473_s8 + $0x220] sm:$0xff]  ;;  %v9941_v12 = vld [vmem:[%s18473_s8 + $0x258] sm:$0xff]  ;;  %v9943_v15 = vld [vmem:[%s18473_s8 + $0x268] sm:$0xff] }
 0x767   : > { %v12088_v58 = vpack.c.bf16 %v9935_v27, %v9934_v9  ;;  %v9947_v7 = vld [vmem:[%s18473_s8 + $0x288] sm:$0xff]  ;;  %v9949_v20 = vld [vmem:[%s18473_s8 + $0x298] sm:$0xff] }
 0x768   : > { %6545 = vmatmul.mubr.f32.vlgmr.msra.gmra.mrb[160].mxu1 %v6228_v35  ;;  %v9945_v35 = vld [vmem:[%s18473_s8 + $0x278] sm:$0xff]  ;;  %v9951_v21 = vld [vmem:[%s18473_s8 + $0x2a8] sm:$0xff] }
 0x769   : > { %6549 = vmatprep.mubr.f32.mxu1 %v16411_v39  ;;  %12083 = vmatpush1.bf16.msra.mxu1 %v12082_v40  ;;  %v9936_v39 = vld [vmem:[%s18473_s8 + $0x230] sm:$0xff]  ;;  %v9937_v40 = vld [vmem:[%s18473_s8 + $0x238] sm:$0xff]  ;;  %v9955_v9 = vld [vmem:[%s18473_s8 + $0x2c8] sm:$0xff] }
 0x76a   : > { %12084 = vmatprep.subr.bf16.mxu1 %v18760_v61  ;;  %v9957_v27 = vld [vmem:[%s18473_s8 + $0x2d8] sm:$0xff] }
 0x76c   : > { %6550 = vmatmul.mubr.f32.gmra.mrb[162].mxu1 %v16401_v34  ;;  %v12091_v34 = vpack.c.bf16 %v9937_v40, %v9936_v39  ;;  %v9961_v39 = vld [vmem:[%s18473_s8 + $0x2f8] sm:$0xff]  ;;  %v18850_v40 = vld [vmem:[#allocation35_spill] sm:$0xff] }
 0x76d   : > { %6554 = vmatprep.mubr.f32.mxu1 %v16440_v33  ;;  %12086 = vmatpush1.bf16.msra.mxu1 %v12085_v36  ;;  %v9938_v33 = vld [vmem:[%s18473_s8 + $0x240] sm:$0xff]  ;;  %v9953_v36 = vld [vmem:[%s18473_s8 + $0x2b8] sm:$0xff] }
 0x76e   : > { %12087 = vmatprep.subr.bf16.mxu1 %v18760_v61 }
 0x770   : > { %6555 = vmatmul.mubr.f32.gmra.mrb[164].mxu1 %v16428_v49  ;;  %v12094_v49 = vpack.c.bf16 %v9939_v55, %v9938_v33  ;;  %v18852_v33 = vld [vmem:[#allocation38_spill] sm:$0xff] }
 0x771   : > { %6559 = vmatprep.mubr.f32.mxu1 %v16471_v29  ;;  %12089 = vmatpush1.bf16.msra.mxu1 %v12088_v58  ;;  %v9940_v29 = vld [vmem:[%s18473_s8 + $0x250] sm:$0xff]  ;;  %v9959_v58 = vld [vmem:[%s18473_s8 + $0x2e8] sm:$0xff] }
 0x772   : > { %12090 = vmatprep.subr.bf16.mxu1 %v18760_v61  ;;  %v18853_v55 = vld [vmem:[#allocation42_spill] sm:$0xff] }
 0x774   : > { %6560 = vmatmul.mubr.f32.gmra.mrb[166].mxu1 %v16461_v38  ;;  %v12097_v38 = vpack.c.bf16 %v9941_v12, %v9940_v29  ;;  %v18854_v12 = vld [vmem:[#allocation41_spill] sm:$0xff] }
 0x775   : > { %6564 = vmatprep.mubr.f32.mxu1 %v16500_v48  ;;  %12092 = vmatpush1.bf16.msra.mxu1 %v12091_v34  ;;  %v9942_v48 = vld [vmem:[%s18473_s8 + $0x260] sm:$0xff]  ;;  %v18851_v34 = vld [vmem:[#allocation39_spill] sm:$0xff] }
 0x776   : > { %12093 = vmatprep.subr.bf16.mxu1 %v18760_v61 }
 0x778   : > { %6565 = vmatmul.mubr.f32.gmra.mrb[168].mxu1 %v16490_v32  ;;  %v12100_v32 = vpack.c.bf16 %v9943_v15, %v9942_v48 }
 0x779   : > { %6569 = vmatprep.mubr.f32.mxu1 %v16529_v62  ;;  %12095 = vmatpush1.bf16.msra.mxu1 %v12094_v49  ;;  %v9944_v62 = vld [vmem:[%s18473_s8 + $0x270] sm:$0xff] }
 0x77a   : > { %12096 = vmatprep.subr.bf16.mxu1 %v18760_v61 }
 0x77c   : > { %6570 = vmatmul.mubr.f32.gmra.mrb[170].mxu1 %v16519_v43  ;;  %v12103_v43 = vpack.c.bf16 %v9945_v35, %v9944_v62  ;;  %v18857_v62 = vld [vmem:[#allocation22_spill] sm:$0xff] }
 0x77d   : > { %6574 = vmatprep.mubr.f32.mxu1 %v16558_v2  ;;  %12098 = vmatpush1.bf16.msra.mxu1 %v12097_v38  ;;  %v9946_v2 = vld [vmem:[%s18473_s8 + $0x280] sm:$0xff] }
 0x77e   : > { %12099 = vmatprep.subr.bf16.mxu1 %v18760_v61  ;;  %v18855_v38 = vld [vmem:[#allocation45_spill] sm:$0xff] }
 0x780   : > { %6575 = vmatmul.mubr.f32.gmra.mrb[172].mxu1 %v16548_v59  ;;  %v12106_v59 = vpack.c.bf16 %v9947_v7, %v9946_v2  ;;  %v18858_v2 = vld [vmem:[#allocation47_spill] sm:$0xff]  ;;  %v18859_v7 = vld [vmem:[#allocation50_spill] sm:$0xff] }
 0x781   : > { %6579 = vmatprep.mubr.f32.mxu1 %v16587_v51  ;;  %12101 = vmatpush1.bf16.msra.mxu1 %v12100_v32  ;;  %v9948_v51 = vld [vmem:[%s18473_s8 + $0x290] sm:$0xff] }
 0x782   : > { %12102 = vmatprep.subr.bf16.mxu1 %v18760_v61  ;;  %v18856_v32 = vld [vmem:[#allocation44_spill] sm:$0xff] }
 0x784   : > { %6580 = vmatmul.mubr.f32.gmra.mrb[174].mxu1 %v16577_v4  ;;  %v12109_v4 = vpack.c.bf16 %v9949_v20, %v9948_v51  ;;  %v18860_v20 = vld [vmem:[#allocation49_spill] sm:$0xff] }
 0x785   : > { %6584 = vmatprep.mubr.f32.mxu1 %v16616_v17  ;;  %12104 = vmatpush1.bf16.msra.mxu1 %v12103_v43  ;;  %v9950_v17 = vld [vmem:[%s18473_s8 + $0x2a0] sm:$0xff] }
 0x786   : > { %12105 = vmatprep.subr.bf16.mxu1 %v18760_v61 }
 0x788   : > { %6585 = vmatmul.mubr.f32.gmra.mrb[176].mxu1 %v16606_v13  ;;  %v12112_v13 = vpack.c.bf16 %v9951_v21, %v9950_v17 }
 0x789   : > { %6589 = vmatprep.mubr.f32.mxu1 %v16645_v47  ;;  %12107 = vmatpush1.bf16.msra.mxu1 %v12106_v59  ;;  %v9952_v47 = vld [vmem:[%s18473_s8 + $0x2b0] sm:$0xff] }
 0x78a   : > { %12108 = vmatprep.subr.bf16.mxu1 %v18760_v61 }
 0x78c   : > { %6590 = vmatmul.mubr.f32.gmra.mrb[178].mxu1 %v16635_v16  ;;  %v12115_v16 = vpack.c.bf16 %v9953_v36, %v9952_v47  ;;  %v18863_v47 = vld [vmem:[#allocation56_spill] sm:$0xff] }
 0x78d   : > { %6594 = vmatprep.mubr.f32.mxu1 %v16674_v24  ;;  %12110 = vmatpush1.bf16.msra.mxu1 %v12109_v4  ;;  %v9954_v24 = vld [vmem:[%s18473_s8 + $0x2c0] sm:$0xff] }
 0x78e   : > { %12111 = vmatprep.subr.bf16.mxu1 %v18760_v61  ;;  %v18861_v4 = vld [vmem:[#allocation53_spill] sm:$0xff] }
 0x790   : > { %6595 = vmatmul.mubr.f32.gmra.mrb[180].mxu1 %v16664_v22  ;;  %v12118_v22 = vpack.c.bf16 %v9955_v9, %v9954_v24  ;;  %v18864_v24 = vld [vmem:[#allocation55_spill] sm:$0xff] }
 0x791   : > { %6599 = vmatprep.mubr.f32.mxu1 %v16703_v26  ;;  %12113 = vmatpush1.bf16.msra.mxu1 %v12112_v13  ;;  %v9956_v26 = vld [vmem:[%s18473_s8 + $0x2d0] sm:$0xff] }
 0x792   : > { %12114 = vmatprep.subr.bf16.mxu1 %v18760_v61  ;;  %v18862_v13 = vld [vmem:[#allocation52_spill] sm:$0xff]  ;;  %v18865_v9 = vld [vmem:[#allocation59_spill] sm:$0xff] }
 0x794   : > { %6600 = vmatmul.mubr.f32.gmra.mrb[182].mxu1 %v16693_v56  ;;  %v12121_v56 = vpack.c.bf16 %v9957_v27, %v9956_v26  ;;  %v18866_v27 = vld [vmem:[#allocation58_spill] sm:$0xff] }
 0x795   : > { %6604 = vmatprep.mubr.f32.mxu1 %v16732_v5  ;;  %12116 = vmatpush1.bf16.msra.mxu1 %v12115_v16  ;;  %v9958_v5 = vld [vmem:[%s18473_s8 + $0x2e0] sm:$0xff] }
 0x796   : > { %12117 = vmatprep.subr.bf16.mxu1 %v18760_v61 }
 0x798   : > { %6605 = vmatmul.mubr.f32.gmra.mrb[184].mxu1 %v16722_v11  ;;  %v12124_v11 = vpack.c.bf16 %v9959_v58, %v9958_v5 }
 0x799   : > { %6609 = vmatprep.mubr.f32.mxu1 %v16761_v31  ;;  %12119 = vmatpush1.bf16.msra.mxu1 %v12118_v22  ;;  %v9960_v31 = vld [vmem:[%s18473_s8 + $0x2f0] sm:$0xff] }
 0x79a   : > { %12120 = vmatprep.subr.bf16.mxu1 %v18760_v61 }
 0x79c   : > { %6610 = vmatmul.mubr.f32.gmra.mrb[186].mxu1 %v16751_v8  ;;  %v12127_v8 = vpack.c.bf16 %v9961_v39, %v9960_v31  ;;  %v18869_v31 = vld [vmem:[#allocation65_spill] sm:$0xff] }
 0x79d   : > { %6614 = vmatprep.mubr.f32.mxu1 %v16784_v14  ;;  %12122 = vmatpush1.bf16.msra.mxu1 %v12121_v56  ;;  %v18838_v14 = vld [vmem:[#allocation79_spill] sm:$0xff]  ;;  %v18867_v56 = vld [vmem:[#allocation62_spill] sm:$0xff] }
 0x79e   : > { %12123 = vmatprep.subr.bf16.mxu1 %v18760_v61 }
 0x7a0   : > { %6615 = vmatmul.mubr.f32.gmra.mrb[188].mxu1 %v16774_v1  ;;  %v18837_v1 = vld [vmem:[#allocation81_spill] sm:$0xff] }
 0x7a1   : > { %6619 = vmatprep.mubr.f32.mxu1 %v16807_v41  ;;  %12125 = vmatpush1.bf16.msra.mxu1 %v12124_v11  ;;  %v18841_v41 = vld [vmem:[#allocation26_spill] sm:$0xff]  ;;  %v18868_v11 = vld [vmem:[#allocation61_spill] sm:$0xff] }
 0x7a2   : > { %12126 = vmatprep.subr.bf16.mxu1 %v18760_v61  ;;  %v18839_v61 = vld [vmem:[#allocation84_spill] sm:$0xff] }
 0x7a4   : > { %6620 = vmatmul.mubr.f32.gmra.mrb[190].mxu1 %v16797_v53  ;;  %v18840_v53 = vld [vmem:[#allocation88_spill] sm:$0xff] }
 0x7a5   : > { %6624 = vmatprep.mubr.f32.mxu1 %v16830_v57  ;;  %12128 = vmatpush1.bf16.msra.mxu1 %v12127_v8  ;;  %v18842_v57 = vrot.slane %v18841_v41, 1  ;;  %v18872_v41 = vld [vmem:[#allocation67_spill] sm:$0xff] }
 0x7a8   : > { %6625 = vmatmul.mubr.f32.gmra.mrb[192].mxu1 %v16820_v63  ;;  %v6666_v63 = vrot.slane %v16346_v45, 1  ;;  %v9978_v45 = vld [vmem:[%s18875_s22 + $0xf0] sm:$0xff] }
 0x7a9   : > { %6629 = vmatprep.mubr.f32.mxu1 %v16852_v19  ;;  %v6665_v19 = vrot.slane %v16350_v37, 1 }
 0x7ac   : > { %6630 = vmatmul.mubr.f32.gmra.mrb[194].mxu1 %v16842_v25  ;;  %v6758_v25 = vsel %vm1673_vm2, %v6666_v63, %v18842_v57  ;;  %v18873_v57 = vld [vmem:[#allocation71_spill] sm:$0xff] }
 0x7ad   : > { %6634 = vmatprep.mubr.f32.mxu1 %v16874_v23 }
 0x7b0   : > { %6635 = vmatmul.mubr.f32.gmra.mrb[196].mxu1 %v16864_v18  ;;  %v18843_v18 = vld [vmem:[#allocation25_spill] sm:$0xff] }
 0x7b1   : > { %6639 = vmatprep.mubr.f32.mxu1 %v18837_v1  ;;  %v18844_v23 = vrot.slane %v18843_v18, 1  ;;  %v18870_v1 = vld [vmem:[#allocation64_spill] sm:$0xff] }
 0x7b4   : > { %6640 = vmatmul.mubr.f32.gmra.mrb[198].mxu1 %v18838_v14  ;;  %v18871_v14 = vld [vmem:[#allocation68_spill] sm:$0xff] }
 0x7b5   : > { %6644 = vmatprep.mubr.f32.mxu1 %v16918_v54  ;;  %v6757_v54 = vsel %vm1673_vm2, %v6665_v19, %v18844_v23  ;;  %v18874_v23 = vld [vmem:[#allocation70_spill] sm:$0xff] }
 0x7b8   : > { %6645 = vmatmul.mubr.f32.gmra.mrb[200].mxu1 %v18839_v61 }
 0x7b9   : > { %6649 = vmatprep.mubr.f32.mxu1 %v16940_v52  ;;  %v18845_v52 = vld [vmem:[#allocation30_spill] sm:$0xff] }
 0x7bc   : > { %6650 = vmatmul.mubr.f32.gmra.mrb[202].mxu1 %v18840_v53 }
 0x7bd   : > { %6654 = vmatprep.mubr.f32.mxu1 %v16964_v60  ;;  %v18847_v60 = vld [vmem:[#allocation33_spill] sm:$0xff] }
 0x7c0   : > { %6655 = vmatmul.mubr.f32.gmra.mrb[204].mxu1 %v16953_v28  ;;  %v18846_v28 = vld [vmem:[#allocation29_spill] sm:$0xff] }
 0x7c1   : > { %6659 = vmatprep.mubr.f32.mxu1 %v17002_v0  ;;  %v18848_v0 = vld [vmem:[#allocation32_spill] sm:$0xff] }
 0x7c4   : > { %6660 = vmatmul.mubr.f32.gmra.mrb[206].mxu1 %v16988_v42  ;;  %v18849_v42 = vld [vmem:[#allocation36_spill] sm:$0xff] }
 0x7c5   : > { %6858 = vmatprep.mubr.f32.mxu1 %v6758_v25 }
 0x7c8   : > { %6859 = vmatmul.mubr.f32.vlgmr.msra.gmra.mrb[208].mxu1 %v6757_v54  ;;  %v7058_v54 = vld [vmem:[%s18875_s22] sm:$0xff] }
 0x7c9   : > { %6863 = vmatprep.mubr.f32.mxu1 %v18845_v52  ;;  %v7059_v52 = vld [vmem:[%s18875_s22 + $0x8] sm:$0xff] }
 0x7cc   : > { %6864 = vmatmul.mubr.f32.gmra.mrb[210].mxu1 %v18846_v28  ;;  %v9964_v28 = vld [vmem:[%s18875_s22 + $0x80] sm:$0xff] }
 0x7cd   : > { %6868 = vmatprep.mubr.f32.mxu1 %v18847_v60  ;;  %v18876_v60 = vld [vmem:[#allocation74_spill] sm:$0xff] }
 0x7d0   : > { %6869 = vmatmul.mubr.f32.gmra.mrb[212].mxu1 %v18848_v0  ;;  %v12129_v0 = vpack.c.bf16 %v7059_v52, %v7058_v54  ;;  %v9972_v54 = vld [vmem:[%s18875_s22 + $0xc0] sm:$0xff] }
 0x7d1   : > { %6873 = vmatprep.mubr.f32.mxu1 %v18849_v42  ;;  %v9965_v42 = vld [vmem:[%s18875_s22 + $0x88] sm:$0xff] }
 0x7d2   : > { %12130 = vmatprep.subr.bf16.mxu0 %v12129_v0 }
 0x7d3   : > { %12132 = vmatpush3.bf16.msra.mxu0 %v12129_v0 }
 0x7d4   : > { %6874 = vmatmul.mubr.f32.gmra.mrb[214].mxu1 %v18850_v40  ;;  %v12161_v40 = vpack.c.bf16 %v9965_v42, %v9964_v28  ;;  %v9973_v28 = vld [vmem:[%s18875_s22 + $0xc8] sm:$0xff] }
 0x7d5   : > { %6878 = vmatprep.mubr.f32.mxu1 %v18851_v34 }
 0x7d6   : > { %12162 = vmatprep.subr.bf16.mxu1 %v12161_v40 }
 0x7d7   : > { %12164 = vmatpush3.bf16.msra.mxu1 %v12161_v40  ;;  %v18884_v40 = vld [vmem:[#allocation89_spill] sm:$0xff] }
 0x7d8   : > { %6879 = vmatmul.mubr.f32.gmra.mrb[216].mxu1 %v18852_v33 }
 0x7d9   : > { %6883 = vmatprep.mubr.f32.mxu1 %v18853_v55  ;;  %v18877_v55 = vld [vmem:[#allocation73_spill] sm:$0xff] }
 0x7db   : > { %v17184_v49 = vpop.f32.mrb[112].mxu1 }
 0x7dc   : > { %v6363_v29 = vpop.f32.mrb[113].mxu1  ;;  %6884 = vmatmul.mubr.f32.gmra.mrb[218].mxu1 %v18854_v12  ;;  %v7061_v12 = vld [vmem:[%s18875_s22 + $0x18] sm:$0xff] }
 0x7dd   : > { %6888 = vmatprep.mubr.f32.mxu1 %v18855_v38  ;;  %v7060_v29 = vld [vmem:[%s18875_s22 + $0x10] sm:$0xff] }
 0x7de   : > { %v9966_v38 = vld [vmem:[%s18875_s22 + $0x90] sm:$0xff] }
 0x7df   : > { %v17188_v48 = vpop.f32.mrb[114].mxu1 }
 0x7e0   : > { %v6368_v15 = vpop.f32.mrb[115].mxu1  ;;  %6889 = vmatmul.mubr.f32.gmra.mrb[220].mxu1 %v18856_v32  ;;  %v12133_v32 = vpack.c.bf16 %v7061_v12, %v7060_v29  ;;  %v18885_v29 = vld [vmem:[#allocation92_spill] sm:$0xff] }
 0x7e1   : > { %6893 = vmatprep.mubr.f32.mxu1 %v18857_v62  ;;  %v18878_v15 = vld [vmem:[#allocation77_spill] sm:$0xff] }
 0x7e2   : > { %v9967_v62 = vld [vmem:[%s18875_s22 + $0x98] sm:$0xff]  ;;  %12134 = vmatprep.subr.bf16.mxu0 %v12133_v32 }
 0x7e3   : > { %v17192_v35 = vpop.f32.mrb[116].mxu1  ;;  %12136 = vmatpush3.bf16.msra.mxu0 %v12133_v32 }
 0x7e4   : > { %v6373_v43 = vpop.f32.mrb[117].mxu1  ;;  %6894 = vmatmul.mubr.f32.gmra.mrb[222].mxu1 %v18858_v2 }
 0x7e5   : > { %6898 = vmatprep.mubr.f32.mxu1 %v18859_v7  ;;  %v12165_v43 = vpack.c.bf16 %v9967_v62, %v9966_v38  ;;  %v9975_v38 = vld [vmem:[%s18875_s22 + $0xd8] sm:$0xff] }
 0x7e7   : > { %v17196_v59 = vpop.f32.mrb[118].mxu1  ;;  %12166 = vmatprep.subr.bf16.mxu1 %v12165_v43 }
 0x7e8   : > { %v6378_v51 = vpop.f32.mrb[119].mxu1  ;;  %6899 = vmatmul.mubr.f32.gmra.mrb[224].mxu1 %v18860_v20  ;;  %v7062_v20 = vld [vmem:[%s18875_s22 + $0x20] sm:$0xff] }
 0x7e9   : > { %6903 = vmatprep.mubr.f32.mxu1 %v18861_v4  ;;  %v18879_v51 = vld [vmem:[#allocation76_spill] sm:$0xff]  ;;  %v7063_v4 = vld [vmem:[%s18875_s22 + $0x28] sm:$0xff]  ;;  %12168 = vmatpush3.bf16.msra.mxu1 %v12165_v43 }
 0x7ea   : > { %v18886_v43 = vld [vmem:[#allocation91_spill] sm:$0xff] }
 0x7eb   : > { %v17200_v17 = vpop.f32.mrb[120].mxu1 }
 0x7ec   : > { %v6383_v21 = vpop.f32.mrb[121].mxu1  ;;  %6904 = vmatmul.mubr.f32.gmra.mrb[226].mxu1 %v18862_v13  ;;  %v18880_v13 = vld [vmem:[#allocation82_spill] sm:$0xff] }
 0x7ed   : > { %6908 = vmatprep.mubr.f32.mxu1 %v18863_v47  ;;  %v9968_v21 = vld [vmem:[%s18875_s22 + $0xa0] sm:$0xff]  ;;  %v12137_v47 = vpack.c.bf16 %v7063_v4, %v7062_v20 }
 0x7ee   : > { %v9976_v20 = vld [vmem:[%s18875_s22 + $0xe0] sm:$0xff] }
 0x7ef   : > { %v17204_v36 = vpop.f32.mrb[122].mxu1  ;;  %12138 = vmatprep.subr.bf16.mxu0 %v12137_v47 }
 0x7f0   : > { %v6388_v16 = vpop.f32.mrb[123].mxu1  ;;  %6909 = vmatmul.mubr.f32.gmra.mrb[228].mxu1 %v18864_v24  ;;  %12140 = vmatpush3.bf16.msra.mxu0 %v12137_v47  ;;  %v18887_v47 = vrot.slane %v16960_v6, 1 }
 0x7f1   : > { %6913 = vmatprep.mubr.f32.mxu1 %v18865_v9  ;;  %v9969_v16 = vld [vmem:[%s18875_s22 + $0xa8] sm:$0xff] }
 0x7f2   : > { %v12169_v24 = vpack.c.bf16 %v9969_v16, %v9968_v21  ;;  %v6760_v16 = vsel %vm1673_vm2, %v18887_v47, %v6666_v63  ;;  %v6759_v63 = vsel %vm1673_vm2, %v6711_v50, %v6665_v19 }
 0x7f3   : > { %v17208_v22 = vpop.f32.mrb[124].mxu1 }
 0x7f4   : > { %v6393_v26 = vpop.f32.mrb[125].mxu1  ;;  %6914 = vmatmul.mubr.f32.gmra.mrb[230].mxu1 %v18866_v27  ;;  %v18881_v27 = vld [vmem:[#allocation80_spill] sm:$0xff]  ;;  %12170 = vmatprep.subr.bf16.mxu1 %v12169_v24 }
 0x7f5   : > { %6918 = vmatprep.mubr.f32.mxu1 %v18867_v56  ;;  %v7064_v56 = vld [vmem:[%s18875_s22 + $0x30] sm:$0xff]  ;;  %12172 = vmatpush3.bf16.msra.mxu1 %v12169_v24 }
 0x7f7   : > { %v17212_v5 = vpop.f32.mrb[126].mxu1 }
 0x7f8   : > { %v6398_v58 = vpop.f32.mrb[127].mxu1  ;;  %6919 = vmatmul.mubr.f32.gmra.mrb[232].mxu1 %v18868_v11  ;;  %v9970_v11 = vld [vmem:[%s18875_s22 + $0xb0] sm:$0xff] }
 0x7f9   : > { %6923 = vmatprep.mubr.f32.mxu1 %v18869_v31  ;;  %v7065_v58 = vld [vmem:[%s18875_s22 + $0x38] sm:$0xff]  ;;  %v18882_v31 = vld [vmem:[#allocation86_spill] sm:$0xff] }
 0x7fb   : > { %v17216_v39 = vpop.f32.mrb[128].mxu1 }
 0x7fc   : > { %v6403_v8 = vpop.f32.mrb[129].mxu1  ;;  %6924 = vmatmul.mubr.f32.gmra.mrb[234].mxu1 %v18870_v1  ;;  %v9971_v1 = vld [vmem:[%s18875_s22 + $0xb8] sm:$0xff] }
 0x7fd   : > { %6928 = vmatprep.mubr.f32.mxu1 %v18871_v14  ;;  %v12141_v8 = vpack.c.bf16 %v7065_v58, %v7064_v56  ;;  %v12173_v14 = vpack.c.bf16 %v9971_v1, %v9970_v11  ;;  %v9979_v56 = vld [vmem:[%s18875_s22 + $0xf8] sm:$0xff] }
 0x7fe   : > { %v12189_v11 = vpack.c.bf16 %v9979_v56, %v9978_v45 }
 0x7ff   : > { %v17220_v61 = vpop.f32.mrb[130].mxu1  ;;  %12142 = vmatprep.subr.bf16.mxu0 %v12141_v8  ;;  %12174 = vmatprep.subr.bf16.mxu1 %v12173_v14 }
 0x800   : > { %v6408_v53 = vpop.f32.mrb[131].mxu1  ;;  %6929 = vmatmul.mubr.f32.gmra.mrb[236].mxu1 %v18872_v41  ;;  %12144 = vmatpush3.bf16.msra.mxu0 %v12141_v8 }
 0x801   : > { %6933 = vmatprep.mubr.f32.mxu1 %v18873_v57  ;;  %v18883_v57 = vld [vmem:[#allocation85_spill] sm:$0xff]  ;;  %12176 = vmatpush3.bf16.msra.mxu1 %v12173_v14 }
 0x803   : > { %v17224_v25 = vpop.f32.mrb[132].mxu1 }
 0x804   : > { %v6413_v18 = vpop.f32.mrb[133].mxu1  ;;  %6934 = vmatmul.mubr.f32.gmra.mrb[238].mxu1 %v18874_v23  ;;  %v7067_v23 = vld [vmem:[%s18875_s22 + $0x48] sm:$0xff] }
 0x805   : > { %6938 = vmatprep.mubr.f32.mxu1 %v18876_v60  ;;  %v7066_v18 = vld [vmem:[%s18875_s22 + $0x40] sm:$0xff]  ;;  %v12177_v60 = vpack.c.bf16 %v9973_v28, %v9972_v54 }
 0x806   : > { %v12145_v52 = vpack.c.bf16 %v7067_v23, %v7066_v18 }
 0x807   : > { %v17240_v34 = vpop.f32.mrb[134].mxu1  ;;  %12178 = vmatprep.subr.bf16.mxu1 %v12177_v60 }
 0x808   : > { %v6418_v33 = vpop.f32.mrb[135].mxu1  ;;  %6939 = vmatmul.mubr.f32.gmra.mrb[240].mxu1 %v18877_v55  ;;  %12146 = vmatprep.subr.bf16.mxu0 %v12145_v52  ;;  %v9974_v55 = vld [vmem:[%s18875_s22 + $0xd0] sm:$0xff] }
 0x809   : > { %6943 = vmatprep.mubr.f32.mxu1 %v18878_v15  ;;  %v7068_v33 = vld [vmem:[%s18875_s22 + $0x50] sm:$0xff]  ;;  %12148 = vmatpush3.bf16.msra.mxu0 %v12145_v52  ;;  %v12181_v15 = vpack.c.bf16 %v9975_v38, %v9974_v55 }
 0x80a   : > { %12180 = vmatpush3.bf16.msra.mxu1 %v12177_v60 }
 0x80b   : > { %v17256_v2 = vpop.f32.mrb[136].mxu1  ;;  %12182 = vmatprep.subr.bf16.mxu1 %v12181_v15 }
 0x80c   : > { %v6423_v7 = vpop.f32.mrb[137].mxu1  ;;  %6944 = vmatmul.mubr.f32.gmra.mrb[242].mxu1 %v18879_v51  ;;  %v7071_v51 = vld [vmem:[%s18875_s22 + $0x68] sm:$0xff] }
 0x80d   : > { %6948 = vmatprep.mubr.f32.mxu1 %v18880_v13  ;;  %v7070_v7 = vld [vmem:[%s18875_s22 + $0x60] sm:$0xff] }
 0x80e   : > { %12184 = vmatpush3.bf16.msra.mxu1 %v12181_v15  ;;  %v12153_v21 = vpack.c.bf16 %v7071_v51, %v7070_v7 }
 0x80f   : > { %v17272_v9 = vpop.f32.mrb[138].mxu1 }
 0x810   : > { %v6428_v26 = vpop.f32.mrb[139].mxu1  ;;  %6949 = vmatmul.mubr.f32.gmra.mrb[244].mxu1 %v18881_v27 }
 0x811   : > { %6953 = vmatprep.mubr.f32.mxu1 %v18882_v31  ;;  %v7072_v26 = vld [vmem:[%s18875_s22 + $0x70] sm:$0xff] }
 0x813   : > { %v17288_v53 = vpop.f32.mrb[140].mxu1 }
 0x814   : > { %v6433_v41 = vpop.f32.mrb[141].mxu1  ;;  %6954 = vmatmul.mubr.f32.gmra.mrb[246].mxu1 %v18883_v57 }
 0x815   : > { %6958 = vmatprep.mubr.f32.mxu1 %v16944_v30  ;;  %v7069_v30 = vld [vmem:[%s18875_s22 + $0x58] sm:$0xff] }
 0x816   : > { %v12149_v12 = vpack.c.bf16 %v7069_v30, %v7068_v33 }
 0x817   : > { %v17304_v0 = vpop.f32.mrb[142].mxu1 }
 0x818   : > { %v6438_v42 = vpop.f32.mrb[143].mxu1  ;;  %6959 = vmatmul.mubr.f32.gmra.mrb[248].mxu1 %v18884_v40  ;;  %12150 = vmatprep.subr.bf16.mxu0 %v12149_v12 }
 0x819   : > { %6963 = vmatprep.mubr.f32.mxu1 %v18885_v29  ;;  %12152 = vmatpush3.bf16.msra.mxu0 %v12149_v12 }
 0x81a   : > { %12154 = vmatprep.subr.bf16.mxu0 %v12153_v21 }
 0x81b   : > { %v17320_v32 = vpop.f32.mrb[144].mxu1 }
 0x81c   : > { %v6443_v62 = vpop.f32.mrb[145].mxu1  ;;  %6964 = vmatmul.mubr.f32.gmra.mrb[250].mxu1 %v18886_v43 }
 0x81d   : > { %6968 = vmatprep.mubr.f32.mxu1 %v17008_v44  ;;  %v9977_v44 = vld [vmem:[%s18875_s22 + $0xe8] sm:$0xff]  ;;  %12156 = vmatpush3.bf16.msra.mxu0 %v12153_v21 }
 0x81e   : > { %v12185_v24 = vpack.c.bf16 %v9977_v44, %v9976_v20 }
 0x81f   : > { %v17333_v4 = vpop.f32.mrb[146].mxu1 }
 0x820   : > { %v6448_v13 = vpop.f32.mrb[147].mxu1  ;;  %6969 = vmatmul.mubr.f32.gmra.mrb[252].mxu1 %v16994_v3  ;;  %12186 = vmatprep.subr.bf16.mxu1 %v12185_v24  ;;  %v7073_v3 = vld [vmem:[%s18875_s22 + $0x78] sm:$0xff] }
 0x821   : > { %6973 = vmatprep.mubr.f32.mxu1 %v6760_v16  ;;  %12188 = vmatpush3.bf16.msra.mxu1 %v12185_v24  ;;  %v12157_v27 = vpack.c.bf16 %v7073_v3, %v7072_v26 }
 0x822   : > { %12190 = vmatprep.subr.bf16.mxu1 %v12189_v11 }
 0x823   : > { %v17354_v6 = vpop.f32.mrb[148].mxu1  ;;  %12158 = vmatprep.subr.bf16.mxu0 %v12157_v27 }
 0x824   : > { %v6453_v58 = vpop.f32.mrb[149].mxu1  ;;  %6974 = vmatmul.mubr.f32.gmra.mrb[254].mxu1 %v6759_v63  ;;  %12160 = vmatpush3.bf16.msra.mxu0 %v12157_v27 }
 0x825   : > { %12192 = vmatpush3.bf16.msra.mxu1 %v12189_v11 }
 0x827   : > { %v17365_v31 = vpop.f32.mrb[150].mxu1 }
 0x828   : > { %v6458_v37 = vpop.f32.mrb[151].mxu1 }
 0x82b   : > { %v17367_v46 = vpop.f32.mrb[152].mxu1 }
 0x82c   : > { %v6463_v8 = vpop.f32.mrb[153].mxu1 }
 0x82f   : > { %v17369_v50 = vpop.f32.mrb[154].mxu1 }
 0x830   : > { %v6468_v19 = vpop.f32.mrb[155].mxu1 }
 0x833   : > { %v17371_v1 = vpop.f32.mrb[156].mxu1 }
 0x834   : > { %v6473_v14 = vpop.f32.mrb[157].mxu1 }
 0x837   : > { %v17373_v41 = vpop.f32.mrb[158].mxu1 }
 0x838   : > { %v6478_v57 = vpop.f32.mrb[159].mxu1 }
 0x83b   : > { %v6546_v18 = vpop.f32.mrb[160].mxu1 }
 0x83c   : > { %v17376_v23 = vadd.f32 %v6546_v18, %v17184_v49  ;;  %v6548_v54 = vpop.f32.mrb[161].mxu1 }
 0x83f   : > { %v6551_v52 = vpop.f32.mrb[162].mxu1 }
 0x840   : > { %v17379_v28 = vadd.f32 %v6551_v52, %v17188_v48  ;;  %v6553_v60 = vpop.f32.mrb[163].mxu1 }
 0x843   : > { %v6556_v42 = vpop.f32.mrb[164].mxu1 }
 0x844   : > { %v17382_v40 = vadd.f32 %v6556_v42, %v17192_v35  ;;  %v6558_v33 = vpop.f32.mrb[165].mxu1 }
 0x847   : > { %v6561_v30 = vpop.f32.mrb[166].mxu1 }
 0x848   : > { %v17385_v55 = vadd.f32 %v6561_v30, %v17196_v59  ;;  %v6563_v29 = vpop.f32.mrb[167].mxu1 }
 0x84b   : > { %v6566_v12 = vpop.f32.mrb[168].mxu1 }
 0x84c   : > { %v17388_v49 = vadd.f32 %v6566_v12, %v17200_v17  ;;  %v6568_v38 = vpop.f32.mrb[169].mxu1 }
 0x84f   : > { %v6571_v15 = vpop.f32.mrb[170].mxu1 }
 0x850   : > { %v17391_v48 = vadd.f32 %v6571_v15, %v17204_v36  ;;  %v6573_v62 = vpop.f32.mrb[171].mxu1 }
 0x853   : > { %v6576_v43 = vpop.f32.mrb[172].mxu1 }
 0x854   : > { %v17394_v35 = vadd.f32 %v6576_v43, %v17208_v22  ;;  %v6578_v7 = vpop.f32.mrb[173].mxu1 }
 0x857   : > { %v6581_v51 = vpop.f32.mrb[174].mxu1 }
 0x858   : > { %v17397_v59 = vadd.f32 %v6581_v51, %v17212_v5  ;;  %v6583_v20 = vpop.f32.mrb[175].mxu1 }
 0x85b   : > { %v6586_v21 = vpop.f32.mrb[176].mxu1 }
 0x85c   : > { %v17400_v17 = vadd.f32 %v6586_v21, %v17216_v39  ;;  %v6588_v44 = vpop.f32.mrb[177].mxu1 }
 0x85d   : > { %v17457_v44 = vld [vmem:[#allocation12] ss:$0 sm:$0xff] }
 0x85f   : > { %v6591_v13 = vpop.f32.mrb[178].mxu1 }
 0x860   : > { %v17403_v36 = vadd.f32 %v6591_v13, %v17220_v61  ;;  %v6593_v47 = vpop.f32.mrb[179].mxu1 }
 0x863   : > { %v6596_v16 = vpop.f32.mrb[180].mxu1 }
 0x864   : > { %v17406_v22 = vadd.f32 %v6596_v16, %v17224_v25  ;;  %v6598_v24 = vpop.f32.mrb[181].mxu1 }
 0x867   : > { %v6601_v26 = vpop.f32.mrb[182].mxu1 }
 0x868   : > { %v17409_v5 = vadd.f32 %v6601_v26, %v17240_v34  ;;  %v6603_v3 = vpop.f32.mrb[183].mxu1  ;;  %v9982_v26 = vld [vmem:[%s18888_s10 + $0x50] sm:$0xff] }
 0x86b   : > { %v6606_v45 = vpop.f32.mrb[184].mxu1 }
 0x86c   : > { %v17412_v39 = vadd.f32 %v6606_v45, %v17256_v2  ;;  %v6608_v63 = vpop.f32.mrb[185].mxu1 }
 0x86f   : > { %v6611_v27 = vpop.f32.mrb[186].mxu1 }
 0x870   : > { %v17415_v61 = vadd.f32 %v6611_v27, %v17272_v9  ;;  %v6613_v56 = vpop.f32.mrb[187].mxu1  ;;  %v9980_v9 = vld [vmem:[%s18888_s10 + $0x40] sm:$0xff] }
 0x873   : > { %v6616_v58 = vpop.f32.mrb[188].mxu1 }
 0x874   : > { %v17418_v25 = vadd.f32 %v6616_v58, %v17288_v53  ;;  %v6618_v11 = vpop.f32.mrb[189].mxu1  ;;  %v9981_v53 = vld [vmem:[%s18888_s10 + $0x48] sm:$0xff] }
 0x875   : > { %v17432_v18 = vpack.c.bf16 %v9981_v53, %v9980_v9 }
 0x877   : > { %v6621_v37 = vpop.f32.mrb[190].mxu1  ;;  %12194 = vmatprep.subr.bf16.mxu0 %v17432_v18  ;;  %12289 = vmatprep.subr.bf16.mxu1 %v17432_v18 }
 0x878   : > { %v17421_v34 = vadd.f32 %v6621_v37, %v17304_v0  ;;  %v6623_v8 = vpop.f32.mrb[191].mxu1 }
 0x87b   : > { %v6626_v19 = vpop.f32.mrb[192].mxu1 }
 0x87c   : > { %v17424_v2 = vadd.f32 %v6626_v19, %v17320_v32  ;;  %v6628_v14 = vpop.f32.mrb[193].mxu1 }
 0x87f   : > { %v6631_v57 = vpop.f32.mrb[194].mxu1 }
 0x880   : > { %v17435_v0 = vadd.f32 %v6631_v57, %v17333_v4  ;;  %v6633_v54 = vpop.f32.mrb[195].mxu1 }
 0x883   : > { %v6636_v32 = vpop.f32.mrb[196].mxu1 }
 0x884   : > { %v17440_v52 = vadd.f32 %v6636_v32, %v17354_v6  ;;  %v6638_v60 = vpop.f32.mrb[197].mxu1 }
 0x887   : > { %v6641_v42 = vpop.f32.mrb[198].mxu1 }
 0x888   : > { %v17443_v33 = vadd.f32 %v6641_v42, %v17365_v31  ;;  %v6643_v30 = vpop.f32.mrb[199].mxu1 }
 0x88b   : > { %v6646_v29 = vpop.f32.mrb[200].mxu1 }
 0x88c   : > { %v17446_v12 = vadd.f32 %v6646_v29, %v17367_v46  ;;  %v6648_v4 = vpop.f32.mrb[201].mxu1 }
 0x88f   : > { %v6651_v38 = vpop.f32.mrb[202].mxu1 }
 0x890   : > { %v17449_v15 = vadd.f32 %v6651_v38, %v17369_v50  ;;  %v6653_v62 = vpop.f32.mrb[203].mxu1 }
 0x893   : > { %v6656_v43 = vpop.f32.mrb[204].mxu1 }
 0x894   : > { %v17452_v6 = vadd.f32 %v6656_v43, %v17371_v1  ;;  %v6658_v7 = vpop.f32.mrb[205].mxu1 }
 0x897   : > { %v6661_v51 = vpop.f32.mrb[206].mxu1 }
 0x898   : > { %v17455_v31 = vadd.f32 %v6661_v51, %v17373_v41  ;;  %v6663_v20 = vpop.f32.mrb[207].mxu1  ;;  %v9983_v41 = vld [vmem:[%s18888_s10 + $0x58] sm:$0xff] }
 0x899   : > { %v17470_v56 = vpack.c.bf16 %v9983_v41, %v9982_v26 }
 0x89b   : > { %v6860_v21 = vpop.f32.mrb[208].mxu1  ;;  %18889 = vst [vmem:[#allocation81_spill] sm:$0xff] %v17470_v56 }
 0x89c   : > { %v6979_v46 = vadd.f32 %v6860_v21, %v17376_v23  ;;  %v6862_v13 = vpop.f32.mrb[209].mxu1 }
 0x89e   : > { %v7010_v50 = vadd.f32 %v17457_v44, %v6979_v46 }
 0x89f   : > { %v6865_v47 = vpop.f32.mrb[210].mxu1 }
 0x8a0   : > { %v7034_v16 = vmax.f32 %v7010_v50, 0.0  ;;  %v6980_v24 = vadd.f32 %v6865_v47, %v17379_v28  ;;  %v6867_v1 = vpop.f32.mrb[211].mxu1 }
 0x8a2   : > { %v7011_v3 = vadd.f32 %v17457_v44, %v6980_v24  ;;  %11297 = vmatprep.mubr.f32.mxu0 %v7034_v16  ;;  %11365 = vmatprep.mubr.f32.mxu1 %v7034_v16 }
 0x8a3   : > { %v6870_v23 = vpop.f32.mrb[212].mxu1 }
 0x8a4   : > { %v7035_v45 = vmax.f32 %v7011_v3, 0.0  ;;  %v6981_v63 = vadd.f32 %v6870_v23, %v17382_v40  ;;  %v6872_v27 = vpop.f32.mrb[213].mxu1 }
 0x8a6   : > { %v7012_v28 = vadd.f32 %v17457_v44, %v6981_v63  ;;  %11298 = vmatmul.mubr.f32.vlgmr.msra.gmra.mrb[160].mxu0 %v7035_v45  ;;  %11366 = vmatmul.mubr.f32.vlgmr.msra.gmra.mrb[0].mxu1 %v7035_v45 }
 0x8a7   : > { %v6875_v58 = vpop.f32.mrb[214].mxu1  ;;  %12196 = vmatpush3.bf16.msra.mxu0 %v17432_v18  ;;  %12293 = vmatpush3.bf16.msra.mxu1 %v17432_v18 }
 0x8a8   : > { %v7036_v11 = vmax.f32 %v7012_v28, 0.0  ;;  %v6982_v37 = vadd.f32 %v6875_v58, %v17385_v55  ;;  %v6877_v8 = vpop.f32.mrb[215].mxu1  ;;  %12198 = vmatprep.subr.bf16.mxu0 %v17470_v56  ;;  %12290 = vmatprep.subr.bf16.mxu1 %v17470_v56 }
 0x8aa   : > { %v7013_v40 = vadd.f32 %v17457_v44, %v6982_v37  ;;  %11300 = vmatprep.mubr.f32.mxu0 %v7036_v11  ;;  %11368 = vmatprep.mubr.f32.mxu1 %v7036_v11 }
 0x8ab   : > { %v6880_v19 = vpop.f32.mrb[216].mxu1  ;;  %12200 = vmatpush3.bf16.msra.mxu0 %v17470_v56  ;;  %12294 = vmatpush3.bf16.msra.mxu1 %v17470_v56 }
 0x8ac   : > { %v7037_v14 = vmax.f32 %v7013_v40, 0.0  ;;  %v6983_v9 = vadd.f32 %v6880_v19, %v17388_v49  ;;  %v6882_v53 = vpop.f32.mrb[217].mxu1 }
 0x8ae   : > { %v7014_v55 = vadd.f32 %v17457_v44, %v6983_v9  ;;  %11301 = vmatmul.mubr.f32.gmra.mrb[162].mxu0 %v7037_v14  ;;  %11369 = vmatmul.mubr.f32.gmra.mrb[2].mxu1 %v7037_v14 }
 0x8af   : > { %v6885_v57 = vpop.f32.mrb[218].mxu1 }
 0x8b0   : > { %v7038_v54 = vmax.f32 %v7014_v55, 0.0  ;;  %v6984_v32 = vadd.f32 %v6885_v57, %v17391_v48  ;;  %v6887_v60 = vpop.f32.mrb[219].mxu1 }
 0x8b2   : > { %v7015_v42 = vadd.f32 %v17457_v44, %v6984_v32  ;;  %11303 = vmatprep.mubr.f32.mxu0 %v7038_v54  ;;  %11371 = vmatprep.mubr.f32.mxu1 %v7038_v54 }
 0x8b3   : > { %v6890_v30 = vpop.f32.mrb[220].mxu1 }
 0x8b4   : > { %v7039_v29 = vmax.f32 %v7015_v42, 0.0  ;;  %v6985_v4 = vadd.f32 %v6890_v30, %v17394_v35  ;;  %v6892_v38 = vpop.f32.mrb[221].mxu1 }
 0x8b6   : > { %v7016_v49 = vadd.f32 %v17457_v44, %v6985_v4  ;;  %11304 = vmatmul.mubr.f32.gmra.mrb[164].mxu0 %v7039_v29  ;;  %11372 = vmatmul.mubr.f32.gmra.mrb[4].mxu1 %v7039_v29 }
 0x8b7   : > { %v6895_v62 = vpop.f32.mrb[222].mxu1 }
 0x8b8   : > { %v7040_v43 = vmax.f32 %v7016_v49, 0.0  ;;  %v6986_v7 = vadd.f32 %v6895_v62, %v17397_v59  ;;  %v6897_v51 = vpop.f32.mrb[223].mxu1 }
 0x8ba   : > { %v7017_v48 = vadd.f32 %v17457_v44, %v6986_v7  ;;  %11306 = vmatprep.mubr.f32.mxu0 %v7040_v43  ;;  %11374 = vmatprep.mubr.f32.mxu1 %v7040_v43 }
 0x8bb   : > { %v6900_v20 = vpop.f32.mrb[224].mxu1 }
 0x8bc   : > { %v7041_v21 = vmax.f32 %v7017_v48, 0.0  ;;  %v6987_v46 = vadd.f32 %v6900_v20, %v17400_v17  ;;  %v6902_v13 = vpop.f32.mrb[225].mxu1 }
 0x8be   : > { %v7018_v35 = vadd.f32 %v17457_v44, %v6987_v46  ;;  %11307 = vmatmul.mubr.f32.gmra.mrb[166].mxu0 %v7041_v21  ;;  %11375 = vmatmul.mubr.f32.gmra.mrb[6].mxu1 %v7041_v21 }
 0x8bf   : > { %v6905_v50 = vpop.f32.mrb[226].mxu1 }
 0x8c0   : > { %v7042_v47 = vmax.f32 %v7018_v35, 0.0  ;;  %v6988_v16 = vadd.f32 %v6905_v50, %v17403_v36  ;;  %v6907_v24 = vpop.f32.mrb[227].mxu1 }
 0x8c2   : > { %v7019_v59 = vadd.f32 %v17457_v44, %v6988_v16  ;;  %11309 = vmatprep.mubr.f32.mxu0 %v7042_v47  ;;  %11377 = vmatprep.mubr.f32.mxu1 %v7042_v47 }
 0x8c3   : > { %v6910_v1 = vpop.f32.mrb[228].mxu1 }
 0x8c4   : > { %v7043_v26 = vmax.f32 %v7019_v59, 0.0  ;;  %v6989_v41 = vadd.f32 %v6910_v1, %v17406_v22  ;;  %v6912_v3 = vpop.f32.mrb[229].mxu1 }
 0x8c6   : > { %v7020_v17 = vadd.f32 %v17457_v44, %v6989_v41  ;;  %11310 = vmatmul.mubr.f32.gmra.mrb[168].mxu0 %v7043_v26  ;;  %11378 = vmatmul.mubr.f32.gmra.mrb[8].mxu1 %v7043_v26 }
 0x8c7   : > { %v6915_v23 = vpop.f32.mrb[230].mxu1 }
 0x8c8   : > { %v7044_v45 = vmax.f32 %v7020_v17, 0.0  ;;  %v6990_v63 = vadd.f32 %v6915_v23, %v17409_v5  ;;  %v6917_v27 = vpop.f32.mrb[231].mxu1 }
 0x8ca   : > { %v7021_v36 = vadd.f32 %v17457_v44, %v6990_v63  ;;  %11312 = vmatprep.mubr.f32.mxu0 %v7044_v45  ;;  %11380 = vmatprep.mubr.f32.mxu1 %v7044_v45 }
 0x8cb   : > { %v6920_v28 = vpop.f32.mrb[232].mxu1 }
 0x8cc   : > { %v7045_v58 = vmax.f32 %v7021_v36, 0.0  ;;  %v6991_v11 = vadd.f32 %v6920_v28, %v17412_v39  ;;  %v6922_v37 = vpop.f32.mrb[233].mxu1 }
 0x8ce   : > { %v7022_v22 = vadd.f32 %v17457_v44, %v6991_v11  ;;  %11313 = vmatmul.mubr.f32.gmra.mrb[170].mxu0 %v7045_v58  ;;  %11381 = vmatmul.mubr.f32.gmra.mrb[10].mxu1 %v7045_v58  ;;  %v9984_v11 = vld [vmem:[%s18888_s10 + $0x60] sm:$0xff] }
 0x8cf   : > { %v6925_v8 = vpop.f32.mrb[234].mxu1 }
 0x8d0   : > { %v7046_v40 = vmax.f32 %v7022_v22, 0.0  ;;  %v6992_v19 = vadd.f32 %v6925_v8, %v17415_v61  ;;  %v6927_v14 = vpop.f32.mrb[235].mxu1 }
 0x8d2   : > { %v7023_v5 = vadd.f32 %v17457_v44, %v6992_v19  ;;  %11315 = vmatprep.mubr.f32.mxu0 %v7046_v40  ;;  %11383 = vmatprep.mubr.f32.mxu1 %v7046_v40  ;;  %v7612_v40 = vld [vmem:[%s18888_s10] sm:$0xff]  ;;  %v7613_v19 = vld [vmem:[%s18888_s10 + $0x8] sm:$0xff] }
 0x8d3   : > { %v6930_v9 = vpop.f32.mrb[236].mxu1  ;;  %v17551_v14 = vpack.c.bf16 %v7613_v19, %v7612_v40 }
 0x8d4   : > { %v7047_v53 = vmax.f32 %v7023_v5, 0.0  ;;  %v6993_v55 = vadd.f32 %v6930_v9, %v17418_v25  ;;  %v6932_v57 = vpop.f32.mrb[237].mxu1  ;;  %v17555_v5 = vld [vmem:[#allocation13] ss:$0 sm:$0xff] }
 0x8d6   : > { %v7024_v39 = vadd.f32 %v17457_v44, %v6993_v55  ;;  %11316 = vmatmul.mubr.f32.gmra.mrb[172].mxu0 %v7047_v53  ;;  %11384 = vmatmul.mubr.f32.gmra.mrb[12].mxu1 %v7047_v53 }
 0x8d7   : > { %v6935_v54 = vpop.f32.mrb[238].mxu1 }
 0x8d8   : > { %v7048_v32 = vmax.f32 %v7024_v39, 0.0  ;;  %v6994_v60 = vadd.f32 %v6935_v54, %v17421_v34  ;;  %v6937_v42 = vpop.f32.mrb[239].mxu1 }
 0x8d9   : > { %v7614_v42 = vld [vmem:[%s18888_s10 + $0x10] sm:$0xff] }
 0x8da   : > { %v7025_v61 = vadd.f32 %v17457_v44, %v6994_v60  ;;  %11318 = vmatprep.mubr.f32.mxu0 %v7048_v32  ;;  %11386 = vmatprep.mubr.f32.mxu1 %v7048_v32 }
 0x8db   : > { %v6940_v30 = vpop.f32.mrb[240].mxu1 }
 0x8dc   : > { %v7049_v29 = vmax.f32 %v7025_v61, 0.0  ;;  %v6995_v4 = vadd.f32 %v6940_v30, %v17424_v2  ;;  %v6942_v38 = vpop.f32.mrb[241].mxu1  ;;  %v7615_v61 = vld [vmem:[%s18888_s10 + $0x18] sm:$0xff]  ;;  %v18892_v30 = vld [vmem:[#allocation23_spill] sm:$0xff] }
 0x8de   : > { %v7026_v25 = vadd.f32 %v17457_v44, %v6995_v4  ;;  %11319 = vmatmul.mubr.f32.gmra.mrb[174].mxu0 %v7049_v29  ;;  %11387 = vmatmul.mubr.f32.gmra.mrb[14].mxu1 %v7049_v29  ;;  %v18893_v4 = vld [vmem:[#allocation24_spill] sm:$0xff] }
 0x8df   : > { %v6945_v49 = vpop.f32.mrb[242].mxu1 }
 0x8e0   : > { %v7050_v62 = vmax.f32 %v7026_v25, 0.0  ;;  %v6996_v43 = vadd.f32 %v6945_v49, %v17435_v0  ;;  %v6947_v7 = vpop.f32.mrb[243].mxu1  ;;  %v17575_v25 = vpack.c.bf16 %v7615_v61, %v7614_v42  ;;  %v18899_v42 = vld [vmem:[#allocation40_spill] sm:$0xff] }
 0x8e1   : > { %v7617_v7 = vld [vmem:[%s18888_s10 + $0x28] sm:$0xff] }
 0x8e2   : > { %v7027_v34 = vadd.f32 %v17457_v44, %v6996_v43  ;;  %11321 = vmatprep.mubr.f32.mxu0 %v7050_v62  ;;  %11389 = vmatprep.mubr.f32.mxu1 %v7050_v62  ;;  %v7616_v43 = vld [vmem:[%s18888_s10 + $0x20] sm:$0xff] }
 0x8e3   : > { %v6950_v51 = vpop.f32.mrb[244].mxu1 }
 0x8e4   : > { %v7051_v48 = vmax.f32 %v7027_v34, 0.0  ;;  %v6997_v20 = vadd.f32 %v6950_v51, %v17440_v52  ;;  %v6952_v21 = vpop.f32.mrb[245].mxu1 }
 0x8e6   : > { %v7028_v2 = vadd.f32 %v17457_v44, %v6997_v20  ;;  %11322 = vmatmul.mubr.f32.gmra.mrb[176].mxu0 %v7051_v48  ;;  %11390 = vmatmul.mubr.f32.gmra.mrb[16].mxu1 %v7051_v48 }
 0x8e7   : > { %v6955_v46 = vpop.f32.mrb[246].mxu1 }
 0x8e8   : > { %v7052_v13 = vmax.f32 %v7028_v2, 0.0  ;;  %v6998_v35 = vadd.f32 %v6955_v46, %v17443_v33  ;;  %v6957_v50 = vpop.f32.mrb[247].mxu1  ;;  %v17595_v2 = vpack.c.bf16 %v7617_v7, %v7616_v43 }
 0x8e9   : > { %v18894_v50 = vld [vmem:[#allocation27_spill] sm:$0xff] }
 0x8ea   : > { %v7029_v0 = vadd.f32 %v17457_v44, %v6998_v35  ;;  %11324 = vmatprep.mubr.f32.mxu0 %v7052_v13  ;;  %11392 = vmatprep.mubr.f32.mxu1 %v7052_v13  ;;  %v7618_v13 = vld [vmem:[%s18888_s10 + $0x30] sm:$0xff]  ;;  %v7619_v35 = vld [vmem:[%s18888_s10 + $0x38] sm:$0xff] }
 0x8eb   : > { %v6960_v47 = vpop.f32.mrb[248].mxu1 }
 0x8ec   : > { %v7053_v16 = vmax.f32 %v7029_v0, 0.0  ;;  %v6999_v24 = vadd.f32 %v6960_v47, %v17446_v12  ;;  %v6962_v59 = vpop.f32.mrb[249].mxu1  ;;  %v18895_v47 = vld [vmem:[#allocation28_spill] sm:$0xff] }
 0x8ee   : > { %v7030_v52 = vadd.f32 %v17457_v44, %v6999_v24  ;;  %11325 = vmatmul.mubr.f32.gmra.mrb[178].mxu0 %v7053_v16  ;;  %11393 = vmatmul.mubr.f32.gmra.mrb[18].mxu1 %v7053_v16  ;;  %v17611_v24 = vpack.c.bf16 %v7619_v35, %v7618_v13 }
 0x8ef   : > { %v6965_v1 = vpop.f32.mrb[250].mxu1 }
 0x8f0   : > { %v7054_v26 = vmax.f32 %v7030_v52, 0.0  ;;  %v7000_v41 = vadd.f32 %v6965_v1, %v17449_v15  ;;  %v6967_v3 = vpop.f32.mrb[251].mxu1  ;;  %v10036_v1 = vld [vmem:[%s18888_s10 + $0x80] sm:$0xff] }
 0x8f2   : > { %v7031_v33 = vadd.f32 %v17457_v44, %v7000_v41  ;;  %11327 = vmatprep.mubr.f32.mxu0 %v7054_v26  ;;  %11395 = vmatprep.mubr.f32.mxu1 %v7054_v26  ;;  %v10037_v26 = vld [vmem:[%s18888_s10 + $0x88] sm:$0xff] }
 0x8f3   : > { %v6970_v17 = vpop.f32.mrb[252].mxu1 }
 0x8f4   : > { %v7055_v23 = vmax.f32 %v7031_v33, 0.0  ;;  %v7001_v45 = vadd.f32 %v6970_v17, %v17452_v6  ;;  %v6972_v63 = vpop.f32.mrb[253].mxu1  ;;  %v9985_v6 = vld [vmem:[%s18888_s10 + $0x68] sm:$0xff] }
 0x8f5   : > { %v17527_v37 = vpack.c.bf16 %v9985_v6, %v9984_v11 }
 0x8f6   : > { %v7032_v12 = vadd.f32 %v17457_v44, %v7001_v45  ;;  %11328 = vmatmul.mubr.f32.gmra.mrb[180].mxu0 %v7055_v23  ;;  %11396 = vmatmul.mubr.f32.gmra.mrb[20].mxu1 %v7055_v23  ;;  %v17631_v45 = vpack.c.bf16 %v10037_v26, %v10036_v1 }
 0x8f7   : > { %v6975_v27 = vpop.f32.mrb[254].mxu1  ;;  %18890 = vst [vmem:[#allocation79_spill] sm:$0xff] %v17527_v37  ;;  %12202 = vmatprep.subr.bf16.mxu0 %v17527_v37  ;;  %12291 = vmatprep.subr.bf16.mxu1 %v17527_v37 }
 0x8f8   : > { %v7056_v36 = vmax.f32 %v7032_v12, 0.0  ;;  %v7002_v28 = vadd.f32 %v6975_v27, %v17455_v31  ;;  %v6977_v58 = vpop.f32.mrb[255].mxu1  ;;  %v9986_v31 = vld [vmem:[%s18888_s10 + $0x70] sm:$0xff]  ;;  %12204 = vmatpush3.bf16.msra.mxu0 %v17527_v37  ;;  %12295 = vmatpush3.bf16.msra.mxu1 %v17527_v37 }
 0x8f9   : > { %v18896_v12 = vld [vmem:[#allocation31_spill] sm:$0xff] }
 0x8fa   : > { %v7033_v15 = vadd.f32 %v17457_v44, %v7002_v28  ;;  %11330 = vmatprep.mubr.f32.mxu0 %v7056_v36  ;;  %11398 = vmatprep.mubr.f32.mxu1 %v7056_v36  ;;  %v9987_v44 = vld [vmem:[%s18888_s10 + $0x78] sm:$0xff]  ;;  %v18897_v36 = vld [vmem:[#allocation34_spill] sm:$0xff] }
 0x8fb   : > { %v17538_v8 = vpack.c.bf16 %v9987_v44, %v9986_v31 }
 0x8fc   : > { %v7057_v22 = vmax.f32 %v7033_v15, 0.0 }
 0x8fd   : > { %18891 = vst [vmem:[#allocation84_spill] sm:$0xff] %v17538_v8  ;;  %12206 = vmatprep.subr.bf16.mxu0 %v17538_v8  ;;  %12292 = vmatprep.subr.bf16.mxu1 %v17538_v8 }
 0x8fe   : > { %11331 = vmatmul.mubr.f32.gmra.mrb[182].mxu0 %v7057_v22  ;;  %11399 = vmatmul.mubr.f32.gmra.mrb[22].mxu1 %v7057_v22 }
 0x8ff   : > { %12208 = vmatpush3.bf16.msra.mxu0 %v17538_v8  ;;  %12296 = vmatpush3.bf16.msra.mxu1 %v17538_v8  ;;  %v18914_v8 = vld [vmem:[#allocation72_spill] sm:$0xff] }
 0x900   : > { %12210 = vmatprep.subr.bf16.mxu0 %v17551_v14  ;;  %12258 = vmatprep.subr.bf16.mxu1 %v17551_v14 }
 0x979   : > { %v11299_v9 = vpop.f32.mrb[160].mxu0  ;;  %v17557_v53 = vpop.f32.mrb[0].mxu1 }
 0x97a   : > { %v7153_v55 = vadd.f32 %v11299_v9, %v17555_v5  ;;  %v7147_v57 = vpop.f32.mrb[161].mxu0  ;;  %v17560_v39 = vpop.f32.mrb[1].mxu1 }
 0x97b   : > { %v7148_v54 = vadd.f32 %v17555_v5, %v7147_v57 }
 0x97c   : > { %v7267_v32 = vmax.f32 %v7153_v55, 0.0 }
 0x97d   : > { %v7266_v60 = vmax.f32 %v7148_v54, 0.0  ;;  %v18898_v54 = vld [vmem:[#allocation37_spill] sm:$0xff] }
 0x97e   : > { %v17573_v38 = vmul.f32 %v7267_v32, %v18893_v4 }
 0x97f   : > { %v17570_v29 = vmul.f32 %v7266_v60, %v18892_v30 }
 0x981   : > { %v11302_v49 = vpop.f32.mrb[162].mxu0  ;;  %v17577_v62 = vpop.f32.mrb[2].mxu1  ;;  %11417 = vmatprep.mubr.msk.f32.mxu0 %vm2565_vm3, %v17570_v29 }
 0x982   : > { %v7163_v34 = vadd.f32 %v11302_v49, %v17555_v5  ;;  %v7157_v51 = vpop.f32.mrb[163].mxu0  ;;  %v17588_v48 = vpop.f32.mrb[3].mxu1  ;;  %11418 = vmatmul.mubr.msk.f32.vlgmr.msra.gmra.mrb[184].mxu0 %vm2565_vm3, %v17573_v38 }
 0x983   : > { %v7158_v20 = vadd.f32 %v17555_v5, %v7157_v51  ;;  %12212 = vmatpush3.bf16.msra.mxu0 %v17551_v14 }
 0x984   : > { %v7269_v21 = vmax.f32 %v7163_v34, 0.0  ;;  %12214 = vmatprep.subr.bf16.mxu0 %v17575_v25 }
 0x985   : > { %v7268_v46 = vmax.f32 %v7158_v20, 0.0 }
 0x986   : > { %v17608_v16 = vmul.f32 %v7269_v21, %v18895_v47 }
 0x987   : > { %v17604_v0 = vmul.f32 %v7268_v46, %v18894_v50  ;;  %12216 = vmatpush3.bf16.msra.mxu0 %v17575_v25 }
 0x988   : > { %12218 = vmatprep.subr.bf16.mxu0 %v17595_v2 }
 0x989   : > { %v11305_v59 = vpop.f32.mrb[164].mxu0  ;;  %v17613_v52 = vpop.f32.mrb[4].mxu1  ;;  %11420 = vmatprep.mubr.msk.f32.mxu0 %vm2565_vm3, %v17604_v0 }
 0x98a   : > { %v7173_v41 = vadd.f32 %v11305_v59, %v17555_v5  ;;  %v7167_v3 = vpop.f32.mrb[165].mxu0  ;;  %v17624_v33 = vpop.f32.mrb[5].mxu1  ;;  %11421 = vmatmul.mubr.msk.f32.gmra.mrb[186].mxu0 %vm2565_vm3, %v17608_v16 }
 0x98b   : > { %v7168_v17 = vadd.f32 %v17555_v5, %v7167_v3  ;;  %12220 = vmatpush3.bf16.msra.mxu0 %v17595_v2 }
 0x98c   : > { %v7271_v23 = vmax.f32 %v7173_v41, 0.0  ;;  %12222 = vmatprep.subr.bf16.mxu0 %v17611_v24  ;;  %v18900_v41 = vld [vmem:[#allocation43_spill] sm:$0xff] }
 0x98d   : > { %v7270_v63 = vmax.f32 %v7168_v17, 0.0 }
 0x98e   : > { %v17638_v28 = vmul.f32 %v7271_v23, %v18897_v36  ;;  %v18901_v23 = vld [vmem:[#allocation46_spill] sm:$0xff] }
 0x98f   : > { %v17634_v27 = vmul.f32 %v7270_v63, %v18896_v12  ;;  %12224 = vmatpush3.bf16.msra.mxu0 %v17611_v24 }
 0x990   : > { %12226 = vmatprep.subr.bf16.mxu0 %v17631_v45 }
 0x991   : > { %v11308_v58 = vpop.f32.mrb[166].mxu0  ;;  %v11376_v15 = vpop.f32.mrb[6].mxu1  ;;  %11423 = vmatprep.mubr.msk.f32.mxu0 %vm2565_vm3, %v17634_v27 }
 0x992   : > { %v7183_v11 = vadd.f32 %v11308_v58, %v17555_v5  ;;  %v7433_v6 = vadd.f32 %v11376_v15, %v17555_v5  ;;  %v7177_v22 = vpop.f32.mrb[167].mxu0  ;;  %v7427_v31 = vpop.f32.mrb[7].mxu1  ;;  %11424 = vmatmul.mubr.msk.f32.gmra.mrb[188].mxu0 %vm2565_vm3, %v17638_v28 }
 0x993   : > { %v7178_v44 = vadd.f32 %v17555_v5, %v7177_v22  ;;  %v7428_v40 = vadd.f32 %v17555_v5, %v7427_v31 }
 0x994   : > { %v7273_v19 = vmax.f32 %v7183_v11, 0.0  ;;  %v7523_v9 = vmax.f32 %v7433_v6, 0.0 }
 0x995   : > { %v7272_v55 = vmax.f32 %v7178_v44, 0.0  ;;  %v7522_v57 = vmax.f32 %v7428_v40, 0.0 }
 0x996   : > { %v17656_v61 = vmul.f32 %v7273_v19, %v18899_v42  ;;  %v17659_v49 = vmul.f32 %v7523_v9, %v18899_v42 }
 0x997   : > { %v17650_v32 = vmul.f32 %v7272_v55, %v18898_v54  ;;  %v17653_v60 = vmul.f32 %v7522_v57, %v18898_v54  ;;  %v18902_v57 = vld [vmem:[#allocation48_spill] sm:$0xff] }
 0x999   : > { %v11311_v43 = vpop.f32.mrb[168].mxu0  ;;  %v11379_v7 = vpop.f32.mrb[8].mxu1  ;;  %11426 = vmatprep.mubr.msk.f32.mxu0 %vm2565_vm3, %v17650_v32  ;;  %11582 = vmatprep.mubr.msk.f32.mxu1 %vm2565_vm3, %v17653_v60 }
 0x99a   : > { %v7193_v34 = vadd.f32 %v11311_v43, %v17555_v5  ;;  %v7443_v51 = vadd.f32 %v11379_v7, %v17555_v5  ;;  %v7187_v20 = vpop.f32.mrb[169].mxu0  ;;  %v7437_v21 = vpop.f32.mrb[9].mxu1  ;;  %11427 = vmatmul.mubr.msk.f32.gmra.mrb[190].mxu0 %vm2565_vm3, %v17656_v61  ;;  %11583 = vmatmul.mubr.msk.f32.vlgmr.msra.gmra.mrb[24].mxu1 %vm2565_vm3, %v17659_v49  ;;  %v18903_v43 = vld [vmem:[#allocation51_spill] sm:$0xff] }
 0x99b   : > { %v7188_v46 = vadd.f32 %v17555_v5, %v7187_v20  ;;  %v7438_v13 = vadd.f32 %v17555_v5, %v7437_v21  ;;  %12260 = vmatpush3.bf16.msra.mxu1 %v17551_v14 }
 0x99c   : > { %v7275_v35 = vmax.f32 %v7193_v34, 0.0  ;;  %v7525_v59 = vmax.f32 %v7443_v51, 0.0  ;;  %12262 = vmatprep.subr.bf16.mxu1 %v17575_v25 }
 0x99d   : > { %v7274_v1 = vmax.f32 %v7188_v46, 0.0  ;;  %v7524_v26 = vmax.f32 %v7438_v13, 0.0 }
 0x99e   : > { %v17683_v63 = vmul.f32 %v7275_v35, %v18901_v23  ;;  %v17686_v58 = vmul.f32 %v7525_v59, %v18901_v23  ;;  %v18904_v23 = vld [vmem:[#allocation54_spill] sm:$0xff] }
 0x99f   : > { %v17676_v3 = vmul.f32 %v7274_v1, %v18900_v41  ;;  %v17679_v17 = vmul.f32 %v7524_v26, %v18900_v41  ;;  %12264 = vmatpush3.bf16.msra.mxu1 %v17575_v25 }
 0x9a0   : > { %12266 = vmatprep.subr.bf16.mxu1 %v17595_v2 }
 0x9a1   : > { %v11314_v14 = vpop.f32.mrb[170].mxu0  ;;  %v11382_v15 = vpop.f32.mrb[10].mxu1  ;;  %11429 = vmatprep.mubr.msk.f32.mxu0 %vm2565_vm3, %v17676_v3  ;;  %11585 = vmatprep.mubr.msk.f32.mxu1 %vm2565_vm3, %v17679_v17 }
 0x9a2   : > { %v7203_v11 = vadd.f32 %v11314_v14, %v17555_v5  ;;  %v7453_v25 = vadd.f32 %v11382_v15, %v17555_v5  ;;  %v7197_v6 = vpop.f32.mrb[171].mxu0  ;;  %v7447_v22 = vpop.f32.mrb[11].mxu1  ;;  %11430 = vmatmul.mubr.msk.f32.gmra.mrb[192].mxu0 %vm2565_vm3, %v17683_v63  ;;  %11586 = vmatmul.mubr.msk.f32.gmra.mrb[26].mxu1 %vm2565_vm3, %v17686_v58 }
 0x9a3   : > { %v7198_v31 = vadd.f32 %v17555_v5, %v7197_v6  ;;  %v7448_v44 = vadd.f32 %v17555_v5, %v7447_v22  ;;  %12268 = vmatpush3.bf16.msra.mxu1 %v17595_v2 }
 0x9a4   : > { %v7277_v40 = vmax.f32 %v7203_v11, 0.0  ;;  %v7527_v19 = vmax.f32 %v7453_v25, 0.0  ;;  %12270 = vmatprep.subr.bf16.mxu1 %v17611_v24  ;;  %v18905_v11 = vld [vmem:[#allocation57_spill] sm:$0xff] }
 0x9a5   : > { %v7276_v9 = vmax.f32 %v7198_v31, 0.0  ;;  %v7526_v55 = vmax.f32 %v7448_v44, 0.0 }
 0x9a6   : > { %v17711_v7 = vmul.f32 %v7277_v40, %v18903_v43  ;;  %v17714_v34 = vmul.f32 %v7527_v19, %v18903_v43 }
 0x9a7   : > { %v17704_v54 = vmul.f32 %v7276_v9, %v18902_v57  ;;  %v17707_v42 = vmul.f32 %v7526_v55, %v18902_v57  ;;  %12272 = vmatpush3.bf16.msra.mxu1 %v17611_v24 }
 0x9a8   : > { %12274 = vmatprep.subr.bf16.mxu1 %v17631_v45 }
 0x9a9   : > { %v11317_v2 = vpop.f32.mrb[172].mxu0  ;;  %v11385_v51 = vpop.f32.mrb[12].mxu1  ;;  %11432 = vmatprep.mubr.msk.f32.mxu0 %vm2565_vm3, %v17704_v54  ;;  %11588 = vmatprep.mubr.msk.f32.mxu1 %vm2565_vm3, %v17707_v42 }
 0x9aa   : > { %v7213_v20 = vadd.f32 %v11317_v2, %v17555_v5  ;;  %v7463_v24 = vadd.f32 %v11385_v51, %v17555_v5  ;;  %v7207_v21 = vpop.f32.mrb[173].mxu0  ;;  %v7457_v46 = vpop.f32.mrb[13].mxu1  ;;  %11433 = vmatmul.mubr.msk.f32.gmra.mrb[194].mxu0 %vm2565_vm3, %v17711_v7  ;;  %11589 = vmatmul.mubr.msk.f32.gmra.mrb[28].mxu1 %vm2565_vm3, %v17714_v34 }
 0x9ab   : > { %v7208_v13 = vadd.f32 %v17555_v5, %v7207_v21  ;;  %v7458_v35 = vadd.f32 %v17555_v5, %v7457_v46 }
 0x9ac   : > { %v7279_v59 = vmax.f32 %v7213_v20, 0.0  ;;  %v7529_v1 = vmax.f32 %v7463_v24, 0.0  ;;  %v18906_v24 = vld [vmem:[#allocation60_spill] sm:$0xff] }
 0x9ad   : > { %v7278_v26 = vmax.f32 %v7208_v13, 0.0  ;;  %v7528_v41 = vmax.f32 %v7458_v35, 0.0  ;;  %v18907_v13 = vld [vmem:[#allocation63_spill] sm:$0xff] }
 0x9ae   : > { %v17736_v25 = vmul.f32 %v7279_v59, %v18905_v11  ;;  %v17739_v6 = vmul.f32 %v7529_v1, %v18905_v11 }
 0x9af   : > { %v17730_v14 = vmul.f32 %v7278_v26, %v18904_v23  ;;  %v17733_v15 = vmul.f32 %v7528_v41, %v18904_v23 }
 0x9b1   : > { %v11320_v22 = vpop.f32.mrb[174].mxu0  ;;  %v11388_v31 = vpop.f32.mrb[14].mxu1  ;;  %11435 = vmatprep.mubr.msk.f32.mxu0 %vm2565_vm3, %v17730_v14  ;;  %11591 = vmatprep.mubr.msk.f32.mxu1 %vm2565_vm3, %v17733_v15 }
 0x9b2   : > { %v7223_v44 = vadd.f32 %v11320_v22, %v17555_v5  ;;  %v7473_v40 = vadd.f32 %v11388_v31, %v17555_v5  ;;  %v7217_v19 = vpop.f32.mrb[175].mxu0  ;;  %v7467_v9 = vpop.f32.mrb[15].mxu1  ;;  %11436 = vmatmul.mubr.msk.f32.gmra.mrb[196].mxu0 %vm2565_vm3, %v17736_v25  ;;  %11592 = vmatmul.mubr.msk.f32.gmra.mrb[30].mxu1 %vm2565_vm3, %v17739_v6 }
 0x9b3   : > { %v7218_v55 = vadd.f32 %v17555_v5, %v7217_v19  ;;  %v7468_v57 = vadd.f32 %v17555_v5, %v7467_v9 }
 0x9b4   : > { %v7281_v43 = vmax.f32 %v7223_v44, 0.0  ;;  %v7531_v2 = vmax.f32 %v7473_v40, 0.0 }
 0x9b5   : > { %v7280_v51 = vmax.f32 %v7218_v55, 0.0  ;;  %v7530_v20 = vmax.f32 %v7468_v57, 0.0  ;;  %v18908_v57 = vld [vmem:[#allocation69_spill] sm:$0xff] }
 0x9b6   : > { %v17760_v35 = vmul.f32 %v7281_v43, %v18907_v13  ;;  %v17763_v59 = vmul.f32 %v7531_v2, %v18907_v13  ;;  %v18910_v2 = vld [vmem:[#allocation66_spill] sm:$0xff] }
 0x9b7   : > { %v17754_v21 = vmul.f32 %v7280_v51, %v18906_v24  ;;  %v17757_v46 = vmul.f32 %v7530_v20, %v18906_v24 }
 0x9b9   : > { %v11323_v1 = vpop.f32.mrb[176].mxu0  ;;  %v11391_v26 = vpop.f32.mrb[16].mxu1  ;;  %11438 = vmatprep.mubr.msk.f32.mxu0 %vm2565_vm3, %v17754_v21  ;;  %11594 = vmatprep.mubr.msk.f32.mxu1 %vm2565_vm3, %v17757_v46 }
 0x9ba   : > { %v7233_v41 = vadd.f32 %v11323_v1, %v17555_v5  ;;  %v7483_v23 = vadd.f32 %v11391_v26, %v17555_v5  ;;  %v7227_v11 = vpop.f32.mrb[177].mxu0  ;;  %v7477_v22 = vpop.f32.mrb[17].mxu1  ;;  %11439 = vmatmul.mubr.msk.f32.gmra.mrb[198].mxu0 %vm2565_vm3, %v17760_v35  ;;  %11595 = vmatmul.mubr.msk.f32.gmra.mrb[32].mxu1 %vm2565_vm3, %v17763_v59 }
 0x9bb   : > { %v7228_v31 = vadd.f32 %v17555_v5, %v7227_v11  ;;  %v7478_v44 = vadd.f32 %v17555_v5, %v7477_v22 }
 0x9bc   : > { %v7283_v40 = vmax.f32 %v7233_v41, 0.0  ;;  %v7533_v19 = vmax.f32 %v7483_v23, 0.0 }
 0x9bd   : > { %v7282_v9 = vmax.f32 %v7228_v31, 0.0  ;;  %v7532_v55 = vmax.f32 %v7478_v44, 0.0 }
 0x9be   : > { %v17778_v43 = vmul.f32 %v7283_v40, %v18908_v57  ;;  %v17788_v13 = vmul.f32 %v7533_v19, %v18908_v57 }
 0x9bf   : > { %v17781_v51 = vmul.f32 %v7282_v9, %v18910_v2  ;;  %v17784_v20 = vmul.f32 %v7532_v55, %v18910_v2 }
 0x9c0   : > { %18909 = vst [vmem:[#allocation88_spill] sm:$0xff] %v17778_v43  ;;  %v8851_v24 = vrot.slane %v17778_v43, 1 }
 0x9c1   : > { %v18556_v1 = vrot.slane %v17781_v51, 1  ;;  %v11326_v26 = vpop.f32.mrb[178].mxu0  ;;  %v11394_v41 = vpop.f32.mrb[18].mxu1  ;;  %11441 = vmatprep.mubr.msk.f32.mxu0 %vm2565_vm3, %v17781_v51  ;;  %11597 = vmatprep.mubr.msk.f32.mxu1 %vm2565_vm3, %v17784_v20 }
 0x9c2   : > { %v7243_v23 = vadd.f32 %v11326_v26, %v17555_v5  ;;  %v7493_v11 = vadd.f32 %v11394_v41, %v17555_v5  ;;  %v7237_v22 = vpop.f32.mrb[179].mxu0  ;;  %v7487_v31 = vpop.f32.mrb[19].mxu1  ;;  %11442 = vmatmul.mubr.msk.f32.gmra.mrb[200].mxu0 %vm2565_vm3, %v17778_v43  ;;  %11598 = vmatmul.mubr.msk.f32.gmra.mrb[34].mxu1 %vm2565_vm3, %v17788_v13  ;;  %v18912_v26 = vld [vmem:[#allocation75_spill] sm:$0xff] }
 0x9c3   : > { %v7238_v44 = vadd.f32 %v17555_v5, %v7237_v22  ;;  %v7488_v40 = vadd.f32 %v17555_v5, %v7487_v31  ;;  %v17807_v55 = vsel %vm1673_vm2, %v18556_v1, %v8851_v24 }
 0x9c4   : > { %v7285_v19 = vmax.f32 %v7243_v23, 0.0  ;;  %v7535_v9 = vmax.f32 %v7493_v11, 0.0  ;;  %18911 = vst [vmem:[#allocation26_spill] sm:$0xff] %v17807_v55 }
 0x9c5   : > { %v7284_v57 = vmax.f32 %v7238_v44, 0.0  ;;  %v7534_v2 = vmax.f32 %v7488_v40, 0.0 }
 0x9c6   : > { %v17810_v41 = vmul.f32 %v7285_v19, %v18912_v26  ;;  %v17820_v11 = vmul.f32 %v7535_v9, %v18912_v26  ;;  %v7403_v9 = vadd.f32 %v17557_v53, %v17555_v5  ;;  %v7408_v53 = vadd.f32 %v17555_v5, %v17588_v48 }
 0x9c7   : > { %v17813_v37 = vmul.f32 %v7284_v57, %v18914_v8  ;;  %v17816_v22 = vmul.f32 %v7534_v2, %v18914_v8  ;;  %v7398_v57 = vadd.f32 %v17555_v5, %v17560_v39  ;;  %v18919_v39 = vld [vmem:[#allocation83_spill] sm:$0xff] }
 0x9c8   : > { %18913 = vst [vmem:[#allocation25_spill] sm:$0xff] %v17810_v41  ;;  %v8853_v23 = vrot.slane %v17810_v41, 1  ;;  %18916 = vst [vmem:[#allocation29_spill] sm:$0xff] %v17820_v11 }
 0x9c9   : > { %18915 = vst [vmem:[#allocation30_spill] sm:$0xff] %v17813_v37  ;;  %v8852_v31 = vrot.slane %v17813_v37, 1  ;;  %v11329_v1 = vpop.f32.mrb[180].mxu0  ;;  %v11397_v55 = vpop.f32.mrb[20].mxu1  ;;  %11444 = vmatprep.mubr.msk.f32.mxu0 %vm2565_vm3, %v17813_v37  ;;  %11600 = vmatprep.mubr.msk.f32.mxu1 %vm2565_vm3, %v17816_v22 }
 0x9ca   : > { %v7253_v44 = vadd.f32 %v11329_v1, %v17555_v5  ;;  %v7503_v8 = vadd.f32 %v11397_v55, %v17555_v5  ;;  %v7247_v40 = vpop.f32.mrb[181].mxu0  ;;  %v7497_v19 = vpop.f32.mrb[21].mxu1  ;;  %11445 = vmatmul.mubr.msk.f32.gmra.mrb[202].mxu0 %vm2565_vm3, %v17810_v41  ;;  %11601 = vmatmul.mubr.msk.f32.gmra.mrb[36].mxu1 %vm2565_vm3, %v17820_v11 }
 0x9cb   : > { %v7248_v2 = vadd.f32 %v17555_v5, %v7247_v40  ;;  %v7498_v1 = vadd.f32 %v17555_v5, %v7497_v19  ;;  %v17841_v56 = vsel %vm1673_vm2, %v8851_v24, %v8852_v31  ;;  %v17845_v41 = vsel %vm1673_vm2, %v8852_v31, %v8853_v23 }
 0x9cc   : > { %v7287_v26 = vmax.f32 %v7253_v44, 0.0  ;;  %v7537_v55 = vmax.f32 %v7503_v8, 0.0  ;;  %18917 = vst [vmem:[#allocation33_spill] sm:$0xff] %v17841_v56  ;;  %18918 = vst [vmem:[#allocation32_spill] sm:$0xff] %v17845_v41  ;;  %v7517_v40 = vmax.f32 %v7403_v9, 0.0  ;;  %v7516_v19 = vmax.f32 %v7398_v57, 0.0 }
 0x9cd   : > { %v7286_v37 = vmax.f32 %v7248_v2, 0.0  ;;  %v7536_v43 = vmax.f32 %v7498_v1, 0.0  ;;  %v18921_v44 = vld [vmem:[#allocation78_spill] sm:$0xff]  ;;  %v7413_v2 = vadd.f32 %v17577_v62, %v17555_v5 }
 0x9ce   : > { %v17850_v11 = vmul.f32 %v7287_v26, %v18919_v39  ;;  %v17860_v31 = vmul.f32 %v7537_v55, %v18919_v39  ;;  %v17878_v39 = vmul.f32 %v7517_v40, %v18893_v4  ;;  %v7423_v4 = vadd.f32 %v17613_v52, %v17555_v5 }
 0x9cf   : > { %v17853_v8 = vmul.f32 %v7286_v37, %v18921_v44  ;;  %v17856_v24 = vmul.f32 %v7536_v43, %v18921_v44  ;;  %v7518_v37 = vmax.f32 %v7408_v53, 0.0  ;;  %v7418_v43 = vadd.f32 %v17555_v5, %v17624_v33 }
 0x9d0   : > { %18920 = vst [vmem:[#allocation36_spill] sm:$0xff] %v17850_v11  ;;  %v8855_v56 = vrot.slane %v17850_v11, 1  ;;  %v17881_v53 = vmul.f32 %v7516_v19, %v18892_v30 }
 0x9d1   : > { %18922 = vst [vmem:[#allocation35_spill] sm:$0xff] %v17853_v8  ;;  %v8854_v48 = vrot.slane %v17853_v8, 1  ;;  %v11332_v1 = vpop.f32.mrb[182].mxu0  ;;  %v11400_v26 = vpop.f32.mrb[22].mxu1  ;;  %11447 = vmatprep.mubr.msk.f32.mxu0 %vm2565_vm3, %v17853_v8  ;;  %11603 = vmatprep.mubr.msk.f32.mxu1 %vm2565_vm3, %v17856_v24  ;;  %v7519_v8 = vmax.f32 %v7413_v2, 0.0  ;;  %v17896_v19 = vmul.f32 %v7518_v37, %v18894_v50 }
 0x9d2   : > { %v7263_v9 = vadd.f32 %v11332_v1, %v17555_v5  ;;  %v7513_v57 = vadd.f32 %v11400_v26, %v17555_v5  ;;  %v7257_v55 = vpop.f32.mrb[183].mxu0  ;;  %v7507_v62 = vpop.f32.mrb[23].mxu1  ;;  %11448 = vmatmul.mubr.msk.f32.gmra.mrb[204].mxu0 %vm2565_vm3, %v17850_v11  ;;  %11604 = vmatmul.mubr.msk.f32.gmra.mrb[38].mxu1 %vm2565_vm3, %v17860_v31 }
 0x9d3   : > { %v7258_v33 = vadd.f32 %v17555_v5, %v7257_v55  ;;  %v7508_v44 = vadd.f32 %v17555_v5, %v7507_v62  ;;  %v17887_v41 = vsel %vm1673_vm2, %v8853_v23, %v8854_v48  ;;  %v17891_v11 = vsel %vm1673_vm2, %v8854_v48, %v8855_v56  ;;  %v18925_v62 = vld [vmem:[#allocation87_spill] sm:$0xff] }
 0x9d4   : > { %v7289_v1 = vmax.f32 %v7263_v9, 0.0  ;;  %v7539_v26 = vmax.f32 %v7513_v57, 0.0  ;;  %18923 = vst [vmem:[#allocation39_spill] sm:$0xff] %v17887_v41  ;;  %v7520_v55 = vmax.f32 %v7418_v43, 0.0  ;;  %v18924_v9 = vld [vmem:[#allocation90_spill] sm:$0xff]  ;;  %v7564_v5 = vrot.slane %v17881_v53, 7 }
 0x9d5   : > { %v7288_v30 = vmax.f32 %v7258_v33, 0.0  ;;  %v7538_v40 = vmax.f32 %v7508_v44, 0.0  ;;  %v7565_v48 = vrot.slane %v17878_v39, 7  ;;  %v17915_v37 = vmul.f32 %v7519_v8, %v18895_v47  ;;  %v10038_v8 = vld [vmem:[%s18888_s10 + $0x90] sm:$0xff] }
 0x9d6   : > { %v17899_v57 = vmul.f32 %v7289_v1, %v18924_v9  ;;  %v17902_v23 = vmul.f32 %v7539_v26, %v18924_v9  ;;  %v7521_v43 = vmax.f32 %v7423_v4, 0.0  ;;  %v7566_v44 = vrot.slane %v17896_v19, 7 }
 0x9d7   : > { %v17905_v41 = vmul.f32 %v7288_v30, %v18925_v62  ;;  %v17908_v2 = vmul.f32 %v7538_v40, %v18925_v62  ;;  %v17924_v1 = vmul.f32 %v7520_v55, %v18896_v12  ;;  %v10039_v12 = vld [vmem:[%s18888_s10 + $0x98] sm:$0xff]  ;;  %v7567_v30 = vrot.slane %v17915_v37, 7 }
 0x9d8   : > { %v8857_v52 = vrot.slane %v17899_v57, 1  ;;  %v7587_v50 = vrot.slane %v17902_v23, 7  ;;  %v17955_v40 = vmul.f32 %v7521_v43, %v18897_v36  ;;  %v7610_v55 = vsel %vm818_vm1, %v7564_v5, %v7565_v48  ;;  %v10041_v36 = vld [vmem:[%s18888_s10 + $0xa8] sm:$0xff] }
 0x9d9   : > { %v8856_v33 = vrot.slane %v17905_v41, 1  ;;  %11450 = vmatprep.mubr.msk.f32.mxu0 %vm2565_vm3, %v17905_v41  ;;  %11606 = vmatprep.mubr.msk.f32.mxu1 %vm2565_vm3, %v17908_v2  ;;  %v12229_v9 = vpack.c.bf16 %v10039_v12, %v10038_v8  ;;  %v7568_v62 = vrot.slane %v17924_v1, 7  ;;  %v7571_v12 = vrot.slane %v17659_v49, 7 }
 0x9da   : > { %11451 = vmatmul.mubr.msk.f32.gmra.mrb[206].mxu0 %vm2565_vm3, %v17899_v57  ;;  %11607 = vmatmul.mubr.msk.f32.gmra.mrb[40].mxu1 %vm2565_vm3, %v17902_v23  ;;  %v7611_v47 = vsel %vm818_vm1, %v7587_v50, %v7564_v5  ;;  %v7569_v5 = vrot.slane %v17955_v40, 7 }
 0x9db   : > { %11469 = vmatprep.mubr.msk.f32.mxu0 %vm2565_vm3, %v7611_v47  ;;  %11625 = vmatprep.mubr.msk.f32.mxu1 %vm2565_vm3, %v17570_v29  ;;  %v17945_v26 = vsel %vm1673_vm2, %v8855_v56, %v8856_v33  ;;  %v17951_v4 = vsel %vm1673_vm2, %v8856_v33, %v8857_v52  ;;  %v7609_v56 = vsel %vm818_vm1, %v7565_v48, %v7566_v44  ;;  %v10040_v33 = vld [vmem:[%s18888_s10 + $0xa0] sm:$0xff]  ;;  %v7570_v47 = vrot.slane %v17653_v60, 7 }
 0x9dc   : > { %v7608_v48 = vsel %vm818_vm1, %v7566_v44, %v7567_v30  ;;  %v12233_v43 = vpack.c.bf16 %v10041_v36, %v10040_v33  ;;  %v7607_v8 = vsel %vm818_vm1, %v7567_v30, %v7568_v62  ;;  %v10043_v44 = vld [vmem:[%s18888_s10 + $0xb8] sm:$0xff]  ;;  %v7606_v30 = vsel %vm818_vm1, %v7568_v62, %v7569_v5 }
 0x9dd   : > { %v7605_v33 = vsel %vm818_vm1, %v7569_v5, %v7570_v47  ;;  %v7604_v62 = vsel %vm818_vm1, %v7570_v47, %v7571_v12  ;;  %v7574_v36 = vrot.slane %v17707_v42, 7  ;;  %v7576_v47 = vrot.slane %v17733_v15, 7 }
 0x9de   : > { %11470 = vmatmul.mubr.msk.f32.vlgmr.msra.gmra.mrb[184].mxu0 %vm2565_vm3, %v7610_v55  ;;  %11626 = vmatmul.mubr.msk.f32.vlgmr.msra.gmra.mrb[42].mxu1 %vm2565_vm3, %v17573_v38 }
 0x9df   : > { %11472 = vmatprep.mubr.msk.f32.mxu0 %vm2565_vm3, %v7609_v56  ;;  %11628 = vmatprep.mubr.msk.f32.mxu1 %vm2565_vm3, %v17604_v0  ;;  %v7572_v56 = vrot.slane %v17679_v17, 7 }
 0x9e0   : > { %12228 = vmatpush3.bf16.msra.mxu0 %v17631_v45  ;;  %12276 = vmatpush3.bf16.msra.mxu1 %v17631_v45  ;;  %v10042_v45 = vld [vmem:[%s18888_s10 + $0xb0] sm:$0xff] }
 0x9e1   : > { %12230 = vmatprep.subr.bf16.mxu0 %v12229_v9  ;;  %12278 = vmatprep.subr.bf16.mxu1 %v12229_v9  ;;  %v12237_v55 = vpack.c.bf16 %v10043_v44, %v10042_v45  ;;  %v7603_v5 = vsel %vm818_vm1, %v7571_v12, %v7572_v56  ;;  %v7577_v45 = vrot.slane %v17739_v6, 7  ;;  %v7578_v12 = vrot.slane %v17757_v46, 7 }
 0x9e2   : > { %11473 = vmatmul.mubr.msk.f32.gmra.mrb[186].mxu0 %vm2565_vm3, %v7608_v48  ;;  %11629 = vmatmul.mubr.msk.f32.gmra.mrb[44].mxu1 %vm2565_vm3, %v17608_v16  ;;  %v7575_v48 = vrot.slane %v17714_v34, 7 }
 0x9e3   : > { %11475 = vmatprep.mubr.msk.f32.mxu0 %vm2565_vm3, %v7607_v8  ;;  %11631 = vmatprep.mubr.msk.f32.mxu1 %vm2565_vm3, %v17634_v27 }
 0x9e4   : > { %12232 = vmatpush3.bf16.msra.mxu0 %v12229_v9  ;;  %12280 = vmatpush3.bf16.msra.mxu1 %v12229_v9  ;;  %v7573_v9 = vrot.slane %v17686_v58, 7  ;;  %v7600_v44 = vsel %vm818_vm1, %v7574_v36, %v7575_v48 }
 0x9e5   : > { %12234 = vmatprep.subr.bf16.mxu0 %v12233_v43  ;;  %12282 = vmatprep.subr.bf16.mxu1 %v12233_v43 }
 0x9e6   : > { %11476 = vmatmul.mubr.msk.f32.gmra.mrb[188].mxu0 %vm2565_vm3, %v7606_v30  ;;  %11632 = vmatmul.mubr.msk.f32.gmra.mrb[46].mxu1 %vm2565_vm3, %v17638_v28  ;;  %v7601_v8 = vsel %vm818_vm1, %v7573_v9, %v7574_v36  ;;  %v7599_v30 = vsel %vm818_vm1, %v7575_v48, %v7576_v47 }
 0x9e7   : > { %11478 = vmatprep.mubr.msk.f32.mxu0 %vm2565_vm3, %v7605_v33  ;;  %11634 = vmatprep.mubr.msk.f32.mxu1 %vm2565_vm3, %v17650_v32  ;;  %v7580_v33 = vrot.slane %v17784_v20, 7 }
 0x9e8   : > { %12236 = vmatpush3.bf16.msra.mxu0 %v12233_v43  ;;  %12284 = vmatpush3.bf16.msra.mxu1 %v12233_v43  ;;  %v7602_v43 = vsel %vm818_vm1, %v7572_v56, %v7573_v9  ;;  %v7598_v56 = vsel %vm818_vm1, %v7576_v47, %v7577_v45  ;;  %v7597_v9 = vsel %vm818_vm1, %v7577_v45, %v7578_v12  ;;  %v7584_v45 = vrot.slane %v17856_v24, 7 }
 0x9e9   : > { %12238 = vmatprep.subr.bf16.mxu0 %v12237_v55  ;;  %12286 = vmatprep.subr.bf16.mxu1 %v12237_v55 }
 0x9ea   : > { %11479 = vmatmul.mubr.msk.f32.gmra.mrb[190].mxu0 %vm2565_vm3, %v7604_v62  ;;  %11635 = vmatmul.mubr.msk.f32.gmra.mrb[24].mxu1 %vm2565_vm3, %v17656_v61  ;;  %v7581_v62 = vrot.slane %v17788_v13, 7 }
 0x9eb   : > { %11481 = vmatprep.mubr.msk.f32.mxu0 %vm2565_vm3, %v7603_v5  ;;  %11637 = vmatprep.mubr.msk.f32.mxu1 %vm2565_vm3, %v17676_v3  ;;  %v7582_v5 = vrot.slane %v17816_v22, 7 }
 0x9ec   : > { %12240 = vmatpush3.bf16.msra.mxu0 %v12237_v55  ;;  %12288 = vmatpush3.bf16.msra.mxu1 %v12237_v55  ;;  %v7579_v55 = vrot.slane %v17763_v59, 7 }
 0x9ed   : > { %12242 = vmatprep.subr.bf16.mxu0 %v17432_v18 }
 0x9ee   : > { %11482 = vmatmul.mubr.msk.f32.gmra.mrb[192].mxu0 %vm2565_vm3, %v7602_v43  ;;  %11638 = vmatmul.mubr.msk.f32.gmra.mrb[26].mxu1 %vm2565_vm3, %v17683_v63  ;;  %v7596_v36 = vsel %vm818_vm1, %v7578_v12, %v7579_v55  ;;  %v7595_v48 = vsel %vm818_vm1, %v7579_v55, %v7580_v33  ;;  %v18926_v43 = vld [vmem:[#allocation29_spill] sm:$0xff]  ;;  %v7593_v12 = vsel %vm818_vm1, %v7581_v62, %v7582_v5  ;;  %v7585_v55 = vrot.slane %v17860_v31, 7 }
 0x9ef   : > { %11484 = vmatprep.mubr.msk.f32.mxu0 %vm2565_vm3, %v7601_v8  ;;  %11640 = vmatprep.mubr.msk.f32.mxu1 %vm2565_vm3, %v17704_v54  ;;  %v7583_v47 = vrot.slane %v18926_v43, 7  ;;  %v7594_v8 = vsel %vm818_vm1, %v7580_v33, %v7581_v62  ;;  %v7586_v33 = vrot.slane %v17908_v2, 7 }
 0x9f1   : > { %v7591_v62 = vsel %vm818_vm1, %v7583_v47, %v7584_v45 }
 0x9f2   : > { %11485 = vmatmul.mubr.msk.f32.gmra.mrb[194].mxu0 %vm2565_vm3, %v7600_v44  ;;  %11641 = vmatmul.mubr.msk.f32.gmra.mrb[28].mxu1 %vm2565_vm3, %v17711_v7  ;;  %v18927_v44 = vld [vmem:[#allocation88_spill] sm:$0xff] }
 0x9f3   : > { %11487 = vmatprep.mubr.msk.f32.mxu0 %vm2565_vm3, %v7599_v30  ;;  %11643 = vmatprep.mubr.msk.f32.mxu1 %vm2565_vm3, %v17730_v14  ;;  %v18928_v30 = vld [vmem:[#allocation30_spill] sm:$0xff] }
 0x9f6   : > { %11488 = vmatmul.mubr.msk.f32.gmra.mrb[196].mxu0 %vm2565_vm3, %v7598_v56  ;;  %11644 = vmatmul.mubr.msk.f32.gmra.mrb[30].mxu1 %vm2565_vm3, %v17736_v25  ;;  %v7592_v56 = vsel %vm818_vm1, %v7582_v5, %v7583_v47  ;;  %v8835_v5 = vrot.slane %v17573_v38, 1  ;;  %v7589_v47 = vsel %vm818_vm1, %v7585_v55, %v7586_v33  ;;  %v7588_v38 = vsel %vm818_vm1, %v7586_v33, %v7587_v50 }
 0x9f7   : > { %11490 = vmatprep.mubr.msk.f32.mxu0 %vm2565_vm3, %v7597_v9  ;;  %11646 = vmatprep.mubr.msk.f32.mxu1 %vm2565_vm3, %v17754_v21  ;;  %v18929_v9 = vld [vmem:[#allocation25_spill] sm:$0xff] }
 0x9fa   : > { %11491 = vmatmul.mubr.msk.f32.gmra.mrb[198].mxu0 %vm2565_vm3, %v7596_v36  ;;  %11647 = vmatmul.mubr.msk.f32.gmra.mrb[32].mxu1 %vm2565_vm3, %v17760_v35  ;;  %v18930_v36 = vld [vmem:[#allocation35_spill] sm:$0xff] }
 0x9fb   : > { %11493 = vmatprep.mubr.msk.f32.mxu0 %vm2565_vm3, %v7595_v48  ;;  %11649 = vmatprep.mubr.msk.f32.mxu1 %vm2565_vm3, %v17781_v51  ;;  %v7590_v48 = vsel %vm818_vm1, %v7584_v45, %v7585_v55  ;;  %v8837_v45 = vrot.slane %v17608_v16, 1  ;;  %v8838_v16 = vrot.slane %v17634_v27, 1  ;;  %v8840_v55 = vrot.slane %v17650_v32, 1 }
 0x9fd   : > { %v8877_v27 = vsel %vm1673_vm2, %v8837_v45, %v8838_v16 }
 0x9fe   : > { %11494 = vmatmul.mubr.msk.f32.gmra.mrb[200].mxu0 %vm2565_vm3, %v7594_v8  ;;  %11650 = vmatmul.mubr.msk.f32.gmra.mrb[34].mxu1 %vm2565_vm3, %v18927_v44  ;;  %v8834_v8 = vrot.slane %v17570_v29, 1  ;;  %v18931_v44 = vld [vmem:[#allocation36_spill] sm:$0xff] }
 0x9ff   : > { %11496 = vmatprep.mubr.msk.f32.mxu0 %vm2565_vm3, %v7593_v12  ;;  %11652 = vmatprep.mubr.msk.f32.mxu1 %vm2565_vm3, %v18928_v30  ;;  %v8836_v12 = vrot.slane %v17604_v0, 1 }
 0xa00   : > { %v8880_v30 = vsel %vm1673_vm2, %v8834_v8, %v8835_v5 }
 0xa01   : > { %v8879_v0 = vsel %vm1673_vm2, %v8835_v5, %v8836_v12  ;;  %v8878_v50 = vsel %vm1673_vm2, %v8836_v12, %v8837_v45  ;;  %v8847_v5 = vrot.slane %v17736_v25, 1  ;;  %v8849_v25 = vrot.slane %v17760_v35, 1  ;;  %v18938_v35 = vld [vmem:[#allocation32_spill] sm:$0xff] }
 0xa02   : > { %11497 = vmatmul.mubr.msk.f32.gmra.mrb[202].mxu0 %vm2565_vm3, %v7592_v56  ;;  %11653 = vmatmul.mubr.msk.f32.gmra.mrb[36].mxu1 %vm2565_vm3, %v18929_v9  ;;  %v8841_v56 = vrot.slane %v17656_v61, 1  ;;  %v18933_v61 = vld [vmem:[#allocation79_spill] sm:$0xff]  ;;  %v8843_v9 = vrot.slane %v17683_v63, 1 }
 0xa03   : > { %11499 = vmatprep.mubr.msk.f32.mxu0 %vm2565_vm3, %v7591_v62  ;;  %11655 = vmatprep.mubr.msk.f32.mxu1 %vm2565_vm3, %v18930_v36  ;;  %v18934_v36 = vld [vmem:[#allocation84_spill] sm:$0xff] }
 0xa04   : > { %v8874_v62 = vsel %vm1673_vm2, %v8840_v55, %v8841_v56 }
 0xa06   : > { %11500 = vmatmul.mubr.msk.f32.gmra.mrb[204].mxu0 %vm2565_vm3, %v7590_v48  ;;  %11656 = vmatmul.mubr.msk.f32.gmra.mrb[38].mxu1 %vm2565_vm3, %v18931_v44  ;;  %v8845_v48 = vrot.slane %v17711_v7, 1 }
 0xa07   : > { %11502 = vmatprep.mubr.msk.f32.mxu0 %vm2565_vm3, %v7589_v47  ;;  %11658 = vmatprep.mubr.msk.f32.mxu1 %vm2565_vm3, %v17905_v41  ;;  %v8839_v41 = vrot.slane %v17638_v28, 1  ;;  %v18932_v28 = vld [vmem:[#allocation81_spill] sm:$0xff] }
 0xa09   : > { %v8876_v33 = vsel %vm1673_vm2, %v8838_v16, %v8839_v41  ;;  %v8875_v32 = vsel %vm1673_vm2, %v8839_v41, %v8840_v55 }
 0xa0a   : > { %11503 = vmatmul.mubr.msk.f32.gmra.mrb[206].mxu0 %vm2565_vm3, %v7588_v38  ;;  %11659 = vmatmul.mubr.msk.f32.gmra.mrb[40].mxu1 %vm2565_vm3, %v17899_v57 }
 0xa0b   : > { %11521 = vmatprep.mubr.msk.f32.mxu0 %vm2565_vm3, %v17881_v53  ;;  %11677 = vmatprep.mubr.msk.f32.mxu1 %vm2565_vm3, %v8880_v30 }
 0xa0e   : > { %11522 = vmatmul.mubr.msk.f32.vlgmr.msra.gmra.mrb[184].mxu0 %vm2565_vm3, %v17878_v39  ;;  %11678 = vmatmul.mubr.msk.f32.vlgmr.msra.gmra.mrb[42].mxu1 %vm2565_vm3, %v8879_v0 }
 0xa0f   : > { %11524 = vmatprep.mubr.msk.f32.mxu0 %vm2565_vm3, %v17896_v19  ;;  %11680 = vmatprep.mubr.msk.f32.mxu1 %vm2565_vm3, %v8878_v50 }
 0xa10   : > { %12244 = vmatpush3.bf16.msra.mxu0 %v17432_v18  ;;  %v8842_v18 = vrot.slane %v17676_v3, 1  ;;  %v8844_v3 = vrot.slane %v17704_v54, 1  ;;  %v8846_v54 = vrot.slane %v17730_v14, 1 }
 0xa11   : > { %12246 = vmatprep.subr.bf16.mxu0 %v18932_v28 }
 0xa12   : > { %11525 = vmatmul.mubr.msk.f32.gmra.mrb[186].mxu0 %vm2565_vm3, %v17915_v37  ;;  %11681 = vmatmul.mubr.msk.f32.gmra.mrb[44].mxu1 %vm2565_vm3, %v8877_v27  ;;  %v8873_v63 = vsel %vm1673_vm2, %v8841_v56, %v8842_v18  ;;  %v8871_v7 = vsel %vm1673_vm2, %v8843_v9, %v8844_v3  ;;  %v8869_v14 = vsel %vm1673_vm2, %v8845_v48, %v8846_v54 }
 0xa13   : > { %11527 = vmatprep.mubr.msk.f32.mxu0 %vm2565_vm3, %v17924_v1  ;;  %11683 = vmatprep.mubr.msk.f32.mxu1 %vm2565_vm3, %v8876_v33 }
 0xa14   : > { %12248 = vmatpush3.bf16.msra.mxu0 %v18932_v28 }
 0xa15   : > { %12250 = vmatprep.subr.bf16.mxu0 %v18933_v61 }
 0xa16   : > { %11528 = vmatmul.mubr.msk.f32.gmra.mrb[188].mxu0 %vm2565_vm3, %v17955_v40  ;;  %11684 = vmatmul.mubr.msk.f32.gmra.mrb[46].mxu1 %vm2565_vm3, %v8875_v32 }
 0xa17   : > { %11530 = vmatprep.mubr.msk.f32.mxu0 %vm2565_vm3, %v17653_v60  ;;  %11686 = vmatprep.mubr.msk.f32.mxu1 %vm2565_vm3, %v8874_v62  ;;  %v8872_v60 = vsel %vm1673_vm2, %v8842_v18, %v8843_v9 }
 0xa18   : > { %12252 = vmatpush3.bf16.msra.mxu0 %v18933_v61 }
 0xa19   : > { %12254 = vmatprep.subr.bf16.mxu0 %v18934_v36 }
 0xa1a   : > { %11531 = vmatmul.mubr.msk.f32.gmra.mrb[190].mxu0 %vm2565_vm3, %v17659_v49  ;;  %11687 = vmatmul.mubr.msk.f32.gmra.mrb[24].mxu1 %vm2565_vm3, %v8873_v63  ;;  %v8870_v49 = vsel %vm1673_vm2, %v8844_v3, %v8845_v48 }
 0xa1b   : > { %11533 = vmatprep.mubr.msk.f32.mxu0 %vm2565_vm3, %v17679_v17  ;;  %11689 = vmatprep.mubr.msk.f32.mxu1 %vm2565_vm3, %v8872_v60  ;;  %v8848_v17 = vrot.slane %v17754_v21, 1 }
 0xa1c   : > { %12256 = vmatpush3.bf16.msra.mxu0 %v18934_v36 }
 0xa1e   : > { %11534 = vmatmul.mubr.msk.f32.gmra.mrb[192].mxu0 %vm2565_vm3, %v17686_v58  ;;  %11690 = vmatmul.mubr.msk.f32.gmra.mrb[26].mxu1 %vm2565_vm3, %v8871_v7  ;;  %v8868_v58 = vsel %vm1673_vm2, %v8846_v54, %v8847_v5 }
 0xa1f   : > { %11536 = vmatprep.mubr.msk.f32.mxu0 %vm2565_vm3, %v17707_v42  ;;  %11692 = vmatprep.mubr.msk.f32.mxu1 %vm2565_vm3, %v8870_v49  ;;  %v8867_v42 = vsel %vm1673_vm2, %v8847_v5, %v8848_v17 }
 0xa22   : > { %11537 = vmatmul.mubr.msk.f32.gmra.mrb[194].mxu0 %vm2565_vm3, %v17714_v34  ;;  %11693 = vmatmul.mubr.msk.f32.gmra.mrb[28].mxu1 %vm2565_vm3, %v8869_v14  ;;  %v8866_v34 = vsel %vm1673_vm2, %v8848_v17, %v8849_v25 }
 0xa23   : > { %11539 = vmatprep.mubr.msk.f32.mxu0 %vm2565_vm3, %v17733_v15  ;;  %11695 = vmatprep.mubr.msk.f32.mxu1 %vm2565_vm3, %v8868_v58  ;;  %v18935_v15 = vrot.slane %v17781_v51, 1  ;;  %v8881_v51 = vsel %vm1673_vm2, %v8857_v52, %v8834_v8 }
 0xa25   : > { %v8865_v21 = vsel %vm1673_vm2, %v8849_v25, %v18935_v15 }
 0xa26   : > { %11540 = vmatmul.mubr.msk.f32.gmra.mrb[196].mxu0 %vm2565_vm3, %v17739_v6  ;;  %11696 = vmatmul.mubr.msk.f32.gmra.mrb[30].mxu1 %vm2565_vm3, %v8867_v42  ;;  %v18936_v6 = vld [vmem:[#allocation26_spill] sm:$0xff] }
 0xa27   : > { %11542 = vmatprep.mubr.msk.f32.mxu0 %vm2565_vm3, %v17757_v46  ;;  %11698 = vmatprep.mubr.msk.f32.mxu1 %vm2565_vm3, %v8866_v34  ;;  %v18937_v46 = vld [vmem:[#allocation33_spill] sm:$0xff] }
 0xa2a   : > { %11543 = vmatmul.mubr.msk.f32.gmra.mrb[198].mxu0 %vm2565_vm3, %v17763_v59  ;;  %11699 = vmatmul.mubr.msk.f32.gmra.mrb[32].mxu1 %vm2565_vm3, %v8865_v21  ;;  %v18939_v59 = vld [vmem:[#allocation39_spill] sm:$0xff] }
 0xa2b   : > { %11545 = vmatprep.mubr.msk.f32.mxu0 %vm2565_vm3, %v17784_v20  ;;  %11701 = vmatprep.mubr.msk.f32.mxu1 %vm2565_vm3, %v18936_v6 }
 0xa2e   : > { %11546 = vmatmul.mubr.msk.f32.gmra.mrb[200].mxu0 %vm2565_vm3, %v17788_v13  ;;  %11702 = vmatmul.mubr.msk.f32.gmra.mrb[34].mxu1 %vm2565_vm3, %v18937_v46 }
 0xa2f   : > { %11548 = vmatprep.mubr.msk.f32.mxu0 %vm2565_vm3, %v17816_v22  ;;  %11704 = vmatprep.mubr.msk.f32.mxu1 %vm2565_vm3, %v18938_v35 }
 0xa32   : > { %11549 = vmatmul.mubr.msk.f32.gmra.mrb[202].mxu0 %vm2565_vm3, %v18926_v43  ;;  %11705 = vmatmul.mubr.msk.f32.gmra.mrb[36].mxu1 %vm2565_vm3, %v18939_v59 }
 0xa33   : > { %11551 = vmatprep.mubr.msk.f32.mxu0 %vm2565_vm3, %v17856_v24  ;;  %11707 = vmatprep.mubr.msk.f32.mxu1 %vm2565_vm3, %v17891_v11 }
 0xa36   : > { %11552 = vmatmul.mubr.msk.f32.gmra.mrb[204].mxu0 %vm2565_vm3, %v17860_v31  ;;  %11708 = vmatmul.mubr.msk.f32.gmra.mrb[38].mxu1 %vm2565_vm3, %v17945_v26 }
 0xa37   : > { %11554 = vmatprep.mubr.msk.f32.mxu0 %vm2565_vm3, %v17908_v2  ;;  %11710 = vmatprep.mubr.msk.f32.mxu1 %vm2565_vm3, %v17951_v4 }
 0xa3a   : > { %11555 = vmatmul.mubr.msk.f32.gmra.mrb[206].mxu0 %vm2565_vm3, %v17902_v23  ;;  %11711 = vmatmul.mubr.msk.f32.gmra.mrb[40].mxu1 %vm2565_vm3, %v8881_v51 }
 0xa3b   : > { %11573 = vmatprep.mubr.msk.f32.mxu0 %vm2565_vm3, %v17881_v53 }
 0xa3e   : > { %11574 = vmatmul.mubr.msk.f32.vlgmr.msra.gmra.mrb[208].mxu0 %vm2565_vm3, %v17878_v39 }
 0xa3f   : > { %11576 = vmatprep.mubr.msk.f32.mxu0 %vm2565_vm3, %v17896_v19 }
 0xa42   : > { %11577 = vmatmul.mubr.msk.f32.gmra.mrb[210].mxu0 %vm2565_vm3, %v17915_v37 }
 0xa43   : > { %11579 = vmatprep.mubr.msk.f32.mxu0 %vm2565_vm3, %v17924_v1 }
 0xa46   : > { %11580 = vmatmul.mubr.msk.f32.gmra.mrb[212].mxu0 %vm2565_vm3, %v17955_v40 }
 0xae1   : > { %v11523_v29 = vpop.f32.mrb[184].mxu0  ;;  %v18266_v20 = vpop.f32.mrb[42].mxu1 }
 0xae2   : > { %v18269_v13 = vadd.f32 %v11523_v29, %v18264_v10  ;;  %v8290_v22 = vpop.f32.mrb[185].mxu0  ;;  %v18271_v11 = vpop.f32.mrb[43].mxu1 }
 0xae3   : > { %v18274_v24 = vadd.f32 %v18264_v10, %v8290_v22 }
 0xae5   : > { %v11526_v31 = vpop.f32.mrb[186].mxu0  ;;  %v18276_v39 = vpop.f32.mrb[44].mxu1 }
 0xae6   : > { %v18279_v53 = vadd.f32 %v11526_v31, %v18264_v10  ;;  %v8300_v19 = vpop.f32.mrb[187].mxu0  ;;  %v18281_v57 = vpop.f32.mrb[45].mxu1 }
 0xae7   : > { %v18284_v23 = vadd.f32 %v18264_v10, %v8300_v19 }
 0xae9   : > { %v11529_v2 = vpop.f32.mrb[188].mxu0  ;;  %v18286_v52 = vpop.f32.mrb[46].mxu1 }
 0xaea   : > { %v18289_v37 = vadd.f32 %v11529_v2, %v18264_v10  ;;  %v8310_v1 = vpop.f32.mrb[189].mxu0  ;;  %v18291_v26 = vpop.f32.mrb[47].mxu1 }
 0xaeb   : > { %v18294_v4 = vadd.f32 %v18264_v10, %v8310_v1 }
 0xaed   : > { %v11532_v40 = vpop.f32.mrb[190].mxu0  ;;  %v11688_v43 = vpop.f32.mrb[24].mxu1 }
 0xaee   : > { %v18297_v8 = vadd.f32 %v11532_v40, %v18264_v10  ;;  %v9170_v44 = vadd.f32 %v11688_v43, %v18264_v10  ;;  %v8320_v47 = vpop.f32.mrb[191].mxu0  ;;  %v9050_v12 = vpop.f32.mrb[25].mxu1 }
 0xaef   : > { %v18301_v38 = vadd.f32 %v18264_v10, %v8320_v47  ;;  %v9169_v45 = vadd.f32 %v18264_v10, %v9050_v12 }
 0xaf0   : > { %9225 = vrot.lane.b32.xlu1 %v9170_v44, %s13054_s1 }
 0xaf1   : > { %9223 = vrot.lane.b32.xlu0 %v9169_v45, %s13054_s1  ;;  %v11535_v30 = vpop.f32.mrb[192].mxu0  ;;  %v11691_v0 = vpop.f32.mrb[26].mxu1 }
 0xaf2   : > { %v18307_v16 = vadd.f32 %v11535_v30, %v18264_v10  ;;  %v9172_v41 = vadd.f32 %v11691_v0, %v18264_v10  ;;  %v8330_v50 = vpop.f32.mrb[193].mxu0  ;;  %v9060_v55 = vpop.f32.mrb[27].mxu1 }
 0xaf3   : > { %v18311_v27 = vadd.f32 %v18264_v10, %v8330_v50  ;;  %v9171_v61 = vadd.f32 %v18264_v10, %v9060_v55 }
 0xaf5   : > { %9229 = vrot.lane.b32.xlu0 %v9172_v41, %s13054_s1  ;;  %v11538_v28 = vpop.f32.mrb[194].mxu0  ;;  %v11694_v56 = vpop.f32.mrb[28].mxu1 }
 0xaf6   : > { %v18315_v33 = vadd.f32 %v11538_v28, %v18264_v10  ;;  %v8340_v18 = vpop.f32.mrb[195].mxu0  ;;  %v9070_v32 = vpop.f32.mrb[29].mxu1  ;;  %v9174_v60 = vadd.f32 %v11694_v56, %v18264_v10 }
 0xaf7   : > { %v18319_v9 = vadd.f32 %v18264_v10, %v8340_v18  ;;  %v9173_v25 = vadd.f32 %v18264_v10, %v9070_v32 }
 0xaf9   : > { %9227 = vrot.lane.b32.xlu0 %v9171_v61, %s13054_s1  ;;  %v11541_v62 = vpop.f32.mrb[196].mxu0  ;;  %v11697_v3 = vpop.f32.mrb[30].mxu1 }
 0xafa   : > { %v18323_v63 = vadd.f32 %v11541_v62, %v18264_v10  ;;  %v8350_v36 = vpop.f32.mrb[197].mxu0  ;;  %v9080_v48 = vpop.f32.mrb[31].mxu1  ;;  %v9176_v35 = vadd.f32 %v11697_v3, %v18264_v10 }
 0xafb   : > { %v18327_v54 = vadd.f32 %v18264_v10, %v8350_v36  ;;  %v9175_v1 = vadd.f32 %v18264_v10, %v9080_v48 }
 0xafd   : > { %9233 = vrot.lane.b32.xlu0 %v9174_v60, %s13054_s1  ;;  %v11544_v7 = vpop.f32.mrb[198].mxu0  ;;  %v18330_v5 = vpop.f32.mrb[32].mxu1 }
 0xafe   : > { %v18333_v49 = vadd.f32 %v11544_v7, %v18264_v10  ;;  %v8360_v17 = vpop.f32.mrb[199].mxu0  ;;  %v9090_v14 = vpop.f32.mrb[33].mxu1 }
 0xaff   : > { %v18337_v58 = vadd.f32 %v18264_v10, %v8360_v17 }
 0xb01   : > { %9231 = vrot.lane.b32.xlu0 %v9173_v25, %s13054_s1  ;;  %v11547_v42 = vpop.f32.mrb[200].mxu0  ;;  %v11703_v34 = vpop.f32.mrb[34].mxu1 }
 0xb02   : > { %v18341_v15 = vadd.f32 %v11547_v42, %v18264_v10  ;;  %v9180_v21 = vadd.f32 %v11703_v34, %v18264_v10  ;;  %v8370_v6 = vpop.f32.mrb[201].mxu0  ;;  %v9100_v46 = vpop.f32.mrb[35].mxu1 }
 0xb03   : > { %v18346_v59 = vadd.f32 %v18264_v10, %v8370_v6  ;;  %v9179_v22 = vadd.f32 %v18264_v10, %v9100_v46 }
 0xb04   : > { %9245 = vrot.lane.b32.xlu1 %v9180_v21, %s13054_s1 }
 0xb05   : > { %9237 = vrot.lane.b32.xlu0 %v9176_v35, %s13054_s1  ;;  %v11550_v51 = vpop.f32.mrb[202].mxu0  ;;  %v11706_v29 = vpop.f32.mrb[36].mxu1 }
 0xb06   : > { %v18352_v31 = vadd.f32 %v11550_v51, %v18264_v10  ;;  %v8380_v19 = vpop.f32.mrb[203].mxu0  ;;  %v9110_v2 = vpop.f32.mrb[37].mxu1  ;;  %v9182_v47 = vadd.f32 %v11706_v29, %v18264_v10  ;;  %v9178_v51 = vadd.f32 %v18330_v5, %v18264_v10 }
 0xb07   : > { %v18356_v40 = vadd.f32 %v18264_v10, %v8380_v19  ;;  %v9181_v55 = vadd.f32 %v18264_v10, %v9110_v2 }
 0xb08   : > { %9243 = vrot.lane.b32.xlu1 %v9179_v22, %s13054_s1 }
 0xb09   : > { %9235 = vrot.lane.b32.xlu0 %v9175_v1, %s13054_s1  ;;  %v11553_v43 = vpop.f32.mrb[204].mxu0  ;;  %v11709_v44 = vpop.f32.mrb[38].mxu1 }
 0xb0a   : > { %v18362_v12 = vadd.f32 %v11553_v43, %v18264_v10  ;;  %v8390_v45 = vpop.f32.mrb[205].mxu0  ;;  %v9120_v30 = vpop.f32.mrb[39].mxu1 }
 0xb0b   : > { %v18365_v0 = vadd.f32 %v18264_v10, %v8390_v45  ;;  %v9183_v62 = vadd.f32 %v18264_v10, %v9120_v30 }
 0xb0c   : > { %9249 = vrot.lane.b32.xlu1 %v9182_v47, %s13054_s1 }
 0xb0d   : > { %v11556_v41 = vpop.f32.mrb[206].mxu0  ;;  %v11712_v50 = vpop.f32.mrb[40].mxu1 }
 0xb0e   : > { %v18370_v28 = vadd.f32 %v11556_v41, %v18264_v10  ;;  %v8400_v56 = vpop.f32.mrb[207].mxu0  ;;  %v9130_v18 = vpop.f32.mrb[41].mxu1 }
 0xb0f   : > { %v18373_v32 = vadd.f32 %v18264_v10, %v8400_v56  ;;  %v9185_v29 = vadd.f32 %v18264_v10, %v9130_v18 }
 0xb10   : > { %9247 = vrot.lane.b32.xlu1 %v9181_v55, %s13054_s1 }
 0xb11   : > { %v11575_v61 = vpop.f32.mrb[208].mxu0 }
 0xb12   : > { %v12297_v3 = vadd.f32 %v18266_v20, %v11575_v61  ;;  %v8530_v36 = vpop.f32.mrb[209].mxu0 }
 0xb13   : > { %v12298_v48 = vadd.f32 %v18271_v11, %v8530_v36 }
 0xb14   : > { %9251 = vrot.lane.b32.xlu1 %v9183_v62, %s13054_s1  ;;  %v9164_v17 = vadd.f32 %v12297_v3, %v18264_v10 }
 0xb15   : > { %v9163_v60 = vadd.f32 %v12298_v48, %v18264_v10  ;;  %v11578_v7 = vpop.f32.mrb[210].mxu0 }
 0xb16   : > { %v12299_v25 = vadd.f32 %v18276_v39, %v11578_v7  ;;  %v8540_v42 = vpop.f32.mrb[211].mxu0  ;;  %v9177_v39 = vadd.f32 %v18264_v10, %v9090_v14  ;;  %v9186_v14 = vadd.f32 %v11712_v50, %v18264_v10 }
 0xb17   : > { %v12300_v34 = vadd.f32 %v18281_v57, %v8540_v42  ;;  %9211 = vrot.lane.b32.xlu0 %v9163_v60, %s13054_s1 }
 0xb18   : > { %9213 = vrot.lane.b32.xlu1 %v9164_v17, %s13054_s1  ;;  %v9166_v11 = vadd.f32 %v12299_v25, %v18264_v10 }
 0xb19   : > { %v9165_v20 = vadd.f32 %v12300_v34, %v18264_v10  ;;  %v11581_v21 = vpop.f32.mrb[212].mxu0 }
 0xb1a   : > { %v12301_v6 = vadd.f32 %v18286_v52, %v11581_v21  ;;  %v8550_v46 = vpop.f32.mrb[213].mxu0  ;;  %v9184_v52 = vadd.f32 %v11709_v44, %v18264_v10 }
 0xb1b   : > { %v12302_v35 = vadd.f32 %v18291_v26, %v8550_v46  ;;  %9215 = vrot.lane.b32.xlu0 %v9165_v20, %s13054_s1 }
 0xb1c   : > { %9217 = vrot.lane.b32.xlu1 %v9166_v11, %s13054_s1  ;;  %v9168_v57 = vadd.f32 %v12301_v6, %v18264_v10 }
 0xb1d   : > { %v9167_v26 = vadd.f32 %v12302_v35, %v18264_v10 }
 0xb1f   : > { %9239 = vrot.lane.b32.xlu0 %v9177_v39, %s13054_s1 }
 0xb20   : > { %9221 = vrot.lane.b32.xlu1 %v9168_v57, %s13054_s1 }
 0xb23   : > { %9241 = vrot.lane.b32.xlu0 %v9178_v51, %s13054_s1 }
 0xb24   : > { %9253 = vrot.lane.b32.xlu1 %v9184_v52, %s13054_s1 }
 0xb27   : > { %9219 = vrot.lane.b32.xlu0 %v9167_v26, %s13054_s1 }
 0xb28   : > { %9255 = vrot.lane.b32.xlu1 %v9185_v29, %s13054_s1 }
 0xb2c   : > { %9257 = vrot.lane.b32.xlu1 %v9186_v14, %s13054_s1 }
 0xb62   : > { %v9226_v2 = vpop.permute.xlu1 %9225 }
 0xb63   : > { %v9224_v22 = vpop.permute.xlu0 %9223 }
 0xb67   : > { %v9230_v5 = vpop.permute.xlu0 %9229 }
 0xb6b   : > { %v9228_v19 = vpop.permute.xlu0 %9227 }
 0xb6f   : > { %v9234_v1 = vpop.permute.xlu0 %9233 }
 0xb73   : > { %v9232_v44 = vpop.permute.xlu0 %9231 }
 0xb76   : > { %v9246_v43 = vpop.permute.xlu1 %9245 }
 0xb77   : > { %v9300_v41 = vsel %vm862_vm0, %v18341_v15, %v9246_v43  ;;  %v9238_v55 = vpop.permute.xlu0 %9237 }
 0xb7a   : > { %v9244_v47 = vpop.permute.xlu1 %9243 }
 0xb7b   : > { %v9299_v45 = vsel %vm862_vm0, %v18346_v59, %v9244_v47  ;;  %v9236_v56 = vpop.permute.xlu0 %9235 }
 0xb7c   : > { %9339 = vxpose.xlu1.b32.start [1/8] (short) (narrow) %v9299_v45, 16 }
 0xb7e   : > { %v9250_v30 = vpop.permute.xlu1 %9249 }
 0xb7f   : > { %v9302_v61 = vsel %vm862_vm0, %v18352_v31, %v9250_v30 }
 0xb80   : > { %9340 = vxpose.xlu1.b32.cont [2/8] (short) (narrow) %v9300_v41, 16 }
 0xb82   : > { %v9248_v10 = vpop.permute.xlu1 %9247 }
 0xb83   : > { %v9301_v50 = vsel %vm862_vm0, %v18356_v40, %v9248_v10 }
 0xb84   : > { %9341 = vxpose.xlu1.b32.cont [3/8] (short) (narrow) %v9301_v50, 16 }
 0xb86   : > { %v9252_v18 = vpop.permute.xlu1 %9251 }
 0xb87   : > { %v9303_v15 = vsel %vm862_vm0, %v18365_v0, %v9252_v18 }
 0xb88   : > { %9342 = vxpose.xlu1.b32.cont [4/8] (short) (narrow) %v9302_v61, 16 }
 0xb89   : > { %v9212_v62 = vpop.permute.xlu0 %9211 }
 0xb8a   : > { %v9214_v59 = vpop.permute.xlu1 %9213  ;;  %v9283_v3 = vsel %vm862_vm0, %v18274_v24, %v9212_v62 }
 0xb8b   : > { %9307 = vxpose.xlu0.b32.start [1/16] (narrow) %v9283_v3, 16  ;;  %v9284_v40 = vsel %vm862_vm0, %v18269_v13, %v9214_v59 }
 0xb8c   : > { %9343 = vxpose.xlu1.b32.cont [5/8] (short) (narrow) %v9303_v15, 16 }
 0xb8d   : > { %v9216_v36 = vpop.permute.xlu0 %9215 }
 0xb8e   : > { %v9218_v48 = vpop.permute.xlu1 %9217  ;;  %v9285_v31 = vsel %vm862_vm0, %v18284_v23, %v9216_v36 }
 0xb8f   : > { %9308 = vxpose.xlu0.b32.cont [2/16] (narrow) %v9284_v40, 16  ;;  %v9286_v24 = vsel %vm862_vm0, %v18279_v53, %v9218_v48 }
 0xb91   : > { %v9240_v60 = vpop.permute.xlu0 %9239 }
 0xb92   : > { %v9222_v7 = vpop.permute.xlu1 %9221 }
 0xb93   : > { %9309 = vxpose.xlu0.b32.cont [3/16] (narrow) %v9285_v31, 16  ;;  %v9288_v20 = vsel %vm862_vm0, %v18289_v37, %v9222_v7  ;;  %v9292_v37 = vsel %vm862_vm0, %v18307_v16, %v9230_v5  ;;  %v9297_v16 = vsel %vm862_vm0, %v18337_v58, %v9240_v60 }
 0xb95   : > { %v9242_v17 = vpop.permute.xlu0 %9241 }
 0xb96   : > { %v9254_v25 = vpop.permute.xlu1 %9253 }
 0xb97   : > { %v9304_v0 = vsel %vm862_vm0, %v18362_v12, %v9254_v25  ;;  %9310 = vxpose.xlu0.b32.cont [4/16] (narrow) %v9286_v24, 16  ;;  %v9289_v12 = vsel %vm862_vm0, %v18301_v38, %v9224_v22  ;;  %v9294_v38 = vsel %vm862_vm0, %v18315_v33, %v9234_v1 }
 0xb98   : > { %9344 = vxpose.xlu1.b32.cont [6/8] (short) (narrow) %v9304_v0, 16 }
 0xb99   : > { %v9220_v42 = vpop.permute.xlu0 %9219 }
 0xb9a   : > { %v9287_v13 = vsel %vm862_vm0, %v18294_v4, %v9220_v42  ;;  %v9256_v34 = vpop.permute.xlu1 %9255  ;;  %v9290_v4 = vsel %vm862_vm0, %v18297_v8, %v9226_v2  ;;  %v9295_v8 = vsel %vm862_vm0, %v18327_v54, %v9236_v56 }
 0xb9b   : > { %v9305_v23 = vsel %vm862_vm0, %v18373_v32, %v9256_v34  ;;  %9311 = vxpose.xlu0.b32.cont [5/16] (narrow) %v9287_v13, 16  ;;  %v9291_v32 = vsel %vm862_vm0, %v18311_v27, %v9228_v19  ;;  %v9296_v27 = vsel %vm862_vm0, %v18323_v63, %v9238_v55 }
 0xb9c   : > { %9345 = vxpose.xlu1.b32.cont [7/8] (short) (narrow) %v9305_v23, 16 }
 0xb9e   : > { %v9258_v53 = vpop.permute.xlu1 %9257 }
 0xb9f   : > { %v9306_v21 = vsel %vm862_vm0, %v18370_v28, %v9258_v53  ;;  %9312 = vxpose.xlu0.b32.cont [6/16] (narrow) %v9288_v20, 16  ;;  %v9293_v28 = vsel %vm862_vm0, %v18319_v9, %v9232_v44  ;;  %v9298_v9 = vsel %vm862_vm0, %v18333_v49, %v9242_v17 }
 0xba0   : > { %9346 = vxpose.xlu1.b32.end [8/8] (short) (narrow) %v9306_v21, 16 }
 0xba3   : > { %9313 = vxpose.xlu0.b32.cont [7/16] (narrow) %v9289_v12, 16 }
 0xba7   : > { %9314 = vxpose.xlu0.b32.cont [8/16] (narrow) %v9290_v4, 16 }
 0xbab   : > { %9315 = vxpose.xlu0.b32.cont [9/16] (narrow) %v9291_v32, 16 }
 0xbaf   : > { %9316 = vxpose.xlu0.b32.cont [10/16] (narrow) %v9292_v37, 16 }
 0xbb3   : > { %9317 = vxpose.xlu0.b32.cont [11/16] (narrow) %v9293_v28, 16 }
 0xbb7   : > { %9318 = vxpose.xlu0.b32.cont [12/16] (narrow) %v9294_v38, 16 }
 0xbbb   : > { %9319 = vxpose.xlu0.b32.cont [13/16] (narrow) %v9295_v8, 16 }
 0xbbf   : > { %9320 = vxpose.xlu0.b32.cont [14/16] (narrow) %v9296_v27, 16 }
 0xbc3   : > { %9321 = vxpose.xlu0.b32.cont [15/16] (narrow) %v9297_v16, 16 }
 0xbc7   : > { %9322 = vxpose.xlu0.b32.end [16/16] (narrow) %v9298_v9, 16 }
 0xc04   : > { %v9355_v33 = vpop.trf.xlu1 }
 0xc05   : > { %9372 = vst.msk [vmem:[%s671_s9 + $0x8] sm:$0xff] %vm2565_vm3, %v9355_v33 }
 0xc08   : > { %v9356_v63 = vpop.trf.xlu1 }
 0xc09   : > { %9374 = vst.msk [vmem:[%s671_s9 + $0x18] sm:$0xff] %vm2565_vm3, %v9356_v63 }
 0xc0b   : > { %v9323_v54 = vpop.trf.xlu0 }
 0xc0c   : > { %9371 = vst [vmem:[%s671_s9] sm:$0xff] %v9323_v54 }
 0xc0f   : > { %v9324_v58 = vpop.trf.xlu0 }
 0xc10   : > { %9373 = vst [vmem:[%s671_s9 + $0x10] sm:$0xff] %v9324_v58 }
 0xc11 PF: > { %s18941_s18 = sld [smem:[#allocation21_spill]] }
 0xc17   : > { %s32_s24 = sadd.s32 1, %s18941_s18  }
 0xc18   : > { %p29_p12 = scmp.ge.s32.totalorder %s32_s24, 4  }
 0xc1a   :  { %31 = sbr.rel (!%p29_p12) target bundleno = 12 (0xc), region = 166 }
 0xc21   :  { %9396 = vsyncpa [#allocation3], 1 }
 0xc22   :  { %9398 = vsyncpa [#allocation3 + $0x1], 1 }
 0xc23   :  { %9399 = vsyncpa [#allocation5], 1 }
 0xc24   :  { %9400 = vsyncpa [#allocation8], 1 }
 0xc25   :  { %9401 = vsyncpa [#allocation11], 1 }
 0xc26   :  { %9402 = vsyncpa [#allocation14], 1 }

</bundles_post_ra>
